<compile_context>
chip_gen: v7x
topology: tpu7x:2x2x1
jax: 0.10.0
libtpu: 0.0.40
codegen_flags: <defaults>
</compile_context>

<pallas_src>
import math

import jax
import jax.numpy as jnp
from jax.experimental import pallas as pl
from jax.experimental.pallas import tpu as pltpu


# -----------------------------------------------------------------------------
# Architecture config: reResnet(args, layers=[1,1,1,1], kernel_sizes=[7]*4,
# planes=[32,64,128,256], strides=[1,2,2,2]), norm_type='bn', eval mode.
# -----------------------------------------------------------------------------
LAYERS       = [1, 1, 1, 1]
KERNEL_SIZES = [7, 7, 7, 7]
PLANES       = [32, 64, 128, 256]
STRIDES      = [1, 2, 2, 2]
N_CLASSES    = 3
N_CHANNELS   = 4
SEQ_LEN      = 256
BATCH        = 2
BN_EPS       = 1e-5

STEM_K, STEM_STRIDE, STEM_PAD, STEM_PLANES = 13, 2, 3, 32
POOL_K, POOL_STRIDE, POOL_PAD = 3, 3, 1

ACT_DTYPE = jnp.bfloat16     # matmul-input dtype (weights + activation taps)
SHIFT_W   = 256              # lane width of the packed per-channel shift table
FUSE_CIN  = 128              # fuse K taps into one matmul when C_in >= this


def _out_len(L, k, s, p):
    return (L + 2 * p - k) // s + 1


def _align8(n):
    return ((n + 7) // 8) * 8


# -----------------------------------------------------------------------------
# In-kernel math
# -----------------------------------------------------------------------------
_SQRT_HALF = 0.7071067811865476


def _erf(x):
    # Abramowitz & Stegun 7.1.26 (|abs err| < ~1.5e-7).  exp() lands on the
    # EUP; the reciprocal uses the exact path so the error bound holds.
    p = 0.3275911
    a1, a2, a3, a4, a5 = (0.254829592, -0.284496736, 1.421413741,
                          -1.453152027, 1.061405429)
    s = jnp.where(x >= 0.0, 1.0, -1.0)
    ax = jnp.abs(x)
    t = pl.reciprocal(1.0 + p * ax, approx=False)
    poly = ((((a5 * t + a4) * t + a3) * t + a2) * t + a1) * t
    return s * (1.0 - poly * jnp.exp(-ax * ax))


def _gelu(x):
    # nn.GELU() default (approximate='none'): 0.5 * x * (1 + erf(x / sqrt(2)))
    return 0.5 * x * (1.0 + _erf(x * _SQRT_HALF))


def _stage_padded(pad_ref, x, pad, L_valid, fill=0.0):
    """Stage a channels-last activation into a padded VMEM scratch ref.

    Rows of pad_ref after this call:
      [0, pad)              : `fill`      (top halo)
      [pad, pad + L_valid)  : first L_valid (valid) rows of x
      [pad + L_valid, end)  : `fill`      (bottom halo + alignment tail)
    x may carry alignment-garbage rows beyond L_valid; they are written first
    and then overwritten by the tail fill, so EVERY row of pad_ref is defined.
    Pure ref stores — no jnp.concatenate / value copies.
    """
    rows, cols = pad_ref.shape
    dt = pad_ref.dtype
    if pad > 0:
        pad_ref[0:pad, :] = jnp.full((pad, cols), fill, dt)
    pad_ref[pad:pad + x.shape[0], :] = x.astype(dt)
    tail0 = pad + L_valid
    pad_ref[tail0:rows, :] = jnp.full((rows - tail0, cols), fill, dt)


def _conv_taps_fused(pad_ref, tap_ref, w_ref, *, K, C_in, stride, L_out_a):
    """Build an (L_out_a, K*C_in) tap matrix once, then ONE MXU matmul with
    contraction K*C_in (accumulation stays inside the MXU)."""
    for k in range(K):
        if stride == 1:
            win = pad_ref[k:k + L_out_a, :]
        else:
            win = pad_ref[pl.ds(k, L_out_a, stride=stride), :]
        tap_ref[:, k * C_in:(k + 1) * C_in] = win          # lane-aligned columns
    return jnp.dot(tap_ref[...].astype(ACT_DTYPE), w_ref[...],
                   preferred_element_type=jnp.float32)


def _conv_taps_split(pad_ref, w_ref, *, K, stride, L_out_a):
    """K per-tap matmuls (used when C_in is not lane-aligned: 4/32/64)."""
    acc = None
    for k in range(K):
        if stride == 1:
            win = pad_ref[k:k + L_out_a, :]
        else:
            win = pad_ref[pl.ds(k, L_out_a, stride=stride), :]
        d = jnp.dot(win.astype(ACT_DTYPE), w_ref[k],
                    preferred_element_type=jnp.float32)
        acc = d if acc is None else acc + d
    return acc


def _maxpool(pool_ref, x, L_valid, L_out_a):
    """MaxPool1d(kernel=3, stride=3, padding=1) via a -inf padded scratch ref."""
    _stage_padded(pool_ref, x, POOL_PAD, L_valid, fill=-jnp.inf)
    y = pool_ref[pl.ds(0, L_out_a, stride=POOL_STRIDE), :]
    for k in range(1, POOL_K):
        y = jnp.maximum(y, pool_ref[pl.ds(k, L_out_a, stride=POOL_STRIDE), :])
    return y


# -----------------------------------------------------------------------------
# Static shape / scratch plan (shared by the kernel, weight prep and the ref)
# -----------------------------------------------------------------------------
def build_plan():
    scratch = []

    def add_scratch(shape, dtype):
        scratch.append(pltpu.VMEM(shape, dtype))
        return len(scratch) - 1

    def conv_plan(L_in, C_in, C_out, K, stride, pad, ds_read=False):
        L_out = _out_len(L_in, K, stride, pad)
        L_out_a = _align8(L_out)
        rows = max(L_in + 2 * pad,                    # true padded extent
                   pad + _align8(L_in),               # aligned interior store
                   K + stride * (L_out_a - 1))        # aligned tap reads
        if ds_read:
            rows = max(rows, pad + stride * (L_out_a - 1) + 1)
        fused = C_in >= FUSE_CIN
        cp = dict(K=K, stride=stride, pad=pad, C_in=C_in, C_out=C_out,
                  L_in=L_in, L_out=L_out, L_out_a=L_out_a, fused=fused,
                  pad_scr=add_scratch((_align8(rows), C_in), jnp.float32))
        if fused:
            cp["tap_scr"] = add_scratch((L_out_a, K * C_in), jnp.float32)
        return cp

    def pool_plan(L_in, C):
        L_out = _out_len(L_in, POOL_K, POOL_STRIDE, POOL_PAD)
        L_out_a = _align8(L_out)
        rows = max(L_in + 2 * POOL_PAD, POOL_PAD + _align8(L_in),
                   POOL_K + POOL_STRIDE * (L_out_a - 1))
        return dict(L_in=L_in, L_out=L_out, L_out_a=L_out_a,
                    scr=add_scratch((_align8(rows), C), jnp.float32))

    plan = {"stem": conv_plan(SEQ_LEN, N_CHANNELS, STEM_PLANES,
                              STEM_K, STEM_STRIDE, STEM_PAD)}
    L, C = plan["stem"]["L_out"], STEM_PLANES
    n_groups = len(LAYERS)
    blocks = []
    for i in range(n_groups):
        planes, ksz, st = PLANES[i], KERNEL_SIZES[i], STRIDES[i]
        pad = ksz // 2
        b = {"stride": st, "has_ds": (st != 1 or C != planes)}
        if i >= n_groups - 2:                         # maxpool before last 2 groups
            b["pool"] = pool_plan(L, C)
            L = b["pool"]["L_out"]
        else:
            b["pool"] = None
        b["conv1"] = conv_plan(L, C, planes, ksz, st, pad, ds_read=b["has_ds"])
        L = b["conv1"]["L_out"]
        b["conv2"] = conv_plan(L, planes, planes, ksz, 1, pad)
        C = planes
        blocks.append(b)
    plan["blocks"] = blocks
    plan["final_L"] = L
    plan["final_C"] = C
    plan["scratch_shapes"] = scratch
    return plan


# -----------------------------------------------------------------------------
# Fused kernel
# -----------------------------------------------------------------------------
def _make_kernel(plan, n_weights):
    stem = plan["stem"]
    blocks = plan["blocks"]
    final_L = plan["final_L"]
    fc_row = plan["fc_shift_row"]

    def conv(x, cp, w, shifts_ref, scr, gelu):
        """Channels-last Conv1d(bias=False) + folded-BN shift [+ GELU]."""
        pad_ref = scr[cp["pad_scr"]]
        _stage_padded(pad_ref, x, cp["pad"], cp["L_in"], fill=0.0)
        w_ref = w[cp["w_idx"]]
        if cp["fused"]:
            acc = _conv_taps_fused(pad_ref, scr[cp["tap_scr"]], w_ref,
                                   K=cp["K"], C_in=cp["C_in"],
                                   stride=cp["stride"], L_out_a=cp["L_out_a"])
        else:
            acc = _conv_taps_split(pad_ref, w_ref, K=cp["K"],
                                   stride=cp["stride"], L_out_a=cp["L_out_a"])
        if cp["shift_row"] is not None:
            r = cp["shift_row"]
            acc = acc + shifts_ref[r:r + 1, :cp["C_out"]]
        if gelu:
            acc = _gelu(acc)
        return acc

    def kernel(*refs):
        x_ref = refs[0]
        w = refs[1:1 + n_weights]
        shifts_ref = refs[1 + n_weights]
        fcw_ref = refs[2 + n_weights]
        o_ref = refs[3 + n_weights]
        scr = refs[4 + n_weights:]

        # One batch element, channels-last (L, C); whole forward stays in VMEM.
        x = x_ref[0]

        # stem: Conv1d(C_in, 32, k=13, s=2, p=3, bias=False) — no BN / activation
        x = conv(x, stem, w, shifts_ref, scr, gelu=False)

        for b in blocks:
            if b["pool"] is not None:                 # MaxPool1d(3, 3, padding=1)
                pp = b["pool"]
                x = _maxpool(scr[pp["scr"]], x, pp["L_in"], pp["L_out_a"])
            cp1, cp2 = b["conv1"], b["conv2"]
            # out = dropout(gelu(bn1(conv1(x))))       (dropout == identity, eval)
            out = conv(x, cp1, w, shifts_ref, scr, gelu=True)
            # out = dropout(gelu(bn0(conv2(out))))
            out = conv(out, cp2, w, shifts_ref, scr, gelu=True)
            # identity = downsample(x) = BN(Conv1d(k=1, stride))   or   x
            if b["has_ds"]:
                pad_ref = scr[cp1["pad_scr"]]         # still holds staged x
                st, pad, Lo = cp1["stride"], cp1["pad"], cp1["L_out_a"]
                if st == 1:
                    xs = pad_ref[pad:pad + Lo, :]
                else:
                    xs = pad_ref[pl.ds(pad, Lo, stride=st), :]
                r = b["ds_shift_row"]
                identity = (jnp.dot(xs.astype(ACT_DTYPE), w[b["ds_w_idx"]][...],
                                    preferred_element_type=jnp.float32)
                            + shifts_ref[r:r + 1, :cp1["C_out"]])
            else:
                identity = x
            x = out + identity

        # head: GELU -> AdaptiveAvgPool1d(1) -> flatten -> Linear(256, n_classes)
        y = _gelu(x)
        rows = jax.lax.broadcasted_iota(jnp.int32, y.shape, 0)
        y = jnp.where(rows < final_L, y, 0.0)         # mask alignment-tail rows
        m = jnp.sum(y, axis=0, keepdims=True) * (1.0 / final_L)     # (1, C)
        logits = (jnp.dot(m, fcw_ref[...], preferred_element_type=jnp.float32)
                  + shifts_ref[fc_row:fc_row + 1, :N_CLASSES])
        o_ref[0] = logits.astype(o_ref.dtype)

    return kernel


def _const_spec(shape):
    zeros = (0,) * len(shape)
    return pl.BlockSpec(shape, lambda b: zeros)


# -----------------------------------------------------------------------------
# reResnet.forward_bn (inference) — single fused pallas_call
# -----------------------------------------------------------------------------
def reresnet_forward(x, weights, shifts, fc_w, plan, target_y=None):
    B = x.shape[0]
    C_in, L0 = x.shape[2], x.shape[3]
    assert (C_in, L0) == (N_CHANNELS, SEQ_LEN), (C_in, L0)
    # x.squeeze(1) -> [B, C, L]; channels-last [B, L, C] so C_out lands in lanes.
    x_cl = jnp.transpose(x.reshape(B, C_in, L0), (0, 2, 1))

    kernel = _make_kernel(plan, len(weights))

    in_specs = [pl.BlockSpec((1, L0, C_in), lambda b: (b, 0, 0))]
    in_specs += [_const_spec(wa.shape) for wa in weights]
    in_specs += [_const_spec(shifts.shape), _const_spec(fc_w.shape)]

    out = pl.pallas_call(
        kernel,
        out_shape=jax.ShapeDtypeStruct((B, 1, N_CLASSES), jnp.float32),
        grid=(B,),
        in_specs=in_specs,
        out_specs=pl.BlockSpec((1, 1, N_CLASSES), lambda b: (b, 0, 0)),
        scratch_shapes=plan["scratch_shapes"],
        compiler_params=pltpu.CompilerParams(
            dimension_semantics=("parallel",),
            vmem_limit_bytes=32 * 1024 * 1024),
    )(x_cl, *weights, shifts, fc_w)
    return out.reshape(B, N_CLASSES), target_y


# -----------------------------------------------------------------------------
# Parameter construction (deterministic, synthetic) + one-time inference fold
# -----------------------------------------------------------------------------
def _conv_w(key, c_out, c_in, k):
    return jax.random.normal(key, (c_out, c_in, k), jnp.float32) / math.sqrt(c_in * k)


def _bn_params(key, c):
    k1, k2, k3, k4 = jax.random.split(key, 4)
    gamma = 1.0 + 0.1 * jax.random.normal(k1, (c,), jnp.float32)
    beta = 0.1 * jax.random.normal(k2, (c,), jnp.float32)
    running_mean = 0.05 * jax.random.normal(k3, (c,), jnp.float32)
    running_var = 1.0 + 0.1 * jnp.abs(jax.random.normal(k4, (c,), jnp.float32))
    return gamma, beta, running_mean, running_var


def build_params(key):
    """Raw parameters in PyTorch layout (conv: (C_out,C_in,K); BN: g/b/mean/var)."""
    params = {}
    key, k0 = jax.random.split(key)
    params["conv1_w"] = _conv_w(k0, STEM_PLANES, N_CHANNELS, STEM_K)
    inplanes = STEM_PLANES
    blocks = []
    for i in range(len(LAYERS)):
        p, ksz, st = PLANES[i], KERNEL_SIZES[i], STRIDES[i]
        key, k1, k2, k3, k4 = jax.random.split(key, 5)
        blk = {"w1": _conv_w(k1, p, inplanes, ksz), "bn1": _bn_params(k2, p),
               "w2": _conv_w(k3, p, p, ksz),        "bn0": _bn_params(k4, p)}
        if st != 1 or inplanes != p:                  # downsample: conv1x1 + BN
            key, k5, k6 = jax.random.split(key, 3)
            blk["dw"] = _conv_w(k5, p, inplanes, 1)
            blk["dbn"] = _bn_params(k6, p)
        blocks.append(blk)
        inplanes = p
    params["blocks"] = blocks
    key, kf1, kf2 = jax.random.split(key, 3)
    params["fc_w"] = jax.random.normal(kf1, (N_CLASSES, 256), jnp.float32) / math.sqrt(256.0)
    params["fc_b"] = 0.01 * jax.random.normal(kf2, (N_CLASSES,), jnp.float32)
    return params


def prepare_inference_params(params, plan):
    """One-time eval-mode fold:
       * BN scale folded into conv weights in f32, then cast to bf16;
       * conv weights channels-last (K,C_in,C_out), flattened to (K*C_in,C_out)
         for the tap-fused convs;
       * all BN shifts + fc bias packed into ONE f32 (n_rows, 256) table.
    Weight / shift-row indices are recorded in `plan`."""
    def fold_bn(bn):
        gamma, beta, mean, var = bn
        scale = gamma / jnp.sqrt(var + BN_EPS)
        shift = beta - mean * scale
        return scale, shift

    weights, shift_rows = [], []

    def add_weight(w):
        weights.append(w.astype(ACT_DTYPE))
        return len(weights) - 1

    def add_shift(v):
        shift_rows.append(jnp.zeros((SHIFT_W,), jnp.float32).at[:v.shape[0]].set(v))
        return len(shift_rows) - 1

    def conv_cl(w, scale, fused):
        if scale is not None:
            w = w * scale[:, None, None]              # fold BN in f32 first
        w = jnp.transpose(w, (2, 1, 0))               # (K, C_in, C_out)
        if fused:
            K, C_in, C_out = w.shape
            w = w.reshape(K * C_in, C_out)
        return w

    stem = plan["stem"]
    stem["w_idx"] = add_weight(conv_cl(params["conv1_w"], None, stem["fused"]))
    stem["shift_row"] = None

    for b, blk in zip(plan["blocks"], params["blocks"]):
        s1, sh1 = fold_bn(blk["bn1"])
        s0, sh0 = fold_bn(blk["bn0"])
        b["conv1"]["w_idx"] = add_weight(conv_cl(blk["w1"], s1, b["conv1"]["fused"]))
        b["conv1"]["shift_row"] = add_shift(sh1)
        b["conv2"]["w_idx"] = add_weight(conv_cl(blk["w2"], s0, b["conv2"]["fused"]))
        b["conv2"]["shift_row"] = add_shift(sh0)
        if b["has_ds"]:
            ds, dsh = fold_bn(blk["dbn"])
            dw = (blk["dw"] * ds[:, None, None])[:, :, 0].T   # (C_in, C_out)
            b["ds_w_idx"] = add_weight(dw)
            b["ds_shift_row"] = add_shift(dsh)

    plan["fc_shift_row"] = add_shift(params["fc_b"])
    fc_w = jnp.transpose(params["fc_w"])              # (256, n_classes), f32
    shifts = jnp.stack(shift_rows, axis=0)            # (n_rows, 256), f32
    return weights, shifts, fc_w


# -----------------------------------------------------------------------------
# Pure-JAX reference (same folded bf16 weights, same matmul-input rounding)
# -----------------------------------------------------------------------------
def _ref_forward(weights, shifts, fc_w, plan, x):
    def rnd(h):                                       # bf16 rounding of matmul inputs
        return h.astype(ACT_DTYPE).astype(jnp.float32)

    def conv(h, cp, gelu):
        w = jnp.asarray(weights[cp["w_idx"]], jnp.float32)
        if cp["fused"]:
            w = w.reshape(cp["K"], cp["C_in"], cp["C_out"])
        w_oih = jnp.transpose(w, (2, 1, 0))           # (C_out, C_in, K)
        y = jax.lax.conv_general_dilated(
            jnp.transpose(rnd(h), (0, 2, 1)), w_oih,
            window_strides=(cp["stride"],), padding=[(cp["pad"], cp["pad"])],
            dimension_numbers=("NCH", "OIH", "NCH"))
        y = jnp.transpose(y, (0, 2, 1))
        if cp["shift_row"] is not None:
            y = y + shifts[cp["shift_row"], :cp["C_out"]]
        return jax.nn.gelu(y, approximate=False) if gelu else y

    def maxpool(h):
        return jax.lax.reduce_window(
            h, -jnp.inf, jax.lax.max, window_dimensions=(1, POOL_K, 1),
            window_strides=(1, POOL_STRIDE, 1),
            padding=((0, 0), (POOL_PAD, POOL_PAD), (0, 0)))

    B, _, C_in, L0 = x.shape
    h = jnp.transpose(x.reshape(B, C_in, L0), (0, 2, 1))
    h = conv(h, plan["stem"], gelu=False)
    for b in plan["blocks"]:
        if b["pool"] is not None:
            h = maxpool(h)
        out = conv(h, b["conv1"], gelu=True)
        out = conv(out, b["conv2"], gelu=True)
        if b["has_ds"]:
            dw = jnp.asarray(weights[b["ds_w_idx"]], jnp.float32)
            identity = (jnp.einsum("blc,cd->bld", rnd(h)[:, ::b["stride"], :], dw)
                        + shifts[b["ds_shift_row"], :b["conv1"]["C_out"]])
        else:
            identity = h
        h = out + identity
    h = jax.nn.gelu(h, approximate=False)
    feat = jnp.mean(h, axis=1)                        # AdaptiveAvgPool1d(1) + flatten
    return feat @ fc_w + shifts[plan["fc_shift_row"], :N_CLASSES]


# -----------------------------------------------------------------------------
if __name__ == "__main__":
    key = jax.random.PRNGKey(0)
    kp, kx = jax.random.split(key)

    params = build_params(kp)
    plan = build_plan()
    weights, shifts, fc_w = prepare_inference_params(params, plan)
    x = jax.random.normal(kx, (BATCH, 1, N_CHANNELS, SEQ_LEN), jnp.float32)

    logits, _ = reresnet_forward(x, weights, shifts, fc_w, plan)
    logits = jax.block_until_ready(logits)
    assert logits.shape == (BATCH, N_CLASSES), logits.shape
    assert bool(jnp.all(jnp.isfinite(logits)))

    ref = jax.block_until_ready(_ref_forward(weights, shifts, fc_w, plan, x))
    err = float(jnp.max(jnp.abs(logits - ref)))
    scale = float(jnp.max(jnp.abs(ref))) + 1e-6
    assert err <= 1e-2 + 1e-2 * scale, ("kernel/ref mismatch", err, logits, ref)

    print("KERNEL_OK")
</pallas_src>

<mosaic_0001>
module attributes {stable_mosaic.version = 11 : i64} {
  func.func @kernel(%arg0: i32, %arg1: memref<1x256x4xf32, #tpu.memory_space<vmem>>, %arg2: memref<13x4x32xbf16, #tpu.memory_space<vmem>>, %arg3: memref<7x32x32xbf16, #tpu.memory_space<vmem>>, %arg4: memref<7x32x32xbf16, #tpu.memory_space<vmem>>, %arg5: memref<7x32x64xbf16, #tpu.memory_space<vmem>>, %arg6: memref<7x64x64xbf16, #tpu.memory_space<vmem>>, %arg7: memref<32x64xbf16, #tpu.memory_space<vmem>>, %arg8: memref<7x64x128xbf16, #tpu.memory_space<vmem>>, %arg9: memref<896x128xbf16, #tpu.memory_space<vmem>>, %arg10: memref<64x128xbf16, #tpu.memory_space<vmem>>, %arg11: memref<896x256xbf16, #tpu.memory_space<vmem>>, %arg12: memref<1792x256xbf16, #tpu.memory_space<vmem>>, %arg13: memref<128x256xbf16, #tpu.memory_space<vmem>>, %arg14: memref<12x256xf32, #tpu.memory_space<vmem>>, %arg15: memref<256x3xf32, #tpu.memory_space<vmem>>, %arg16: memref<1x1x3xf32, #tpu.memory_space<vmem>>, %arg17: memref<272x4xf32, #tpu.memory_space<vmem>>, %arg18: memref<136x32xf32, #tpu.memory_space<vmem>>, %arg19: memref<136x32xf32, #tpu.memory_space<vmem>>, %arg20: memref<136x32xf32, #tpu.memory_space<vmem>>, %arg21: memref<72x64xf32, #tpu.memory_space<vmem>>, %arg22: memref<72x64xf32, #tpu.memory_space<vmem>>, %arg23: memref<40x64xf32, #tpu.memory_space<vmem>>, %arg24: memref<24x128xf32, #tpu.memory_space<vmem>>, %arg25: memref<16x896xf32, #tpu.memory_space<vmem>>, %arg26: memref<24x128xf32, #tpu.memory_space<vmem>>, %arg27: memref<24x128xf32, #tpu.memory_space<vmem>>, %arg28: memref<8x896xf32, #tpu.memory_space<vmem>>, %arg29: memref<16x256xf32, #tpu.memory_space<vmem>>, %arg30: memref<8x1792xf32, #tpu.memory_space<vmem>>) attributes {dimension_semantics = [#tpu.dimension_semantics<parallel>], iteration_bounds = array<i64: 2>, scalar_prefetch = 0 : i64, scratch_operands = 14 : i64, tpu.core_type = #tpu.core_type<tc>, window_params = [{transform_indices = @transform_0, window_bounds = array<i64: 1, 256, 4>}, {pipeline_mode = #tpu.pipeline_mode<synchronous>, transform_indices = @transform_1, window_bounds = array<i64: 13, 4, 32>}, {pipeline_mode = #tpu.pipeline_mode<synchronous>, transform_indices = @transform_2, window_bounds = array<i64: 7, 32, 32>}, {pipeline_mode = #tpu.pipeline_mode<synchronous>, transform_indices = @transform_3, window_bounds = array<i64: 7, 32, 32>}, {pipeline_mode = #tpu.pipeline_mode<synchronous>, transform_indices = @transform_4, window_bounds = array<i64: 7, 32, 64>}, {pipeline_mode = #tpu.pipeline_mode<synchronous>, transform_indices = @transform_5, window_bounds = array<i64: 7, 64, 64>}, {pipeline_mode = #tpu.pipeline_mode<synchronous>, transform_indices = @transform_6, window_bounds = array<i64: 32, 64>}, {pipeline_mode = #tpu.pipeline_mode<synchronous>, transform_indices = @transform_7, window_bounds = array<i64: 7, 64, 128>}, {pipeline_mode = #tpu.pipeline_mode<synchronous>, transform_indices = @transform_8, window_bounds = array<i64: 896, 128>}, {pipeline_mode = #tpu.pipeline_mode<synchronous>, transform_indices = @transform_9, window_bounds = array<i64: 64, 128>}, {pipeline_mode = #tpu.pipeline_mode<synchronous>, transform_indices = @transform_10, window_bounds = array<i64: 896, 256>}, {pipeline_mode = #tpu.pipeline_mode<synchronous>, transform_indices = @transform_11, window_bounds = array<i64: 1792, 256>}, {pipeline_mode = #tpu.pipeline_mode<synchronous>, transform_indices = @transform_12, window_bounds = array<i64: 128, 256>}, {pipeline_mode = #tpu.pipeline_mode<synchronous>, transform_indices = @transform_13, window_bounds = array<i64: 12, 256>}, {pipeline_mode = #tpu.pipeline_mode<synchronous>, transform_indices = @transform_14, window_bounds = array<i64: 256, 3>}, {transform_indices = @transform_15, window_bounds = array<i64: 1, 1, 3>}]} {
    %c0 = arith.constant 0 : index
    %c0_0 = arith.constant 0 : index
    %c0_1 = arith.constant 0 : index
    %0 = vector.load %arg1[%c0, %c0_0, %c0_1] : memref<1x256x4xf32, #tpu.memory_space<vmem>>, vector<1x256x4xf32>
    %1 = vector.shape_cast %0 : vector<1x256x4xf32> to vector<256x4xf32>
    %cst = arith.constant 0.000000e+00 : f32
    %2 = vector.broadcast %cst : f32 to vector<3x4xf32>
    %c0_2 = arith.constant 0 : index
    %c0_3 = arith.constant 0 : index
    %3 = vector.load %arg17[%c0_2, %c0_3] : memref<272x4xf32, #tpu.memory_space<vmem>>, vector<3x4xf32>
    tpu.vector_store %arg17[%c0_2, %c0_3], %2 {strides = array<i32>} : memref<272x4xf32, #tpu.memory_space<vmem>>, vector<3x4xf32>,
    %c3 = arith.constant 3 : index
    %c0_4 = arith.constant 0 : index
    %4 = vector.load %arg17[%c3, %c0_4] : memref<272x4xf32, #tpu.memory_space<vmem>>, vector<256x4xf32>
    tpu.vector_store %arg17[%c3, %c0_4], %1 {strides = array<i32>} : memref<272x4xf32, #tpu.memory_space<vmem>>, vector<256x4xf32>,
    %cst_5 = arith.constant 0.000000e+00 : f32
    %5 = vector.broadcast %cst_5 : f32 to vector<13x4xf32>
    %c259 = arith.constant 259 : index
    %c0_6 = arith.constant 0 : index
    %6 = vector.load %arg17[%c259, %c0_6] : memref<272x4xf32, #tpu.memory_space<vmem>>, vector<13x4xf32>
    tpu.vector_store %arg17[%c259, %c0_6], %5 {strides = array<i32>} : memref<272x4xf32, #tpu.memory_space<vmem>>, vector<13x4xf32>,
    %c0_7 = arith.constant 0 : index
    %c0_8 = arith.constant 0 : index
    %7 = tpu.strided_load %arg17[%c0_7, %c0_8] {strides = array<i32: 2, 1>} : memref<272x4xf32, #tpu.memory_space<vmem>>, vector<128x4xf32>
    %8 = arith.truncf %7 : vector<128x4xf32> to vector<128x4xbf16>
    %c0_9 = arith.constant 0 : index
    %c0_10 = arith.constant 0 : index
    %c0_11 = arith.constant 0 : index
    %9 = vector.load %arg2[%c0_9, %c0_10, %c0_11] : memref<13x4x32xbf16, #tpu.memory_space<vmem>>, vector<1x4x32xbf16>
    %10 = vector.shape_cast %9 : vector<1x4x32xbf16> to vector<4x32xbf16>
    %cst_12 = arith.constant dense<0.000000e+00> : vector<128x32xf32>
    %11 = tpu.matmul %8, %10, %cst_12 {dimension_numbers = #tpu.dot_dimension_numbers<[1], [0], [0], [1], [0, 0, 1, 1], [], []>} : vector<128x4xbf16>, vector<4x32xbf16>, vector<128x32xf32> -> vector<128x32xf32>
    %c1 = arith.constant 1 : index
    %c0_13 = arith.constant 0 : index
    %12 = tpu.strided_load %arg17[%c1, %c0_13] {strides = array<i32: 2, 1>} : memref<272x4xf32, #tpu.memory_space<vmem>>, vector<128x4xf32>
    %13 = arith.truncf %12 : vector<128x4xf32> to vector<128x4xbf16>
    %c1_14 = arith.constant 1 : index
    %c0_15 = arith.constant 0 : index
    %c0_16 = arith.constant 0 : index
    %14 = vector.load %arg2[%c1_14, %c0_15, %c0_16] : memref<13x4x32xbf16, #tpu.memory_space<vmem>>, vector<1x4x32xbf16>
    %15 = vector.shape_cast %14 : vector<1x4x32xbf16> to vector<4x32xbf16>
    %cst_17 = arith.constant dense<0.000000e+00> : vector<128x32xf32>
    %16 = tpu.matmul %13, %15, %cst_17 {dimension_numbers = #tpu.dot_dimension_numbers<[1], [0], [0], [1], [0, 0, 1, 1], [], []>} : vector<128x4xbf16>, vector<4x32xbf16>, vector<128x32xf32> -> vector<128x32xf32>
    %17 = arith.addf %11, %16 : vector<128x32xf32>
    %c2 = arith.constant 2 : index
    %c0_18 = arith.constant 0 : index
    %18 = tpu.strided_load %arg17[%c2, %c0_18] {strides = array<i32: 2, 1>} : memref<272x4xf32, #tpu.memory_space<vmem>>, vector<128x4xf32>
    %19 = arith.truncf %18 : vector<128x4xf32> to vector<128x4xbf16>
    %c2_19 = arith.constant 2 : index
    %c0_20 = arith.constant 0 : index
    %c0_21 = arith.constant 0 : index
    %20 = vector.load %arg2[%c2_19, %c0_20, %c0_21] : memref<13x4x32xbf16, #tpu.memory_space<vmem>>, vector<1x4x32xbf16>
    %21 = vector.shape_cast %20 : vector<1x4x32xbf16> to vector<4x32xbf16>
    %cst_22 = arith.constant dense<0.000000e+00> : vector<128x32xf32>
    %22 = tpu.matmul %19, %21, %cst_22 {dimension_numbers = #tpu.dot_dimension_numbers<[1], [0], [0], [1], [0, 0, 1, 1], [], []>} : vector<128x4xbf16>, vector<4x32xbf16>, vector<128x32xf32> -> vector<128x32xf32>
    %23 = arith.addf %17, %22 : vector<128x32xf32>
    %c3_23 = arith.constant 3 : index
    %c0_24 = arith.constant 0 : index
    %24 = tpu.strided_load %arg17[%c3_23, %c0_24] {strides = array<i32: 2, 1>} : memref<272x4xf32, #tpu.memory_space<vmem>>, vector<128x4xf32>
    %25 = arith.truncf %24 : vector<128x4xf32> to vector<128x4xbf16>
    %c3_25 = arith.constant 3 : index
    %c0_26 = arith.constant 0 : index
    %c0_27 = arith.constant 0 : index
    %26 = vector.load %arg2[%c3_25, %c0_26, %c0_27] : memref<13x4x32xbf16, #tpu.memory_space<vmem>>, vector<1x4x32xbf16>
    %27 = vector.shape_cast %26 : vector<1x4x32xbf16> to vector<4x32xbf16>
    %cst_28 = arith.constant dense<0.000000e+00> : vector<128x32xf32>
    %28 = tpu.matmul %25, %27, %cst_28 {dimension_numbers = #tpu.dot_dimension_numbers<[1], [0], [0], [1], [0, 0, 1, 1], [], []>} : vector<128x4xbf16>, vector<4x32xbf16>, vector<128x32xf32> -> vector<128x32xf32>
    %29 = arith.addf %23, %28 : vector<128x32xf32>
    %c4 = arith.constant 4 : index
    %c0_29 = arith.constant 0 : index
    %30 = tpu.strided_load %arg17[%c4, %c0_29] {strides = array<i32: 2, 1>} : memref<272x4xf32, #tpu.memory_space<vmem>>, vector<128x4xf32>
    %31 = arith.truncf %30 : vector<128x4xf32> to vector<128x4xbf16>
    %c4_30 = arith.constant 4 : index
    %c0_31 = arith.constant 0 : index
    %c0_32 = arith.constant 0 : index
    %32 = vector.load %arg2[%c4_30, %c0_31, %c0_32] : memref<13x4x32xbf16, #tpu.memory_space<vmem>>, vector<1x4x32xbf16>
    %33 = vector.shape_cast %32 : vector<1x4x32xbf16> to vector<4x32xbf16>
    %cst_33 = arith.constant dense<0.000000e+00> : vector<128x32xf32>
    %34 = tpu.matmul %31, %33, %cst_33 {dimension_numbers = #tpu.dot_dimension_numbers<[1], [0], [0], [1], [0, 0, 1, 1], [], []>} : vector<128x4xbf16>, vector<4x32xbf16>, vector<128x32xf32> -> vector<128x32xf32>
    %35 = arith.addf %29, %34 : vector<128x32xf32>
    %c5 = arith.constant 5 : index
    %c0_34 = arith.constant 0 : index
    %36 = tpu.strided_load %arg17[%c5, %c0_34] {strides = array<i32: 2, 1>} : memref<272x4xf32, #tpu.memory_space<vmem>>, vector<128x4xf32>
    %37 = arith.truncf %36 : vector<128x4xf32> to vector<128x4xbf16>
    %c5_35 = arith.constant 5 : index
    %c0_36 = arith.constant 0 : index
    %c0_37 = arith.constant 0 : index
    %38 = vector.load %arg2[%c5_35, %c0_36, %c0_37] : memref<13x4x32xbf16, #tpu.memory_space<vmem>>, vector<1x4x32xbf16>
    %39 = vector.shape_cast %38 : vector<1x4x32xbf16> to vector<4x32xbf16>
    %cst_38 = arith.constant dense<0.000000e+00> : vector<128x32xf32>
    %40 = tpu.matmul %37, %39, %cst_38 {dimension_numbers = #tpu.dot_dimension_numbers<[1], [0], [0], [1], [0, 0, 1, 1], [], []>} : vector<128x4xbf16>, vector<4x32xbf16>, vector<128x32xf32> -> vector<128x32xf32>
    %41 = arith.addf %35, %40 : vector<128x32xf32>
    %c6 = arith.constant 6 : index
    %c0_39 = arith.constant 0 : index
    %42 = tpu.strided_load %arg17[%c6, %c0_39] {strides = array<i32: 2, 1>} : memref<272x4xf32, #tpu.memory_space<vmem>>, vector<128x4xf32>
    %43 = arith.truncf %42 : vector<128x4xf32> to vector<128x4xbf16>
    %c6_40 = arith.constant 6 : index
    %c0_41 = arith.constant 0 : index
    %c0_42 = arith.constant 0 : index
    %44 = vector.load %arg2[%c6_40, %c0_41, %c0_42] : memref<13x4x32xbf16, #tpu.memory_space<vmem>>, vector<1x4x32xbf16>
    %45 = vector.shape_cast %44 : vector<1x4x32xbf16> to vector<4x32xbf16>
    %cst_43 = arith.constant dense<0.000000e+00> : vector<128x32xf32>
    %46 = tpu.matmul %43, %45, %cst_43 {dimension_numbers = #tpu.dot_dimension_numbers<[1], [0], [0], [1], [0, 0, 1, 1], [], []>} : vector<128x4xbf16>, vector<4x32xbf16>, vector<128x32xf32> -> vector<128x32xf32>
    %47 = arith.addf %41, %46 : vector<128x32xf32>
    %c7 = arith.constant 7 : index
    %c0_44 = arith.constant 0 : index
    %48 = tpu.strided_load %arg17[%c7, %c0_44] {strides = array<i32: 2, 1>} : memref<272x4xf32, #tpu.memory_space<vmem>>, vector<128x4xf32>
    %49 = arith.truncf %48 : vector<128x4xf32> to vector<128x4xbf16>
    %c7_45 = arith.constant 7 : index
    %c0_46 = arith.constant 0 : index
    %c0_47 = arith.constant 0 : index
    %50 = vector.load %arg2[%c7_45, %c0_46, %c0_47] : memref<13x4x32xbf16, #tpu.memory_space<vmem>>, vector<1x4x32xbf16>
    %51 = vector.shape_cast %50 : vector<1x4x32xbf16> to vector<4x32xbf16>
    %cst_48 = arith.constant dense<0.000000e+00> : vector<128x32xf32>
    %52 = tpu.matmul %49, %51, %cst_48 {dimension_numbers = #tpu.dot_dimension_numbers<[1], [0], [0], [1], [0, 0, 1, 1], [], []>} : vector<128x4xbf16>, vector<4x32xbf16>, vector<128x32xf32> -> vector<128x32xf32>
    %53 = arith.addf %47, %52 : vector<128x32xf32>
    %c8 = arith.constant 8 : index
    %c0_49 = arith.constant 0 : index
    %54 = tpu.strided_load %arg17[%c8, %c0_49] {strides = array<i32: 2, 1>} : memref<272x4xf32, #tpu.memory_space<vmem>>, vector<128x4xf32>
    %55 = arith.truncf %54 : vector<128x4xf32> to vector<128x4xbf16>
    %c8_50 = arith.constant 8 : index
    %c0_51 = arith.constant 0 : index
    %c0_52 = arith.constant 0 : index
    %56 = vector.load %arg2[%c8_50, %c0_51, %c0_52] : memref<13x4x32xbf16, #tpu.memory_space<vmem>>, vector<1x4x32xbf16>
    %57 = vector.shape_cast %56 : vector<1x4x32xbf16> to vector<4x32xbf16>
    %cst_53 = arith.constant dense<0.000000e+00> : vector<128x32xf32>
    %58 = tpu.matmul %55, %57, %cst_53 {dimension_numbers = #tpu.dot_dimension_numbers<[1], [0], [0], [1], [0, 0, 1, 1], [], []>} : vector<128x4xbf16>, vector<4x32xbf16>, vector<128x32xf32> -> vector<128x32xf32>
    %59 = arith.addf %53, %58 : vector<128x32xf32>
    %c9 = arith.constant 9 : index
    %c0_54 = arith.constant 0 : index
    %60 = tpu.strided_load %arg17[%c9, %c0_54] {strides = array<i32: 2, 1>} : memref<272x4xf32, #tpu.memory_space<vmem>>, vector<128x4xf32>
    %61 = arith.truncf %60 : vector<128x4xf32> to vector<128x4xbf16>
    %c9_55 = arith.constant 9 : index
    %c0_56 = arith.constant 0 : index
    %c0_57 = arith.constant 0 : index
    %62 = vector.load %arg2[%c9_55, %c0_56, %c0_57] : memref<13x4x32xbf16, #tpu.memory_space<vmem>>, vector<1x4x32xbf16>
    %63 = vector.shape_cast %62 : vector<1x4x32xbf16> to vector<4x32xbf16>
    %cst_58 = arith.constant dense<0.000000e+00> : vector<128x32xf32>
    %64 = tpu.matmul %61, %63, %cst_58 {dimension_numbers = #tpu.dot_dimension_numbers<[1], [0], [0], [1], [0, 0, 1, 1], [], []>} : vector<128x4xbf16>, vector<4x32xbf16>, vector<128x32xf32> -> vector<128x32xf32>
    %65 = arith.addf %59, %64 : vector<128x32xf32>
    %c10 = arith.constant 10 : index
    %c0_59 = arith.constant 0 : index
    %66 = tpu.strided_load %arg17[%c10, %c0_59] {strides = array<i32: 2, 1>} : memref<272x4xf32, #tpu.memory_space<vmem>>, vector<128x4xf32>
    %67 = arith.truncf %66 : vector<128x4xf32> to vector<128x4xbf16>
    %c10_60 = arith.constant 10 : index
    %c0_61 = arith.constant 0 : index
    %c0_62 = arith.constant 0 : index
    %68 = vector.load %arg2[%c10_60, %c0_61, %c0_62] : memref<13x4x32xbf16, #tpu.memory_space<vmem>>, vector<1x4x32xbf16>
    %69 = vector.shape_cast %68 : vector<1x4x32xbf16> to vector<4x32xbf16>
    %cst_63 = arith.constant dense<0.000000e+00> : vector<128x32xf32>
    %70 = tpu.matmul %67, %69, %cst_63 {dimension_numbers = #tpu.dot_dimension_numbers<[1], [0], [0], [1], [0, 0, 1, 1], [], []>} : vector<128x4xbf16>, vector<4x32xbf16>, vector<128x32xf32> -> vector<128x32xf32>
    %71 = arith.addf %65, %70 : vector<128x32xf32>
    %c11 = arith.constant 11 : index
    %c0_64 = arith.constant 0 : index
    %72 = tpu.strided_load %arg17[%c11, %c0_64] {strides = array<i32: 2, 1>} : memref<272x4xf32, #tpu.memory_space<vmem>>, vector<128x4xf32>
    %73 = arith.truncf %72 : vector<128x4xf32> to vector<128x4xbf16>
    %c11_65 = arith.constant 11 : index
    %c0_66 = arith.constant 0 : index
    %c0_67 = arith.constant 0 : index
    %74 = vector.load %arg2[%c11_65, %c0_66, %c0_67] : memref<13x4x32xbf16, #tpu.memory_space<vmem>>, vector<1x4x32xbf16>
    %75 = vector.shape_cast %74 : vector<1x4x32xbf16> to vector<4x32xbf16>
    %cst_68 = arith.constant dense<0.000000e+00> : vector<128x32xf32>
    %76 = tpu.matmul %73, %75, %cst_68 {dimension_numbers = #tpu.dot_dimension_numbers<[1], [0], [0], [1], [0, 0, 1, 1], [], []>} : vector<128x4xbf16>, vector<4x32xbf16>, vector<128x32xf32> -> vector<128x32xf32>
    %77 = arith.addf %71, %76 : vector<128x32xf32>
    %c12 = arith.constant 12 : index
    %c0_69 = arith.constant 0 : index
    %78 = tpu.strided_load %arg17[%c12, %c0_69] {strides = array<i32: 2, 1>} : memref<272x4xf32, #tpu.memory_space<vmem>>, vector<128x4xf32>
    %79 = arith.truncf %78 : vector<128x4xf32> to vector<128x4xbf16>
    %c12_70 = arith.constant 12 : index
    %c0_71 = arith.constant 0 : index
    %c0_72 = arith.constant 0 : index
    %80 = vector.load %arg2[%c12_70, %c0_71, %c0_72] : memref<13x4x32xbf16, #tpu.memory_space<vmem>>, vector<1x4x32xbf16>
    %81 = vector.shape_cast %80 : vector<1x4x32xbf16> to vector<4x32xbf16>
    %cst_73 = arith.constant dense<0.000000e+00> : vector<128x32xf32>
    %82 = tpu.matmul %79, %81, %cst_73 {dimension_numbers = #tpu.dot_dimension_numbers<[1], [0], [0], [1], [0, 0, 1, 1], [], []>} : vector<128x4xbf16>, vector<4x32xbf16>, vector<128x32xf32> -> vector<128x32xf32>
    %83 = arith.addf %77, %82 : vector<128x32xf32>
    %cst_74 = arith.constant 0.000000e+00 : f32
    %84 = vector.broadcast %cst_74 : f32 to vector<3x32xf32>
    %c0_75 = arith.constant 0 : index
    %c0_76 = arith.constant 0 : index
    %85 = vector.load %arg18[%c0_75, %c0_76] : memref<136x32xf32, #tpu.memory_space<vmem>>, vector<3x32xf32>
    tpu.vector_store %arg18[%c0_75, %c0_76], %84 {strides = array<i32>} : memref<136x32xf32, #tpu.memory_space<vmem>>, vector<3x32xf32>,
    %c3_77 = arith.constant 3 : index
    %c0_78 = arith.constant 0 : index
    %86 = vector.load %arg18[%c3_77, %c0_78] : memref<136x32xf32, #tpu.memory_space<vmem>>, vector<128x32xf32>
    tpu.vector_store %arg18[%c3_77, %c0_78], %83 {strides = array<i32>} : memref<136x32xf32, #tpu.memory_space<vmem>>, vector<128x32xf32>,
    %cst_79 = arith.constant 0.000000e+00 : f32
    %87 = vector.broadcast %cst_79 : f32 to vector<8x32xf32>
    %c128 = arith.constant 128 : index
    %c0_80 = arith.constant 0 : index
    %88 = vector.load %arg18[%c128, %c0_80] : memref<136x32xf32, #tpu.memory_space<vmem>>, vector<8x32xf32>
    tpu.vector_store %arg18[%c128, %c0_80], %87 {strides = array<i32>} : memref<136x32xf32, #tpu.memory_space<vmem>>, vector<8x32xf32>,
    %c0_81 = arith.constant 0 : index
    %c0_82 = arith.constant 0 : index
    %89 = vector.load %arg18[%c0_81, %c0_82] : memref<136x32xf32, #tpu.memory_space<vmem>>, vector<128x32xf32>
    %90 = arith.truncf %89 : vector<128x32xf32> to vector<128x32xbf16>
    %c0_83 = arith.constant 0 : index
    %c0_84 = arith.constant 0 : index
    %c0_85 = arith.constant 0 : index
    %91 = vector.load %arg3[%c0_83, %c0_84, %c0_85] : memref<7x32x32xbf16, #tpu.memory_space<vmem>>, vector<1x32x32xbf16>
    %92 = vector.shape_cast %91 : vector<1x32x32xbf16> to vector<32x32xbf16>
    %cst_86 = arith.constant dense<0.000000e+00> : vector<128x32xf32>
    %93 = tpu.matmul %90, %92, %cst_86 {dimension_numbers = #tpu.dot_dimension_numbers<[1], [0], [0], [1], [0, 0, 1, 1], [], []>} : vector<128x32xbf16>, vector<32x32xbf16>, vector<128x32xf32> -> vector<128x32xf32>
    %c1_87 = arith.constant 1 : index
    %c0_88 = arith.constant 0 : index
    %94 = vector.load %arg18[%c1_87, %c0_88] : memref<136x32xf32, #tpu.memory_space<vmem>>, vector<128x32xf32>
    %95 = arith.truncf %94 : vector<128x32xf32> to vector<128x32xbf16>
    %c1_89 = arith.constant 1 : index
    %c0_90 = arith.constant 0 : index
    %c0_91 = arith.constant 0 : index
    %96 = vector.load %arg3[%c1_89, %c0_90, %c0_91] : memref<7x32x32xbf16, #tpu.memory_space<vmem>>, vector<1x32x32xbf16>
    %97 = vector.shape_cast %96 : vector<1x32x32xbf16> to vector<32x32xbf16>
    %cst_92 = arith.constant dense<0.000000e+00> : vector<128x32xf32>
    %98 = tpu.matmul %95, %97, %cst_92 {dimension_numbers = #tpu.dot_dimension_numbers<[1], [0], [0], [1], [0, 0, 1, 1], [], []>} : vector<128x32xbf16>, vector<32x32xbf16>, vector<128x32xf32> -> vector<128x32xf32>
    %99 = arith.addf %93, %98 : vector<128x32xf32>
    %c2_93 = arith.constant 2 : index
    %c0_94 = arith.constant 0 : index
    %100 = vector.load %arg18[%c2_93, %c0_94] : memref<136x32xf32, #tpu.memory_space<vmem>>, vector<128x32xf32>
    %101 = arith.truncf %100 : vector<128x32xf32> to vector<128x32xbf16>
    %c2_95 = arith.constant 2 : index
    %c0_96 = arith.constant 0 : index
    %c0_97 = arith.constant 0 : index
    %102 = vector.load %arg3[%c2_95, %c0_96, %c0_97] : memref<7x32x32xbf16, #tpu.memory_space<vmem>>, vector<1x32x32xbf16>
    %103 = vector.shape_cast %102 : vector<1x32x32xbf16> to vector<32x32xbf16>
    %cst_98 = arith.constant dense<0.000000e+00> : vector<128x32xf32>
    %104 = tpu.matmul %101, %103, %cst_98 {dimension_numbers = #tpu.dot_dimension_numbers<[1], [0], [0], [1], [0, 0, 1, 1], [], []>} : vector<128x32xbf16>, vector<32x32xbf16>, vector<128x32xf32> -> vector<128x32xf32>
    %105 = arith.addf %99, %104 : vector<128x32xf32>
    %c3_99 = arith.constant 3 : index
    %c0_100 = arith.constant 0 : index
    %106 = vector.load %arg18[%c3_99, %c0_100] : memref<136x32xf32, #tpu.memory_space<vmem>>, vector<128x32xf32>
    %107 = arith.truncf %106 : vector<128x32xf32> to vector<128x32xbf16>
    %c3_101 = arith.constant 3 : index
    %c0_102 = arith.constant 0 : index
    %c0_103 = arith.constant 0 : index
    %108 = vector.load %arg3[%c3_101, %c0_102, %c0_103] : memref<7x32x32xbf16, #tpu.memory_space<vmem>>, vector<1x32x32xbf16>
    %109 = vector.shape_cast %108 : vector<1x32x32xbf16> to vector<32x32xbf16>
    %cst_104 = arith.constant dense<0.000000e+00> : vector<128x32xf32>
    %110 = tpu.matmul %107, %109, %cst_104 {dimension_numbers = #tpu.dot_dimension_numbers<[1], [0], [0], [1], [0, 0, 1, 1], [], []>} : vector<128x32xbf16>, vector<32x32xbf16>, vector<128x32xf32> -> vector<128x32xf32>
    %111 = arith.addf %105, %110 : vector<128x32xf32>
    %c4_105 = arith.constant 4 : index
    %c0_106 = arith.constant 0 : index
    %112 = vector.load %arg18[%c4_105, %c0_106] : memref<136x32xf32, #tpu.memory_space<vmem>>, vector<128x32xf32>
    %113 = arith.truncf %112 : vector<128x32xf32> to vector<128x32xbf16>
    %c4_107 = arith.constant 4 : index
    %c0_108 = arith.constant 0 : index
    %c0_109 = arith.constant 0 : index
    %114 = vector.load %arg3[%c4_107, %c0_108, %c0_109] : memref<7x32x32xbf16, #tpu.memory_space<vmem>>, vector<1x32x32xbf16>
    %115 = vector.shape_cast %114 : vector<1x32x32xbf16> to vector<32x32xbf16>
    %cst_110 = arith.constant dense<0.000000e+00> : vector<128x32xf32>
    %116 = tpu.matmul %113, %115, %cst_110 {dimension_numbers = #tpu.dot_dimension_numbers<[1], [0], [0], [1], [0, 0, 1, 1], [], []>} : vector<128x32xbf16>, vector<32x32xbf16>, vector<128x32xf32> -> vector<128x32xf32>
    %117 = arith.addf %111, %116 : vector<128x32xf32>
    %c5_111 = arith.constant 5 : index
    %c0_112 = arith.constant 0 : index
    %118 = vector.load %arg18[%c5_111, %c0_112] : memref<136x32xf32, #tpu.memory_space<vmem>>, vector<128x32xf32>
    %119 = arith.truncf %118 : vector<128x32xf32> to vector<128x32xbf16>
    %c5_113 = arith.constant 5 : index
    %c0_114 = arith.constant 0 : index
    %c0_115 = arith.constant 0 : index
    %120 = vector.load %arg3[%c5_113, %c0_114, %c0_115] : memref<7x32x32xbf16, #tpu.memory_space<vmem>>, vector<1x32x32xbf16>
    %121 = vector.shape_cast %120 : vector<1x32x32xbf16> to vector<32x32xbf16>
    %cst_116 = arith.constant dense<0.000000e+00> : vector<128x32xf32>
    %122 = tpu.matmul %119, %121, %cst_116 {dimension_numbers = #tpu.dot_dimension_numbers<[1], [0], [0], [1], [0, 0, 1, 1], [], []>} : vector<128x32xbf16>, vector<32x32xbf16>, vector<128x32xf32> -> vector<128x32xf32>
    %123 = arith.addf %117, %122 : vector<128x32xf32>
    %c6_117 = arith.constant 6 : index
    %c0_118 = arith.constant 0 : index
    %124 = vector.load %arg18[%c6_117, %c0_118] : memref<136x32xf32, #tpu.memory_space<vmem>>, vector<128x32xf32>
    %125 = arith.truncf %124 : vector<128x32xf32> to vector<128x32xbf16>
    %c6_119 = arith.constant 6 : index
    %c0_120 = arith.constant 0 : index
    %c0_121 = arith.constant 0 : index
    %126 = vector.load %arg3[%c6_119, %c0_120, %c0_121] : memref<7x32x32xbf16, #tpu.memory_space<vmem>>, vector<1x32x32xbf16>
    %127 = vector.shape_cast %126 : vector<1x32x32xbf16> to vector<32x32xbf16>
    %cst_122 = arith.constant dense<0.000000e+00> : vector<128x32xf32>
    %128 = tpu.matmul %125, %127, %cst_122 {dimension_numbers = #tpu.dot_dimension_numbers<[1], [0], [0], [1], [0, 0, 1, 1], [], []>} : vector<128x32xbf16>, vector<32x32xbf16>, vector<128x32xf32> -> vector<128x32xf32>
    %129 = arith.addf %123, %128 : vector<128x32xf32>
    %c0_123 = arith.constant 0 : index
    %c0_124 = arith.constant 0 : index
    %130 = vector.load %arg14[%c0_123, %c0_124] : memref<12x256xf32, #tpu.memory_space<vmem>>, vector<1x32xf32>
    %131 = vector.broadcast %130 : vector<1x32xf32> to vector<128x32xf32>
    %132 = arith.addf %129, %131 : vector<128x32xf32>
    %cst_125 = arith.constant 5.000000e-01 : f32
    %133 = vector.broadcast %cst_125 : f32 to vector<128x32xf32>
    %134 = arith.mulf %133, %132 : vector<128x32xf32>
    %cst_126 = arith.constant 0.707106769 : f32
    %135 = vector.broadcast %cst_126 : f32 to vector<128x32xf32>
    %136 = arith.mulf %132, %135 : vector<128x32xf32>
    %cst_127 = arith.constant 0.000000e+00 : f32
    %137 = vector.broadcast %cst_127 : f32 to vector<128x32xf32>
    %138 = arith.cmpf oge, %136, %137 : vector<128x32xf32>
    %cst_128 = arith.constant 1.000000e+00 : f32
    %cst_129 = arith.constant -1.000000e+00 : f32
    %139 = vector.broadcast %cst_128 : f32 to vector<128x32xf32>
    %140 = vector.broadcast %cst_129 : f32 to vector<128x32xf32>
    %141 = arith.select %138, %139, %140 : vector<128x32xi1>, vector<128x32xf32>
    %142 = math.absf %136 : vector<128x32xf32>
    %cst_130 = arith.constant 0.327591091 : f32
    %143 = vector.broadcast %cst_130 : f32 to vector<128x32xf32>
    %144 = arith.mulf %143, %142 : vector<128x32xf32>
    %cst_131 = arith.constant 1.000000e+00 : f32
    %145 = vector.broadcast %cst_131 : f32 to vector<128x32xf32>
    %146 = arith.addf %145, %144 : vector<128x32xf32>
    %147 = tpu.reciprocal %146 : vector<128x32xf32> -> vector<128x32xf32>
    %cst_132 = arith.constant 1.06140542 : f32
    %148 = vector.broadcast %cst_132 : f32 to vector<128x32xf32>
    %149 = arith.mulf %148, %147 : vector<128x32xf32>
    %cst_133 = arith.constant -1.45315206 : f32
    %150 = vector.broadcast %cst_133 : f32 to vector<128x32xf32>
    %151 = arith.addf %149, %150 : vector<128x32xf32>
    %152 = arith.mulf %151, %147 : vector<128x32xf32>
    %cst_134 = arith.constant 1.42141378 : f32
    %153 = vector.broadcast %cst_134 : f32 to vector<128x32xf32>
    %154 = arith.addf %152, %153 : vector<128x32xf32>
    %155 = arith.mulf %154, %147 : vector<128x32xf32>
    %cst_135 = arith.constant -0.284496725 : f32
    %156 = vector.broadcast %cst_135 : f32 to vector<128x32xf32>
    %157 = arith.addf %155, %156 : vector<128x32xf32>
    %158 = arith.mulf %157, %147 : vector<128x32xf32>
    %cst_136 = arith.constant 0.254829586 : f32
    %159 = vector.broadcast %cst_136 : f32 to vector<128x32xf32>
    %160 = arith.addf %158, %159 : vector<128x32xf32>
    %161 = arith.mulf %160, %147 : vector<128x32xf32>
    %cst_137 = arith.constant 0.000000e+00 : f32
    %162 = vector.broadcast %cst_137 : f32 to vector<128x32xf32>
    %163 = arith.subf %162, %142 : vector<128x32xf32>
    %164 = arith.mulf %163, %142 : vector<128x32xf32>
    %165 = math.exp %164 : vector<128x32xf32>
    %166 = arith.mulf %161, %165 : vector<128x32xf32>
    %cst_138 = arith.constant 1.000000e+00 : f32
    %167 = vector.broadcast %cst_138 : f32 to vector<128x32xf32>
    %168 = arith.subf %167, %166 : vector<128x32xf32>
    %169 = arith.mulf %141, %168 : vector<128x32xf32>
    %cst_139 = arith.constant 1.000000e+00 : f32
    %170 = vector.broadcast %cst_139 : f32 to vector<128x32xf32>
    %171 = arith.addf %170, %169 : vector<128x32xf32>
    %172 = arith.mulf %134, %171 : vector<128x32xf32>
    %cst_140 = arith.constant 0.000000e+00 : f32
    %173 = vector.broadcast %cst_140 : f32 to vector<3x32xf32>
    %c0_141 = arith.constant 0 : index
    %c0_142 = arith.constant 0 : index
    %174 = vector.load %arg19[%c0_141, %c0_142] : memref<136x32xf32, #tpu.memory_space<vmem>>, vector<3x32xf32>
    tpu.vector_store %arg19[%c0_141, %c0_142], %173 {strides = array<i32>} : memref<136x32xf32, #tpu.memory_space<vmem>>, vector<3x32xf32>,
    %c3_143 = arith.constant 3 : index
    %c0_144 = arith.constant 0 : index
    %175 = vector.load %arg19[%c3_143, %c0_144] : memref<136x32xf32, #tpu.memory_space<vmem>>, vector<128x32xf32>
    tpu.vector_store %arg19[%c3_143, %c0_144], %172 {strides = array<i32>} : memref<136x32xf32, #tpu.memory_space<vmem>>, vector<128x32xf32>,
    %cst_145 = arith.constant 0.000000e+00 : f32
    %176 = vector.broadcast %cst_145 : f32 to vector<8x32xf32>
    %c128_146 = arith.constant 128 : index
    %c0_147 = arith.constant 0 : index
    %177 = vector.load %arg19[%c128_146, %c0_147] : memref<136x32xf32, #tpu.memory_space<vmem>>, vector<8x32xf32>
    tpu.vector_store %arg19[%c128_146, %c0_147], %176 {strides = array<i32>} : memref<136x32xf32, #tpu.memory_space<vmem>>, vector<8x32xf32>,
    %c0_148 = arith.constant 0 : index
    %c0_149 = arith.constant 0 : index
    %178 = vector.load %arg19[%c0_148, %c0_149] : memref<136x32xf32, #tpu.memory_space<vmem>>, vector<128x32xf32>
    %179 = arith.truncf %178 : vector<128x32xf32> to vector<128x32xbf16>
    %c0_150 = arith.constant 0 : index
    %c0_151 = arith.constant 0 : index
    %c0_152 = arith.constant 0 : index
    %180 = vector.load %arg4[%c0_150, %c0_151, %c0_152] : memref<7x32x32xbf16, #tpu.memory_space<vmem>>, vector<1x32x32xbf16>
    %181 = vector.shape_cast %180 : vector<1x32x32xbf16> to vector<32x32xbf16>
    %cst_153 = arith.constant dense<0.000000e+00> : vector<128x32xf32>
    %182 = tpu.matmul %179, %181, %cst_153 {dimension_numbers = #tpu.dot_dimension_numbers<[1], [0], [0], [1], [0, 0, 1, 1], [], []>} : vector<128x32xbf16>, vector<32x32xbf16>, vector<128x32xf32> -> vector<128x32xf32>
    %c1_154 = arith.constant 1 : index
    %c0_155 = arith.constant 0 : index
    %183 = vector.load %arg19[%c1_154, %c0_155] : memref<136x32xf32, #tpu.memory_space<vmem>>, vector<128x32xf32>
    %184 = arith.truncf %183 : vector<128x32xf32> to vector<128x32xbf16>
    %c1_156 = arith.constant 1 : index
    %c0_157 = arith.constant 0 : index
    %c0_158 = arith.constant 0 : index
    %185 = vector.load %arg4[%c1_156, %c0_157, %c0_158] : memref<7x32x32xbf16, #tpu.memory_space<vmem>>, vector<1x32x32xbf16>
    %186 = vector.shape_cast %185 : vector<1x32x32xbf16> to vector<32x32xbf16>
    %cst_159 = arith.constant dense<0.000000e+00> : vector<128x32xf32>
    %187 = tpu.matmul %184, %186, %cst_159 {dimension_numbers = #tpu.dot_dimension_numbers<[1], [0], [0], [1], [0, 0, 1, 1], [], []>} : vector<128x32xbf16>, vector<32x32xbf16>, vector<128x32xf32> -> vector<128x32xf32>
    %188 = arith.addf %182, %187 : vector<128x32xf32>
    %c2_160 = arith.constant 2 : index
    %c0_161 = arith.constant 0 : index
    %189 = vector.load %arg19[%c2_160, %c0_161] : memref<136x32xf32, #tpu.memory_space<vmem>>, vector<128x32xf32>
    %190 = arith.truncf %189 : vector<128x32xf32> to vector<128x32xbf16>
    %c2_162 = arith.constant 2 : index
    %c0_163 = arith.constant 0 : index
    %c0_164 = arith.constant 0 : index
    %191 = vector.load %arg4[%c2_162, %c0_163, %c0_164] : memref<7x32x32xbf16, #tpu.memory_space<vmem>>, vector<1x32x32xbf16>
    %192 = vector.shape_cast %191 : vector<1x32x32xbf16> to vector<32x32xbf16>
    %cst_165 = arith.constant dense<0.000000e+00> : vector<128x32xf32>
    %193 = tpu.matmul %190, %192, %cst_165 {dimension_numbers = #tpu.dot_dimension_numbers<[1], [0], [0], [1], [0, 0, 1, 1], [], []>} : vector<128x32xbf16>, vector<32x32xbf16>, vector<128x32xf32> -> vector<128x32xf32>
    %194 = arith.addf %188, %193 : vector<128x32xf32>
    %c3_166 = arith.constant 3 : index
    %c0_167 = arith.constant 0 : index
    %195 = vector.load %arg19[%c3_166, %c0_167] : memref<136x32xf32, #tpu.memory_space<vmem>>, vector<128x32xf32>
    %196 = arith.truncf %195 : vector<128x32xf32> to vector<128x32xbf16>
    %c3_168 = arith.constant 3 : index
    %c0_169 = arith.constant 0 : index
    %c0_170 = arith.constant 0 : index
    %197 = vector.load %arg4[%c3_168, %c0_169, %c0_170] : memref<7x32x32xbf16, #tpu.memory_space<vmem>>, vector<1x32x32xbf16>
    %198 = vector.shape_cast %197 : vector<1x32x32xbf16> to vector<32x32xbf16>
    %cst_171 = arith.constant dense<0.000000e+00> : vector<128x32xf32>
    %199 = tpu.matmul %196, %198, %cst_171 {dimension_numbers = #tpu.dot_dimension_numbers<[1], [0], [0], [1], [0, 0, 1, 1], [], []>} : vector<128x32xbf16>, vector<32x32xbf16>, vector<128x32xf32> -> vector<128x32xf32>
    %200 = arith.addf %194, %199 : vector<128x32xf32>
    %c4_172 = arith.constant 4 : index
    %c0_173 = arith.constant 0 : index
    %201 = vector.load %arg19[%c4_172, %c0_173] : memref<136x32xf32, #tpu.memory_space<vmem>>, vector<128x32xf32>
    %202 = arith.truncf %201 : vector<128x32xf32> to vector<128x32xbf16>
    %c4_174 = arith.constant 4 : index
    %c0_175 = arith.constant 0 : index
    %c0_176 = arith.constant 0 : index
    %203 = vector.load %arg4[%c4_174, %c0_175, %c0_176] : memref<7x32x32xbf16, #tpu.memory_space<vmem>>, vector<1x32x32xbf16>
    %204 = vector.shape_cast %203 : vector<1x32x32xbf16> to vector<32x32xbf16>
    %cst_177 = arith.constant dense<0.000000e+00> : vector<128x32xf32>
    %205 = tpu.matmul %202, %204, %cst_177 {dimension_numbers = #tpu.dot_dimension_numbers<[1], [0], [0], [1], [0, 0, 1, 1], [], []>} : vector<128x32xbf16>, vector<32x32xbf16>, vector<128x32xf32> -> vector<128x32xf32>
    %206 = arith.addf %200, %205 : vector<128x32xf32>
    %c5_178 = arith.constant 5 : index
    %c0_179 = arith.constant 0 : index
    %207 = vector.load %arg19[%c5_178, %c0_179] : memref<136x32xf32, #tpu.memory_space<vmem>>, vector<128x32xf32>
    %208 = arith.truncf %207 : vector<128x32xf32> to vector<128x32xbf16>
    %c5_180 = arith.constant 5 : index
    %c0_181 = arith.constant 0 : index
    %c0_182 = arith.constant 0 : index
    %209 = vector.load %arg4[%c5_180, %c0_181, %c0_182] : memref<7x32x32xbf16, #tpu.memory_space<vmem>>, vector<1x32x32xbf16>
    %210 = vector.shape_cast %209 : vector<1x32x32xbf16> to vector<32x32xbf16>
    %cst_183 = arith.constant dense<0.000000e+00> : vector<128x32xf32>
    %211 = tpu.matmul %208, %210, %cst_183 {dimension_numbers = #tpu.dot_dimension_numbers<[1], [0], [0], [1], [0, 0, 1, 1], [], []>} : vector<128x32xbf16>, vector<32x32xbf16>, vector<128x32xf32> -> vector<128x32xf32>
    %212 = arith.addf %206, %211 : vector<128x32xf32>
    %c6_184 = arith.constant 6 : index
    %c0_185 = arith.constant 0 : index
    %213 = vector.load %arg19[%c6_184, %c0_185] : memref<136x32xf32, #tpu.memory_space<vmem>>, vector<128x32xf32>
    %214 = arith.truncf %213 : vector<128x32xf32> to vector<128x32xbf16>
    %c6_186 = arith.constant 6 : index
    %c0_187 = arith.constant 0 : index
    %c0_188 = arith.constant 0 : index
    %215 = vector.load %arg4[%c6_186, %c0_187, %c0_188] : memref<7x32x32xbf16, #tpu.memory_space<vmem>>, vector<1x32x32xbf16>
    %216 = vector.shape_cast %215 : vector<1x32x32xbf16> to vector<32x32xbf16>
    %cst_189 = arith.constant dense<0.000000e+00> : vector<128x32xf32>
    %217 = tpu.matmul %214, %216, %cst_189 {dimension_numbers = #tpu.dot_dimension_numbers<[1], [0], [0], [1], [0, 0, 1, 1], [], []>} : vector<128x32xbf16>, vector<32x32xbf16>, vector<128x32xf32> -> vector<128x32xf32>
    %218 = arith.addf %212, %217 : vector<128x32xf32>
    %c1_190 = arith.constant 1 : index
    %c0_191 = arith.constant 0 : index
    %219 = vector.load %arg14[%c1_190, %c0_191] : memref<12x256xf32, #tpu.memory_space<vmem>>, vector<1x32xf32>
    %220 = vector.broadcast %219 : vector<1x32xf32> to vector<128x32xf32>
    %221 = arith.addf %218, %220 : vector<128x32xf32>
    %cst_192 = arith.constant 5.000000e-01 : f32
    %222 = vector.broadcast %cst_192 : f32 to vector<128x32xf32>
    %223 = arith.mulf %222, %221 : vector<128x32xf32>
    %cst_193 = arith.constant 0.707106769 : f32
    %224 = vector.broadcast %cst_193 : f32 to vector<128x32xf32>
    %225 = arith.mulf %221, %224 : vector<128x32xf32>
    %cst_194 = arith.constant 0.000000e+00 : f32
    %226 = vector.broadcast %cst_194 : f32 to vector<128x32xf32>
    %227 = arith.cmpf oge, %225, %226 : vector<128x32xf32>
    %cst_195 = arith.constant 1.000000e+00 : f32
    %cst_196 = arith.constant -1.000000e+00 : f32
    %228 = vector.broadcast %cst_195 : f32 to vector<128x32xf32>
    %229 = vector.broadcast %cst_196 : f32 to vector<128x32xf32>
    %230 = arith.select %227, %228, %229 : vector<128x32xi1>, vector<128x32xf32>
    %231 = math.absf %225 : vector<128x32xf32>
    %cst_197 = arith.constant 0.327591091 : f32
    %232 = vector.broadcast %cst_197 : f32 to vector<128x32xf32>
    %233 = arith.mulf %232, %231 : vector<128x32xf32>
    %cst_198 = arith.constant 1.000000e+00 : f32
    %234 = vector.broadcast %cst_198 : f32 to vector<128x32xf32>
    %235 = arith.addf %234, %233 : vector<128x32xf32>
    %236 = tpu.reciprocal %235 : vector<128x32xf32> -> vector<128x32xf32>
    %cst_199 = arith.constant 1.06140542 : f32
    %237 = vector.broadcast %cst_199 : f32 to vector<128x32xf32>
    %238 = arith.mulf %237, %236 : vector<128x32xf32>
    %cst_200 = arith.constant -1.45315206 : f32
    %239 = vector.broadcast %cst_200 : f32 to vector<128x32xf32>
    %240 = arith.addf %238, %239 : vector<128x32xf32>
    %241 = arith.mulf %240, %236 : vector<128x32xf32>
    %cst_201 = arith.constant 1.42141378 : f32
    %242 = vector.broadcast %cst_201 : f32 to vector<128x32xf32>
    %243 = arith.addf %241, %242 : vector<128x32xf32>
    %244 = arith.mulf %243, %236 : vector<128x32xf32>
    %cst_202 = arith.constant -0.284496725 : f32
    %245 = vector.broadcast %cst_202 : f32 to vector<128x32xf32>
    %246 = arith.addf %244, %245 : vector<128x32xf32>
    %247 = arith.mulf %246, %236 : vector<128x32xf32>
    %cst_203 = arith.constant 0.254829586 : f32
    %248 = vector.broadcast %cst_203 : f32 to vector<128x32xf32>
    %249 = arith.addf %247, %248 : vector<128x32xf32>
    %250 = arith.mulf %249, %236 : vector<128x32xf32>
    %cst_204 = arith.constant 0.000000e+00 : f32
    %251 = vector.broadcast %cst_204 : f32 to vector<128x32xf32>
    %252 = arith.subf %251, %231 : vector<128x32xf32>
    %253 = arith.mulf %252, %231 : vector<128x32xf32>
    %254 = math.exp %253 : vector<128x32xf32>
    %255 = arith.mulf %250, %254 : vector<128x32xf32>
    %cst_205 = arith.constant 1.000000e+00 : f32
    %256 = vector.broadcast %cst_205 : f32 to vector<128x32xf32>
    %257 = arith.subf %256, %255 : vector<128x32xf32>
    %258 = arith.mulf %230, %257 : vector<128x32xf32>
    %cst_206 = arith.constant 1.000000e+00 : f32
    %259 = vector.broadcast %cst_206 : f32 to vector<128x32xf32>
    %260 = arith.addf %259, %258 : vector<128x32xf32>
    %261 = arith.mulf %223, %260 : vector<128x32xf32>
    %262 = arith.addf %261, %83 : vector<128x32xf32>
    %cst_207 = arith.constant 0.000000e+00 : f32
    %263 = vector.broadcast %cst_207 : f32 to vector<3x32xf32>
    %c0_208 = arith.constant 0 : index
    %c0_209 = arith.constant 0 : index
    %264 = vector.load %arg20[%c0_208, %c0_209] : memref<136x32xf32, #tpu.memory_space<vmem>>, vector<3x32xf32>
    tpu.vector_store %arg20[%c0_208, %c0_209], %263 {strides = array<i32>} : memref<136x32xf32, #tpu.memory_space<vmem>>, vector<3x32xf32>,
    %c3_210 = arith.constant 3 : index
    %c0_211 = arith.constant 0 : index
    %265 = vector.load %arg20[%c3_210, %c0_211] : memref<136x32xf32, #tpu.memory_space<vmem>>, vector<128x32xf32>
    tpu.vector_store %arg20[%c3_210, %c0_211], %262 {strides = array<i32>} : memref<136x32xf32, #tpu.memory_space<vmem>>, vector<128x32xf32>,
    %cst_212 = arith.constant 0.000000e+00 : f32
    %266 = vector.broadcast %cst_212 : f32 to vector<8x32xf32>
    %c128_213 = arith.constant 128 : index
    %c0_214 = arith.constant 0 : index
    %267 = vector.load %arg20[%c128_213, %c0_214] : memref<136x32xf32, #tpu.memory_space<vmem>>, vector<8x32xf32>
    tpu.vector_store %arg20[%c128_213, %c0_214], %266 {strides = array<i32>} : memref<136x32xf32, #tpu.memory_space<vmem>>, vector<8x32xf32>,
    %c0_215 = arith.constant 0 : index
    %c0_216 = arith.constant 0 : index
    %268 = tpu.strided_load %arg20[%c0_215, %c0_216] {strides = array<i32: 2, 1>} : memref<136x32xf32, #tpu.memory_space<vmem>>, vector<64x32xf32>
    %269 = arith.truncf %268 : vector<64x32xf32> to vector<64x32xbf16>
    %c0_217 = arith.constant 0 : index
    %c0_218 = arith.constant 0 : index
    %c0_219 = arith.constant 0 : index
    %270 = vector.load %arg5[%c0_217, %c0_218, %c0_219] : memref<7x32x64xbf16, #tpu.memory_space<vmem>>, vector<1x32x64xbf16>
    %271 = vector.shape_cast %270 : vector<1x32x64xbf16> to vector<32x64xbf16>
    %cst_220 = arith.constant dense<0.000000e+00> : vector<64x64xf32>
    %272 = tpu.matmul %269, %271, %cst_220 {dimension_numbers = #tpu.dot_dimension_numbers<[1], [0], [0], [1], [0, 0, 1, 1], [], []>} : vector<64x32xbf16>, vector<32x64xbf16>, vector<64x64xf32> -> vector<64x64xf32>
    %c1_221 = arith.constant 1 : index
    %c0_222 = arith.constant 0 : index
    %273 = tpu.strided_load %arg20[%c1_221, %c0_222] {strides = array<i32: 2, 1>} : memref<136x32xf32, #tpu.memory_space<vmem>>, vector<64x32xf32>
    %274 = arith.truncf %273 : vector<64x32xf32> to vector<64x32xbf16>
    %c1_223 = arith.constant 1 : index
    %c0_224 = arith.constant 0 : index
    %c0_225 = arith.constant 0 : index
    %275 = vector.load %arg5[%c1_223, %c0_224, %c0_225] : memref<7x32x64xbf16, #tpu.memory_space<vmem>>, vector<1x32x64xbf16>
    %276 = vector.shape_cast %275 : vector<1x32x64xbf16> to vector<32x64xbf16>
    %cst_226 = arith.constant dense<0.000000e+00> : vector<64x64xf32>
    %277 = tpu.matmul %274, %276, %cst_226 {dimension_numbers = #tpu.dot_dimension_numbers<[1], [0], [0], [1], [0, 0, 1, 1], [], []>} : vector<64x32xbf16>, vector<32x64xbf16>, vector<64x64xf32> -> vector<64x64xf32>
    %278 = arith.addf %272, %277 : vector<64x64xf32>
    %c2_227 = arith.constant 2 : index
    %c0_228 = arith.constant 0 : index
    %279 = tpu.strided_load %arg20[%c2_227, %c0_228] {strides = array<i32: 2, 1>} : memref<136x32xf32, #tpu.memory_space<vmem>>, vector<64x32xf32>
    %280 = arith.truncf %279 : vector<64x32xf32> to vector<64x32xbf16>
    %c2_229 = arith.constant 2 : index
    %c0_230 = arith.constant 0 : index
    %c0_231 = arith.constant 0 : index
    %281 = vector.load %arg5[%c2_229, %c0_230, %c0_231] : memref<7x32x64xbf16, #tpu.memory_space<vmem>>, vector<1x32x64xbf16>
    %282 = vector.shape_cast %281 : vector<1x32x64xbf16> to vector<32x64xbf16>
    %cst_232 = arith.constant dense<0.000000e+00> : vector<64x64xf32>
    %283 = tpu.matmul %280, %282, %cst_232 {dimension_numbers = #tpu.dot_dimension_numbers<[1], [0], [0], [1], [0, 0, 1, 1], [], []>} : vector<64x32xbf16>, vector<32x64xbf16>, vector<64x64xf32> -> vector<64x64xf32>
    %284 = arith.addf %278, %283 : vector<64x64xf32>
    %c3_233 = arith.constant 3 : index
    %c0_234 = arith.constant 0 : index
    %285 = tpu.strided_load %arg20[%c3_233, %c0_234] {strides = array<i32: 2, 1>} : memref<136x32xf32, #tpu.memory_space<vmem>>, vector<64x32xf32>
    %286 = arith.truncf %285 : vector<64x32xf32> to vector<64x32xbf16>
    %c3_235 = arith.constant 3 : index
    %c0_236 = arith.constant 0 : index
    %c0_237 = arith.constant 0 : index
    %287 = vector.load %arg5[%c3_235, %c0_236, %c0_237] : memref<7x32x64xbf16, #tpu.memory_space<vmem>>, vector<1x32x64xbf16>
    %288 = vector.shape_cast %287 : vector<1x32x64xbf16> to vector<32x64xbf16>
    %cst_238 = arith.constant dense<0.000000e+00> : vector<64x64xf32>
    %289 = tpu.matmul %286, %288, %cst_238 {dimension_numbers = #tpu.dot_dimension_numbers<[1], [0], [0], [1], [0, 0, 1, 1], [], []>} : vector<64x32xbf16>, vector<32x64xbf16>, vector<64x64xf32> -> vector<64x64xf32>
    %290 = arith.addf %284, %289 : vector<64x64xf32>
    %c4_239 = arith.constant 4 : index
    %c0_240 = arith.constant 0 : index
    %291 = tpu.strided_load %arg20[%c4_239, %c0_240] {strides = array<i32: 2, 1>} : memref<136x32xf32, #tpu.memory_space<vmem>>, vector<64x32xf32>
    %292 = arith.truncf %291 : vector<64x32xf32> to vector<64x32xbf16>
    %c4_241 = arith.constant 4 : index
    %c0_242 = arith.constant 0 : index
    %c0_243 = arith.constant 0 : index
    %293 = vector.load %arg5[%c4_241, %c0_242, %c0_243] : memref<7x32x64xbf16, #tpu.memory_space<vmem>>, vector<1x32x64xbf16>
    %294 = vector.shape_cast %293 : vector<1x32x64xbf16> to vector<32x64xbf16>
    %cst_244 = arith.constant dense<0.000000e+00> : vector<64x64xf32>
    %295 = tpu.matmul %292, %294, %cst_244 {dimension_numbers = #tpu.dot_dimension_numbers<[1], [0], [0], [1], [0, 0, 1, 1], [], []>} : vector<64x32xbf16>, vector<32x64xbf16>, vector<64x64xf32> -> vector<64x64xf32>
    %296 = arith.addf %290, %295 : vector<64x64xf32>
    %c5_245 = arith.constant 5 : index
    %c0_246 = arith.constant 0 : index
    %297 = tpu.strided_load %arg20[%c5_245, %c0_246] {strides = array<i32: 2, 1>} : memref<136x32xf32, #tpu.memory_space<vmem>>, vector<64x32xf32>
    %298 = arith.truncf %297 : vector<64x32xf32> to vector<64x32xbf16>
    %c5_247 = arith.constant 5 : index
    %c0_248 = arith.constant 0 : index
    %c0_249 = arith.constant 0 : index
    %299 = vector.load %arg5[%c5_247, %c0_248, %c0_249] : memref<7x32x64xbf16, #tpu.memory_space<vmem>>, vector<1x32x64xbf16>
    %300 = vector.shape_cast %299 : vector<1x32x64xbf16> to vector<32x64xbf16>
    %cst_250 = arith.constant dense<0.000000e+00> : vector<64x64xf32>
    %301 = tpu.matmul %298, %300, %cst_250 {dimension_numbers = #tpu.dot_dimension_numbers<[1], [0], [0], [1], [0, 0, 1, 1], [], []>} : vector<64x32xbf16>, vector<32x64xbf16>, vector<64x64xf32> -> vector<64x64xf32>
    %302 = arith.addf %296, %301 : vector<64x64xf32>
    %c6_251 = arith.constant 6 : index
    %c0_252 = arith.constant 0 : index
    %303 = tpu.strided_load %arg20[%c6_251, %c0_252] {strides = array<i32: 2, 1>} : memref<136x32xf32, #tpu.memory_space<vmem>>, vector<64x32xf32>
    %304 = arith.truncf %303 : vector<64x32xf32> to vector<64x32xbf16>
    %c6_253 = arith.constant 6 : index
    %c0_254 = arith.constant 0 : index
    %c0_255 = arith.constant 0 : index
    %305 = vector.load %arg5[%c6_253, %c0_254, %c0_255] : memref<7x32x64xbf16, #tpu.memory_space<vmem>>, vector<1x32x64xbf16>
    %306 = vector.shape_cast %305 : vector<1x32x64xbf16> to vector<32x64xbf16>
    %cst_256 = arith.constant dense<0.000000e+00> : vector<64x64xf32>
    %307 = tpu.matmul %304, %306, %cst_256 {dimension_numbers = #tpu.dot_dimension_numbers<[1], [0], [0], [1], [0, 0, 1, 1], [], []>} : vector<64x32xbf16>, vector<32x64xbf16>, vector<64x64xf32> -> vector<64x64xf32>
    %308 = arith.addf %302, %307 : vector<64x64xf32>
    %c2_257 = arith.constant 2 : index
    %c0_258 = arith.constant 0 : index
    %309 = vector.load %arg14[%c2_257, %c0_258] : memref<12x256xf32, #tpu.memory_space<vmem>>, vector<1x64xf32>
    %310 = vector.broadcast %309 : vector<1x64xf32> to vector<64x64xf32>
    %311 = arith.addf %308, %310 : vector<64x64xf32>
    %cst_259 = arith.constant 5.000000e-01 : f32
    %312 = vector.broadcast %cst_259 : f32 to vector<64x64xf32>
    %313 = arith.mulf %312, %311 : vector<64x64xf32>
    %cst_260 = arith.constant 0.707106769 : f32
    %314 = vector.broadcast %cst_260 : f32 to vector<64x64xf32>
    %315 = arith.mulf %311, %314 : vector<64x64xf32>
    %cst_261 = arith.constant 0.000000e+00 : f32
    %316 = vector.broadcast %cst_261 : f32 to vector<64x64xf32>
    %317 = arith.cmpf oge, %315, %316 : vector<64x64xf32>
    %cst_262 = arith.constant 1.000000e+00 : f32
    %cst_263 = arith.constant -1.000000e+00 : f32
    %318 = vector.broadcast %cst_262 : f32 to vector<64x64xf32>
    %319 = vector.broadcast %cst_263 : f32 to vector<64x64xf32>
    %320 = arith.select %317, %318, %319 : vector<64x64xi1>, vector<64x64xf32>
    %321 = math.absf %315 : vector<64x64xf32>
    %cst_264 = arith.constant 0.327591091 : f32
    %322 = vector.broadcast %cst_264 : f32 to vector<64x64xf32>
    %323 = arith.mulf %322, %321 : vector<64x64xf32>
    %cst_265 = arith.constant 1.000000e+00 : f32
    %324 = vector.broadcast %cst_265 : f32 to vector<64x64xf32>
    %325 = arith.addf %324, %323 : vector<64x64xf32>
    %326 = tpu.reciprocal %325 : vector<64x64xf32> -> vector<64x64xf32>
    %cst_266 = arith.constant 1.06140542 : f32
    %327 = vector.broadcast %cst_266 : f32 to vector<64x64xf32>
    %328 = arith.mulf %327, %326 : vector<64x64xf32>
    %cst_267 = arith.constant -1.45315206 : f32
    %329 = vector.broadcast %cst_267 : f32 to vector<64x64xf32>
    %330 = arith.addf %328, %329 : vector<64x64xf32>
    %331 = arith.mulf %330, %326 : vector<64x64xf32>
    %cst_268 = arith.constant 1.42141378 : f32
    %332 = vector.broadcast %cst_268 : f32 to vector<64x64xf32>
    %333 = arith.addf %331, %332 : vector<64x64xf32>
    %334 = arith.mulf %333, %326 : vector<64x64xf32>
    %cst_269 = arith.constant -0.284496725 : f32
    %335 = vector.broadcast %cst_269 : f32 to vector<64x64xf32>
    %336 = arith.addf %334, %335 : vector<64x64xf32>
    %337 = arith.mulf %336, %326 : vector<64x64xf32>
    %cst_270 = arith.constant 0.254829586 : f32
    %338 = vector.broadcast %cst_270 : f32 to vector<64x64xf32>
    %339 = arith.addf %337, %338 : vector<64x64xf32>
    %340 = arith.mulf %339, %326 : vector<64x64xf32>
    %cst_271 = arith.constant 0.000000e+00 : f32
    %341 = vector.broadcast %cst_271 : f32 to vector<64x64xf32>
    %342 = arith.subf %341, %321 : vector<64x64xf32>
    %343 = arith.mulf %342, %321 : vector<64x64xf32>
    %344 = math.exp %343 : vector<64x64xf32>
    %345 = arith.mulf %340, %344 : vector<64x64xf32>
    %cst_272 = arith.constant 1.000000e+00 : f32
    %346 = vector.broadcast %cst_272 : f32 to vector<64x64xf32>
    %347 = arith.subf %346, %345 : vector<64x64xf32>
    %348 = arith.mulf %320, %347 : vector<64x64xf32>
    %cst_273 = arith.constant 1.000000e+00 : f32
    %349 = vector.broadcast %cst_273 : f32 to vector<64x64xf32>
    %350 = arith.addf %349, %348 : vector<64x64xf32>
    %351 = arith.mulf %313, %350 : vector<64x64xf32>
    %cst_274 = arith.constant 0.000000e+00 : f32
    %352 = vector.broadcast %cst_274 : f32 to vector<3x64xf32>
    %c0_275 = arith.constant 0 : index
    %c0_276 = arith.constant 0 : index
    %353 = vector.load %arg21[%c0_275, %c0_276] : memref<72x64xf32, #tpu.memory_space<vmem>>, vector<3x64xf32>
    tpu.vector_store %arg21[%c0_275, %c0_276], %352 {strides = array<i32>} : memref<72x64xf32, #tpu.memory_space<vmem>>, vector<3x64xf32>,
    %c3_277 = arith.constant 3 : index
    %c0_278 = arith.constant 0 : index
    %354 = vector.load %arg21[%c3_277, %c0_278] : memref<72x64xf32, #tpu.memory_space<vmem>>, vector<64x64xf32>
    tpu.vector_store %arg21[%c3_277, %c0_278], %351 {strides = array<i32>} : memref<72x64xf32, #tpu.memory_space<vmem>>, vector<64x64xf32>,
    %cst_279 = arith.constant 0.000000e+00 : f32
    %355 = vector.broadcast %cst_279 : f32 to vector<6x64xf32>
    %c66 = arith.constant 66 : index
    %c0_280 = arith.constant 0 : index
    %356 = vector.load %arg21[%c66, %c0_280] : memref<72x64xf32, #tpu.memory_space<vmem>>, vector<6x64xf32>
    tpu.vector_store %arg21[%c66, %c0_280], %355 {strides = array<i32>} : memref<72x64xf32, #tpu.memory_space<vmem>>, vector<6x64xf32>,
    %c0_281 = arith.constant 0 : index
    %c0_282 = arith.constant 0 : index
    %357 = vector.load %arg21[%c0_281, %c0_282] : memref<72x64xf32, #tpu.memory_space<vmem>>, vector<64x64xf32>
    %358 = arith.truncf %357 : vector<64x64xf32> to vector<64x64xbf16>
    %c0_283 = arith.constant 0 : index
    %c0_284 = arith.constant 0 : index
    %c0_285 = arith.constant 0 : index
    %359 = vector.load %arg6[%c0_283, %c0_284, %c0_285] : memref<7x64x64xbf16, #tpu.memory_space<vmem>>, vector<1x64x64xbf16>
    %360 = vector.shape_cast %359 : vector<1x64x64xbf16> to vector<64x64xbf16>
    %cst_286 = arith.constant dense<0.000000e+00> : vector<64x64xf32>
    %361 = tpu.matmul %358, %360, %cst_286 {dimension_numbers = #tpu.dot_dimension_numbers<[1], [0], [0], [1], [0, 0, 1, 1], [], []>} : vector<64x64xbf16>, vector<64x64xbf16>, vector<64x64xf32> -> vector<64x64xf32>
    %c1_287 = arith.constant 1 : index
    %c0_288 = arith.constant 0 : index
    %362 = vector.load %arg21[%c1_287, %c0_288] : memref<72x64xf32, #tpu.memory_space<vmem>>, vector<64x64xf32>
    %363 = arith.truncf %362 : vector<64x64xf32> to vector<64x64xbf16>
    %c1_289 = arith.constant 1 : index
    %c0_290 = arith.constant 0 : index
    %c0_291 = arith.constant 0 : index
    %364 = vector.load %arg6[%c1_289, %c0_290, %c0_291] : memref<7x64x64xbf16, #tpu.memory_space<vmem>>, vector<1x64x64xbf16>
    %365 = vector.shape_cast %364 : vector<1x64x64xbf16> to vector<64x64xbf16>
    %cst_292 = arith.constant dense<0.000000e+00> : vector<64x64xf32>
    %366 = tpu.matmul %363, %365, %cst_292 {dimension_numbers = #tpu.dot_dimension_numbers<[1], [0], [0], [1], [0, 0, 1, 1], [], []>} : vector<64x64xbf16>, vector<64x64xbf16>, vector<64x64xf32> -> vector<64x64xf32>
    %367 = arith.addf %361, %366 : vector<64x64xf32>
    %c2_293 = arith.constant 2 : index
    %c0_294 = arith.constant 0 : index
    %368 = vector.load %arg21[%c2_293, %c0_294] : memref<72x64xf32, #tpu.memory_space<vmem>>, vector<64x64xf32>
    %369 = arith.truncf %368 : vector<64x64xf32> to vector<64x64xbf16>
    %c2_295 = arith.constant 2 : index
    %c0_296 = arith.constant 0 : index
    %c0_297 = arith.constant 0 : index
    %370 = vector.load %arg6[%c2_295, %c0_296, %c0_297] : memref<7x64x64xbf16, #tpu.memory_space<vmem>>, vector<1x64x64xbf16>
    %371 = vector.shape_cast %370 : vector<1x64x64xbf16> to vector<64x64xbf16>
    %cst_298 = arith.constant dense<0.000000e+00> : vector<64x64xf32>
    %372 = tpu.matmul %369, %371, %cst_298 {dimension_numbers = #tpu.dot_dimension_numbers<[1], [0], [0], [1], [0, 0, 1, 1], [], []>} : vector<64x64xbf16>, vector<64x64xbf16>, vector<64x64xf32> -> vector<64x64xf32>
    %373 = arith.addf %367, %372 : vector<64x64xf32>
    %c3_299 = arith.constant 3 : index
    %c0_300 = arith.constant 0 : index
    %374 = vector.load %arg21[%c3_299, %c0_300] : memref<72x64xf32, #tpu.memory_space<vmem>>, vector<64x64xf32>
    %375 = arith.truncf %374 : vector<64x64xf32> to vector<64x64xbf16>
    %c3_301 = arith.constant 3 : index
    %c0_302 = arith.constant 0 : index
    %c0_303 = arith.constant 0 : index
    %376 = vector.load %arg6[%c3_301, %c0_302, %c0_303] : memref<7x64x64xbf16, #tpu.memory_space<vmem>>, vector<1x64x64xbf16>
    %377 = vector.shape_cast %376 : vector<1x64x64xbf16> to vector<64x64xbf16>
    %cst_304 = arith.constant dense<0.000000e+00> : vector<64x64xf32>
    %378 = tpu.matmul %375, %377, %cst_304 {dimension_numbers = #tpu.dot_dimension_numbers<[1], [0], [0], [1], [0, 0, 1, 1], [], []>} : vector<64x64xbf16>, vector<64x64xbf16>, vector<64x64xf32> -> vector<64x64xf32>
    %379 = arith.addf %373, %378 : vector<64x64xf32>
    %c4_305 = arith.constant 4 : index
    %c0_306 = arith.constant 0 : index
    %380 = vector.load %arg21[%c4_305, %c0_306] : memref<72x64xf32, #tpu.memory_space<vmem>>, vector<64x64xf32>
    %381 = arith.truncf %380 : vector<64x64xf32> to vector<64x64xbf16>
    %c4_307 = arith.constant 4 : index
    %c0_308 = arith.constant 0 : index
    %c0_309 = arith.constant 0 : index
    %382 = vector.load %arg6[%c4_307, %c0_308, %c0_309] : memref<7x64x64xbf16, #tpu.memory_space<vmem>>, vector<1x64x64xbf16>
    %383 = vector.shape_cast %382 : vector<1x64x64xbf16> to vector<64x64xbf16>
    %cst_310 = arith.constant dense<0.000000e+00> : vector<64x64xf32>
    %384 = tpu.matmul %381, %383, %cst_310 {dimension_numbers = #tpu.dot_dimension_numbers<[1], [0], [0], [1], [0, 0, 1, 1], [], []>} : vector<64x64xbf16>, vector<64x64xbf16>, vector<64x64xf32> -> vector<64x64xf32>
    %385 = arith.addf %379, %384 : vector<64x64xf32>
    %c5_311 = arith.constant 5 : index
    %c0_312 = arith.constant 0 : index
    %386 = vector.load %arg21[%c5_311, %c0_312] : memref<72x64xf32, #tpu.memory_space<vmem>>, vector<64x64xf32>
    %387 = arith.truncf %386 : vector<64x64xf32> to vector<64x64xbf16>
    %c5_313 = arith.constant 5 : index
    %c0_314 = arith.constant 0 : index
    %c0_315 = arith.constant 0 : index
    %388 = vector.load %arg6[%c5_313, %c0_314, %c0_315] : memref<7x64x64xbf16, #tpu.memory_space<vmem>>, vector<1x64x64xbf16>
    %389 = vector.shape_cast %388 : vector<1x64x64xbf16> to vector<64x64xbf16>
    %cst_316 = arith.constant dense<0.000000e+00> : vector<64x64xf32>
    %390 = tpu.matmul %387, %389, %cst_316 {dimension_numbers = #tpu.dot_dimension_numbers<[1], [0], [0], [1], [0, 0, 1, 1], [], []>} : vector<64x64xbf16>, vector<64x64xbf16>, vector<64x64xf32> -> vector<64x64xf32>
    %391 = arith.addf %385, %390 : vector<64x64xf32>
    %c6_317 = arith.constant 6 : index
    %c0_318 = arith.constant 0 : index
    %392 = vector.load %arg21[%c6_317, %c0_318] : memref<72x64xf32, #tpu.memory_space<vmem>>, vector<64x64xf32>
    %393 = arith.truncf %392 : vector<64x64xf32> to vector<64x64xbf16>
    %c6_319 = arith.constant 6 : index
    %c0_320 = arith.constant 0 : index
    %c0_321 = arith.constant 0 : index
    %394 = vector.load %arg6[%c6_319, %c0_320, %c0_321] : memref<7x64x64xbf16, #tpu.memory_space<vmem>>, vector<1x64x64xbf16>
    %395 = vector.shape_cast %394 : vector<1x64x64xbf16> to vector<64x64xbf16>
    %cst_322 = arith.constant dense<0.000000e+00> : vector<64x64xf32>
    %396 = tpu.matmul %393, %395, %cst_322 {dimension_numbers = #tpu.dot_dimension_numbers<[1], [0], [0], [1], [0, 0, 1, 1], [], []>} : vector<64x64xbf16>, vector<64x64xbf16>, vector<64x64xf32> -> vector<64x64xf32>
    %397 = arith.addf %391, %396 : vector<64x64xf32>
    %c3_323 = arith.constant 3 : index
    %c0_324 = arith.constant 0 : index
    %398 = vector.load %arg14[%c3_323, %c0_324] : memref<12x256xf32, #tpu.memory_space<vmem>>, vector<1x64xf32>
    %399 = vector.broadcast %398 : vector<1x64xf32> to vector<64x64xf32>
    %400 = arith.addf %397, %399 : vector<64x64xf32>
    %cst_325 = arith.constant 5.000000e-01 : f32
    %401 = vector.broadcast %cst_325 : f32 to vector<64x64xf32>
    %402 = arith.mulf %401, %400 : vector<64x64xf32>
    %cst_326 = arith.constant 0.707106769 : f32
    %403 = vector.broadcast %cst_326 : f32 to vector<64x64xf32>
    %404 = arith.mulf %400, %403 : vector<64x64xf32>
    %cst_327 = arith.constant 0.000000e+00 : f32
    %405 = vector.broadcast %cst_327 : f32 to vector<64x64xf32>
    %406 = arith.cmpf oge, %404, %405 : vector<64x64xf32>
    %cst_328 = arith.constant 1.000000e+00 : f32
    %cst_329 = arith.constant -1.000000e+00 : f32
    %407 = vector.broadcast %cst_328 : f32 to vector<64x64xf32>
    %408 = vector.broadcast %cst_329 : f32 to vector<64x64xf32>
    %409 = arith.select %406, %407, %408 : vector<64x64xi1>, vector<64x64xf32>
    %410 = math.absf %404 : vector<64x64xf32>
    %cst_330 = arith.constant 0.327591091 : f32
    %411 = vector.broadcast %cst_330 : f32 to vector<64x64xf32>
    %412 = arith.mulf %411, %410 : vector<64x64xf32>
    %cst_331 = arith.constant 1.000000e+00 : f32
    %413 = vector.broadcast %cst_331 : f32 to vector<64x64xf32>
    %414 = arith.addf %413, %412 : vector<64x64xf32>
    %415 = tpu.reciprocal %414 : vector<64x64xf32> -> vector<64x64xf32>
    %cst_332 = arith.constant 1.06140542 : f32
    %416 = vector.broadcast %cst_332 : f32 to vector<64x64xf32>
    %417 = arith.mulf %416, %415 : vector<64x64xf32>
    %cst_333 = arith.constant -1.45315206 : f32
    %418 = vector.broadcast %cst_333 : f32 to vector<64x64xf32>
    %419 = arith.addf %417, %418 : vector<64x64xf32>
    %420 = arith.mulf %419, %415 : vector<64x64xf32>
    %cst_334 = arith.constant 1.42141378 : f32
    %421 = vector.broadcast %cst_334 : f32 to vector<64x64xf32>
    %422 = arith.addf %420, %421 : vector<64x64xf32>
    %423 = arith.mulf %422, %415 : vector<64x64xf32>
    %cst_335 = arith.constant -0.284496725 : f32
    %424 = vector.broadcast %cst_335 : f32 to vector<64x64xf32>
    %425 = arith.addf %423, %424 : vector<64x64xf32>
    %426 = arith.mulf %425, %415 : vector<64x64xf32>
    %cst_336 = arith.constant 0.254829586 : f32
    %427 = vector.broadcast %cst_336 : f32 to vector<64x64xf32>
    %428 = arith.addf %426, %427 : vector<64x64xf32>
    %429 = arith.mulf %428, %415 : vector<64x64xf32>
    %cst_337 = arith.constant 0.000000e+00 : f32
    %430 = vector.broadcast %cst_337 : f32 to vector<64x64xf32>
    %431 = arith.subf %430, %410 : vector<64x64xf32>
    %432 = arith.mulf %431, %410 : vector<64x64xf32>
    %433 = math.exp %432 : vector<64x64xf32>
    %434 = arith.mulf %429, %433 : vector<64x64xf32>
    %cst_338 = arith.constant 1.000000e+00 : f32
    %435 = vector.broadcast %cst_338 : f32 to vector<64x64xf32>
    %436 = arith.subf %435, %434 : vector<64x64xf32>
    %437 = arith.mulf %409, %436 : vector<64x64xf32>
    %cst_339 = arith.constant 1.000000e+00 : f32
    %438 = vector.broadcast %cst_339 : f32 to vector<64x64xf32>
    %439 = arith.addf %438, %437 : vector<64x64xf32>
    %440 = arith.mulf %402, %439 : vector<64x64xf32>
    %c3_340 = arith.constant 3 : index
    %c0_341 = arith.constant 0 : index
    %441 = tpu.strided_load %arg20[%c3_340, %c0_341] {strides = array<i32: 2, 1>} : memref<136x32xf32, #tpu.memory_space<vmem>>, vector<64x32xf32>
    %442 = arith.truncf %441 : vector<64x32xf32> to vector<64x32xbf16>
    %c0_342 = arith.constant 0 : index
    %c0_343 = arith.constant 0 : index
    %443 = vector.load %arg7[%c0_342, %c0_343] : memref<32x64xbf16, #tpu.memory_space<vmem>>, vector<32x64xbf16>
    %cst_344 = arith.constant dense<0.000000e+00> : vector<64x64xf32>
    %444 = tpu.matmul %442, %443, %cst_344 {dimension_numbers = #tpu.dot_dimension_numbers<[1], [0], [0], [1], [0, 0, 1, 1], [], []>} : vector<64x32xbf16>, vector<32x64xbf16>, vector<64x64xf32> -> vector<64x64xf32>
    %c4_345 = arith.constant 4 : index
    %c0_346 = arith.constant 0 : index
    %445 = vector.load %arg14[%c4_345, %c0_346] : memref<12x256xf32, #tpu.memory_space<vmem>>, vector<1x64xf32>
    %446 = vector.broadcast %445 : vector<1x64xf32> to vector<64x64xf32>
    %447 = arith.addf %444, %446 : vector<64x64xf32>
    %448 = arith.addf %440, %447 : vector<64x64xf32>
    %cst_347 = arith.constant 0xFF800000 : f32
    %449 = vector.broadcast %cst_347 : f32 to vector<1x64xf32>
    %c0_348 = arith.constant 0 : index
    %c0_349 = arith.constant 0 : index
    %450 = vector.load %arg22[%c0_348, %c0_349] : memref<72x64xf32, #tpu.memory_space<vmem>>, vector<1x64xf32>
    tpu.vector_store %arg22[%c0_348, %c0_349], %449 {strides = array<i32>} : memref<72x64xf32, #tpu.memory_space<vmem>>, vector<1x64xf32>,
    %c1_350 = arith.constant 1 : index
    %c0_351 = arith.constant 0 : index
    %451 = vector.load %arg22[%c1_350, %c0_351] : memref<72x64xf32, #tpu.memory_space<vmem>>, vector<64x64xf32>
    tpu.vector_store %arg22[%c1_350, %c0_351], %448 {strides = array<i32>} : memref<72x64xf32, #tpu.memory_space<vmem>>, vector<64x64xf32>,
    %cst_352 = arith.constant 0xFF800000 : f32
    %452 = vector.broadcast %cst_352 : f32 to vector<8x64xf32>
    %c64 = arith.constant 64 : index
    %c0_353 = arith.constant 0 : index
    %453 = vector.load %arg22[%c64, %c0_353] : memref<72x64xf32, #tpu.memory_space<vmem>>, vector<8x64xf32>
    tpu.vector_store %arg22[%c64, %c0_353], %452 {strides = array<i32>} : memref<72x64xf32, #tpu.memory_space<vmem>>, vector<8x64xf32>,
    %c0_354 = arith.constant 0 : index
    %c0_355 = arith.constant 0 : index
    %454 = tpu.strided_load %arg22[%c0_354, %c0_355] {strides = array<i32: 3, 1>} : memref<72x64xf32, #tpu.memory_space<vmem>>, vector<24x64xf32>
    %c1_356 = arith.constant 1 : index
    %c0_357 = arith.constant 0 : index
    %455 = tpu.strided_load %arg22[%c1_356, %c0_357] {strides = array<i32: 3, 1>} : memref<72x64xf32, #tpu.memory_space<vmem>>, vector<24x64xf32>
    %456 = arith.maximumf %454, %455 : vector<24x64xf32>
    %c2_358 = arith.constant 2 : index
    %c0_359 = arith.constant 0 : index
    %457 = tpu.strided_load %arg22[%c2_358, %c0_359] {strides = array<i32: 3, 1>} : memref<72x64xf32, #tpu.memory_space<vmem>>, vector<24x64xf32>
    %458 = arith.maximumf %456, %457 : vector<24x64xf32>
    %cst_360 = arith.constant 0.000000e+00 : f32
    %459 = vector.broadcast %cst_360 : f32 to vector<3x64xf32>
    %c0_361 = arith.constant 0 : index
    %c0_362 = arith.constant 0 : index
    %460 = vector.load %arg23[%c0_361, %c0_362] : memref<40x64xf32, #tpu.memory_space<vmem>>, vector<3x64xf32>
    tpu.vector_store %arg23[%c0_361, %c0_362], %459 {strides = array<i32>} : memref<40x64xf32, #tpu.memory_space<vmem>>, vector<3x64xf32>,
    %c3_363 = arith.constant 3 : index
    %c0_364 = arith.constant 0 : index
    %461 = vector.load %arg23[%c3_363, %c0_364] : memref<40x64xf32, #tpu.memory_space<vmem>>, vector<24x64xf32>
    tpu.vector_store %arg23[%c3_363, %c0_364], %458 {strides = array<i32>} : memref<40x64xf32, #tpu.memory_space<vmem>>, vector<24x64xf32>,
    %cst_365 = arith.constant 0.000000e+00 : f32
    %462 = vector.broadcast %cst_365 : f32 to vector<16x64xf32>
    %c24 = arith.constant 24 : index
    %c0_366 = arith.constant 0 : index
    %463 = vector.load %arg23[%c24, %c0_366] : memref<40x64xf32, #tpu.memory_space<vmem>>, vector<16x64xf32>
    tpu.vector_store %arg23[%c24, %c0_366], %462 {strides = array<i32>} : memref<40x64xf32, #tpu.memory_space<vmem>>, vector<16x64xf32>,
    %c0_367 = arith.constant 0 : index
    %c0_368 = arith.constant 0 : index
    %464 = tpu.strided_load %arg23[%c0_367, %c0_368] {strides = array<i32: 2, 1>} : memref<40x64xf32, #tpu.memory_space<vmem>>, vector<16x64xf32>
    %465 = arith.truncf %464 : vector<16x64xf32> to vector<16x64xbf16>
    %c0_369 = arith.constant 0 : index
    %c0_370 = arith.constant 0 : index
    %c0_371 = arith.constant 0 : index
    %466 = vector.load %arg8[%c0_369, %c0_370, %c0_371] : memref<7x64x128xbf16, #tpu.memory_space<vmem>>, vector<1x64x128xbf16>
    %467 = vector.shape_cast %466 : vector<1x64x128xbf16> to vector<64x128xbf16>
    %cst_372 = arith.constant dense<0.000000e+00> : vector<16x128xf32>
    %468 = tpu.matmul %465, %467, %cst_372 {dimension_numbers = #tpu.dot_dimension_numbers<[1], [0], [0], [1], [0, 0, 1, 1], [], []>} : vector<16x64xbf16>, vector<64x128xbf16>, vector<16x128xf32> -> vector<16x128xf32>
    %c1_373 = arith.constant 1 : index
    %c0_374 = arith.constant 0 : index
    %469 = tpu.strided_load %arg23[%c1_373, %c0_374] {strides = array<i32: 2, 1>} : memref<40x64xf32, #tpu.memory_space<vmem>>, vector<16x64xf32>
    %470 = arith.truncf %469 : vector<16x64xf32> to vector<16x64xbf16>
    %c1_375 = arith.constant 1 : index
    %c0_376 = arith.constant 0 : index
    %c0_377 = arith.constant 0 : index
    %471 = vector.load %arg8[%c1_375, %c0_376, %c0_377] : memref<7x64x128xbf16, #tpu.memory_space<vmem>>, vector<1x64x128xbf16>
    %472 = vector.shape_cast %471 : vector<1x64x128xbf16> to vector<64x128xbf16>
    %cst_378 = arith.constant dense<0.000000e+00> : vector<16x128xf32>
    %473 = tpu.matmul %470, %472, %cst_378 {dimension_numbers = #tpu.dot_dimension_numbers<[1], [0], [0], [1], [0, 0, 1, 1], [], []>} : vector<16x64xbf16>, vector<64x128xbf16>, vector<16x128xf32> -> vector<16x128xf32>
    %474 = arith.addf %468, %473 : vector<16x128xf32>
    %c2_379 = arith.constant 2 : index
    %c0_380 = arith.constant 0 : index
    %475 = tpu.strided_load %arg23[%c2_379, %c0_380] {strides = array<i32: 2, 1>} : memref<40x64xf32, #tpu.memory_space<vmem>>, vector<16x64xf32>
    %476 = arith.truncf %475 : vector<16x64xf32> to vector<16x64xbf16>
    %c2_381 = arith.constant 2 : index
    %c0_382 = arith.constant 0 : index
    %c0_383 = arith.constant 0 : index
    %477 = vector.load %arg8[%c2_381, %c0_382, %c0_383] : memref<7x64x128xbf16, #tpu.memory_space<vmem>>, vector<1x64x128xbf16>
    %478 = vector.shape_cast %477 : vector<1x64x128xbf16> to vector<64x128xbf16>
    %cst_384 = arith.constant dense<0.000000e+00> : vector<16x128xf32>
    %479 = tpu.matmul %476, %478, %cst_384 {dimension_numbers = #tpu.dot_dimension_numbers<[1], [0], [0], [1], [0, 0, 1, 1], [], []>} : vector<16x64xbf16>, vector<64x128xbf16>, vector<16x128xf32> -> vector<16x128xf32>
    %480 = arith.addf %474, %479 : vector<16x128xf32>
    %c3_385 = arith.constant 3 : index
    %c0_386 = arith.constant 0 : index
    %481 = tpu.strided_load %arg23[%c3_385, %c0_386] {strides = array<i32: 2, 1>} : memref<40x64xf32, #tpu.memory_space<vmem>>, vector<16x64xf32>
    %482 = arith.truncf %481 : vector<16x64xf32> to vector<16x64xbf16>
    %c3_387 = arith.constant 3 : index
    %c0_388 = arith.constant 0 : index
    %c0_389 = arith.constant 0 : index
    %483 = vector.load %arg8[%c3_387, %c0_388, %c0_389] : memref<7x64x128xbf16, #tpu.memory_space<vmem>>, vector<1x64x128xbf16>
    %484 = vector.shape_cast %483 : vector<1x64x128xbf16> to vector<64x128xbf16>
    %cst_390 = arith.constant dense<0.000000e+00> : vector<16x128xf32>
    %485 = tpu.matmul %482, %484, %cst_390 {dimension_numbers = #tpu.dot_dimension_numbers<[1], [0], [0], [1], [0, 0, 1, 1], [], []>} : vector<16x64xbf16>, vector<64x128xbf16>, vector<16x128xf32> -> vector<16x128xf32>
    %486 = arith.addf %480, %485 : vector<16x128xf32>
    %c4_391 = arith.constant 4 : index
    %c0_392 = arith.constant 0 : index
    %487 = tpu.strided_load %arg23[%c4_391, %c0_392] {strides = array<i32: 2, 1>} : memref<40x64xf32, #tpu.memory_space<vmem>>, vector<16x64xf32>
    %488 = arith.truncf %487 : vector<16x64xf32> to vector<16x64xbf16>
    %c4_393 = arith.constant 4 : index
    %c0_394 = arith.constant 0 : index
    %c0_395 = arith.constant 0 : index
    %489 = vector.load %arg8[%c4_393, %c0_394, %c0_395] : memref<7x64x128xbf16, #tpu.memory_space<vmem>>, vector<1x64x128xbf16>
    %490 = vector.shape_cast %489 : vector<1x64x128xbf16> to vector<64x128xbf16>
    %cst_396 = arith.constant dense<0.000000e+00> : vector<16x128xf32>
    %491 = tpu.matmul %488, %490, %cst_396 {dimension_numbers = #tpu.dot_dimension_numbers<[1], [0], [0], [1], [0, 0, 1, 1], [], []>} : vector<16x64xbf16>, vector<64x128xbf16>, vector<16x128xf32> -> vector<16x128xf32>
    %492 = arith.addf %486, %491 : vector<16x128xf32>
    %c5_397 = arith.constant 5 : index
    %c0_398 = arith.constant 0 : index
    %493 = tpu.strided_load %arg23[%c5_397, %c0_398] {strides = array<i32: 2, 1>} : memref<40x64xf32, #tpu.memory_space<vmem>>, vector<16x64xf32>
    %494 = arith.truncf %493 : vector<16x64xf32> to vector<16x64xbf16>
    %c5_399 = arith.constant 5 : index
    %c0_400 = arith.constant 0 : index
    %c0_401 = arith.constant 0 : index
    %495 = vector.load %arg8[%c5_399, %c0_400, %c0_401] : memref<7x64x128xbf16, #tpu.memory_space<vmem>>, vector<1x64x128xbf16>
    %496 = vector.shape_cast %495 : vector<1x64x128xbf16> to vector<64x128xbf16>
    %cst_402 = arith.constant dense<0.000000e+00> : vector<16x128xf32>
    %497 = tpu.matmul %494, %496, %cst_402 {dimension_numbers = #tpu.dot_dimension_numbers<[1], [0], [0], [1], [0, 0, 1, 1], [], []>} : vector<16x64xbf16>, vector<64x128xbf16>, vector<16x128xf32> -> vector<16x128xf32>
    %498 = arith.addf %492, %497 : vector<16x128xf32>
    %c6_403 = arith.constant 6 : index
    %c0_404 = arith.constant 0 : index
    %499 = tpu.strided_load %arg23[%c6_403, %c0_404] {strides = array<i32: 2, 1>} : memref<40x64xf32, #tpu.memory_space<vmem>>, vector<16x64xf32>
    %500 = arith.truncf %499 : vector<16x64xf32> to vector<16x64xbf16>
    %c6_405 = arith.constant 6 : index
    %c0_406 = arith.constant 0 : index
    %c0_407 = arith.constant 0 : index
    %501 = vector.load %arg8[%c6_405, %c0_406, %c0_407] : memref<7x64x128xbf16, #tpu.memory_space<vmem>>, vector<1x64x128xbf16>
    %502 = vector.shape_cast %501 : vector<1x64x128xbf16> to vector<64x128xbf16>
    %cst_408 = arith.constant dense<0.000000e+00> : vector<16x128xf32>
    %503 = tpu.matmul %500, %502, %cst_408 {dimension_numbers = #tpu.dot_dimension_numbers<[1], [0], [0], [1], [0, 0, 1, 1], [], []>} : vector<16x64xbf16>, vector<64x128xbf16>, vector<16x128xf32> -> vector<16x128xf32>
    %504 = arith.addf %498, %503 : vector<16x128xf32>
    %c5_409 = arith.constant 5 : index
    %c0_410 = arith.constant 0 : index
    %505 = vector.load %arg14[%c5_409, %c0_410] : memref<12x256xf32, #tpu.memory_space<vmem>>, vector<1x128xf32>
    %506 = vector.broadcast %505 : vector<1x128xf32> to vector<16x128xf32>
    %507 = arith.addf %504, %506 : vector<16x128xf32>
    %cst_411 = arith.constant 5.000000e-01 : f32
    %508 = vector.broadcast %cst_411 : f32 to vector<16x128xf32>
    %509 = arith.mulf %508, %507 : vector<16x128xf32>
    %cst_412 = arith.constant 0.707106769 : f32
    %510 = vector.broadcast %cst_412 : f32 to vector<16x128xf32>
    %511 = arith.mulf %507, %510 : vector<16x128xf32>
    %cst_413 = arith.constant 0.000000e+00 : f32
    %512 = vector.broadcast %cst_413 : f32 to vector<16x128xf32>
    %513 = arith.cmpf oge, %511, %512 : vector<16x128xf32>
    %cst_414 = arith.constant 1.000000e+00 : f32
    %cst_415 = arith.constant -1.000000e+00 : f32
    %514 = vector.broadcast %cst_414 : f32 to vector<16x128xf32>
    %515 = vector.broadcast %cst_415 : f32 to vector<16x128xf32>
    %516 = arith.select %513, %514, %515 : vector<16x128xi1>, vector<16x128xf32>
    %517 = math.absf %511 : vector<16x128xf32>
    %cst_416 = arith.constant 0.327591091 : f32
    %518 = vector.broadcast %cst_416 : f32 to vector<16x128xf32>
    %519 = arith.mulf %518, %517 : vector<16x128xf32>
    %cst_417 = arith.constant 1.000000e+00 : f32
    %520 = vector.broadcast %cst_417 : f32 to vector<16x128xf32>
    %521 = arith.addf %520, %519 : vector<16x128xf32>
    %522 = tpu.reciprocal %521 : vector<16x128xf32> -> vector<16x128xf32>
    %cst_418 = arith.constant 1.06140542 : f32
    %523 = vector.broadcast %cst_418 : f32 to vector<16x128xf32>
    %524 = arith.mulf %523, %522 : vector<16x128xf32>
    %cst_419 = arith.constant -1.45315206 : f32
    %525 = vector.broadcast %cst_419 : f32 to vector<16x128xf32>
    %526 = arith.addf %524, %525 : vector<16x128xf32>
    %527 = arith.mulf %526, %522 : vector<16x128xf32>
    %cst_420 = arith.constant 1.42141378 : f32
    %528 = vector.broadcast %cst_420 : f32 to vector<16x128xf32>
    %529 = arith.addf %527, %528 : vector<16x128xf32>
    %530 = arith.mulf %529, %522 : vector<16x128xf32>
    %cst_421 = arith.constant -0.284496725 : f32
    %531 = vector.broadcast %cst_421 : f32 to vector<16x128xf32>
    %532 = arith.addf %530, %531 : vector<16x128xf32>
    %533 = arith.mulf %532, %522 : vector<16x128xf32>
    %cst_422 = arith.constant 0.254829586 : f32
    %534 = vector.broadcast %cst_422 : f32 to vector<16x128xf32>
    %535 = arith.addf %533, %534 : vector<16x128xf32>
    %536 = arith.mulf %535, %522 : vector<16x128xf32>
    %cst_423 = arith.constant 0.000000e+00 : f32
    %537 = vector.broadcast %cst_423 : f32 to vector<16x128xf32>
    %538 = arith.subf %537, %517 : vector<16x128xf32>
    %539 = arith.mulf %538, %517 : vector<16x128xf32>
    %540 = math.exp %539 : vector<16x128xf32>
    %541 = arith.mulf %536, %540 : vector<16x128xf32>
    %cst_424 = arith.constant 1.000000e+00 : f32
    %542 = vector.broadcast %cst_424 : f32 to vector<16x128xf32>
    %543 = arith.subf %542, %541 : vector<16x128xf32>
    %544 = arith.mulf %516, %543 : vector<16x128xf32>
    %cst_425 = arith.constant 1.000000e+00 : f32
    %545 = vector.broadcast %cst_425 : f32 to vector<16x128xf32>
    %546 = arith.addf %545, %544 : vector<16x128xf32>
    %547 = arith.mulf %509, %546 : vector<16x128xf32>
    %cst_426 = arith.constant 0.000000e+00 : f32
    %548 = vector.broadcast %cst_426 : f32 to vector<3x128xf32>
    %c0_427 = arith.constant 0 : index
    %c0_428 = arith.constant 0 : index
    %549 = vector.load %arg24[%c0_427, %c0_428] : memref<24x128xf32, #tpu.memory_space<vmem>>, vector<3x128xf32>
    tpu.vector_store %arg24[%c0_427, %c0_428], %548 {strides = array<i32>} : memref<24x128xf32, #tpu.memory_space<vmem>>, vector<3x128xf32>,
    %c3_429 = arith.constant 3 : index
    %c0_430 = arith.constant 0 : index
    %550 = vector.load %arg24[%c3_429, %c0_430] : memref<24x128xf32, #tpu.memory_space<vmem>>, vector<16x128xf32>
    tpu.vector_store %arg24[%c3_429, %c0_430], %547 {strides = array<i32>} : memref<24x128xf32, #tpu.memory_space<vmem>>, vector<16x128xf32>,
    %cst_431 = arith.constant 0.000000e+00 : f32
    %551 = vector.broadcast %cst_431 : f32 to vector<10x128xf32>
    %c14 = arith.constant 14 : index
    %c0_432 = arith.constant 0 : index
    %552 = vector.load %arg24[%c14, %c0_432] : memref<24x128xf32, #tpu.memory_space<vmem>>, vector<10x128xf32>
    tpu.vector_store %arg24[%c14, %c0_432], %551 {strides = array<i32>} : memref<24x128xf32, #tpu.memory_space<vmem>>, vector<10x128xf32>,
    %c0_433 = arith.constant 0 : index
    %c0_434 = arith.constant 0 : index
    %553 = vector.load %arg24[%c0_433, %c0_434] : memref<24x128xf32, #tpu.memory_space<vmem>>, vector<16x128xf32>
    %c0_435 = arith.constant 0 : index
    %c0_436 = arith.constant 0 : index
    %554 = vector.load %arg25[%c0_435, %c0_436] : memref<16x896xf32, #tpu.memory_space<vmem>>, vector<16x128xf32>
    tpu.vector_store %arg25[%c0_435, %c0_436], %553 {strides = array<i32>} : memref<16x896xf32, #tpu.memory_space<vmem>>, vector<16x128xf32>,
    %c1_437 = arith.constant 1 : index
    %c0_438 = arith.constant 0 : index
    %555 = vector.load %arg24[%c1_437, %c0_438] : memref<24x128xf32, #tpu.memory_space<vmem>>, vector<16x128xf32>
    %c0_439 = arith.constant 0 : index
    %c128_440 = arith.constant 128 : index
    %556 = vector.load %arg25[%c0_439, %c128_440] : memref<16x896xf32, #tpu.memory_space<vmem>>, vector<16x128xf32>
    tpu.vector_store %arg25[%c0_439, %c128_440], %555 {strides = array<i32>} : memref<16x896xf32, #tpu.memory_space<vmem>>, vector<16x128xf32>,
    %c2_441 = arith.constant 2 : index
    %c0_442 = arith.constant 0 : index
    %557 = vector.load %arg24[%c2_441, %c0_442] : memref<24x128xf32, #tpu.memory_space<vmem>>, vector<16x128xf32>
    %c0_443 = arith.constant 0 : index
    %c256 = arith.constant 256 : index
    %558 = vector.load %arg25[%c0_443, %c256] : memref<16x896xf32, #tpu.memory_space<vmem>>, vector<16x128xf32>
    tpu.vector_store %arg25[%c0_443, %c256], %557 {strides = array<i32>} : memref<16x896xf32, #tpu.memory_space<vmem>>, vector<16x128xf32>,
    %c3_444 = arith.constant 3 : index
    %c0_445 = arith.constant 0 : index
    %559 = vector.load %arg24[%c3_444, %c0_445] : memref<24x128xf32, #tpu.memory_space<vmem>>, vector<16x128xf32>
    %c0_446 = arith.constant 0 : index
    %c384 = arith.constant 384 : index
    %560 = vector.load %arg25[%c0_446, %c384] : memref<16x896xf32, #tpu.memory_space<vmem>>, vector<16x128xf32>
    tpu.vector_store %arg25[%c0_446, %c384], %559 {strides = array<i32>} : memref<16x896xf32, #tpu.memory_space<vmem>>, vector<16x128xf32>,
    %c4_447 = arith.constant 4 : index
    %c0_448 = arith.constant 0 : index
    %561 = vector.load %arg24[%c4_447, %c0_448] : memref<24x128xf32, #tpu.memory_space<vmem>>, vector<16x128xf32>
    %c0_449 = arith.constant 0 : index
    %c512 = arith.constant 512 : index
    %562 = vector.load %arg25[%c0_449, %c512] : memref<16x896xf32, #tpu.memory_space<vmem>>, vector<16x128xf32>
    tpu.vector_store %arg25[%c0_449, %c512], %561 {strides = array<i32>} : memref<16x896xf32, #tpu.memory_space<vmem>>, vector<16x128xf32>,
    %c5_450 = arith.constant 5 : index
    %c0_451 = arith.constant 0 : index
    %563 = vector.load %arg24[%c5_450, %c0_451] : memref<24x128xf32, #tpu.memory_space<vmem>>, vector<16x128xf32>
    %c0_452 = arith.constant 0 : index
    %c640 = arith.constant 640 : index
    %564 = vector.load %arg25[%c0_452, %c640] : memref<16x896xf32, #tpu.memory_space<vmem>>, vector<16x128xf32>
    tpu.vector_store %arg25[%c0_452, %c640], %563 {strides = array<i32>} : memref<16x896xf32, #tpu.memory_space<vmem>>, vector<16x128xf32>,
    %c6_453 = arith.constant 6 : index
    %c0_454 = arith.constant 0 : index
    %565 = vector.load %arg24[%c6_453, %c0_454] : memref<24x128xf32, #tpu.memory_space<vmem>>, vector<16x128xf32>
    %c0_455 = arith.constant 0 : index
    %c768 = arith.constant 768 : index
    %566 = vector.load %arg25[%c0_455, %c768] : memref<16x896xf32, #tpu.memory_space<vmem>>, vector<16x128xf32>
    tpu.vector_store %arg25[%c0_455, %c768], %565 {strides = array<i32>} : memref<16x896xf32, #tpu.memory_space<vmem>>, vector<16x128xf32>,
    %c0_456 = arith.constant 0 : index
    %c0_457 = arith.constant 0 : index
    %567 = vector.load %arg25[%c0_456, %c0_457] : memref<16x896xf32, #tpu.memory_space<vmem>>, vector<16x896xf32>
    %568 = arith.truncf %567 : vector<16x896xf32> to vector<16x896xbf16>
    %c0_458 = arith.constant 0 : index
    %c0_459 = arith.constant 0 : index
    %569 = vector.load %arg9[%c0_458, %c0_459] : memref<896x128xbf16, #tpu.memory_space<vmem>>, vector<896x128xbf16>
    %cst_460 = arith.constant dense<0.000000e+00> : vector<16x128xf32>
    %570 = tpu.matmul %568, %569, %cst_460 {dimension_numbers = #tpu.dot_dimension_numbers<[1], [0], [0], [1], [0, 0, 1, 1], [], []>} : vector<16x896xbf16>, vector<896x128xbf16>, vector<16x128xf32> -> vector<16x128xf32>
    %c6_461 = arith.constant 6 : index
    %c0_462 = arith.constant 0 : index
    %571 = vector.load %arg14[%c6_461, %c0_462] : memref<12x256xf32, #tpu.memory_space<vmem>>, vector<1x128xf32>
    %572 = vector.broadcast %571 : vector<1x128xf32> to vector<16x128xf32>
    %573 = arith.addf %570, %572 : vector<16x128xf32>
    %cst_463 = arith.constant 5.000000e-01 : f32
    %574 = vector.broadcast %cst_463 : f32 to vector<16x128xf32>
    %575 = arith.mulf %574, %573 : vector<16x128xf32>
    %cst_464 = arith.constant 0.707106769 : f32
    %576 = vector.broadcast %cst_464 : f32 to vector<16x128xf32>
    %577 = arith.mulf %573, %576 : vector<16x128xf32>
    %cst_465 = arith.constant 0.000000e+00 : f32
    %578 = vector.broadcast %cst_465 : f32 to vector<16x128xf32>
    %579 = arith.cmpf oge, %577, %578 : vector<16x128xf32>
    %cst_466 = arith.constant 1.000000e+00 : f32
    %cst_467 = arith.constant -1.000000e+00 : f32
    %580 = vector.broadcast %cst_466 : f32 to vector<16x128xf32>
    %581 = vector.broadcast %cst_467 : f32 to vector<16x128xf32>
    %582 = arith.select %579, %580, %581 : vector<16x128xi1>, vector<16x128xf32>
    %583 = math.absf %577 : vector<16x128xf32>
    %cst_468 = arith.constant 0.327591091 : f32
    %584 = vector.broadcast %cst_468 : f32 to vector<16x128xf32>
    %585 = arith.mulf %584, %583 : vector<16x128xf32>
    %cst_469 = arith.constant 1.000000e+00 : f32
    %586 = vector.broadcast %cst_469 : f32 to vector<16x128xf32>
    %587 = arith.addf %586, %585 : vector<16x128xf32>
    %588 = tpu.reciprocal %587 : vector<16x128xf32> -> vector<16x128xf32>
    %cst_470 = arith.constant 1.06140542 : f32
    %589 = vector.broadcast %cst_470 : f32 to vector<16x128xf32>
    %590 = arith.mulf %589, %588 : vector<16x128xf32>
    %cst_471 = arith.constant -1.45315206 : f32
    %591 = vector.broadcast %cst_471 : f32 to vector<16x128xf32>
    %592 = arith.addf %590, %591 : vector<16x128xf32>
    %593 = arith.mulf %592, %588 : vector<16x128xf32>
    %cst_472 = arith.constant 1.42141378 : f32
    %594 = vector.broadcast %cst_472 : f32 to vector<16x128xf32>
    %595 = arith.addf %593, %594 : vector<16x128xf32>
    %596 = arith.mulf %595, %588 : vector<16x128xf32>
    %cst_473 = arith.constant -0.284496725 : f32
    %597 = vector.broadcast %cst_473 : f32 to vector<16x128xf32>
    %598 = arith.addf %596, %597 : vector<16x128xf32>
    %599 = arith.mulf %598, %588 : vector<16x128xf32>
    %cst_474 = arith.constant 0.254829586 : f32
    %600 = vector.broadcast %cst_474 : f32 to vector<16x128xf32>
    %601 = arith.addf %599, %600 : vector<16x128xf32>
    %602 = arith.mulf %601, %588 : vector<16x128xf32>
    %cst_475 = arith.constant 0.000000e+00 : f32
    %603 = vector.broadcast %cst_475 : f32 to vector<16x128xf32>
    %604 = arith.subf %603, %583 : vector<16x128xf32>
    %605 = arith.mulf %604, %583 : vector<16x128xf32>
    %606 = math.exp %605 : vector<16x128xf32>
    %607 = arith.mulf %602, %606 : vector<16x128xf32>
    %cst_476 = arith.constant 1.000000e+00 : f32
    %608 = vector.broadcast %cst_476 : f32 to vector<16x128xf32>
    %609 = arith.subf %608, %607 : vector<16x128xf32>
    %610 = arith.mulf %582, %609 : vector<16x128xf32>
    %cst_477 = arith.constant 1.000000e+00 : f32
    %611 = vector.broadcast %cst_477 : f32 to vector<16x128xf32>
    %612 = arith.addf %611, %610 : vector<16x128xf32>
    %613 = arith.mulf %575, %612 : vector<16x128xf32>
    %c3_478 = arith.constant 3 : index
    %c0_479 = arith.constant 0 : index
    %614 = tpu.strided_load %arg23[%c3_478, %c0_479] {strides = array<i32: 2, 1>} : memref<40x64xf32, #tpu.memory_space<vmem>>, vector<16x64xf32>
    %615 = arith.truncf %614 : vector<16x64xf32> to vector<16x64xbf16>
    %c0_480 = arith.constant 0 : index
    %c0_481 = arith.constant 0 : index
    %616 = vector.load %arg10[%c0_480, %c0_481] : memref<64x128xbf16, #tpu.memory_space<vmem>>, vector<64x128xbf16>
    %cst_482 = arith.constant dense<0.000000e+00> : vector<16x128xf32>
    %617 = tpu.matmul %615, %616, %cst_482 {dimension_numbers = #tpu.dot_dimension_numbers<[1], [0], [0], [1], [0, 0, 1, 1], [], []>} : vector<16x64xbf16>, vector<64x128xbf16>, vector<16x128xf32> -> vector<16x128xf32>
    %c7_483 = arith.constant 7 : index
    %c0_484 = arith.constant 0 : index
    %618 = vector.load %arg14[%c7_483, %c0_484] : memref<12x256xf32, #tpu.memory_space<vmem>>, vector<1x128xf32>
    %619 = vector.broadcast %618 : vector<1x128xf32> to vector<16x128xf32>
    %620 = arith.addf %617, %619 : vector<16x128xf32>
    %621 = arith.addf %613, %620 : vector<16x128xf32>
    %cst_485 = arith.constant 0xFF800000 : f32
    %622 = vector.broadcast %cst_485 : f32 to vector<1x128xf32>
    %c0_486 = arith.constant 0 : index
    %c0_487 = arith.constant 0 : index
    %623 = vector.load %arg26[%c0_486, %c0_487] : memref<24x128xf32, #tpu.memory_space<vmem>>, vector<1x128xf32>
    tpu.vector_store %arg26[%c0_486, %c0_487], %622 {strides = array<i32>} : memref<24x128xf32, #tpu.memory_space<vmem>>, vector<1x128xf32>,
    %c1_488 = arith.constant 1 : index
    %c0_489 = arith.constant 0 : index
    %624 = vector.load %arg26[%c1_488, %c0_489] : memref<24x128xf32, #tpu.memory_space<vmem>>, vector<16x128xf32>
    tpu.vector_store %arg26[%c1_488, %c0_489], %621 {strides = array<i32>} : memref<24x128xf32, #tpu.memory_space<vmem>>, vector<16x128xf32>,
    %cst_490 = arith.constant 0xFF800000 : f32
    %625 = vector.broadcast %cst_490 : f32 to vector<12x128xf32>
    %c12_491 = arith.constant 12 : index
    %c0_492 = arith.constant 0 : index
    %626 = vector.load %arg26[%c12_491, %c0_492] : memref<24x128xf32, #tpu.memory_space<vmem>>, vector<12x128xf32>
    tpu.vector_store %arg26[%c12_491, %c0_492], %625 {strides = array<i32>} : memref<24x128xf32, #tpu.memory_space<vmem>>, vector<12x128xf32>,
    %c0_493 = arith.constant 0 : index
    %c0_494 = arith.constant 0 : index
    %627 = tpu.strided_load %arg26[%c0_493, %c0_494] {strides = array<i32: 3, 1>} : memref<24x128xf32, #tpu.memory_space<vmem>>, vector<8x128xf32>
    %c1_495 = arith.constant 1 : index
    %c0_496 = arith.constant 0 : index
    %628 = tpu.strided_load %arg26[%c1_495, %c0_496] {strides = array<i32: 3, 1>} : memref<24x128xf32, #tpu.memory_space<vmem>>, vector<8x128xf32>
    %629 = arith.maximumf %627, %628 : vector<8x128xf32>
    %c2_497 = arith.constant 2 : index
    %c0_498 = arith.constant 0 : index
    %630 = tpu.strided_load %arg26[%c2_497, %c0_498] {strides = array<i32: 3, 1>} : memref<24x128xf32, #tpu.memory_space<vmem>>, vector<8x128xf32>
    %631 = arith.maximumf %629, %630 : vector<8x128xf32>
    %cst_499 = arith.constant 0.000000e+00 : f32
    %632 = vector.broadcast %cst_499 : f32 to vector<3x128xf32>
    %c0_500 = arith.constant 0 : index
    %c0_501 = arith.constant 0 : index
    %633 = vector.load %arg27[%c0_500, %c0_501] : memref<24x128xf32, #tpu.memory_space<vmem>>, vector<3x128xf32>
    tpu.vector_store %arg27[%c0_500, %c0_501], %632 {strides = array<i32>} : memref<24x128xf32, #tpu.memory_space<vmem>>, vector<3x128xf32>,
    %c3_502 = arith.constant 3 : index
    %c0_503 = arith.constant 0 : index
    %634 = vector.load %arg27[%c3_502, %c0_503] : memref<24x128xf32, #tpu.memory_space<vmem>>, vector<8x128xf32>
    tpu.vector_store %arg27[%c3_502, %c0_503], %631 {strides = array<i32>} : memref<24x128xf32, #tpu.memory_space<vmem>>, vector<8x128xf32>,
    %cst_504 = arith.constant 0.000000e+00 : f32
    %635 = vector.broadcast %cst_504 : f32 to vector<17x128xf32>
    %c7_505 = arith.constant 7 : index
    %c0_506 = arith.constant 0 : index
    %636 = vector.load %arg27[%c7_505, %c0_506] : memref<24x128xf32, #tpu.memory_space<vmem>>, vector<17x128xf32>
    tpu.vector_store %arg27[%c7_505, %c0_506], %635 {strides = array<i32>} : memref<24x128xf32, #tpu.memory_space<vmem>>, vector<17x128xf32>,
    %c0_507 = arith.constant 0 : index
    %c0_508 = arith.constant 0 : index
    %637 = tpu.strided_load %arg27[%c0_507, %c0_508] {strides = array<i32: 2, 1>} : memref<24x128xf32, #tpu.memory_space<vmem>>, vector<8x128xf32>
    %c0_509 = arith.constant 0 : index
    %c0_510 = arith.constant 0 : index
    %638 = vector.load %arg28[%c0_509, %c0_510] : memref<8x896xf32, #tpu.memory_space<vmem>>, vector<8x128xf32>
    tpu.vector_store %arg28[%c0_509, %c0_510], %637 {strides = array<i32>} : memref<8x896xf32, #tpu.memory_space<vmem>>, vector<8x128xf32>,
    %c1_511 = arith.constant 1 : index
    %c0_512 = arith.constant 0 : index
    %639 = tpu.strided_load %arg27[%c1_511, %c0_512] {strides = array<i32: 2, 1>} : memref<24x128xf32, #tpu.memory_space<vmem>>, vector<8x128xf32>
    %c0_513 = arith.constant 0 : index
    %c128_514 = arith.constant 128 : index
    %640 = vector.load %arg28[%c0_513, %c128_514] : memref<8x896xf32, #tpu.memory_space<vmem>>, vector<8x128xf32>
    tpu.vector_store %arg28[%c0_513, %c128_514], %639 {strides = array<i32>} : memref<8x896xf32, #tpu.memory_space<vmem>>, vector<8x128xf32>,
    %c2_515 = arith.constant 2 : index
    %c0_516 = arith.constant 0 : index
    %641 = tpu.strided_load %arg27[%c2_515, %c0_516] {strides = array<i32: 2, 1>} : memref<24x128xf32, #tpu.memory_space<vmem>>, vector<8x128xf32>
    %c0_517 = arith.constant 0 : index
    %c256_518 = arith.constant 256 : index
    %642 = vector.load %arg28[%c0_517, %c256_518] : memref<8x896xf32, #tpu.memory_space<vmem>>, vector<8x128xf32>
    tpu.vector_store %arg28[%c0_517, %c256_518], %641 {strides = array<i32>} : memref<8x896xf32, #tpu.memory_space<vmem>>, vector<8x128xf32>,
    %c3_519 = arith.constant 3 : index
    %c0_520 = arith.constant 0 : index
    %643 = tpu.strided_load %arg27[%c3_519, %c0_520] {strides = array<i32: 2, 1>} : memref<24x128xf32, #tpu.memory_space<vmem>>, vector<8x128xf32>
    %c0_521 = arith.constant 0 : index
    %c384_522 = arith.constant 384 : index
    %644 = vector.load %arg28[%c0_521, %c384_522] : memref<8x896xf32, #tpu.memory_space<vmem>>, vector<8x128xf32>
    tpu.vector_store %arg28[%c0_521, %c384_522], %643 {strides = array<i32>} : memref<8x896xf32, #tpu.memory_space<vmem>>, vector<8x128xf32>,
    %c4_523 = arith.constant 4 : index
    %c0_524 = arith.constant 0 : index
    %645 = tpu.strided_load %arg27[%c4_523, %c0_524] {strides = array<i32: 2, 1>} : memref<24x128xf32, #tpu.memory_space<vmem>>, vector<8x128xf32>
    %c0_525 = arith.constant 0 : index
    %c512_526 = arith.constant 512 : index
    %646 = vector.load %arg28[%c0_525, %c512_526] : memref<8x896xf32, #tpu.memory_space<vmem>>, vector<8x128xf32>
    tpu.vector_store %arg28[%c0_525, %c512_526], %645 {strides = array<i32>} : memref<8x896xf32, #tpu.memory_space<vmem>>, vector<8x128xf32>,
    %c5_527 = arith.constant 5 : index
    %c0_528 = arith.constant 0 : index
    %647 = tpu.strided_load %arg27[%c5_527, %c0_528] {strides = array<i32: 2, 1>} : memref<24x128xf32, #tpu.memory_space<vmem>>, vector<8x128xf32>
    %c0_529 = arith.constant 0 : index
    %c640_530 = arith.constant 640 : index
    %648 = vector.load %arg28[%c0_529, %c640_530] : memref<8x896xf32, #tpu.memory_space<vmem>>, vector<8x128xf32>
    tpu.vector_store %arg28[%c0_529, %c640_530], %647 {strides = array<i32>} : memref<8x896xf32, #tpu.memory_space<vmem>>, vector<8x128xf32>,
    %c6_531 = arith.constant 6 : index
    %c0_532 = arith.constant 0 : index
    %649 = tpu.strided_load %arg27[%c6_531, %c0_532] {strides = array<i32: 2, 1>} : memref<24x128xf32, #tpu.memory_space<vmem>>, vector<8x128xf32>
    %c0_533 = arith.constant 0 : index
    %c768_534 = arith.constant 768 : index
    %650 = vector.load %arg28[%c0_533, %c768_534] : memref<8x896xf32, #tpu.memory_space<vmem>>, vector<8x128xf32>
    tpu.vector_store %arg28[%c0_533, %c768_534], %649 {strides = array<i32>} : memref<8x896xf32, #tpu.memory_space<vmem>>, vector<8x128xf32>,
    %c0_535 = arith.constant 0 : index
    %c0_536 = arith.constant 0 : index
    %651 = vector.load %arg28[%c0_535, %c0_536] : memref<8x896xf32, #tpu.memory_space<vmem>>, vector<8x896xf32>
    %652 = arith.truncf %651 : vector<8x896xf32> to vector<8x896xbf16>
    %c0_537 = arith.constant 0 : index
    %c0_538 = arith.constant 0 : index
    %653 = vector.load %arg11[%c0_537, %c0_538] : memref<896x256xbf16, #tpu.memory_space<vmem>>, vector<896x256xbf16>
    %cst_539 = arith.constant dense<0.000000e+00> : vector<8x256xf32>
    %654 = tpu.matmul %652, %653, %cst_539 {dimension_numbers = #tpu.dot_dimension_numbers<[1], [0], [0], [1], [0, 0, 1, 1], [], []>} : vector<8x896xbf16>, vector<896x256xbf16>, vector<8x256xf32> -> vector<8x256xf32>
    %c8_540 = arith.constant 8 : index
    %c0_541 = arith.constant 0 : index
    %655 = vector.load %arg14[%c8_540, %c0_541] : memref<12x256xf32, #tpu.memory_space<vmem>>, vector<1x256xf32>
    %656 = vector.broadcast %655 : vector<1x256xf32> to vector<8x256xf32>
    %657 = arith.addf %654, %656 : vector<8x256xf32>
    %cst_542 = arith.constant 5.000000e-01 : f32
    %658 = vector.broadcast %cst_542 : f32 to vector<8x256xf32>
    %659 = arith.mulf %658, %657 : vector<8x256xf32>
    %cst_543 = arith.constant 0.707106769 : f32
    %660 = vector.broadcast %cst_543 : f32 to vector<8x256xf32>
    %661 = arith.mulf %657, %660 : vector<8x256xf32>
    %cst_544 = arith.constant 0.000000e+00 : f32
    %662 = vector.broadcast %cst_544 : f32 to vector<8x256xf32>
    %663 = arith.cmpf oge, %661, %662 : vector<8x256xf32>
    %cst_545 = arith.constant 1.000000e+00 : f32
    %cst_546 = arith.constant -1.000000e+00 : f32
    %664 = vector.broadcast %cst_545 : f32 to vector<8x256xf32>
    %665 = vector.broadcast %cst_546 : f32 to vector<8x256xf32>
    %666 = arith.select %663, %664, %665 : vector<8x256xi1>, vector<8x256xf32>
    %667 = math.absf %661 : vector<8x256xf32>
    %cst_547 = arith.constant 0.327591091 : f32
    %668 = vector.broadcast %cst_547 : f32 to vector<8x256xf32>
    %669 = arith.mulf %668, %667 : vector<8x256xf32>
    %cst_548 = arith.constant 1.000000e+00 : f32
    %670 = vector.broadcast %cst_548 : f32 to vector<8x256xf32>
    %671 = arith.addf %670, %669 : vector<8x256xf32>
    %672 = tpu.reciprocal %671 : vector<8x256xf32> -> vector<8x256xf32>
    %cst_549 = arith.constant 1.06140542 : f32
    %673 = vector.broadcast %cst_549 : f32 to vector<8x256xf32>
    %674 = arith.mulf %673, %672 : vector<8x256xf32>
    %cst_550 = arith.constant -1.45315206 : f32
    %675 = vector.broadcast %cst_550 : f32 to vector<8x256xf32>
    %676 = arith.addf %674, %675 : vector<8x256xf32>
    %677 = arith.mulf %676, %672 : vector<8x256xf32>
    %cst_551 = arith.constant 1.42141378 : f32
    %678 = vector.broadcast %cst_551 : f32 to vector<8x256xf32>
    %679 = arith.addf %677, %678 : vector<8x256xf32>
    %680 = arith.mulf %679, %672 : vector<8x256xf32>
    %cst_552 = arith.constant -0.284496725 : f32
    %681 = vector.broadcast %cst_552 : f32 to vector<8x256xf32>
    %682 = arith.addf %680, %681 : vector<8x256xf32>
    %683 = arith.mulf %682, %672 : vector<8x256xf32>
    %cst_553 = arith.constant 0.254829586 : f32
    %684 = vector.broadcast %cst_553 : f32 to vector<8x256xf32>
    %685 = arith.addf %683, %684 : vector<8x256xf32>
    %686 = arith.mulf %685, %672 : vector<8x256xf32>
    %cst_554 = arith.constant 0.000000e+00 : f32
    %687 = vector.broadcast %cst_554 : f32 to vector<8x256xf32>
    %688 = arith.subf %687, %667 : vector<8x256xf32>
    %689 = arith.mulf %688, %667 : vector<8x256xf32>
    %690 = math.exp %689 : vector<8x256xf32>
    %691 = arith.mulf %686, %690 : vector<8x256xf32>
    %cst_555 = arith.constant 1.000000e+00 : f32
    %692 = vector.broadcast %cst_555 : f32 to vector<8x256xf32>
    %693 = arith.subf %692, %691 : vector<8x256xf32>
    %694 = arith.mulf %666, %693 : vector<8x256xf32>
    %cst_556 = arith.constant 1.000000e+00 : f32
    %695 = vector.broadcast %cst_556 : f32 to vector<8x256xf32>
    %696 = arith.addf %695, %694 : vector<8x256xf32>
    %697 = arith.mulf %659, %696 : vector<8x256xf32>
    %cst_557 = arith.constant 0.000000e+00 : f32
    %698 = vector.broadcast %cst_557 : f32 to vector<3x256xf32>
    %c0_558 = arith.constant 0 : index
    %c0_559 = arith.constant 0 : index
    %699 = vector.load %arg29[%c0_558, %c0_559] : memref<16x256xf32, #tpu.memory_space<vmem>>, vector<3x256xf32>
    tpu.vector_store %arg29[%c0_558, %c0_559], %698 {strides = array<i32>} : memref<16x256xf32, #tpu.memory_space<vmem>>, vector<3x256xf32>,
    %c3_560 = arith.constant 3 : index
    %c0_561 = arith.constant 0 : index
    %700 = vector.load %arg29[%c3_560, %c0_561] : memref<16x256xf32, #tpu.memory_space<vmem>>, vector<8x256xf32>
    tpu.vector_store %arg29[%c3_560, %c0_561], %697 {strides = array<i32>} : memref<16x256xf32, #tpu.memory_space<vmem>>, vector<8x256xf32>,
    %cst_562 = arith.constant 0.000000e+00 : f32
    %701 = vector.broadcast %cst_562 : f32 to vector<11x256xf32>
    %c5_563 = arith.constant 5 : index
    %c0_564 = arith.constant 0 : index
    %702 = vector.load %arg29[%c5_563, %c0_564] : memref<16x256xf32, #tpu.memory_space<vmem>>, vector<11x256xf32>
    tpu.vector_store %arg29[%c5_563, %c0_564], %701 {strides = array<i32>} : memref<16x256xf32, #tpu.memory_space<vmem>>, vector<11x256xf32>,
    %c0_565 = arith.constant 0 : index
    %c0_566 = arith.constant 0 : index
    %703 = vector.load %arg29[%c0_565, %c0_566] : memref<16x256xf32, #tpu.memory_space<vmem>>, vector<8x256xf32>
    %c0_567 = arith.constant 0 : index
    %c0_568 = arith.constant 0 : index
    %704 = vector.load %arg30[%c0_567, %c0_568] : memref<8x1792xf32, #tpu.memory_space<vmem>>, vector<8x256xf32>
    tpu.vector_store %arg30[%c0_567, %c0_568], %703 {strides = array<i32>} : memref<8x1792xf32, #tpu.memory_space<vmem>>, vector<8x256xf32>,
    %c1_569 = arith.constant 1 : index
    %c0_570 = arith.constant 0 : index
    %705 = vector.load %arg29[%c1_569, %c0_570] : memref<16x256xf32, #tpu.memory_space<vmem>>, vector<8x256xf32>
    %c0_571 = arith.constant 0 : index
    %c256_572 = arith.constant 256 : index
    %706 = vector.load %arg30[%c0_571, %c256_572] : memref<8x1792xf32, #tpu.memory_space<vmem>>, vector<8x256xf32>
    tpu.vector_store %arg30[%c0_571, %c256_572], %705 {strides = array<i32>} : memref<8x1792xf32, #tpu.memory_space<vmem>>, vector<8x256xf32>,
    %c2_573 = arith.constant 2 : index
    %c0_574 = arith.constant 0 : index
    %707 = vector.load %arg29[%c2_573, %c0_574] : memref<16x256xf32, #tpu.memory_space<vmem>>, vector<8x256xf32>
    %c0_575 = arith.constant 0 : index
    %c512_576 = arith.constant 512 : index
    %708 = vector.load %arg30[%c0_575, %c512_576] : memref<8x1792xf32, #tpu.memory_space<vmem>>, vector<8x256xf32>
    tpu.vector_store %arg30[%c0_575, %c512_576], %707 {strides = array<i32>} : memref<8x1792xf32, #tpu.memory_space<vmem>>, vector<8x256xf32>,
    %c3_577 = arith.constant 3 : index
    %c0_578 = arith.constant 0 : index
    %709 = vector.load %arg29[%c3_577, %c0_578] : memref<16x256xf32, #tpu.memory_space<vmem>>, vector<8x256xf32>
    %c0_579 = arith.constant 0 : index
    %c768_580 = arith.constant 768 : index
    %710 = vector.load %arg30[%c0_579, %c768_580] : memref<8x1792xf32, #tpu.memory_space<vmem>>, vector<8x256xf32>
    tpu.vector_store %arg30[%c0_579, %c768_580], %709 {strides = array<i32>} : memref<8x1792xf32, #tpu.memory_space<vmem>>, vector<8x256xf32>,
    %c4_581 = arith.constant 4 : index
    %c0_582 = arith.constant 0 : index
    %711 = vector.load %arg29[%c4_581, %c0_582] : memref<16x256xf32, #tpu.memory_space<vmem>>, vector<8x256xf32>
    %c0_583 = arith.constant 0 : index
    %c1024 = arith.constant 1024 : index
    %712 = vector.load %arg30[%c0_583, %c1024] : memref<8x1792xf32, #tpu.memory_space<vmem>>, vector<8x256xf32>
    tpu.vector_store %arg30[%c0_583, %c1024], %711 {strides = array<i32>} : memref<8x1792xf32, #tpu.memory_space<vmem>>, vector<8x256xf32>,
    %c5_584 = arith.constant 5 : index
    %c0_585 = arith.constant 0 : index
    %713 = vector.load %arg29[%c5_584, %c0_585] : memref<16x256xf32, #tpu.memory_space<vmem>>, vector<8x256xf32>
    %c0_586 = arith.constant 0 : index
    %c1280 = arith.constant 1280 : index
    %714 = vector.load %arg30[%c0_586, %c1280] : memref<8x1792xf32, #tpu.memory_space<vmem>>, vector<8x256xf32>
    tpu.vector_store %arg30[%c0_586, %c1280], %713 {strides = array<i32>} : memref<8x1792xf32, #tpu.memory_space<vmem>>, vector<8x256xf32>,
    %c6_587 = arith.constant 6 : index
    %c0_588 = arith.constant 0 : index
    %715 = vector.load %arg29[%c6_587, %c0_588] : memref<16x256xf32, #tpu.memory_space<vmem>>, vector<8x256xf32>
    %c0_589 = arith.constant 0 : index
    %c1536 = arith.constant 1536 : index
    %716 = vector.load %arg30[%c0_589, %c1536] : memref<8x1792xf32, #tpu.memory_space<vmem>>, vector<8x256xf32>
    tpu.vector_store %arg30[%c0_589, %c1536], %715 {strides = array<i32>} : memref<8x1792xf32, #tpu.memory_space<vmem>>, vector<8x256xf32>,
    %c0_590 = arith.constant 0 : index
    %c0_591 = arith.constant 0 : index
    %717 = vector.load %arg30[%c0_590, %c0_591] : memref<8x1792xf32, #tpu.memory_space<vmem>>, vector<8x1792xf32>
    %718 = arith.truncf %717 : vector<8x1792xf32> to vector<8x1792xbf16>
    %c0_592 = arith.constant 0 : index
    %c0_593 = arith.constant 0 : index
    %719 = vector.load %arg12[%c0_592, %c0_593] : memref<1792x256xbf16, #tpu.memory_space<vmem>>, vector<1792x256xbf16>
    %cst_594 = arith.constant dense<0.000000e+00> : vector<8x256xf32>
    %720 = tpu.matmul %718, %719, %cst_594 {dimension_numbers = #tpu.dot_dimension_numbers<[1], [0], [0], [1], [0, 0, 1, 1], [], []>} : vector<8x1792xbf16>, vector<1792x256xbf16>, vector<8x256xf32> -> vector<8x256xf32>
    %c9_595 = arith.constant 9 : index
    %c0_596 = arith.constant 0 : index
    %721 = vector.load %arg14[%c9_595, %c0_596] : memref<12x256xf32, #tpu.memory_space<vmem>>, vector<1x256xf32>
    %722 = vector.broadcast %721 : vector<1x256xf32> to vector<8x256xf32>
    %723 = arith.addf %720, %722 : vector<8x256xf32>
    %cst_597 = arith.constant 5.000000e-01 : f32
    %724 = vector.broadcast %cst_597 : f32 to vector<8x256xf32>
    %725 = arith.mulf %724, %723 : vector<8x256xf32>
    %cst_598 = arith.constant 0.707106769 : f32
    %726 = vector.broadcast %cst_598 : f32 to vector<8x256xf32>
    %727 = arith.mulf %723, %726 : vector<8x256xf32>
    %cst_599 = arith.constant 0.000000e+00 : f32
    %728 = vector.broadcast %cst_599 : f32 to vector<8x256xf32>
    %729 = arith.cmpf oge, %727, %728 : vector<8x256xf32>
    %cst_600 = arith.constant 1.000000e+00 : f32
    %cst_601 = arith.constant -1.000000e+00 : f32
    %730 = vector.broadcast %cst_600 : f32 to vector<8x256xf32>
    %731 = vector.broadcast %cst_601 : f32 to vector<8x256xf32>
    %732 = arith.select %729, %730, %731 : vector<8x256xi1>, vector<8x256xf32>
    %733 = math.absf %727 : vector<8x256xf32>
    %cst_602 = arith.constant 0.327591091 : f32
    %734 = vector.broadcast %cst_602 : f32 to vector<8x256xf32>
    %735 = arith.mulf %734, %733 : vector<8x256xf32>
    %cst_603 = arith.constant 1.000000e+00 : f32
    %736 = vector.broadcast %cst_603 : f32 to vector<8x256xf32>
    %737 = arith.addf %736, %735 : vector<8x256xf32>
    %738 = tpu.reciprocal %737 : vector<8x256xf32> -> vector<8x256xf32>
    %cst_604 = arith.constant 1.06140542 : f32
    %739 = vector.broadcast %cst_604 : f32 to vector<8x256xf32>
    %740 = arith.mulf %739, %738 : vector<8x256xf32>
    %cst_605 = arith.constant -1.45315206 : f32
    %741 = vector.broadcast %cst_605 : f32 to vector<8x256xf32>
    %742 = arith.addf %740, %741 : vector<8x256xf32>
    %743 = arith.mulf %742, %738 : vector<8x256xf32>
    %cst_606 = arith.constant 1.42141378 : f32
    %744 = vector.broadcast %cst_606 : f32 to vector<8x256xf32>
    %745 = arith.addf %743, %744 : vector<8x256xf32>
    %746 = arith.mulf %745, %738 : vector<8x256xf32>
    %cst_607 = arith.constant -0.284496725 : f32
    %747 = vector.broadcast %cst_607 : f32 to vector<8x256xf32>
    %748 = arith.addf %746, %747 : vector<8x256xf32>
    %749 = arith.mulf %748, %738 : vector<8x256xf32>
    %cst_608 = arith.constant 0.254829586 : f32
    %750 = vector.broadcast %cst_608 : f32 to vector<8x256xf32>
    %751 = arith.addf %749, %750 : vector<8x256xf32>
    %752 = arith.mulf %751, %738 : vector<8x256xf32>
    %cst_609 = arith.constant 0.000000e+00 : f32
    %753 = vector.broadcast %cst_609 : f32 to vector<8x256xf32>
    %754 = arith.subf %753, %733 : vector<8x256xf32>
    %755 = arith.mulf %754, %733 : vector<8x256xf32>
    %756 = math.exp %755 : vector<8x256xf32>
    %757 = arith.mulf %752, %756 : vector<8x256xf32>
    %cst_610 = arith.constant 1.000000e+00 : f32
    %758 = vector.broadcast %cst_610 : f32 to vector<8x256xf32>
    %759 = arith.subf %758, %757 : vector<8x256xf32>
    %760 = arith.mulf %732, %759 : vector<8x256xf32>
    %cst_611 = arith.constant 1.000000e+00 : f32
    %761 = vector.broadcast %cst_611 : f32 to vector<8x256xf32>
    %762 = arith.addf %761, %760 : vector<8x256xf32>
    %763 = arith.mulf %725, %762 : vector<8x256xf32>
    %c3_612 = arith.constant 3 : index
    %c0_613 = arith.constant 0 : index
    %764 = tpu.strided_load %arg27[%c3_612, %c0_613] {strides = array<i32: 2, 1>} : memref<24x128xf32, #tpu.memory_space<vmem>>, vector<8x128xf32>
    %765 = arith.truncf %764 : vector<8x128xf32> to vector<8x128xbf16>
    %c0_614 = arith.constant 0 : index
    %c0_615 = arith.constant 0 : index
    %766 = vector.load %arg13[%c0_614, %c0_615] : memref<128x256xbf16, #tpu.memory_space<vmem>>, vector<128x256xbf16>
    %cst_616 = arith.constant dense<0.000000e+00> : vector<8x256xf32>
    %767 = tpu.matmul %765, %766, %cst_616 {dimension_numbers = #tpu.dot_dimension_numbers<[1], [0], [0], [1], [0, 0, 1, 1], [], []>} : vector<8x128xbf16>, vector<128x256xbf16>, vector<8x256xf32> -> vector<8x256xf32>
    %c10_617 = arith.constant 10 : index
    %c0_618 = arith.constant 0 : index
    %768 = vector.load %arg14[%c10_617, %c0_618] : memref<12x256xf32, #tpu.memory_space<vmem>>, vector<1x256xf32>
    %769 = vector.broadcast %768 : vector<1x256xf32> to vector<8x256xf32>
    %770 = arith.addf %767, %769 : vector<8x256xf32>
    %771 = arith.addf %763, %770 : vector<8x256xf32>
    %cst_619 = arith.constant 5.000000e-01 : f32
    %772 = vector.broadcast %cst_619 : f32 to vector<8x256xf32>
    %773 = arith.mulf %772, %771 : vector<8x256xf32>
    %cst_620 = arith.constant 0.707106769 : f32
    %774 = vector.broadcast %cst_620 : f32 to vector<8x256xf32>
    %775 = arith.mulf %771, %774 : vector<8x256xf32>
    %cst_621 = arith.constant 0.000000e+00 : f32
    %776 = vector.broadcast %cst_621 : f32 to vector<8x256xf32>
    %777 = arith.cmpf oge, %775, %776 : vector<8x256xf32>
    %cst_622 = arith.constant 1.000000e+00 : f32
    %cst_623 = arith.constant -1.000000e+00 : f32
    %778 = vector.broadcast %cst_622 : f32 to vector<8x256xf32>
    %779 = vector.broadcast %cst_623 : f32 to vector<8x256xf32>
    %780 = arith.select %777, %778, %779 : vector<8x256xi1>, vector<8x256xf32>
    %781 = math.absf %775 : vector<8x256xf32>
    %cst_624 = arith.constant 0.327591091 : f32
    %782 = vector.broadcast %cst_624 : f32 to vector<8x256xf32>
    %783 = arith.mulf %782, %781 : vector<8x256xf32>
    %cst_625 = arith.constant 1.000000e+00 : f32
    %784 = vector.broadcast %cst_625 : f32 to vector<8x256xf32>
    %785 = arith.addf %784, %783 : vector<8x256xf32>
    %786 = tpu.reciprocal %785 : vector<8x256xf32> -> vector<8x256xf32>
    %cst_626 = arith.constant 1.06140542 : f32
    %787 = vector.broadcast %cst_626 : f32 to vector<8x256xf32>
    %788 = arith.mulf %787, %786 : vector<8x256xf32>
    %cst_627 = arith.constant -1.45315206 : f32
    %789 = vector.broadcast %cst_627 : f32 to vector<8x256xf32>
    %790 = arith.addf %788, %789 : vector<8x256xf32>
    %791 = arith.mulf %790, %786 : vector<8x256xf32>
    %cst_628 = arith.constant 1.42141378 : f32
    %792 = vector.broadcast %cst_628 : f32 to vector<8x256xf32>
    %793 = arith.addf %791, %792 : vector<8x256xf32>
    %794 = arith.mulf %793, %786 : vector<8x256xf32>
    %cst_629 = arith.constant -0.284496725 : f32
    %795 = vector.broadcast %cst_629 : f32 to vector<8x256xf32>
    %796 = arith.addf %794, %795 : vector<8x256xf32>
    %797 = arith.mulf %796, %786 : vector<8x256xf32>
    %cst_630 = arith.constant 0.254829586 : f32
    %798 = vector.broadcast %cst_630 : f32 to vector<8x256xf32>
    %799 = arith.addf %797, %798 : vector<8x256xf32>
    %800 = arith.mulf %799, %786 : vector<8x256xf32>
    %cst_631 = arith.constant 0.000000e+00 : f32
    %801 = vector.broadcast %cst_631 : f32 to vector<8x256xf32>
    %802 = arith.subf %801, %781 : vector<8x256xf32>
    %803 = arith.mulf %802, %781 : vector<8x256xf32>
    %804 = math.exp %803 : vector<8x256xf32>
    %805 = arith.mulf %800, %804 : vector<8x256xf32>
    %cst_632 = arith.constant 1.000000e+00 : f32
    %806 = vector.broadcast %cst_632 : f32 to vector<8x256xf32>
    %807 = arith.subf %806, %805 : vector<8x256xf32>
    %808 = arith.mulf %780, %807 : vector<8x256xf32>
    %cst_633 = arith.constant 1.000000e+00 : f32
    %809 = vector.broadcast %cst_633 : f32 to vector<8x256xf32>
    %810 = arith.addf %809, %808 : vector<8x256xf32>
    %811 = arith.mulf %773, %810 : vector<8x256xf32>
    %812 = tpu.iota {dimensions = array<i32: 0>} : vector<8x256xi32>
    %c2_i32 = arith.constant 2 : i32
    %813 = vector.broadcast %c2_i32 : i32 to vector<8x256xi32>
    %814 = arith.cmpi slt, %812, %813 : vector<8x256xi32>
    %cst_634 = arith.constant 0.000000e+00 : f32
    %815 = vector.broadcast %cst_634 : f32 to vector<8x256xf32>
    %816 = arith.select %814, %811, %815 : vector<8x256xi1>, vector<8x256xf32>
    %cst_635 = arith.constant dense<0.000000e+00> : vector<256xf32>
    %817 = vector.multi_reduction <add>, %816, %cst_635 [0] : vector<8x256xf32> to vector<256xf32>
    %818 = vector.shape_cast %817 : vector<256xf32> to vector<1x256xf32>
    %cst_636 = arith.constant 5.000000e-01 : f32
    %819 = vector.broadcast %cst_636 : f32 to vector<1x256xf32>
    %820 = arith.mulf %818, %819 : vector<1x256xf32>
    %c0_637 = arith.constant 0 : index
    %c0_638 = arith.constant 0 : index
    %821 = vector.load %arg15[%c0_637, %c0_638] : memref<256x3xf32, #tpu.memory_space<vmem>>, vector<256x3xf32>
    %cst_639 = arith.constant dense<0.000000e+00> : vector<1x3xf32>
    %822 = tpu.matmul %820, %821, %cst_639 {dimension_numbers = #tpu.dot_dimension_numbers<[1], [0], [0], [1], [0, 0, 1, 1], [], []>} : vector<1x256xf32>, vector<256x3xf32>, vector<1x3xf32> -> vector<1x3xf32>
    %c11_640 = arith.constant 11 : index
    %c0_641 = arith.constant 0 : index
    %823 = vector.load %arg14[%c11_640, %c0_641] : memref<12x256xf32, #tpu.memory_space<vmem>>, vector<1x3xf32>
    %824 = arith.addf %822, %823 : vector<1x3xf32>
    %c0_642 = arith.constant 0 : index
    %c0_643 = arith.constant 0 : index
    %c0_644 = arith.constant 0 : index
    %825 = vector.load %arg16[%c0_642, %c0_643, %c0_644] : memref<1x1x3xf32, #tpu.memory_space<vmem>>, vector<1x1x3xf32>
    %826 = vector.shape_cast %825 : vector<1x1x3xf32> to vector<1x3xf32>
    %827 = vector.shape_cast %824 : vector<1x3xf32> to vector<1x1x3xf32>
    tpu.vector_store %arg16[%c0_642, %c0_643, %c0_644], %827 {strides = array<i32>} : memref<1x1x3xf32, #tpu.memory_space<vmem>>, vector<1x1x3xf32>,
    return
  }
  func.func @transform_0(%arg0: i32) -> (i32, i32, i32) {
    %c0_i32 = arith.constant 0 : i32
    %c0_i32_0 = arith.constant 0 : i32
    %c0_i32_1 = arith.constant 0 : i32
    return %arg0, %c0_i32, %c0_i32_0 : i32, i32, i32
  }
  func.func @transform_1(%arg0: i32) -> (i32, i32, i32) {
    %c0_i32 = arith.constant 0 : i32
    %c0_i32_0 = arith.constant 0 : i32
    %c0_i32_1 = arith.constant 0 : i32
    %c0_i32_2 = arith.constant 0 : i32
    return %c0_i32, %c0_i32_0, %c0_i32_1 : i32, i32, i32
  }
  func.func @transform_2(%arg0: i32) -> (i32, i32, i32) {
    %c0_i32 = arith.constant 0 : i32
    %c0_i32_0 = arith.constant 0 : i32
    %c0_i32_1 = arith.constant 0 : i32
    %c0_i32_2 = arith.constant 0 : i32
    return %c0_i32, %c0_i32_0, %c0_i32_1 : i32, i32, i32
  }
  func.func @transform_3(%arg0: i32) -> (i32, i32, i32) {
    %c0_i32 = arith.constant 0 : i32
    %c0_i32_0 = arith.constant 0 : i32
    %c0_i32_1 = arith.constant 0 : i32
    %c0_i32_2 = arith.constant 0 : i32
    return %c0_i32, %c0_i32_0, %c0_i32_1 : i32, i32, i32
  }
  func.func @transform_4(%arg0: i32) -> (i32, i32, i32) {
    %c0_i32 = arith.constant 0 : i32
    %c0_i32_0 = arith.constant 0 : i32
    %c0_i32_1 = arith.constant 0 : i32
    %c0_i32_2 = arith.constant 0 : i32
    return %c0_i32, %c0_i32_0, %c0_i32_1 : i32, i32, i32
  }
  func.func @transform_5(%arg0: i32) -> (i32, i32, i32) {
    %c0_i32 = arith.constant 0 : i32
    %c0_i32_0 = arith.constant 0 : i32
    %c0_i32_1 = arith.constant 0 : i32
    %c0_i32_2 = arith.constant 0 : i32
    return %c0_i32, %c0_i32_0, %c0_i32_1 : i32, i32, i32
  }
  func.func @transform_6(%arg0: i32) -> (i32, i32) {
    %c0_i32 = arith.constant 0 : i32
    %c0_i32_0 = arith.constant 0 : i32
    %c0_i32_1 = arith.constant 0 : i32
    return %c0_i32, %c0_i32_0 : i32, i32
  }
  func.func @transform_7(%arg0: i32) -> (i32, i32, i32) {
    %c0_i32 = arith.constant 0 : i32
    %c0_i32_0 = arith.constant 0 : i32
    %c0_i32_1 = arith.constant 0 : i32
    %c0_i32_2 = arith.constant 0 : i32
    return %c0_i32, %c0_i32_0, %c0_i32_1 : i32, i32, i32
  }
  func.func @transform_8(%arg0: i32) -> (i32, i32) {
    %c0_i32 = arith.constant 0 : i32
    %c0_i32_0 = arith.constant 0 : i32
    %c0_i32_1 = arith.constant 0 : i32
    return %c0_i32, %c0_i32_0 : i32, i32
  }
  func.func @transform_9(%arg0: i32) -> (i32, i32) {
    %c0_i32 = arith.constant 0 : i32
    %c0_i32_0 = arith.constant 0 : i32
    %c0_i32_1 = arith.constant 0 : i32
    return %c0_i32, %c0_i32_0 : i32, i32
  }
  func.func @transform_10(%arg0: i32) -> (i32, i32) {
    %c0_i32 = arith.constant 0 : i32
    %c0_i32_0 = arith.constant 0 : i32
    %c0_i32_1 = arith.constant 0 : i32
    return %c0_i32, %c0_i32_0 : i32, i32
  }
  func.func @transform_11(%arg0: i32) -> (i32, i32) {
    %c0_i32 = arith.constant 0 : i32
    %c0_i32_0 = arith.constant 0 : i32
    %c0_i32_1 = arith.constant 0 : i32
    return %c0_i32, %c0_i32_0 : i32, i32
  }
  func.func @transform_12(%arg0: i32) -> (i32, i32) {
    %c0_i32 = arith.constant 0 : i32
    %c0_i32_0 = arith.constant 0 : i32
    %c0_i32_1 = arith.constant 0 : i32
    return %c0_i32, %c0_i32_0 : i32, i32
  }
  func.func @transform_13(%arg0: i32) -> (i32, i32) {
    %c0_i32 = arith.constant 0 : i32
    %c0_i32_0 = arith.constant 0 : i32
    %c0_i32_1 = arith.constant 0 : i32
    return %c0_i32, %c0_i32_0 : i32, i32
  }
  func.func @transform_14(%arg0: i32) -> (i32, i32) {
    %c0_i32 = arith.constant 0 : i32
    %c0_i32_0 = arith.constant 0 : i32
    %c0_i32_1 = arith.constant 0 : i32
    return %c0_i32, %c0_i32_0 : i32, i32
  }
  func.func @transform_15(%arg0: i32) -> (i32, i32, i32) {
    %c0_i32 = arith.constant 0 : i32
    %c0_i32_0 = arith.constant 0 : i32
    %c0_i32_1 = arith.constant 0 : i32
    return %arg0, %c0_i32, %c0_i32_0 : i32, i32, i32
  }
}

</mosaic_0001>

<bundles_post_ra>
// kernel: tpu_custom_call.1
= control target key start
LH: loop header
LB: loop body
LE: loop exit
PB: predicated region body
PF: predicated region fallthrough
CT: control target
= control target key end

     0   :  { %s20228_s0 = inlined_call_operand.vmem [shape: f32[2,256,4], index: 0, kind: input, shape index: {}]   ;;  %s20229_s1 = inlined_call_operand.hbm [shape: bf16[13,4,32], index: 1, kind: input, shape index: {}]   ;;  %s20230_s2 = inlined_call_operand.hbm [shape: bf16[7,32,32], index: 2, kind: input, shape index: {}]   ;;  %s20231_s3 = inlined_call_operand.hbm [shape: bf16[7,32,32], index: 3, kind: input, shape index: {}]   ;;  %s20232_s4 = inlined_call_operand.hbm [shape: bf16[7,32,64], index: 4, kind: input, shape index: {}]   ;;  %s20233_s5 = inlined_call_operand.vmem [shape: bf16[7,64,64], index: 5, kind: input, shape index: {}]   ;;  %s20234_s6 = inlined_call_operand.hbm [shape: bf16[32,64], index: 6, kind: input, shape index: {}]   ;;  %s20235_s7 = inlined_call_operand.hbm [shape: bf16[7,64,128], index: 7, kind: input, shape index: {}]   ;;  %s20236_s8 = inlined_call_operand.vmem [shape: bf16[896,128], index: 8, kind: input, shape index: {}]   ;;  %s20237_s9 = inlined_call_operand.hbm [shape: bf16[64,128], index: 9, kind: input, shape index: {}]   ;;  %s20238_s10 = inlined_call_operand.hbm [shape: bf16[896,256], index: 10, kind: input, shape index: {}]   ;;  %s20239_s11 = inlined_call_operand.hbm [shape: bf16[1792,256], index: 11, kind: input, shape index: {}]   ;;  %s20240_s12 = inlined_call_operand.vmem [shape: bf16[128,256], index: 12, kind: input, shape index: {}]   ;;  %s20241_s13 = inlined_call_operand.vmem [shape: f32[12,256], index: 13, kind: input, shape index: {}]   ;;  %s20242_s14 = inlined_call_operand.vmem [shape: f32[256,3], index: 14, kind: input, shape index: {}]   ;;  %s20243_s15 = inlined_call_operand.hbm [shape: f32[2,1,3], index: 15, kind: output, shape index: {}]  }
   0x1   :  { %20281 = sst [smem:[#allocation60_spill]] %s20230_s2 }
   0x2   :  { %20282 = sst [smem:[#allocation61_spill]] %s20232_s4 }
   0x3   :  { %20283 = sst [smem:[#allocation62_spill]] %s20240_s12 }
   0x4   :  { %20284 = sst [smem:[#allocation63_spill]] %s20242_s14 }
   0x5   :  { %20285 = sst [smem:[#allocation64_spill]] %s20243_s15 }
   0x6   :  { %20 = vsyncpa [#allocation17], 0 }
   0x7   :  { %21 = vsyncpa [#allocation20], 0 }
   0x8   :  { %22 = vsyncpa [#allocation23], 0 }
   0x9   :  { %23 = vsyncpa [#allocation26], 0 }
   0xa   :  { %24 = vsyncpa [#allocation29], 0 }
   0xb   :  { %25 = vsyncpa [#allocation18], 0 }
   0xc   :  { %27 = vsyncpa [#allocation18 + $0x1], 0  ;;  %s17748_s18 = smov 0   ;;  %s17750_s19 = smov 0  }
   0xd   :  { %s17752_s20 = smov 0   ;;  %s17754_s21 = smov 0  }
   0xe LB: > { %20286 = sst [smem:[#allocation38_spill]] %s17633_s18  ;;  %s17769_s22 = sadd.s32 4294967295, %s17645_s21   ;;  %s17645_s21 = sphi %s17754_s21, %s20357_s21   ;;  %s17641_s20 = sphi %s17752_s20, %s20360_s20   ;;  %s17637_s19 = sphi %s17750_s19, %s20359_s19   ;;  %s17633_s18 = sphi %s17748_s18, %s20358_s18  }
   0xf   : > { %20287 = sst [smem:[#allocation39_spill]] %s17637_s19  ;;  %s13454_s23 = sadd.s32 4294967294, %s17645_s21  }
  0x10   : > { %20288 = sst [smem:[#allocation40_spill]] %s17641_s20  ;;  %s17773_s24 = sadd.s32 1, %s17645_s21  }
  0x11   : > { %20289 = sst [smem:[#allocation41_spill]] %s17645_s21  ;;  %s360_s25 = sadd.s32 1, %s17641_s20 }
  0x12   : > { %20290 = sst [smem:[#allocation42_spill]] %s17773_s24  ;;  %s357_s26 = ssub.s32 %s17645_s21, %s17773_s24 }
  0x13   : > { %p370_p0 = scmp.ne.s32.totalorder %s17641_s20, %s17637_s19  ;;  %p358_p1 = scmp.eq.s32.totalorder %s357_s26, 0 }
  0x14   : > { %p371_p2 = scmp.eq.s32.totalorder %s17769_s22, 1  ;;  %p376_p3 = scmp.ne.s32.totalorder %s17637_s19, %s17633_s18 }
  0x15   : > { %p377_p4 = scmp.eq.s32.totalorder %s13454_s23, 1  ;;  %p13455_p7 = scmp.ge.s32.totalorder %s17645_s21, 1 }
  0x16   : > { %s17784_s27 = scalar_select %p358_p1, %s17641_s20, %s360_s25  }
  0x17   : > { %p17786_p5 = por %p371_p2, %p370_p0  ;;  %p17790_p6 = por %p377_p4, %p376_p3 }
  0x18   : > { %20291 = sst [smem:[#allocation43_spill]] %s17784_s27  ;;  %p384_p8 = scmp.lt.s32.totalorder %s17645_s21, 3 }
  0x19   : > { %s20292_s28 = scalar_select %p17786_p5, 1, 0 }
  0x1a   : > { %s20294_s29 = scalar_select %p17790_p6, 1, 0 }
  0x1b   : > { %20293 = sst [smem:[#allocation44_spill]] %s20292_s28  ;;  %p20251_p9 = scmp.eq.s32.totalorder %s17769_s22, 0 }
  0x1c   : > { %20295 = sst [smem:[#allocation45_spill]] %s20294_s29  ;;  %p17797_p10 = pnand %p13455_p7, %p384_p8 }
  0x1d   : > { %s17647_s16 = smov [#allocation19]   ;;  %s17648_s25 = smov [#allocation22]  }
  0x1e   : > { %s20296_s30 = scalar_select %p17797_p10, 1, 0 }
  0x1f   : > { %s409_s17 = sshll.u32 %s17647_s16, 4  ;;  %p16282_p11 = pneg %p17797_p10  ;;  %s17803_s17 = int_to_ptr.vmem [resolvable:$true] %s409_s17 }
  0x20   : > { %s435_s26 = sshll.u32 %s17648_s25, 4  ;;  %s17649_s27 = smov [#allocation25]   ;;  %s17811_s26 = int_to_ptr.vmem [resolvable:$true] %s435_s26 }
  0x21   : > { %p17807_p12 = pnand %p20251_p9, %p16282_p11  ;;  %s17813_s20 = sshll.u32 %s17649_s27, 4  ;;  %s465_s20 = int_to_ptr.vmem [resolvable:$true] %s17813_s20 }
  0x22   : > { %s20298_s2 = sld [smem:[#allocation60_spill]] }
  0x23   : > { %p17823_p0 = pneg %p17807_p12 }
  0x28   : > { %s17311_s16 = scalar_lea.hbm %s20298_s2, 1792 }
  0x29   : > { %p17312_p13 = scmp.ne.s32.totalorder %s20298_s2, %s17311_s16  ;;  %p17318_p3 = scmp.lt.u32.totalorder %s17311_s16, %s20298_s2 }
  0x2b   : > { %p17314_p1 = pnand %p17823_p0, %p17312_p13 }
  0x2d   : > { %p17315_p2 = pneg %p17314_p1 }
  0x2f   : > { %p17320_p4 = pnand %p17318_p3, %p17315_p2 }
  0x31   : > { %17323 = shalt.err (!%p17320_p4)
}
  0x32   : > { %s17324_s18 = scalar_lea.vmem %s17803_s17, 1792  ;;  %p17332_p9 = scmp.lt.s32.totalorder %s17803_s17, %s17803_s17 }
  0x33   : > { %p17325_p7 = scmp.ne.s32.totalorder %s17803_s17, %s17324_s18  ;;  %p17333_p6 = scmp.lt.s32.totalorder %s17324_s18, %s17324_s18 }
  0x35   : > { %p17327_p8 = pnand %p17325_p7, %p17823_p0  ;;  %p17334_p13 = por %p17333_p6, %p17332_p9 }
  0x37   : > { %p17328_p11 = pneg %p17327_p8 }
  0x39   : > { %p17335_p1 = pnand %p17334_p13, %p17328_p11 }
  0x3b   : > { %17338 = shalt.err (!%p17335_p1)
}
  0x3c   : > { %s20259_s21 = smov 64   ;;  %s20261_s24 = smov 4  }
  0x3d   : > { %16288 = dma.hbm_to_vmem [thread:$0]  (!%p17807_p12), %s20298_s2, 1792, %s17803_s17, [#allocation20], %s20259_s21, %s20259_s21, %s20261_s24  }
  0x3e   : > { %s20300_s4 = sld [smem:[#allocation61_spill]] }
  0x44   : > { %s17339_s18 = scalar_lea.hbm %s20300_s4, 1792 }
  0x45   : > { %p17340_p6 = scmp.ne.s32.totalorder %s20300_s4, %s17339_s18  ;;  %p17346_p3 = scmp.lt.u32.totalorder %s17339_s18, %s20300_s4 }
  0x47   : > { %p17342_p9 = pnand %p17340_p6, %p17823_p0 }
  0x49   : > { %p17343_p2 = pneg %p17342_p9 }
  0x4b   : > { %p17348_p4 = pnand %p17346_p3, %p17343_p2 }
  0x4d   : > { %17351 = shalt.err (!%p17348_p4)
}
  0x4e   : > { %s17352_s17 = scalar_lea.vmem %s17811_s26, 1792  ;;  %p17360_p13 = scmp.lt.s32.totalorder %s17811_s26, %s17811_s26 }
  0x4f   : > { %p17353_p7 = scmp.ne.s32.totalorder %s17811_s26, %s17352_s17  ;;  %p17361_p1 = scmp.lt.s32.totalorder %s17352_s17, %s17352_s17 }
  0x51   : > { %p17355_p8 = pnand %p17353_p7, %p17823_p0  ;;  %p17362_p6 = por %p17361_p1, %p17360_p13 }
  0x53   : > { %p17356_p11 = pneg %p17355_p8 }
  0x55   : > { %p17363_p9 = pnand %p17362_p6, %p17356_p11 }
  0x57   : > { %17366 = shalt.err (!%p17363_p9)
}
  0x58   : > { %16294 = dma.hbm_to_vmem [thread:$0]  (!%p17807_p12), %s20300_s4, 1792, %s17811_s26, [#allocation23], %s20259_s21, %s20259_s21, %s20261_s24  }
  0x59   : > { %s17367_s29 = scalar_lea.hbm %s20235_s7, 3584 }
  0x5a   : > { %p17368_p2 = scmp.ne.s32.totalorder %s20235_s7, %s17367_s29  ;;  %p17374_p7 = scmp.lt.u32.totalorder %s17367_s29, %s20235_s7 }
  0x5c   : > { %p17370_p3 = pnand %p17368_p2, %p17823_p0 }
  0x5e   : > { %p17371_p4 = pneg %p17370_p3 }
  0x60   : > { %p17376_p8 = pnand %p17374_p7, %p17371_p4 }
  0x62   : > { %17379 = shalt.err (!%p17376_p8)
}
  0x63   : > { %s17380_s17 = scalar_lea.vmem %s465_s20, 3584  ;;  %p17388_p6 = scmp.lt.s32.totalorder %s465_s20, %s465_s20 }
  0x64   : > { %p17381_p11 = scmp.ne.s32.totalorder %s465_s20, %s17380_s17  ;;  %p17389_p9 = scmp.lt.s32.totalorder %s17380_s17, %s17380_s17 }
  0x66   : > { %p17383_p13 = pnand %p17381_p11, %p17823_p0  ;;  %p17390_p5 = por %p17389_p9, %p17388_p6 }
  0x68   : > { %p17384_p1 = pneg %p17383_p13 }
  0x6a   : > { %p17391_p10 = pnand %p17390_p5, %p17384_p1 }
  0x6c   : > { %17394 = shalt.err (!%p17391_p10)
}
  0x6d   : > { %16300 = dma.hbm_to_vmem [thread:$0]  (!%p17807_p12), %s20235_s7, 3584, %s465_s20, [#allocation26], %s20259_s21, %s20259_s21, %s20261_s24  }
  0x6e   : > { %s17652_s14 = smov [#allocation28]   ;;  %s17395_s16 = scalar_lea.hbm %s20238_s10, 14336 }
  0x6f   : > { %s493_s19 = sshll.u32 %s17652_s14, 4  ;;  %p17396_p5 = scmp.ne.s32.totalorder %s20238_s10, %s17395_s16  ;;  %s494_s19 = int_to_ptr.vmem [resolvable:$true] %s493_s19 }
  0x70   : > { %p17402_p3 = scmp.lt.u32.totalorder %s17395_s16, %s20238_s10 }
  0x71   : > { %p17398_p10 = pnand %p17396_p5, %p17823_p0 }
  0x73   : > { %p17399_p2 = pneg %p17398_p10 }
  0x75   : > { %p17404_p4 = pnand %p17402_p3, %p17399_p2 }
  0x77   : > { %17407 = shalt.err (!%p17404_p4)
}
  0x78   : > { %s17408_s20 = scalar_lea.vmem %s494_s19, 14336  ;;  %p17416_p13 = scmp.lt.s32.totalorder %s494_s19, %s494_s19 }
  0x79   : > { %p17409_p7 = scmp.ne.s32.totalorder %s494_s19, %s17408_s20  ;;  %p17417_p1 = scmp.lt.s32.totalorder %s17408_s20, %s17408_s20 }
  0x7b   : > { %p17411_p8 = pnand %p17409_p7, %p17823_p0  ;;  %p17418_p6 = por %p17417_p1, %p17416_p13 }
  0x7d   : > { %p17412_p11 = pneg %p17411_p8 }
  0x7f   : > { %p17419_p9 = pnand %p17418_p6, %p17412_p11 }
  0x81   : > { %17422 = shalt.err (!%p17419_p9)
}
  0x82   : > { %s20263_s26 = smov 128   ;;  %s20264_s12 = smov 8  }
  0x83   : > { %16306 = dma.hbm_to_vmem [thread:$0]  (!%p17807_p12), %s20238_s10, 14336, %s494_s19, [#allocation29], %s20263_s26, %s20263_s26, %s20264_s12  }
  0x84   : > { %s17655_s29 = smov [#allocation16]   ;;  %s17423_s18 = scalar_lea.hbm %s20229_s1, 416 }
  0x85   : > { %s396_s16 = sshll.u32 %s17655_s29, 4  ;;  %p17424_p5 = scmp.ne.s32.totalorder %s20229_s1, %s17423_s18  ;;  %s397_s16 = int_to_ptr.vmem [resolvable:$true] %s396_s16 }
  0x86   : > { %p17430_p3 = scmp.lt.u32.totalorder %s17423_s18, %s20229_s1 }
  0x87   : > { %p17426_p10 = pnand %p17424_p5, %p17823_p0 }
  0x89   : > { %p17427_p2 = pneg %p17426_p10 }
  0x8b   : > { %p17432_p4 = pnand %p17430_p3, %p17427_p2 }
  0x8d   : > { %17435 = shalt.err (!%p17432_p4)
}
  0x8e   : > { %s17436_s19 = scalar_lea.vmem %s397_s16, 416  ;;  %p17444_p13 = scmp.lt.s32.totalorder %s397_s16, %s397_s16 }
  0x8f   : > { %p17437_p7 = scmp.ne.s32.totalorder %s397_s16, %s17436_s19  ;;  %p17445_p1 = scmp.lt.s32.totalorder %s17436_s19, %s17436_s19 }
  0x91   : > { %p17439_p8 = pnand %p17437_p7, %p17823_p0  ;;  %p17446_p6 = por %p17445_p1, %p17444_p13 }
  0x93   : > { %p17440_p11 = pneg %p17439_p8 }
  0x95   : > { %p17447_p9 = pnand %p17446_p6, %p17440_p11 }
  0x97   : > { %17450 = shalt.err (!%p17447_p9)
}
  0x98   : > { %s17656_s14 = smov 32   ;;  %s17657_s28 = smov 2  }
  0x99   : > { %16285 = dma.hbm_to_vmem [thread:$0]  (!%p17807_p12), %s20229_s1, 416, %s397_s16, [#allocation17], %s17656_s14, %s17656_s14, %s17657_s28  }
  0x9a   : > { %s17658_s29 = smov [#allocation21]   ;;  %s17659_s27 = smov [#allocation24]  }
  0x9b   : > { %s422_s25 = sshll.u32 %s17658_s29, 4  ;;  %s451_s18 = sshll.u32 %s17659_s27, 4  ;;  %s423_s25 = int_to_ptr.vmem [resolvable:$true] %s422_s25  ;;  %s452_s18 = int_to_ptr.vmem [resolvable:$true] %s451_s18 }
  0x9c   : > { %s17451_s19 = scalar_lea.hbm %s20231_s3, 1792 }
  0x9d   : > { %p17452_p5 = scmp.ne.s32.totalorder %s20231_s3, %s17451_s19  ;;  %p17458_p3 = scmp.lt.u32.totalorder %s17451_s19, %s20231_s3 }
  0x9f   : > { %p17454_p10 = pnand %p17452_p5, %p17823_p0 }
  0xa1   : > { %p17455_p2 = pneg %p17454_p10 }
  0xa3   : > { %p17460_p4 = pnand %p17458_p3, %p17455_p2 }
  0xa5   : > { %17463 = shalt.err (!%p17460_p4)
}
  0xa6   : > { %s17464_s16 = scalar_lea.vmem %s423_s25, 1792  ;;  %p17472_p13 = scmp.lt.s32.totalorder %s423_s25, %s423_s25 }
  0xa7   : > { %p17465_p7 = scmp.ne.s32.totalorder %s423_s25, %s17464_s16  ;;  %p17473_p1 = scmp.lt.s32.totalorder %s17464_s16, %s17464_s16 }
  0xa9   : > { %p17467_p8 = pnand %p17465_p7, %p17823_p0  ;;  %p17474_p6 = por %p17473_p1, %p17472_p13 }
  0xab   : > { %p17468_p11 = pneg %p17467_p8 }
  0xad   : > { %p17475_p9 = pnand %p17474_p6, %p17468_p11 }
  0xaf   : > { %17478 = shalt.err (!%p17475_p9)
}
  0xb0   : > { %s20301_s26 = smov 4   ;;  %s20302_s12 = smov 64  }
  0xb1   : > { %16291 = dma.hbm_to_vmem [thread:$0]  (!%p17807_p12), %s20231_s3, 1792, %s423_s25, [#allocation20], %s20302_s12, %s20302_s12, %s20301_s26  }
  0xb2   : > { %s17479_s21 = scalar_lea.hbm %s20234_s6, 256 }
  0xb3   : > { %p17480_p5 = scmp.ne.s32.totalorder %s20234_s6, %s17479_s21  ;;  %p17486_p3 = scmp.lt.u32.totalorder %s17479_s21, %s20234_s6 }
  0xb5   : > { %p17482_p10 = pnand %p17480_p5, %p17823_p0 }
  0xb7   : > { %p17483_p2 = pneg %p17482_p10 }
  0xb9   : > { %p17488_p4 = pnand %p17486_p3, %p17483_p2 }
  0xbb   : > { %17491 = shalt.err (!%p17488_p4)
}
  0xbc   : > { %s17492_s20 = scalar_lea.vmem %s452_s18, 256  ;;  %p17500_p13 = scmp.lt.s32.totalorder %s452_s18, %s452_s18 }
  0xbd   : > { %p17493_p7 = scmp.ne.s32.totalorder %s452_s18, %s17492_s20  ;;  %p17501_p1 = scmp.lt.s32.totalorder %s17492_s20, %s17492_s20 }
  0xbf   : > { %p17495_p8 = pnand %p17493_p7, %p17823_p0  ;;  %p17502_p6 = por %p17501_p1, %p17500_p13 }
  0xc1   : > { %p17496_p11 = pneg %p17495_p8 }
  0xc3   : > { %p17503_p9 = pnand %p17502_p6, %p17496_p11 }
  0xc5   : > { %17506 = shalt.err (!%p17503_p9)
}
  0xc6   : > { %16297 = dma.hbm_to_vmem [thread:$0]  (!%p17807_p12), %s20234_s6, 256, %s452_s18, [#allocation23], %s20302_s12, %s20302_s12, %s20301_s26  }
  0xc7   : > { %s17660_s16 = smov [#allocation27]   ;;  %s17661_s4 = smov [#allocation30]  }
  0xc8   : > { %s480_s2 = sshll.u32 %s17660_s16, 4  ;;  %s506_s14 = sshll.u32 %s17661_s4, 4  ;;  %s481_s2 = int_to_ptr.vmem [resolvable:$true] %s480_s2  ;;  %s507_s14 = int_to_ptr.vmem [resolvable:$true] %s506_s14 }
  0xc9   : > { %s17507_s24 = scalar_lea.hbm %s20237_s9, 512 }
  0xca   : > { %p17508_p5 = scmp.ne.s32.totalorder %s20237_s9, %s17507_s24  ;;  %p17514_p3 = scmp.lt.u32.totalorder %s17507_s24, %s20237_s9 }
  0xcc   : > { %p17510_p10 = pnand %p17508_p5, %p17823_p0 }
  0xce   : > { %p17511_p2 = pneg %p17510_p10 }
  0xd0   : > { %p17516_p4 = pnand %p17514_p3, %p17511_p2 }
  0xd2   : > { %17519 = shalt.err (!%p17516_p4)
}
  0xd3   : > { %s17520_s18 = scalar_lea.vmem %s481_s2, 512  ;;  %p17528_p13 = scmp.lt.s32.totalorder %s481_s2, %s481_s2 }
  0xd4   : > { %p17521_p7 = scmp.ne.s32.totalorder %s481_s2, %s17520_s18  ;;  %p17529_p1 = scmp.lt.s32.totalorder %s17520_s18, %s17520_s18 }
  0xd6   : > { %p17523_p8 = pnand %p17521_p7, %p17823_p0  ;;  %p17530_p6 = por %p17529_p1, %p17528_p13 }
  0xd8   : > { %p17524_p11 = pneg %p17523_p8 }
  0xda   : > { %p17531_p9 = pnand %p17530_p6, %p17524_p11 }
  0xdc   : > { %17534 = shalt.err (!%p17531_p9)
}
  0xdd   : > { %16303 = dma.hbm_to_vmem [thread:$0]  (!%p17807_p12), %s20237_s9, 512, %s481_s2, [#allocation26], %s20302_s12, %s20302_s12, %s20301_s26  }
  0xde   : > { %s17535_s28 = scalar_lea.hbm %s20239_s11, 28672 }
  0xdf   : > { %p17536_p5 = scmp.ne.s32.totalorder %s20239_s11, %s17535_s28  ;;  %p17542_p3 = scmp.lt.u32.totalorder %s17535_s28, %s20239_s11 }
  0xe1   : > { %p17538_p10 = pnand %p17536_p5, %p17823_p0 }
  0xe3   : > { %p17539_p2 = pneg %p17538_p10 }
  0xe5   : > { %p17544_p4 = pnand %p17542_p3, %p17539_p2 }
  0xe7   : > { %17547 = shalt.err (!%p17544_p4)
}
  0xe8   : > { %s17548_s17 = scalar_lea.vmem %s507_s14, 28672  ;;  %p17556_p13 = scmp.lt.s32.totalorder %s507_s14, %s507_s14 }
  0xe9   : > { %p17549_p7 = scmp.ne.s32.totalorder %s507_s14, %s17548_s17  ;;  %p17557_p1 = scmp.lt.s32.totalorder %s17548_s17, %s17548_s17 }
  0xeb   : > { %p17551_p8 = pnand %p17549_p7, %p17823_p0  ;;  %p17558_p6 = por %p17557_p1, %p17556_p13 }
  0xed   : > { %p17552_p11 = pneg %p17551_p8 }
  0xef   : > { %p17559_p9 = pnand %p17558_p6, %p17552_p11 }
  0xf1   : > { %17562 = shalt.err (!%p17559_p9)
}
  0xf2   : > { %s20303_s26 = smov 8   ;;  %s20304_s12 = smov 128  }
  0xf3   : > { %16309 = dma.hbm_to_vmem [thread:$0]  (!%p17807_p12), %s20239_s11, 28672, %s507_s14, [#allocation29], %s20304_s12, %s20304_s12, %s20303_s26  }
  0xf4   : > { %p20305_p5 = scmp.ne.s32.totalorder %s20296_s30, 0 }
  0xf6   : > { %539 = sbr.rel (%p20305_p5) target bundleno = 4697 (0x1259), region = 80 }
  0xfd   : > { %p20306_p0 = scmp.eq.s32.totalorder %s17769_s22, 0 }
  0xff   : > { %17608 = dma.done.wait (%p20306_p0), [#allocation17], 416   ;;  %p20307_p10 = pmov %p20306_p0 }
 0x100   : > { %p20308_p2 = pmov %p20306_p0 }
 0x101   : > { %17610 = vsyncadd (%p20307_p10), [#allocation17], 4294966880 }
 0x102   : > { %17612 = dma.done.wait (%p20308_p2), [#allocation20], 3584   ;;  %p20309_p3 = pmov %p20306_p0 }
 0x103   : > { %p20310_p4 = pmov %p20306_p0 }
 0x104   : > { %17614 = vsyncadd (%p20309_p3), [#allocation20], 4294963712 }
 0x105   : > { %17616 = dma.done.wait (%p20310_p4), [#allocation23], 2048   ;;  %p20311_p12 = pmov %p20306_p0 }
 0x106   : > { %p20312_p7 = pmov %p20306_p0 }
 0x107   : > { %17618 = vsyncadd (%p20311_p12), [#allocation23], 4294965248 }
 0x108   : > { %17620 = dma.done.wait (%p20312_p7), [#allocation26], 4096   ;;  %p20313_p8 = pmov %p20306_p0 }
 0x109   : > { %p20314_p11 = pmov %p20306_p0 }
 0x10a   : > { %17622 = vsyncadd (%p20313_p8), [#allocation26], 4294963200 }
 0x10b   : > { %17624 = dma.done.wait (%p20314_p11), [#allocation29], 43008   ;;  %p20315_p13 = pmov %p20306_p0 }
 0x10c   : > { %p618_p1 = scmp.lt.s32.totalorder %s17769_s22, 1  ;;  %v17662_v0 = vmov 0.0   ;;  %vm656_vm0 = vcmask 26624   ;;  %vm658_vm1 = vcmask 31744   ;;  %vm800_vm2 = vcmask 1041408   ;;  %s20346_s20 = sld [smem:[#allocation63_spill]] }
 0x10d   : > { %17626 = vsyncadd (%p20315_p13), [#allocation29], 4294924288  ;;  %9358 = vst [vmem:[#allocation9] sm:$0x7] %v17662_v0  ;;  %v775_v1 = vld [vmem:[#allocation16 + $0x2] sm:$0x3] }
 0x10e   : > { %10171 = vst [vmem:[#allocation12] sm:$0x7] %v17662_v0  ;;  %10174 = vst [vmem:[#allocation12 + $0xf] sm:$0xff] %v17662_v0  ;;  %s619_s15 = scalar_select %p618_p1, %s17769_s22, 1  ;;  %16230 = vmatprep.subr.msk.bf16.mxu0 %vm800_vm2, %v775_v1  ;;  %v802_v4 = vsel %vm800_vm2, %v775_v1, 0  ;;  %16231 = vmatprep.subr.msk.bf16.mxu1 %vm800_vm2, %v775_v1  ;;  %vm3027_vm3 = vcmask 256000  }
 0x10f   : > { %11111 = vst [vmem:[#allocation14] sm:$0x7] %v17662_v0  ;;  %11112 = vst [vmem:[#allocation14 + $0x8] sm:$0x7] %v17662_v0  ;;  %v733_v7 = vld [vmem:[#allocation16] sm:$0x3]  ;;  %14841 = vmatpush3.bf16.msra.mxu0 %v802_v4  ;;  %15711 = vmatpush3.bf16.msra.mxu1 %v802_v4 }
 0x110   : > { %657 = vst.msk [vmem:[#allocation2] sm:$0x7] %vm656_vm0, %v17662_v0  ;;  %s14328_s30 = sshll.u32 %s619_s15, 8  ;;  %16232 = vmatprep.subr.msk.bf16.mxu0 %vm800_vm2, %v733_v7  ;;  %v926_v38 = vsel %vm800_vm2, %v733_v7, 0  ;;  %v1066_v40 = vld [vmem:[#allocation16 + $0x4] sm:$0x3] }
 0x111   : > { %691 = vst.msk [vmem:[#allocation2 + $0x103] sm:$0xff] %vm658_vm1, %v17662_v0  ;;  %s18046_s18 = scalar_lea.vmem %s20228_s0, %s14328_s30  ;;  %v1092_v53 = vsel %vm800_vm2, %v1066_v40, 0  ;;  %v1248_v54 = vld [vmem:[#allocation16 + $0x6] sm:$0x3]  ;;  %vm3029_vm4 = vcmask 261120   ;;  %s20345_s30 = sld [smem:[#allocation62_spill]] }
 0x112   : > { %v624_v2 = vld [vmem:[%s18046_s18] sm:$0xff]  ;;  %v625_v3 = vld [vmem:[%s18046_s18 + $0x8] sm:$0xff]  ;;  %v626_v5 = vld [vmem:[%s18046_s18 + $0x10] sm:$0xff]  ;;  %s20347_s15 = smov %s20346_s20  ;;  %s20348_s2 = sld [smem:[#allocation39_spill]] }
 0x113   : > { %v627_v6 = vld [vmem:[%s18046_s18 + $0x18] sm:$0xff]  ;;  %659 = vst.msk [vmem:[#allocation2 + $0x3] sm:$0xff] %vm658_vm1, %v624_v2  ;;  %660 = vst.msk [vmem:[#allocation2 + $0xb] sm:$0xff] %vm658_vm1, %v625_v3  ;;  %v628_v8 = vld [vmem:[%s18046_s18 + $0x20] sm:$0xff]  ;;  %s20349_s23 = sld [smem:[#allocation44_spill]]  ;;  %s14325_s25 = sshll.u32 %s17769_s22, 4 }
 0x114   : > { %661 = vst.msk [vmem:[#allocation2 + $0x13] sm:$0xff] %vm658_vm1, %v626_v5  ;;  %662 = vst.msk [vmem:[#allocation2 + $0x1b] sm:$0xff] %vm658_vm1, %v627_v6  ;;  %v629_v9 = vld [vmem:[%s18046_s18 + $0x28] sm:$0xff]  ;;  %v630_v10 = vld [vmem:[%s18046_s18 + $0x30] sm:$0xff]  ;;  %s20350_s21 = sld [smem:[#allocation64_spill]]  ;;  %s17667_s22 = smov [#allocation31]  }
 0x115   : > { %v631_v11 = vld [vmem:[%s18046_s18 + $0x38] sm:$0xff]  ;;  %663 = vst.msk [vmem:[#allocation2 + $0x23] sm:$0xff] %vm658_vm1, %v628_v8  ;;  %664 = vst.msk [vmem:[#allocation2 + $0x2b] sm:$0xff] %vm658_vm1, %v629_v9  ;;  %v632_v12 = vld [vmem:[%s18046_s18 + $0x40] sm:$0xff]  ;;  %s17567_s26 = sshll.u32 %s17667_s22, 4  ;;  %s17568_s26 = int_to_ptr.vmem [resolvable:$false] %s17567_s26 }
 0x116   : > { %665 = vst.msk [vmem:[#allocation2 + $0x33] sm:$0xff] %vm658_vm1, %v630_v10  ;;  %666 = vst.msk [vmem:[#allocation2 + $0x3b] sm:$0xff] %vm658_vm1, %v631_v11  ;;  %v633_v13 = vld [vmem:[%s18046_s18 + $0x48] sm:$0xff]  ;;  %v634_v14 = vld [vmem:[%s18046_s18 + $0x50] sm:$0xff]  ;;  %v1274_v11 = vsel %vm800_vm2, %v1248_v54, 0  ;;  %s17569_s12 = scalar_lea.vmem %s17568_s26, 32 }
 0x117   : > { %v635_v15 = vld [vmem:[%s18046_s18 + $0x58] sm:$0xff]  ;;  %667 = vst.msk [vmem:[#allocation2 + $0x43] sm:$0xff] %vm658_vm1, %v632_v12  ;;  %668 = vst.msk [vmem:[#allocation2 + $0x4b] sm:$0xff] %vm658_vm1, %v633_v13  ;;  %v636_v16 = vld [vmem:[%s18046_s18 + $0x60] sm:$0xff] }
 0x118   : > { %669 = vst.msk [vmem:[#allocation2 + $0x53] sm:$0xff] %vm658_vm1, %v634_v14  ;;  %670 = vst.msk [vmem:[#allocation2 + $0x5b] sm:$0xff] %vm658_vm1, %v635_v15  ;;  %v637_v17 = vld [vmem:[%s18046_s18 + $0x68] sm:$0xff]  ;;  %v638_v18 = vld [vmem:[%s18046_s18 + $0x70] sm:$0xff] }
 0x119   : > { %v639_v19 = vld [vmem:[%s18046_s18 + $0x78] sm:$0xff]  ;;  %671 = vst.msk [vmem:[#allocation2 + $0x63] sm:$0xff] %vm658_vm1, %v636_v16  ;;  %672 = vst.msk [vmem:[#allocation2 + $0x6b] sm:$0xff] %vm658_vm1, %v637_v17  ;;  %v640_v20 = vld [vmem:[%s18046_s18 + $0x80] sm:$0xff]  ;;  %p20352_p9 = scmp.ne.s32.totalorder %s20349_s23, 0 }
 0x11a   : > { %673 = vst.msk [vmem:[#allocation2 + $0x73] sm:$0xff] %vm658_vm1, %v638_v18  ;;  %v641_v21 = vld [vmem:[%s18046_s18 + $0x88] sm:$0xff]  ;;  %674 = vst.msk [vmem:[#allocation2 + $0x7b] sm:$0xff] %vm658_vm1, %v639_v19  ;;  %v642_v22 = vld [vmem:[%s18046_s18 + $0x90] sm:$0xff]  ;;  %s20351_s24 = smov %s20350_s21  ;;  %s20186_s29 = scalar_lea.hbm %s20350_s21, %s14325_s25 }
 0x11b   : > { %v643_v23 = vld [vmem:[%s18046_s18 + $0x98] sm:$0xff]  ;;  %675 = vst.msk [vmem:[#allocation2 + $0x83] sm:$0xff] %vm658_vm1, %v640_v20  ;;  %676 = vst.msk [vmem:[#allocation2 + $0x8b] sm:$0xff] %vm658_vm1, %v641_v21  ;;  %v644_v24 = vld [vmem:[%s18046_s18 + $0xa0] sm:$0xff] }
 0x11c   : > { %v735_v25 = vld [vmem:[#allocation2 + $0x1] ss:$2 sm:$0xff]  ;;  %v694_v26 = vld [vmem:[#allocation2] ss:$2 sm:$0xff]  ;;  %677 = vst.msk [vmem:[#allocation2 + $0x93] sm:$0xff] %vm658_vm1, %v642_v22  ;;  %678 = vst.msk [vmem:[#allocation2 + $0x9b] sm:$0xff] %vm658_vm1, %v643_v23 }
 0x11d   : > { %v645_v27 = vld [vmem:[%s18046_s18 + $0xa8] sm:$0xff]  ;;  %679 = vst.msk [vmem:[#allocation2 + $0xa3] sm:$0xff] %vm658_vm1, %v644_v24  ;;  %v737_v28 = vld [vmem:[#allocation2 + $0x11] ss:$2 sm:$0xff]  ;;  %v696_v29 = vld [vmem:[#allocation2 + $0x10] ss:$2 sm:$0xff] }
 0x11e   : > { %v646_v30 = vld [vmem:[%s18046_s18 + $0xb0] sm:$0xff]  ;;  %680 = vst.msk [vmem:[#allocation2 + $0xab] sm:$0xff] %vm658_vm1, %v645_v27  ;;  %v766_v31 = vpack.c.bf16 %v737_v28, %v735_v25  ;;  %v739_v32 = vld [vmem:[#allocation2 + $0x21] ss:$2 sm:$0xff]  ;;  %v647_v33 = vld [vmem:[%s18046_s18 + $0xb8] sm:$0xff]  ;;  %v725_v35 = vpack.c.bf16 %v696_v29, %v694_v26 }
 0x11f   : > { %681 = vst.msk [vmem:[#allocation2 + $0xb3] sm:$0xff] %vm658_vm1, %v646_v30  ;;  %v741_v34 = vld [vmem:[#allocation2 + $0x31] ss:$2 sm:$0xff]  ;;  %682 = vst.msk [vmem:[#allocation2 + $0xbb] sm:$0xff] %vm658_vm1, %v647_v33  ;;  %v648_v36 = vld [vmem:[%s18046_s18 + $0xc0] sm:$0xff] }
 0x120   : > { %14842 = vmatprep.mubr.msk.bf16.mxu0 %vm658_vm1, %v766_v31  ;;  %v767_v37 = vpack.c.bf16 %v741_v34, %v739_v32  ;;  %v649_v39 = vld [vmem:[%s18046_s18 + $0xc8] sm:$0xff]  ;;  %683 = vst.msk [vmem:[#allocation2 + $0xc3] sm:$0xff] %vm658_vm1, %v648_v36  ;;  %v650_v41 = vld [vmem:[%s18046_s18 + $0xd0] sm:$0xff]  ;;  %v651_v42 = vld [vmem:[%s18046_s18 + $0xd8] sm:$0xff] }
 0x121   : > { %684 = vst.msk [vmem:[#allocation2 + $0xcb] sm:$0xff] %vm658_vm1, %v649_v39  ;;  %685 = vst.msk [vmem:[#allocation2 + $0xd3] sm:$0xff] %vm658_vm1, %v650_v41  ;;  %v652_v43 = vld [vmem:[%s18046_s18 + $0xe0] sm:$0xff]  ;;  %v653_v44 = vld [vmem:[%s18046_s18 + $0xe8] sm:$0xff] }
 0x122   : > { %14843 = vmatmul.mubr.msk.bf16.vlgmr.msra.gmra.mrb[0].mxu0 %vm658_vm1, %v767_v37  ;;  %686 = vst.msk [vmem:[#allocation2 + $0xdb] sm:$0xff] %vm658_vm1, %v651_v42  ;;  %v654_v45 = vld [vmem:[%s18046_s18 + $0xf0] sm:$0xff]  ;;  %687 = vst.msk [vmem:[#allocation2 + $0xe3] sm:$0xff] %vm658_vm1, %v652_v43  ;;  %v655_v46 = vld [vmem:[%s18046_s18 + $0xf8] sm:$0xff] }
 0x123   : > { %14859 = vmatpush3.bf16.msra.mxu0 %v926_v38  ;;  %14860 = vmatprep.mubr.msk.bf16.mxu0 %vm658_vm1, %v725_v35  ;;  %688 = vst.msk [vmem:[#allocation2 + $0xeb] sm:$0xff] %vm658_vm1, %v653_v44  ;;  %689 = vst.msk [vmem:[#allocation2 + $0xf3] sm:$0xff] %vm658_vm1, %v654_v45  ;;  %v698_v47 = vld [vmem:[#allocation2 + $0x20] ss:$2 sm:$0xff]  ;;  %v700_v48 = vld [vmem:[#allocation2 + $0x30] ss:$2 sm:$0xff] }
 0x124   : > { %16233 = vmatprep.subr.msk.bf16.mxu0 %vm800_vm2, %v1066_v40  ;;  %690 = vst.msk [vmem:[#allocation2 + $0xfb] sm:$0xff] %vm658_vm1, %v655_v46  ;;  %v702_v49 = vld [vmem:[#allocation2 + $0x40] ss:$2 sm:$0xff]  ;;  %v704_v50 = vld [vmem:[#allocation2 + $0x50] ss:$2 sm:$0xff]  ;;  %v726_v51 = vpack.c.bf16 %v700_v48, %v698_v47 }
 0x125   : > { %v727_v52 = vpack.c.bf16 %v704_v50, %v702_v49  ;;  %v706_v55 = vld [vmem:[#allocation2 + $0x60] ss:$2 sm:$0xff]  ;;  %v708_v56 = vld [vmem:[#allocation2 + $0x70] ss:$2 sm:$0xff]  ;;  %v1208_v30 = vld [vmem:[#allocation2 + $0x3] ss:$2 sm:$0xff] }
 0x126   : > { %v710_v57 = vld [vmem:[#allocation2 + $0x80] ss:$2 sm:$0xff]  ;;  %v712_v58 = vld [vmem:[#allocation2 + $0x90] ss:$2 sm:$0xff]  ;;  %v728_v59 = vpack.c.bf16 %v708_v56, %v706_v55  ;;  %v1210_v32 = vld [vmem:[#allocation2 + $0x13] ss:$2 sm:$0xff] }
 0x127   : > { %v729_v60 = vpack.c.bf16 %v712_v58, %v710_v57  ;;  %v714_v61 = vld [vmem:[#allocation2 + $0xa0] ss:$2 sm:$0xff]  ;;  %v716_v62 = vld [vmem:[#allocation2 + $0xb0] ss:$2 sm:$0xff]  ;;  %v1239_v34 = vpack.c.bf16 %v1210_v32, %v1208_v30  ;;  %v1212_v35 = vld [vmem:[#allocation2 + $0x23] ss:$2 sm:$0xff] }
 0x128   : > { %v718_v63 = vld [vmem:[#allocation2 + $0xc0] ss:$2 sm:$0xff]  ;;  %v730_v1 = vpack.c.bf16 %v716_v62, %v714_v61  ;;  %v1430_v16 = vld [vmem:[#allocation16 + $0x8] sm:$0x3]  ;;  %v1214_v36 = vld [vmem:[#allocation2 + $0x33] ss:$2 sm:$0xff] }
 0x129   : > { %v720_v0 = vld [vmem:[#allocation2 + $0xd0] ss:$2 sm:$0xff]  ;;  %v1456_v37 = vsel %vm800_vm2, %v1430_v16, 0  ;;  %v1216_v38 = vld [vmem:[#allocation2 + $0x43] ss:$2 sm:$0xff]  ;;  %v1240_v40 = vpack.c.bf16 %v1214_v36, %v1212_v35 }
 0x12a   : > { %v731_v2 = vpack.c.bf16 %v720_v0, %v718_v63  ;;  %v1026_v3 = vld [vmem:[#allocation2 + $0x2] ss:$2 sm:$0xff]  ;;  %v1028_v4 = vld [vmem:[#allocation2 + $0x12] ss:$2 sm:$0xff]  ;;  %v1218_v39 = vld [vmem:[#allocation2 + $0x53] ss:$2 sm:$0xff] }
 0x12b   : > { %v722_v5 = vld [vmem:[#allocation2 + $0xe0] ss:$2 sm:$0xff]  ;;  %v724_v6 = vld [vmem:[#allocation2 + $0xf0] ss:$2 sm:$0xff]  ;;  %v1057_v8 = vpack.c.bf16 %v1028_v4, %v1026_v3  ;;  %v1241_v41 = vpack.c.bf16 %v1218_v39, %v1216_v38  ;;  %v1220_v43 = vld [vmem:[#allocation2 + $0x63] ss:$2 sm:$0xff] }
 0x12c   : > { %v732_v7 = vpack.c.bf16 %v724_v6, %v722_v5  ;;  %v1030_v9 = vld [vmem:[#allocation2 + $0x22] ss:$2 sm:$0xff]  ;;  %v1032_v10 = vld [vmem:[#allocation2 + $0x32] ss:$2 sm:$0xff]  ;;  %v1222_v44 = vld [vmem:[#allocation2 + $0x73] ss:$2 sm:$0xff] }
 0x12d   : > { %v1034_v12 = vld [vmem:[#allocation2 + $0x42] ss:$2 sm:$0xff]  ;;  %v1036_v13 = vld [vmem:[#allocation2 + $0x52] ss:$2 sm:$0xff]  ;;  %v1058_v14 = vpack.c.bf16 %v1032_v10, %v1030_v9  ;;  %v1224_v45 = vld [vmem:[#allocation2 + $0x83] ss:$2 sm:$0xff]  ;;  %v1242_v47 = vpack.c.bf16 %v1222_v44, %v1220_v43 }
 0x12e   : > { %14861 = vmatmul.mubr.msk.bf16.vlgmr.msra.gmra.mrb[0].mxu0 %vm658_vm1, %v726_v51  ;;  %v1059_v15 = vpack.c.bf16 %v1036_v13, %v1034_v12  ;;  %v1038_v17 = vld [vmem:[#allocation2 + $0x62] ss:$2 sm:$0xff]  ;;  %v1040_v18 = vld [vmem:[#allocation2 + $0x72] ss:$2 sm:$0xff]  ;;  %v1226_v46 = vld [vmem:[#allocation2 + $0x93] ss:$2 sm:$0xff] }
 0x12f   : > { %14877 = vmatpush3.bf16.msra.mxu0 %v1092_v53  ;;  %14864 = vmatprep.mubr.msk.bf16.mxu0 %vm658_vm1, %v727_v52  ;;  %v1042_v19 = vld [vmem:[#allocation2 + $0x82] ss:$2 sm:$0xff]  ;;  %v1044_v20 = vld [vmem:[#allocation2 + $0x92] ss:$2 sm:$0xff]  ;;  %v1060_v21 = vpack.c.bf16 %v1040_v18, %v1038_v17  ;;  %v1243_v48 = vpack.c.bf16 %v1226_v46, %v1224_v45  ;;  %v1228_v49 = vld [vmem:[#allocation2 + $0xa3] ss:$2 sm:$0xff] }
 0x130   : > { %16234 = vmatprep.subr.msk.bf16.mxu0 %vm800_vm2, %v1248_v54  ;;  %v1061_v22 = vpack.c.bf16 %v1044_v20, %v1042_v19  ;;  %v1046_v23 = vld [vmem:[#allocation2 + $0xa2] ss:$2 sm:$0xff]  ;;  %v1048_v24 = vld [vmem:[#allocation2 + $0xb2] ss:$2 sm:$0xff]  ;;  %v1230_v50 = vld [vmem:[#allocation2 + $0xb3] ss:$2 sm:$0xff] }
 0x131   : > { %v1050_v25 = vld [vmem:[#allocation2 + $0xc2] ss:$2 sm:$0xff]  ;;  %v1052_v26 = vld [vmem:[#allocation2 + $0xd2] ss:$2 sm:$0xff]  ;;  %v1062_v27 = vpack.c.bf16 %v1048_v24, %v1046_v23  ;;  %v1232_v51 = vld [vmem:[#allocation2 + $0xc3] ss:$2 sm:$0xff]  ;;  %v1244_v53 = vpack.c.bf16 %v1230_v50, %v1228_v49 }
 0x132   : > { %v1063_v28 = vpack.c.bf16 %v1052_v26, %v1050_v25  ;;  %v1054_v29 = vld [vmem:[#allocation2 + $0xe2] ss:$2 sm:$0xff]  ;;  %v1056_v31 = vld [vmem:[#allocation2 + $0xf2] ss:$2 sm:$0xff]  ;;  %v1234_v52 = vld [vmem:[#allocation2 + $0xd3] ss:$2 sm:$0xff] }
 0x133   : > { %v1064_v33 = vpack.c.bf16 %v1056_v31, %v1054_v29  ;;  %v1612_v42 = vld [vmem:[#allocation16 + $0xa] sm:$0x3]  ;;  %v1245_v54 = vpack.c.bf16 %v1234_v52, %v1232_v51  ;;  %v1236_v55 = vld [vmem:[#allocation2 + $0xe3] ss:$2 sm:$0xff]  ;;  %v1392_v58 = vld [vmem:[#allocation2 + $0x14] ss:$2 sm:$0xff] }
 0x134   : > { %v1238_v56 = vld [vmem:[#allocation2 + $0xf3] ss:$2 sm:$0xff]  ;;  %v1390_v57 = vld [vmem:[#allocation2 + $0x4] ss:$2 sm:$0xff]  ;;  %v1396_v62 = vld [vmem:[#allocation2 + $0x34] ss:$2 sm:$0xff] }
 0x135   : > { %v1394_v61 = vld [vmem:[#allocation2 + $0x24] ss:$2 sm:$0xff]  ;;  %v1638_v63 = vsel %vm800_vm2, %v1612_v42, 0  ;;  %v1794_v4 = vld [vmem:[#allocation16 + $0xc] sm:$0x3] }
 0x136   : > { %14865 = vmatmul.mubr.msk.bf16.gmra.mrb[4].mxu0 %vm658_vm1, %v728_v59  ;;  %v1246_v59 = vpack.c.bf16 %v1238_v56, %v1236_v55  ;;  %v1398_v0 = vld [vmem:[#allocation2 + $0x44] ss:$2 sm:$0xff]  ;;  %v1404_v6 = vld [vmem:[#allocation2 + $0x74] ss:$2 sm:$0xff]  ;;  %v1572_v19 = vld [vmem:[#allocation2 + $0x5] ss:$2 sm:$0xff] }
 0x137   : > { %14868 = vmatprep.mubr.msk.bf16.mxu0 %vm658_vm1, %v729_v60  ;;  %v1421_v60 = vpack.c.bf16 %v1392_v58, %v1390_v57  ;;  %v1402_v5 = vld [vmem:[#allocation2 + $0x64] ss:$2 sm:$0xff]  ;;  %v1412_v12 = vld [vmem:[#allocation2 + $0xb4] ss:$2 sm:$0xff]  ;;  %v1574_v20 = vld [vmem:[#allocation2 + $0x15] ss:$2 sm:$0xff] }
 0x138   : > { %v1424_v9 = vpack.c.bf16 %v1404_v6, %v1402_v5  ;;  %v1414_v13 = vld [vmem:[#allocation2 + $0xc4] ss:$2 sm:$0xff]  ;;  %v1420_v18 = vld [vmem:[#allocation2 + $0xf4] ss:$2 sm:$0xff]  ;;  %v1576_v23 = vld [vmem:[#allocation2 + $0x25] ss:$2 sm:$0xff] }
 0x139   : > { %v1418_v17 = vld [vmem:[#allocation2 + $0xe4] ss:$2 sm:$0xff]  ;;  %v1578_v24 = vld [vmem:[#allocation2 + $0x35] ss:$2 sm:$0xff]  ;;  %v1820_v25 = vsel %vm800_vm2, %v1794_v4, 0 }
 0x13a   : > { %v1580_v26 = vld [vmem:[#allocation2 + $0x45] ss:$2 sm:$0xff]  ;;  %v1976_v30 = vld [vmem:[#allocation16 + $0xe] sm:$0x3]  ;;  %v1754_v45 = vld [vmem:[#allocation2 + $0x6] ss:$2 sm:$0xff] }
 0x13b   : > { %v1584_v31 = vld [vmem:[#allocation2 + $0x65] ss:$2 sm:$0xff]  ;;  %v1586_v32 = vld [vmem:[#allocation2 + $0x75] ss:$2 sm:$0xff]  ;;  %v1756_v46 = vld [vmem:[#allocation2 + $0x16] ss:$2 sm:$0xff] }
 0x13c   : > { %v1606_v35 = vpack.c.bf16 %v1586_v32, %v1584_v31  ;;  %v1594_v38 = vld [vmem:[#allocation2 + $0xb5] ss:$2 sm:$0xff]  ;;  %v1596_v39 = vld [vmem:[#allocation2 + $0xc5] ss:$2 sm:$0xff]  ;;  %v1758_v49 = vld [vmem:[#allocation2 + $0x26] ss:$2 sm:$0xff] }
 0x13d   : > { %v1600_v43 = vld [vmem:[#allocation2 + $0xe5] ss:$2 sm:$0xff]  ;;  %v1602_v44 = vld [vmem:[#allocation2 + $0xf5] ss:$2 sm:$0xff]  ;;  %v1760_v50 = vld [vmem:[#allocation2 + $0x36] ss:$2 sm:$0xff] }
 0x13e   : > { %14869 = vmatmul.mubr.msk.bf16.gmra.mrb[8].mxu0 %vm658_vm1, %v730_v1  ;;  %v1400_v1 = vld [vmem:[#allocation2 + $0x54] ss:$2 sm:$0xff]  ;;  %v2002_v56 = vsel %vm800_vm2, %v1976_v30, 0  ;;  %v1964_v31 = vld [vmem:[#allocation2 + $0xe7] ss:$2 sm:$0xff] }
 0x13f   : > { %14872 = vmatprep.mubr.msk.bf16.mxu0 %vm658_vm1, %v731_v2  ;;  %v1422_v2 = vpack.c.bf16 %v1396_v62, %v1394_v61  ;;  %v1423_v3 = vpack.c.bf16 %v1400_v1, %v1398_v0  ;;  %v1762_v51 = vld [vmem:[#allocation2 + $0x46] ss:$2 sm:$0xff]  ;;  %v1764_v52 = vld [vmem:[#allocation2 + $0x56] ss:$2 sm:$0xff]  ;;  %v1966_v32 = vld [vmem:[#allocation2 + $0xf7] ss:$2 sm:$0xff] }
 0x140   : > { %v2158_v55 = vld [vmem:[#allocation16 + $0x10] sm:$0x3]  ;;  %v1766_v57 = vld [vmem:[#allocation2 + $0x66] ss:$2 sm:$0xff] }
 0x141   : > { %v1768_v58 = vld [vmem:[#allocation2 + $0x76] ss:$2 sm:$0xff]  ;;  %v1778_v1 = vld [vmem:[#allocation2 + $0xc6] ss:$2 sm:$0xff] }
 0x142   : > { %v1788_v61 = vpack.c.bf16 %v1768_v58, %v1766_v57  ;;  %v1776_v0 = vld [vmem:[#allocation2 + $0xb6] ss:$2 sm:$0xff]  ;;  %v1782_v5 = vld [vmem:[#allocation2 + $0xe6] ss:$2 sm:$0xff]  ;;  %v751_v57 = vld [vmem:[#allocation2 + $0x81] ss:$2 sm:$0xff] }
 0x143   : > { %v1784_v6 = vld [vmem:[#allocation2 + $0xf6] ss:$2 sm:$0xff]  ;;  %v753_v58 = vld [vmem:[#allocation2 + $0x91] ss:$2 sm:$0xff] }
 0x146   : > { %14873 = vmatmul.mubr.msk.bf16.gmra.mrb[12].mxu0 %vm658_vm1, %v732_v7  ;;  %v1406_v7 = vld [vmem:[#allocation2 + $0x84] ss:$2 sm:$0xff] }
 0x147   : > { %14878 = vmatprep.mubr.msk.bf16.mxu0 %vm658_vm1, %v1057_v8  ;;  %v1408_v8 = vld [vmem:[#allocation2 + $0x94] ss:$2 sm:$0xff] }
 0x148   : > { %v1425_v10 = vpack.c.bf16 %v1408_v8, %v1406_v7  ;;  %v1936_v7 = vld [vmem:[#allocation2 + $0x7] ss:$2 sm:$0xff]  ;;  %v1938_v8 = vld [vmem:[#allocation2 + $0x17] ss:$2 sm:$0xff] }
 0x14e   : > { %14879 = vmatmul.mubr.msk.bf16.vlgmr.msra.gmra.mrb[0].mxu0 %vm658_vm1, %v1058_v14  ;;  %v1416_v14 = vld [vmem:[#allocation2 + $0xd4] ss:$2 sm:$0xff] }
 0x14f   : > { %14895 = vmatpush3.bf16.msra.mxu0 %v1274_v11  ;;  %14882 = vmatprep.mubr.msk.bf16.mxu0 %vm658_vm1, %v1059_v15  ;;  %v1410_v11 = vld [vmem:[#allocation2 + $0xa4] ss:$2 sm:$0xff] }
 0x150   : > { %16235 = vmatprep.subr.msk.bf16.mxu0 %vm800_vm2, %v1430_v16  ;;  %v1426_v15 = vpack.c.bf16 %v1412_v12, %v1410_v11  ;;  %v1427_v16 = vpack.c.bf16 %v1416_v14, %v1414_v13  ;;  %v1940_v11 = vld [vmem:[#allocation2 + $0x27] ss:$2 sm:$0xff]  ;;  %v1942_v12 = vld [vmem:[#allocation2 + $0x37] ss:$2 sm:$0xff] }
 0x151   : > { %v1944_v13 = vld [vmem:[#allocation2 + $0x47] ss:$2 sm:$0xff]  ;;  %v1946_v14 = vld [vmem:[#allocation2 + $0x57] ss:$2 sm:$0xff] }
 0x156   : > { %14883 = vmatmul.mubr.msk.bf16.gmra.mrb[4].mxu0 %vm658_vm1, %v1060_v21  ;;  %v1428_v21 = vpack.c.bf16 %v1420_v18, %v1418_v17  ;;  %v2340_v17 = vld [vmem:[#allocation16 + $0x12] sm:$0x3]  ;;  %v2184_v18 = vsel %vm800_vm2, %v2158_v55, 0 }
 0x157   : > { %14886 = vmatprep.mubr.msk.bf16.mxu0 %vm658_vm1, %v1061_v22  ;;  %v1603_v22 = vpack.c.bf16 %v1574_v20, %v1572_v19  ;;  %v1948_v19 = vld [vmem:[#allocation2 + $0x67] ss:$2 sm:$0xff]  ;;  %v1950_v20 = vld [vmem:[#allocation2 + $0x77] ss:$2 sm:$0xff] }
 0x15e   : > { %14887 = vmatmul.mubr.msk.bf16.gmra.mrb[8].mxu0 %vm658_vm1, %v1062_v27  ;;  %v1582_v27 = vld [vmem:[#allocation2 + $0x55] ss:$2 sm:$0xff] }
 0x15f   : > { %14890 = vmatprep.mubr.msk.bf16.mxu0 %vm658_vm1, %v1063_v28  ;;  %v1604_v28 = vpack.c.bf16 %v1578_v24, %v1576_v23  ;;  %v1605_v29 = vpack.c.bf16 %v1582_v27, %v1580_v26  ;;  %v1970_v23 = vpack.c.bf16 %v1950_v20, %v1948_v19  ;;  %v1958_v26 = vld [vmem:[#allocation2 + $0xb7] ss:$2 sm:$0xff]  ;;  %v1960_v27 = vld [vmem:[#allocation2 + $0xc7] ss:$2 sm:$0xff] }
 0x160   : > { %v2308_v19 = vld [vmem:[#allocation2 + $0x49] ss:$2 sm:$0xff]  ;;  %v2310_v20 = vld [vmem:[#allocation2 + $0x59] ss:$2 sm:$0xff] }
 0x166   : > { %14891 = vmatmul.mubr.msk.bf16.gmra.mrb[12].mxu0 %vm658_vm1, %v1064_v33  ;;  %v1588_v33 = vld [vmem:[#allocation2 + $0x85] ss:$2 sm:$0xff] }
 0x167   : > { %14896 = vmatprep.mubr.msk.bf16.mxu0 %vm658_vm1, %v1239_v34  ;;  %v1590_v34 = vld [vmem:[#allocation2 + $0x95] ss:$2 sm:$0xff] }
 0x168   : > { %v1607_v36 = vpack.c.bf16 %v1590_v34, %v1588_v33  ;;  %v2118_v33 = vld [vmem:[#allocation2 + $0x8] ss:$2 sm:$0xff]  ;;  %v2120_v34 = vld [vmem:[#allocation2 + $0x18] ss:$2 sm:$0xff] }
 0x16e   : > { %14897 = vmatmul.mubr.msk.bf16.vlgmr.msra.gmra.mrb[0].mxu0 %vm658_vm1, %v1240_v40  ;;  %v1598_v40 = vld [vmem:[#allocation2 + $0xd5] ss:$2 sm:$0xff] }
 0x16f   : > { %14913 = vmatpush3.bf16.msra.mxu0 %v1456_v37  ;;  %14900 = vmatprep.mubr.msk.bf16.mxu0 %vm658_vm1, %v1241_v41  ;;  %v1592_v37 = vld [vmem:[#allocation2 + $0xa5] ss:$2 sm:$0xff] }
 0x170   : > { %16236 = vmatprep.subr.msk.bf16.mxu0 %vm800_vm2, %v1612_v42  ;;  %v1608_v41 = vpack.c.bf16 %v1594_v38, %v1592_v37  ;;  %v1609_v42 = vpack.c.bf16 %v1598_v40, %v1596_v39  ;;  %v2122_v37 = vld [vmem:[#allocation2 + $0x28] ss:$2 sm:$0xff]  ;;  %v2124_v38 = vld [vmem:[#allocation2 + $0x38] ss:$2 sm:$0xff] }
 0x171   : > { %v2126_v39 = vld [vmem:[#allocation2 + $0x48] ss:$2 sm:$0xff]  ;;  %v2128_v40 = vld [vmem:[#allocation2 + $0x58] ss:$2 sm:$0xff] }
 0x176   : > { %14901 = vmatmul.mubr.msk.bf16.gmra.mrb[4].mxu0 %vm658_vm1, %v1242_v47  ;;  %v1610_v47 = vpack.c.bf16 %v1602_v44, %v1600_v43  ;;  %v18191_v43 = vld [vmem:[#allocation16 + $0x14] sm:$0x3]  ;;  %v2366_v44 = vsel %vm800_vm2, %v2340_v17, 0 }
 0x177   : > { %14904 = vmatprep.mubr.msk.bf16.mxu0 %vm658_vm1, %v1243_v48  ;;  %v1785_v48 = vpack.c.bf16 %v1756_v46, %v1754_v45  ;;  %v743_v45 = vld [vmem:[#allocation2 + $0x41] ss:$2 sm:$0xff]  ;;  %v745_v46 = vld [vmem:[#allocation2 + $0x51] ss:$2 sm:$0xff] }
 0x17e   : > { %14905 = vmatmul.mubr.msk.bf16.gmra.mrb[8].mxu0 %vm658_vm1, %v1244_v53  ;;  %v1786_v53 = vpack.c.bf16 %v1760_v50, %v1758_v49  ;;  %v2132_v49 = vld [vmem:[#allocation2 + $0x78] ss:$2 sm:$0xff]  ;;  %v768_v50 = vpack.c.bf16 %v745_v46, %v743_v45 }
 0x17f   : > { %14908 = vmatprep.mubr.msk.bf16.mxu0 %vm658_vm1, %v1245_v54  ;;  %v1787_v54 = vpack.c.bf16 %v1764_v52, %v1762_v51  ;;  %v749_v51 = vld [vmem:[#allocation2 + $0x71] ss:$2 sm:$0xff]  ;;  %v2134_v52 = vld [vmem:[#allocation2 + $0x88] ss:$2 sm:$0xff] }
 0x180   : > { %14846 = vmatprep.mubr.msk.bf16.mxu1 %vm658_vm1, %v768_v50  ;;  %v2488_v45 = vld [vmem:[#allocation2 + $0x3a] ss:$2 sm:$0xff]  ;;  %v2490_v46 = vld [vmem:[#allocation2 + $0x4a] ss:$2 sm:$0xff] }
 0x186   : > { %14909 = vmatmul.mubr.msk.bf16.gmra.mrb[12].mxu0 %vm658_vm1, %v1246_v59  ;;  %v1770_v59 = vld [vmem:[#allocation2 + $0x86] ss:$2 sm:$0xff] }
 0x187   : > { %14914 = vmatprep.mubr.msk.bf16.mxu0 %vm658_vm1, %v1421_v60  ;;  %v1772_v60 = vld [vmem:[#allocation2 + $0x96] ss:$2 sm:$0xff] }
 0x188   : > { %v1789_v62 = vpack.c.bf16 %v1772_v60, %v1770_v59  ;;  %v755_v59 = vld [vmem:[#allocation2 + $0xa1] ss:$2 sm:$0xff]  ;;  %v2138_v60 = vld [vmem:[#allocation2 + $0xa8] ss:$2 sm:$0xff] }
 0x18e   : > { %14915 = vmatmul.mubr.msk.bf16.vlgmr.msra.gmra.mrb[0].mxu0 %vm658_vm1, %v1422_v2  ;;  %v1780_v2 = vld [vmem:[#allocation2 + $0xd6] ss:$2 sm:$0xff] }
 0x18f   : > { %14931 = vmatpush3.bf16.msra.mxu0 %v1638_v63  ;;  %14918 = vmatprep.mubr.msk.bf16.mxu0 %vm658_vm1, %v1423_v3  ;;  %v1774_v63 = vld [vmem:[#allocation2 + $0xa6] ss:$2 sm:$0xff] }
 0x190   : > { %16237 = vmatprep.subr.msk.bf16.mxu0 %vm800_vm2, %v1794_v4  ;;  %v1790_v3 = vpack.c.bf16 %v1776_v0, %v1774_v63  ;;  %v1791_v4 = vpack.c.bf16 %v1780_v2, %v1778_v1  ;;  %v757_v63 = vld [vmem:[#allocation2 + $0xb1] ss:$2 sm:$0xff]  ;;  %v2142_v0 = vld [vmem:[#allocation2 + $0xc8] ss:$2 sm:$0xff]  ;;  %v2144_v1 = vld [vmem:[#allocation2 + $0xd8] ss:$2 sm:$0xff] }
 0x191   : > { %v771_v2 = vpack.c.bf16 %v757_v63, %v755_v59  ;;  %v2504_v59 = vld [vmem:[#allocation2 + $0xba] ss:$2 sm:$0xff] }
 0x196   : > { %14919 = vmatmul.mubr.msk.bf16.gmra.mrb[4].mxu0 %vm658_vm1, %v1424_v9  ;;  %v1792_v9 = vpack.c.bf16 %v1784_v6, %v1782_v5  ;;  %v759_v5 = vld [vmem:[#allocation2 + $0xc1] ss:$2 sm:$0xff]  ;;  %v761_v6 = vld [vmem:[#allocation2 + $0xd1] ss:$2 sm:$0xff] }
 0x197   : > { %14922 = vmatprep.mubr.msk.bf16.mxu0 %vm658_vm1, %v1425_v10  ;;  %v1967_v10 = vpack.c.bf16 %v1938_v8, %v1936_v7  ;;  %v763_v7 = vld [vmem:[#allocation2 + $0xe1] ss:$2 sm:$0xff]  ;;  %v2146_v8 = vld [vmem:[#allocation2 + $0xe8] ss:$2 sm:$0xff] }
 0x19e   : > { %14923 = vmatmul.mubr.msk.bf16.gmra.mrb[8].mxu0 %vm658_vm1, %v1426_v15  ;;  %v1968_v15 = vpack.c.bf16 %v1942_v12, %v1940_v11  ;;  %v765_v11 = vld [vmem:[#allocation2 + $0xf1] ss:$2 sm:$0xff] }
 0x19f   : > { %14926 = vmatprep.mubr.msk.bf16.mxu0 %vm658_vm1, %v1427_v16  ;;  %v1969_v16 = vpack.c.bf16 %v1946_v14, %v1944_v13  ;;  %v2300_v12 = vld [vmem:[#allocation2 + $0x9] ss:$2 sm:$0xff]  ;;  %v2302_v13 = vld [vmem:[#allocation2 + $0x19] ss:$2 sm:$0xff]  ;;  %v773_v14 = vpack.c.bf16 %v765_v11, %v763_v7 }
 0x1a0   : > { %v2670_v7 = vld [vmem:[#allocation2 + $0x3b] ss:$2 sm:$0xff] }
 0x1a6   : > { %14927 = vmatmul.mubr.msk.bf16.gmra.mrb[12].mxu0 %vm658_vm1, %v1428_v21  ;;  %v1952_v21 = vld [vmem:[#allocation2 + $0x87] ss:$2 sm:$0xff] }
 0x1a7   : > { %14932 = vmatprep.mubr.msk.bf16.mxu0 %vm658_vm1, %v1603_v22  ;;  %v1954_v22 = vld [vmem:[#allocation2 + $0x97] ss:$2 sm:$0xff] }
 0x1a8   : > { %v1971_v24 = vpack.c.bf16 %v1954_v22, %v1952_v21  ;;  %v16385_v21 = vld [vmem:[#allocation19 + $0x10] sm:$0xff]  }
 0x1a9   : > { %15074 = vmatprep.subr.bf16.mxu1 %v16385_v21 }
 0x1ae   : > { %14933 = vmatmul.mubr.msk.bf16.vlgmr.msra.gmra.mrb[0].mxu0 %vm658_vm1, %v1604_v28  ;;  %v1962_v28 = vld [vmem:[#allocation2 + $0xd7] ss:$2 sm:$0xff] }
 0x1af   : > { %14949 = vmatpush3.bf16.msra.mxu0 %v1820_v25  ;;  %14936 = vmatprep.mubr.msk.bf16.mxu0 %vm658_vm1, %v1605_v29  ;;  %v1956_v25 = vld [vmem:[#allocation2 + $0xa7] ss:$2 sm:$0xff] }
 0x1b0   : > { %16238 = vmatprep.subr.msk.bf16.mxu0 %vm800_vm2, %v1976_v30  ;;  %v1972_v29 = vpack.c.bf16 %v1958_v26, %v1956_v25  ;;  %v1973_v30 = vpack.c.bf16 %v1962_v28, %v1960_v27  ;;  %v2548_v25 = vsel %vm800_vm2, %v18191_v43, 0  ;;  %v2312_v26 = vld [vmem:[#allocation2 + $0x69] ss:$2 sm:$0xff]  ;;  %v2314_v27 = vld [vmem:[#allocation2 + $0x79] ss:$2 sm:$0xff] }
 0x1b1   : > { %v2316_v28 = vld [vmem:[#allocation2 + $0x89] ss:$2 sm:$0xff] }
 0x1b6   : > { %14937 = vmatmul.mubr.msk.bf16.gmra.mrb[4].mxu0 %vm658_vm1, %v1606_v35  ;;  %v1974_v35 = vpack.c.bf16 %v1966_v32, %v1964_v31  ;;  %v2320_v32 = vld [vmem:[#allocation2 + $0xa9] ss:$2 sm:$0xff] }
 0x1b7   : > { %14940 = vmatprep.mubr.msk.bf16.mxu0 %vm658_vm1, %v1607_v36  ;;  %v2149_v36 = vpack.c.bf16 %v2120_v34, %v2118_v33  ;;  %v2322_v33 = vld [vmem:[#allocation2 + $0xb9] ss:$2 sm:$0xff]  ;;  %v2324_v34 = vld [vmem:[#allocation2 + $0xc9] ss:$2 sm:$0xff] }
 0x1be   : > { %14941 = vmatmul.mubr.msk.bf16.gmra.mrb[8].mxu0 %vm658_vm1, %v1608_v41  ;;  %v2150_v41 = vpack.c.bf16 %v2124_v38, %v2122_v37  ;;  %v2328_v38 = vld [vmem:[#allocation2 + $0xe9] ss:$2 sm:$0xff] }
 0x1bf   : > { %14944 = vmatprep.mubr.msk.bf16.mxu0 %vm658_vm1, %v1609_v42  ;;  %v2151_v42 = vpack.c.bf16 %v2128_v40, %v2126_v39  ;;  %v2330_v39 = vld [vmem:[#allocation2 + $0xf9] ss:$2 sm:$0xff]  ;;  %v2482_v40 = vld [vmem:[#allocation2 + $0xa] ss:$2 sm:$0xff] }
 0x1c6   : > { %14945 = vmatmul.mubr.msk.bf16.gmra.mrb[12].mxu0 %vm658_vm1, %v1610_v47  ;;  %v747_v47 = vld [vmem:[#allocation2 + $0x61] ss:$2 sm:$0xff] }
 0x1c7   : > { %14950 = vmatprep.mubr.msk.bf16.mxu0 %vm658_vm1, %v1785_v48  ;;  %v2130_v48 = vld [vmem:[#allocation2 + $0x68] ss:$2 sm:$0xff] }
 0x1ce   : > { %14951 = vmatmul.mubr.msk.bf16.vlgmr.msra.gmra.mrb[0].mxu0 %vm658_vm1, %v1786_v53  ;;  %v2136_v53 = vld [vmem:[#allocation2 + $0x98] ss:$2 sm:$0xff] }
 0x1cf   : > { %14967 = vmatpush3.bf16.msra.mxu0 %v2002_v56  ;;  %14954 = vmatprep.mubr.msk.bf16.mxu0 %vm658_vm1, %v1787_v54  ;;  %v769_v54 = vpack.c.bf16 %v749_v51, %v747_v47  ;;  %v2153_v56 = vpack.c.bf16 %v2136_v53, %v2134_v52  ;;  %v2492_v47 = vld [vmem:[#allocation2 + $0x5a] ss:$2 sm:$0xff]  ;;  %v2494_v52 = vld [vmem:[#allocation2 + $0x6a] ss:$2 sm:$0xff] }
 0x1d0   : > { %16239 = vmatprep.subr.msk.bf16.mxu0 %vm800_vm2, %v2158_v55  ;;  %v2152_v55 = vpack.c.bf16 %v2132_v49, %v2130_v48  ;;  %v2515_v49 = vpack.c.bf16 %v2492_v47, %v2490_v46  ;;  %v2886_v51 = vld [vmem:[#allocation16 + $0x18] sm:$0x3] }
 0x1d1   : > { %14847 = vmatmul.mubr.msk.bf16.vlgmr.msra.gmra.mrb[0].mxu1 %vm658_vm1, %v769_v54  ;;  %v2496_v53 = vld [vmem:[#allocation2 + $0x7a] ss:$2 sm:$0xff]  ;;  %v2498_v54 = vld [vmem:[#allocation2 + $0x8a] ss:$2 sm:$0xff] }
 0x1d2   : > { %15075 = vmatpush3.bf16.msra.mxu1 %v16385_v21  ;;  %v2688_v21 = vld [vmem:[#allocation2 + $0xcb] ss:$2 sm:$0xff]  ;;  %v2872_v46 = vld [vmem:[#allocation2 + $0xdc] ss:$2 sm:$0xff] }
 0x1d6   : > { %14955 = vmatmul.mubr.msk.bf16.gmra.mrb[4].mxu0 %vm658_vm1, %v1788_v61  ;;  %v2140_v61 = vld [vmem:[#allocation2 + $0xb8] ss:$2 sm:$0xff] }
 0x1d7   : > { %14958 = vmatprep.mubr.msk.bf16.mxu0 %vm658_vm1, %v1789_v62  ;;  %v770_v62 = vpack.c.bf16 %v753_v58, %v751_v57  ;;  %v2502_v58 = vld [vmem:[#allocation2 + $0xaa] ss:$2 sm:$0xff] }
 0x1d9   : > { %14850 = vmatprep.mubr.msk.bf16.mxu1 %vm658_vm1, %v770_v62  ;;  %v2518_v62 = vpack.c.bf16 %v2504_v59, %v2502_v58 }
 0x1da   : > { %14851 = vmatmul.mubr.msk.bf16.gmra.mrb[4].mxu1 %vm658_vm1, %v771_v2  ;;  %v2664_v2 = vld [vmem:[#allocation2 + $0xb] ss:$2 sm:$0xff] }
 0x1de   : > { %14959 = vmatmul.mubr.msk.bf16.gmra.mrb[8].mxu0 %vm658_vm1, %v1790_v3  ;;  %v2154_v3 = vpack.c.bf16 %v2140_v61, %v2138_v60  ;;  %v2506_v60 = vld [vmem:[#allocation2 + $0xca] ss:$2 sm:$0xff]  ;;  %v2508_v61 = vld [vmem:[#allocation2 + $0xda] ss:$2 sm:$0xff] }
 0x1df   : > { %14962 = vmatprep.mubr.msk.bf16.mxu0 %vm658_vm1, %v1791_v4  ;;  %v2155_v4 = vpack.c.bf16 %v2144_v1, %v2142_v0  ;;  %v2519_v63 = vpack.c.bf16 %v2508_v61, %v2506_v60  ;;  %v2510_v0 = vld [vmem:[#allocation2 + $0xea] ss:$2 sm:$0xff]  ;;  %v2512_v1 = vld [vmem:[#allocation2 + $0xfa] ss:$2 sm:$0xff] }
 0x1e6   : > { %14963 = vmatmul.mubr.msk.bf16.gmra.mrb[12].mxu0 %vm658_vm1, %v1792_v9  ;;  %v2148_v9 = vld [vmem:[#allocation2 + $0xf8] ss:$2 sm:$0xff] }
 0x1e7   : > { %14968 = vmatprep.mubr.msk.bf16.mxu0 %vm658_vm1, %v1967_v10  ;;  %v772_v10 = vpack.c.bf16 %v761_v6, %v759_v5  ;;  %v2668_v6 = vld [vmem:[#allocation2 + $0x2b] ss:$2 sm:$0xff] }
 0x1e9   : > { %14854 = vmatprep.mubr.msk.bf16.mxu1 %vm658_vm1, %v772_v10  ;;  %v2696_v10 = vpack.c.bf16 %v2670_v7, %v2668_v6 }
 0x1ea   : > { %14855 = vmatmul.mubr.msk.bf16.gmra.mrb[8].mxu1 %vm658_vm1, %v773_v14  ;;  %v2678_v14 = vld [vmem:[#allocation2 + $0x7b] ss:$2 sm:$0xff] }
 0x1ee   : > { %14969 = vmatmul.mubr.msk.bf16.vlgmr.msra.gmra.mrb[0].mxu0 %vm658_vm1, %v1968_v15  ;;  %v2156_v15 = vpack.c.bf16 %v2148_v9, %v2146_v8  ;;  %v2672_v8 = vld [vmem:[#allocation2 + $0x4b] ss:$2 sm:$0xff]  ;;  %v2674_v9 = vld [vmem:[#allocation2 + $0x5b] ss:$2 sm:$0xff] }
 0x1ef   : > { %14985 = vmatpush3.bf16.msra.mxu0 %v2184_v18  ;;  %14972 = vmatprep.mubr.msk.bf16.mxu0 %vm658_vm1, %v1969_v16  ;;  %v2331_v16 = vpack.c.bf16 %v2302_v13, %v2300_v12  ;;  %v2306_v18 = vld [vmem:[#allocation2 + $0x39] ss:$2 sm:$0xff]  ;;  %v2697_v11 = vpack.c.bf16 %v2674_v9, %v2672_v8  ;;  %v2912_v12 = vsel %vm800_vm2, %v2886_v51, 0 }
 0x1f0   : > { %16240 = vmatprep.subr.msk.bf16.mxu0 %vm800_vm2, %v2340_v17  ;;  %v2304_v17 = vld [vmem:[#allocation2 + $0x29] ss:$2 sm:$0xff] }
 0x1f1   : > { %v2332_v22 = vpack.c.bf16 %v2306_v18, %v2304_v17  ;;  %v2676_v13 = vld [vmem:[#allocation2 + $0x6b] ss:$2 sm:$0xff] }
 0x1f2   : > { %v2698_v17 = vpack.c.bf16 %v2678_v14, %v2676_v13 }
 0x1f6   : > { %14973 = vmatmul.mubr.msk.bf16.gmra.mrb[4].mxu0 %vm658_vm1, %v1970_v23  ;;  %v2333_v23 = vpack.c.bf16 %v2310_v20, %v2308_v19  ;;  %v2684_v19 = vld [vmem:[#allocation2 + $0xab] ss:$2 sm:$0xff]  ;;  %v2686_v20 = vld [vmem:[#allocation2 + $0xbb] ss:$2 sm:$0xff] }
 0x1f7   : > { %14976 = vmatprep.mubr.msk.bf16.mxu0 %vm658_vm1, %v1971_v24  ;;  %v2704_v24 = vld [vmem:[#allocation16 + $0x16] sm:$0x3] }
 0x1f8   : > { %v2730_v50 = vsel %vm800_vm2, %v2704_v24, 0 }
 0x1fe   : > { %14977 = vmatmul.mubr.msk.bf16.gmra.mrb[8].mxu0 %vm658_vm1, %v1972_v29  ;;  %v2318_v29 = vld [vmem:[#allocation2 + $0x99] ss:$2 sm:$0xff] }
 0x1ff   : > { %14980 = vmatprep.mubr.msk.bf16.mxu0 %vm658_vm1, %v1973_v30  ;;  %v2334_v30 = vpack.c.bf16 %v2314_v27, %v2312_v26  ;;  %v2335_v31 = vpack.c.bf16 %v2318_v29, %v2316_v28  ;;  %v2694_v26 = vld [vmem:[#allocation2 + $0xfb] ss:$2 sm:$0xff]  ;;  %v2846_v27 = vld [vmem:[#allocation2 + $0xc] ss:$2 sm:$0xff]  ;;  %v2848_v28 = vld [vmem:[#allocation2 + $0x1c] ss:$2 sm:$0xff] }
 0x206   : > { %14981 = vmatmul.mubr.msk.bf16.gmra.mrb[12].mxu0 %vm658_vm1, %v1974_v35  ;;  %v2326_v35 = vld [vmem:[#allocation2 + $0xd9] ss:$2 sm:$0xff] }
 0x207   : > { %14986 = vmatprep.mubr.msk.bf16.mxu0 %vm658_vm1, %v2149_v36  ;;  %v2336_v36 = vpack.c.bf16 %v2322_v33, %v2320_v32  ;;  %v2337_v37 = vpack.c.bf16 %v2326_v35, %v2324_v34  ;;  %v2852_v32 = vld [vmem:[#allocation2 + $0x3c] ss:$2 sm:$0xff]  ;;  %v2854_v33 = vld [vmem:[#allocation2 + $0x4c] ss:$2 sm:$0xff] }
 0x208   : > { %v2856_v34 = vld [vmem:[#allocation2 + $0x5c] ss:$2 sm:$0xff] }
 0x20e   : > { %14987 = vmatmul.mubr.msk.bf16.vlgmr.msra.gmra.mrb[0].mxu0 %vm658_vm1, %v2150_v41  ;;  %v2484_v41 = vld [vmem:[#allocation2 + $0x1a] ss:$2 sm:$0xff] }
 0x20f   : > { %15003 = vmatpush3.bf16.msra.mxu0 %v2366_v44  ;;  %14990 = vmatprep.mubr.msk.bf16.mxu0 %vm658_vm1, %v2151_v42  ;;  %v2338_v42 = vpack.c.bf16 %v2330_v39, %v2328_v38  ;;  %v2486_v44 = vld [vmem:[#allocation2 + $0x2a] ss:$2 sm:$0xff] }
 0x210   : > { %16241 = vmatprep.subr.msk.bf16.mxu0 %vm800_vm2, %v18191_v43  ;;  %v2513_v43 = vpack.c.bf16 %v2484_v41, %v2482_v40  ;;  %v2514_v48 = vpack.c.bf16 %v2488_v45, %v2486_v44  ;;  %v2860_v38 = vld [vmem:[#allocation2 + $0x7c] ss:$2 sm:$0xff]  ;;  %v2862_v39 = vld [vmem:[#allocation2 + $0x8c] ss:$2 sm:$0xff] }
 0x211   : > { %v2864_v40 = vld [vmem:[#allocation2 + $0x9c] ss:$2 sm:$0xff]  ;;  %v2870_v45 = vld [vmem:[#allocation2 + $0xcc] ss:$2 sm:$0xff] }
 0x212   : > { %v2868_v44 = vld [vmem:[#allocation2 + $0xbc] ss:$2 sm:$0xff] }
 0x216   : > { %14991 = vmatmul.mubr.msk.bf16.gmra.mrb[4].mxu0 %vm658_vm1, %v2152_v55  ;;  %v2500_v55 = vld [vmem:[#allocation2 + $0x9a] ss:$2 sm:$0xff] }
 0x217   : > { %14994 = vmatprep.mubr.msk.bf16.mxu0 %vm658_vm1, %v2153_v56  ;;  %v2516_v56 = vpack.c.bf16 %v2496_v53, %v2494_v52  ;;  %v2517_v57 = vpack.c.bf16 %v2500_v55, %v2498_v54  ;;  %v18247_v52 = vld [vmem:[#allocation12 + $0xf] sm:$0xff] }
 0x218   : > { %3028 = vst.msk [vmem:[#allocation3] sm:$0x7] %vm3027_vm3, %v18247_v52  ;;  %4693 = vst.msk [vmem:[#allocation4] sm:$0x7] %vm3027_vm3, %v18247_v52  ;;  %v16386_v53 = vld [vmem:[#allocation19 + $0x18] sm:$0xff]  }
 0x219   : > { %6373 = vst.msk [vmem:[#allocation5] sm:$0x7] %vm3027_vm3, %v18247_v52  ;;  %15076 = vmatprep.subr.bf16.mxu1 %v16386_v53 }
 0x21a   : > { %15077 = vmatpush3.bf16.msra.mxu1 %v16386_v53 }
 0x21e   : > { %14995 = vmatmul.mubr.msk.bf16.gmra.mrb[8].mxu0 %vm658_vm1, %v2154_v3  ;;  %v2666_v3 = vld [vmem:[#allocation2 + $0x1b] ss:$2 sm:$0xff] }
 0x21f   : > { %14998 = vmatprep.mubr.msk.bf16.mxu0 %vm658_vm1, %v2155_v4  ;;  %v2520_v4 = vpack.c.bf16 %v2512_v1, %v2510_v0  ;;  %v2695_v5 = vpack.c.bf16 %v2666_v3, %v2664_v2 }
 0x226   : > { %14999 = vmatmul.mubr.msk.bf16.gmra.mrb[12].mxu0 %vm658_vm1, %v2156_v15  ;;  %v2680_v15 = vld [vmem:[#allocation2 + $0x8b] ss:$2 sm:$0xff] }
 0x227   : > { %15004 = vmatprep.mubr.msk.bf16.mxu0 %vm658_vm1, %v2331_v16  ;;  %v2682_v16 = vld [vmem:[#allocation2 + $0x9b] ss:$2 sm:$0xff] }
 0x228   : > { %v2699_v18 = vpack.c.bf16 %v2682_v16, %v2680_v15 }
 0x22e   : > { %15005 = vmatmul.mubr.msk.bf16.vlgmr.msra.gmra.mrb[0].mxu0 %vm658_vm1, %v2332_v22  ;;  %v2690_v22 = vld [vmem:[#allocation2 + $0xdb] ss:$2 sm:$0xff] }
 0x22f   : > { %15021 = vmatpush3.bf16.msra.mxu0 %v2548_v25  ;;  %15008 = vmatprep.mubr.msk.bf16.mxu0 %vm658_vm1, %v2333_v23  ;;  %v2700_v23 = vpack.c.bf16 %v2686_v20, %v2684_v19  ;;  %v2692_v25 = vld [vmem:[#allocation2 + $0xeb] ss:$2 sm:$0xff] }
 0x230   : > { %16242 = vmatprep.subr.msk.bf16.mxu0 %vm800_vm2, %v2704_v24  ;;  %v2701_v24 = vpack.c.bf16 %v2690_v22, %v2688_v21  ;;  %v2702_v29 = vpack.c.bf16 %v2694_v26, %v2692_v25  ;;  %v16388_v21 = vld [vmem:[#allocation19 + $0x8] sm:$0xff]   ;;  %v16389_v25 = vld [vmem:[#allocation19 + $0x20] sm:$0xff]  }
 0x236   : > { %15009 = vmatmul.mubr.msk.bf16.gmra.mrb[4].mxu0 %vm658_vm1, %v2334_v30  ;;  %v2877_v30 = vpack.c.bf16 %v2848_v28, %v2846_v27 }
 0x237   : > { %15012 = vmatprep.mubr.msk.bf16.mxu0 %vm658_vm1, %v2335_v31  ;;  %v2850_v31 = vld [vmem:[#allocation2 + $0x2c] ss:$2 sm:$0xff] }
 0x238   : > { %v2878_v35 = vpack.c.bf16 %v2852_v32, %v2850_v31 }
 0x23e   : > { %15013 = vmatmul.mubr.msk.bf16.gmra.mrb[8].mxu0 %vm658_vm1, %v2336_v36  ;;  %v2879_v36 = vpack.c.bf16 %v2856_v34, %v2854_v33 }
 0x23f   : > { %15016 = vmatprep.mubr.msk.bf16.mxu0 %vm658_vm1, %v2337_v37  ;;  %v2858_v37 = vld [vmem:[#allocation2 + $0x6c] ss:$2 sm:$0xff] }
 0x240   : > { %v2880_v41 = vpack.c.bf16 %v2860_v38, %v2858_v37 }
 0x246   : > { %15017 = vmatmul.mubr.msk.bf16.gmra.mrb[12].mxu0 %vm658_vm1, %v2338_v42  ;;  %v2881_v42 = vpack.c.bf16 %v2864_v40, %v2862_v39 }
 0x247   : > { %15022 = vmatprep.mubr.msk.bf16.mxu0 %vm658_vm1, %v2513_v43  ;;  %v2866_v43 = vld [vmem:[#allocation2 + $0xac] ss:$2 sm:$0xff] }
 0x248   : > { %v2882_v47 = vpack.c.bf16 %v2868_v44, %v2866_v43 }
 0x24e   : > { %15023 = vmatmul.mubr.msk.bf16.vlgmr.msra.gmra.mrb[0].mxu0 %vm658_vm1, %v2514_v48  ;;  %v2883_v48 = vpack.c.bf16 %v2872_v46, %v2870_v45 }
 0x24f   : > { %15039 = vmatpush3.bf16.msra.mxu0 %v2730_v50  ;;  %15026 = vmatprep.mubr.msk.bf16.mxu0 %vm658_vm1, %v2515_v49  ;;  %v2874_v49 = vld [vmem:[#allocation2 + $0xec] ss:$2 sm:$0xff]  ;;  %v2876_v50 = vld [vmem:[#allocation2 + $0xfc] ss:$2 sm:$0xff] }
 0x250   : > { %16243 = vmatprep.subr.msk.bf16.mxu0 %vm800_vm2, %v2886_v51  ;;  %v2884_v51 = vpack.c.bf16 %v2876_v50, %v2874_v49 }
 0x256   : > { %15027 = vmatmul.mubr.msk.bf16.gmra.mrb[4].mxu0 %vm658_vm1, %v2516_v56 }
 0x257   : > { %15030 = vmatprep.mubr.msk.bf16.mxu0 %vm658_vm1, %v2517_v57 }
 0x25e   : > { %15031 = vmatmul.mubr.msk.bf16.gmra.mrb[8].mxu0 %vm658_vm1, %v2518_v62  ;;  %v16387_v62 = vld [vmem:[#allocation19] sm:$0xff]  }
 0x25f   : > { %15034 = vmatprep.mubr.msk.bf16.mxu0 %vm658_vm1, %v2519_v63  ;;  %15094 = vmatprep.subr.bf16.mxu1 %v16387_v62 }
 0x266   : > { %15035 = vmatmul.mubr.msk.bf16.gmra.mrb[12].mxu0 %vm658_vm1, %v2520_v4 }
 0x267   : > { %15040 = vmatprep.mubr.msk.bf16.mxu0 %vm658_vm1, %v2695_v5 }
 0x26e   : > { %15041 = vmatmul.mubr.msk.bf16.vlgmr.msra.gmra.mrb[0].mxu0 %vm658_vm1, %v2696_v10 }
 0x26f   : > { %15057 = vmatpush3.bf16.msra.mxu0 %v2912_v12  ;;  %15044 = vmatprep.mubr.msk.bf16.mxu0 %vm658_vm1, %v2697_v11 }
 0x276   : > { %15045 = vmatmul.mubr.msk.bf16.gmra.mrb[4].mxu0 %vm658_vm1, %v2698_v17 }
 0x277   : > { %15048 = vmatprep.mubr.msk.bf16.mxu0 %vm658_vm1, %v2699_v18 }
 0x27e   : > { %15049 = vmatmul.mubr.msk.bf16.gmra.mrb[8].mxu0 %vm658_vm1, %v2700_v23 }
 0x27f   : > { %15052 = vmatprep.mubr.msk.bf16.mxu0 %vm658_vm1, %v2701_v24 }
 0x286   : > { %15053 = vmatmul.mubr.msk.bf16.gmra.mrb[12].mxu0 %vm658_vm1, %v2702_v29 }
 0x287   : > { %15058 = vmatprep.mubr.msk.bf16.mxu0 %vm658_vm1, %v2877_v30 }
 0x28e   : > { %15059 = vmatmul.mubr.msk.bf16.vlgmr.msra.gmra.mrb[0].mxu0 %vm658_vm1, %v2878_v35 }
 0x28f   : > { %15062 = vmatprep.mubr.msk.bf16.mxu0 %vm658_vm1, %v2879_v36 }
 0x296   : > { %15063 = vmatmul.mubr.msk.bf16.gmra.mrb[4].mxu0 %vm658_vm1, %v2880_v41 }
 0x297   : > { %15066 = vmatprep.mubr.msk.bf16.mxu0 %vm658_vm1, %v2881_v42 }
 0x29e   : > { %15067 = vmatmul.mubr.msk.bf16.gmra.mrb[8].mxu0 %vm658_vm1, %v2882_v47 }
 0x29f   : > { %15070 = vmatprep.mubr.msk.bf16.mxu0 %vm658_vm1, %v2883_v48 }
 0x2a4   : > { %v14848_v54 = vpop.f32.mrb[0].mxu1 }
 0x2a5   : > { %v854_v55 = vpop.f32.mrb[1].mxu1 }
 0x2a6   : > { %15071 = vmatmul.mubr.msk.bf16.gmra.mrb[12].mxu0 %vm658_vm1, %v2884_v51  ;;  %v14849_v56 = vpop.f32.mrb[2].mxu1 }
 0x2a7   : > { %v857_v57 = vpop.f32.mrb[3].mxu1 }
 0x2ad   : > { %v14852_v58 = vpop.f32.mrb[4].mxu1 }
 0x2ae   : > { %v870_v59 = vpop.f32.mrb[5].mxu1 }
 0x2af   : > { %v14853_v60 = vpop.f32.mrb[6].mxu1 }
 0x2b0   : > { %v873_v61 = vpop.f32.mrb[7].mxu1 }
 0x2bd   : > { %v14856_v63 = vpop.f32.mrb[8].mxu1 }
 0x2be   : > { %v886_v0 = vpop.f32.mrb[9].mxu1 }
 0x2bf   : > { %v18252_v1 = vpop.f32.mrb[10].mxu1 }
 0x2c0   : > { %v18254_v2 = vpop.f32.mrb[11].mxu1 }
 0x361   : > { %v18256_v3 = vpop.f32.mrb[0].mxu0 }
 0x362   : > { %3032 = vst.msk [vmem:[#allocation3 + $0x13] sm:$0xff] %vm3029_vm4, %v18256_v3  ;;  %v18260_v4 = vpop.f32.mrb[1].mxu0 }
 0x363   : > { %3030 = vst.msk [vmem:[#allocation3 + $0x3] sm:$0xff] %vm3029_vm4, %v18260_v4  ;;  %v18264_v5 = vpop.f32.mrb[2].mxu0 }
 0x364   : > { %3033 = vst.msk [vmem:[#allocation3 + $0x1b] sm:$0xff] %vm3029_vm4, %v18264_v5  ;;  %v18268_v6 = vpop.f32.mrb[3].mxu0 }
 0x365   : > { %20316 = vst [vmem:[#allocation46_spill] sm:$0xff] %v18268_v6  ;;  %3031 = vst.msk [vmem:[#allocation3 + $0xb] sm:$0xff] %vm3029_vm4, %v18268_v6 }
 0x369   : > { %v15064_v7 = vpop.f32.mrb[4].mxu0 }
 0x36a   : > { %v18272_v8 = vadd.f32 %v15064_v7, %v14848_v54  ;;  %v2964_v9 = vpop.f32.mrb[5].mxu0  ;;  %v3075_v15 = vld [vmem:[#allocation3 + $0x1] sm:$0xff] }
 0x36b   : > { %v18274_v10 = vadd.f32 %v2964_v9, %v854_v55  ;;  %v15065_v11 = vpop.f32.mrb[6].mxu0  ;;  %v3078_v12 = vld [vmem:[#allocation3 + $0x19] sm:$0xff]  ;;  %v16391_v7 = vld [vmem:[#allocation19 + $0x30] sm:$0xff]  }
 0x36c   : > { %20317 = vst [vmem:[#allocation47_spill] sm:$0xff] %v18272_v8  ;;  %3036 = vst.msk [vmem:[#allocation3 + $0x33] sm:$0xff] %vm3029_vm4, %v18272_v8  ;;  %v18278_v13 = vadd.f32 %v15065_v11, %v14849_v56  ;;  %v2967_v14 = vpop.f32.mrb[7].mxu0  ;;  %v3076_v16 = vld [vmem:[#allocation3 + $0x9] sm:$0xff]  ;;  %v3077_v17 = vld [vmem:[#allocation3 + $0x11] sm:$0xff] }
 0x36d   : > { %20318 = vst [vmem:[#allocation48_spill] sm:$0xff] %v18274_v10  ;;  %3034 = vst.msk [vmem:[#allocation3 + $0x23] sm:$0xff] %vm3029_vm4, %v18274_v10  ;;  %v18282_v18 = vadd.f32 %v2967_v14, %v857_v57  ;;  %v3091_v19 = vpack.c.bf16 %v3076_v16, %v3075_v15  ;;  %v3092_v20 = vpack.c.bf16 %v3078_v12, %v3077_v17  ;;  %v3048_v53 = vld [vmem:[#allocation3 + $0x8] sm:$0xff] }
 0x36e   : > { %20319 = vst [vmem:[#allocation49_spill] sm:$0xff] %v18278_v13  ;;  %3037 = vst.msk [vmem:[#allocation3 + $0x3b] sm:$0xff] %vm3029_vm4, %v18278_v13 }
 0x36f   : > { %20320 = vst [vmem:[#allocation50_spill] sm:$0xff] %v18282_v18  ;;  %3035 = vst.msk [vmem:[#allocation3 + $0x2b] sm:$0xff] %vm3029_vm4, %v18282_v18  ;;  %15078 = vmatprep.mubr.msk.bf16.mxu1 %vm3029_vm4, %v3091_v19 }
 0x370   : > { %15079 = vmatmul.mubr.msk.bf16.vlgmr.msra.gmra.mrb[12].mxu1 %vm3029_vm4, %v3092_v20 }
 0x371   : > { %v15068_v22 = vpop.f32.mrb[8].mxu0  ;;  %15095 = vmatpush3.bf16.msra.mxu1 %v16387_v62 }
 0x372   : > { %v18290_v23 = vadd.f32 %v15068_v22, %v14852_v58  ;;  %v2980_v24 = vpop.f32.mrb[9].mxu0  ;;  %15096 = vmatprep.subr.bf16.mxu1 %v16388_v21 }
 0x373   : > { %v18292_v26 = vadd.f32 %v2980_v24, %v870_v59  ;;  %v15069_v27 = vpop.f32.mrb[10].mxu0  ;;  %v3047_v59 = vld [vmem:[#allocation3] sm:$0xff] }
 0x374   : > { %20321 = vst [vmem:[#allocation51_spill] sm:$0xff] %v18290_v23  ;;  %3040 = vst.msk [vmem:[#allocation3 + $0x53] sm:$0xff] %vm3029_vm4, %v18290_v23  ;;  %v18296_v28 = vadd.f32 %v15069_v27, %v14853_v60  ;;  %v2983_v29 = vpop.f32.mrb[11].mxu0  ;;  %v3079_v32 = vld [vmem:[#allocation3 + $0x21] sm:$0xff]  ;;  %v3049_v60 = vld [vmem:[#allocation3 + $0x10] sm:$0xff] }
 0x375   : > { %20322 = vst [vmem:[#allocation52_spill] sm:$0xff] %v18292_v26  ;;  %3038 = vst.msk [vmem:[#allocation3 + $0x43] sm:$0xff] %vm3029_vm4, %v18292_v26  ;;  %v18300_v30 = vadd.f32 %v2983_v29, %v873_v61  ;;  %v3082_v31 = vld [vmem:[#allocation3 + $0x39] sm:$0xff]  ;;  %15097 = vmatpush3.bf16.msra.mxu1 %v16388_v21  ;;  %v3371_v29 = vld [vmem:[#allocation3 + $0xa] sm:$0xff] }
 0x376   : > { %20323 = vst [vmem:[#allocation53_spill] sm:$0xff] %v18296_v28  ;;  %3041 = vst.msk [vmem:[#allocation3 + $0x5b] sm:$0xff] %vm3029_vm4, %v18296_v28  ;;  %v3080_v33 = vld [vmem:[#allocation3 + $0x29] sm:$0xff]  ;;  %v3081_v34 = vld [vmem:[#allocation3 + $0x31] sm:$0xff]  ;;  %15114 = vmatprep.subr.bf16.mxu1 %v16389_v25 }
 0x377   : > { %20324 = vst [vmem:[#allocation54_spill] sm:$0xff] %v18300_v30  ;;  %3039 = vst.msk [vmem:[#allocation3 + $0x4b] sm:$0xff] %vm3029_vm4, %v18300_v30  ;;  %v3093_v35 = vpack.c.bf16 %v3080_v33, %v3079_v32  ;;  %v3094_v36 = vpack.c.bf16 %v3082_v31, %v3081_v34  ;;  %v3050_v61 = vld [vmem:[#allocation3 + $0x18] sm:$0xff]  ;;  %v3052_v62 = vld [vmem:[#allocation3 + $0x28] sm:$0xff] }
 0x378   : > { %v3053_v9 = vld [vmem:[#allocation3 + $0x30] sm:$0xff]  ;;  %v3054_v11 = vld [vmem:[#allocation3 + $0x38] sm:$0xff]  ;;  %v3370_v32 = vld [vmem:[#allocation3 + $0x2] sm:$0xff] }
 0x379   : > { %v15072_v37 = vpop.f32.mrb[12].mxu0  ;;  %15082 = vmatprep.mubr.msk.bf16.mxu1 %vm3029_vm4, %v3093_v35  ;;  %v3066_v14 = vpack.c.bf16 %v3054_v11, %v3053_v9  ;;  %v3386_v33 = vpack.c.bf16 %v3371_v29, %v3370_v32  ;;  %v3372_v34 = vld [vmem:[#allocation3 + $0x12] sm:$0xff]  ;;  %v3373_v35 = vld [vmem:[#allocation3 + $0x1a] sm:$0xff]  ;;  %v3552_v9 = vld [vmem:[#allocation3 + $0x23] sm:$0xff] }
 0x37a   : > { %v18307_v38 = vadd.f32 %v15072_v37, %v14856_v63  ;;  %v2996_v39 = vpop.f32.mrb[13].mxu0  ;;  %15083 = vmatmul.mubr.msk.bf16.gmra.mrb[16].mxu1 %vm3029_vm4, %v3094_v36  ;;  %v3064_v63 = vpack.c.bf16 %v3050_v61, %v3049_v60  ;;  %v3375_v36 = vld [vmem:[#allocation3 + $0x2a] sm:$0xff]  ;;  %v3387_v37 = vpack.c.bf16 %v3373_v35, %v3372_v34  ;;  %v16394_v11 = vld [vmem:[#allocation19 + $0x48] sm:$0xff]  }
 0x37b   : > { %v18310_v40 = vadd.f32 %v2996_v39, %v886_v0  ;;  %v15073_v41 = vpop.f32.mrb[14].mxu0  ;;  %v3051_v0 = vld [vmem:[#allocation3 + $0x20] sm:$0xff]  ;;  %v3549_v60 = vld [vmem:[#allocation3 + $0xb] sm:$0xff] }
 0x37c   : > { %20325 = vst [vmem:[#allocation55_spill] sm:$0xff] %v18307_v38  ;;  %3044 = vst.msk [vmem:[#allocation3 + $0x73] sm:$0xff] %vm3029_vm4, %v18307_v38  ;;  %v18315_v42 = vadd.f32 %v15073_v41, %v18252_v1  ;;  %v2999_v43 = vpop.f32.mrb[15].mxu0  ;;  %v3083_v46 = vld [vmem:[#allocation3 + $0x41] sm:$0xff]  ;;  %v16392_v41 = vld [vmem:[#allocation19 + $0x38] sm:$0xff]  }
 0x37d   : > { %20326 = vst [vmem:[#allocation56_spill] sm:$0xff] %v18310_v40  ;;  %3042 = vst.msk [vmem:[#allocation3 + $0x63] sm:$0xff] %vm3029_vm4, %v18310_v40  ;;  %v18320_v44 = vadd.f32 %v2999_v43, %v18254_v2  ;;  %v3086_v45 = vld [vmem:[#allocation3 + $0x59] sm:$0xff]  ;;  %v3065_v2 = vpack.c.bf16 %v3052_v62, %v3051_v0  ;;  %v3374_v39 = vld [vmem:[#allocation3 + $0x22] sm:$0xff] }
 0x37e   : > { %20327 = vst [vmem:[#allocation57_spill] sm:$0xff] %v18315_v42  ;;  %3045 = vst.msk [vmem:[#allocation3 + $0x7b] sm:$0xff] %vm3029_vm4, %v18315_v42  ;;  %v3084_v47 = vld [vmem:[#allocation3 + $0x49] sm:$0xff]  ;;  %v3085_v48 = vld [vmem:[#allocation3 + $0x51] sm:$0xff]  ;;  %v3388_v43 = vpack.c.bf16 %v3375_v36, %v3374_v39 }
 0x37f   : > { %20328 = vst [vmem:[#allocation58_spill] sm:$0xff] %v18320_v44  ;;  %3046 = vst.msk [vmem:[#allocation3 + $0x80] sm:$0xff] %vm3029_vm4, %v18247_v52  ;;  %v3095_v49 = vpack.c.bf16 %v3084_v47, %v3083_v46  ;;  %v3096_v50 = vpack.c.bf16 %v3086_v45, %v3085_v48  ;;  %v3063_v52 = vpack.c.bf16 %v3048_v53, %v3047_v59  ;;  %v16390_v1 = vld [vmem:[#allocation19 + $0x28] sm:$0xff]   ;;  %v3056_v12 = vld [vmem:[#allocation3 + $0x48] sm:$0xff] }
 0x380   : > { %3043 = vst.msk [vmem:[#allocation3 + $0x6b] sm:$0xff] %vm3029_vm4, %v18320_v44  ;;  %v3055_v15 = vld [vmem:[#allocation3 + $0x40] sm:$0xff]  ;;  %v3057_v17 = vld [vmem:[#allocation3 + $0x50] sm:$0xff]  ;;  %v3058_v19 = vld [vmem:[#allocation3 + $0x58] sm:$0xff] }
 0x381   : > { %15086 = vmatprep.mubr.msk.bf16.mxu1 %vm3029_vm4, %v3095_v49  ;;  %v3067_v16 = vpack.c.bf16 %v3056_v12, %v3055_v15  ;;  %v3068_v21 = vpack.c.bf16 %v3058_v19, %v3057_v17  ;;  %v16393_v45 = vld [vmem:[#allocation19 + $0x40] sm:$0xff]   ;;  %v3377_v47 = vld [vmem:[#allocation3 + $0x3a] sm:$0xff]  ;;  %v3379_v48 = vld [vmem:[#allocation3 + $0x4a] sm:$0xff] }
 0x382   : > { %15087 = vmatmul.mubr.msk.bf16.gmra.mrb[20].mxu1 %vm3029_vm4, %v3096_v50  ;;  %v3376_v46 = vld [vmem:[#allocation3 + $0x32] sm:$0xff]  ;;  %v3378_v50 = vld [vmem:[#allocation3 + $0x42] sm:$0xff] }
 0x383   : > { %v3389_v49 = vpack.c.bf16 %v3377_v47, %v3376_v46  ;;  %v3380_v53 = vld [vmem:[#allocation3 + $0x52] sm:$0xff]  ;;  %v3548_v62 = vld [vmem:[#allocation3 + $0x3] sm:$0xff]  ;;  %v3551_v0 = vld [vmem:[#allocation3 + $0x1b] sm:$0xff] }
 0x384   : > { %v3087_v51 = vld [vmem:[#allocation3 + $0x61] sm:$0xff]  ;;  %v3554_v17 = vld [vmem:[#allocation3 + $0x33] sm:$0xff]  ;;  %v16396_v47 = vld [vmem:[#allocation19 + $0x58] sm:$0xff]  }
 0x385   : > { %v3059_v22 = vld [vmem:[#allocation3 + $0x60] sm:$0xff]  ;;  %v3062_v27 = vld [vmem:[#allocation3 + $0x78] sm:$0xff]  ;;  %v3727_v34 = vld [vmem:[#allocation3 + $0xc] sm:$0xff] }
 0x386   : > { %v3090_v56 = vld [vmem:[#allocation3 + $0x79] sm:$0xff]  ;;  %v3560_v29 = vld [vmem:[#allocation3 + $0x63] sm:$0xff] }
 0x387   : > { %v3088_v54 = vld [vmem:[#allocation3 + $0x69] sm:$0xff]  ;;  %v3089_v55 = vld [vmem:[#allocation3 + $0x71] sm:$0xff]  ;;  %v3555_v15 = vld [vmem:[#allocation3 + $0x3b] sm:$0xff] }
 0x388   : > { %v3097_v57 = vpack.c.bf16 %v3088_v54, %v3087_v51  ;;  %v3098_v58 = vpack.c.bf16 %v3090_v56, %v3089_v55  ;;  %v3060_v20 = vld [vmem:[#allocation3 + $0x68] sm:$0xff]  ;;  %v3390_v51 = vpack.c.bf16 %v3379_v48, %v3378_v50  ;;  %v3381_v54 = vld [vmem:[#allocation3 + $0x5a] sm:$0xff]  ;;  %v3384_v59 = vld [vmem:[#allocation3 + $0x72] sm:$0xff]  ;;  %v3567_v19 = vpack.c.bf16 %v3555_v15, %v3554_v17 }
 0x389   : > { %v3069_v24 = vpack.c.bf16 %v3060_v20, %v3059_v22  ;;  %v3383_v55 = vld [vmem:[#allocation3 + $0x6a] sm:$0xff]  ;;  %v3391_v56 = vpack.c.bf16 %v3381_v54, %v3380_v53  ;;  %v3559_v22 = vld [vmem:[#allocation3 + $0x5b] sm:$0xff]  ;;  %v3562_v35 = vld [vmem:[#allocation3 + $0x73] sm:$0xff] }
 0x38a   : > { %15090 = vmatprep.mubr.msk.bf16.mxu1 %vm3029_vm4, %v3097_v57  ;;  %v3382_v57 = vld [vmem:[#allocation3 + $0x62] sm:$0xff]  ;;  %v3735_v53 = vld [vmem:[#allocation3 + $0x4c] sm:$0xff]  ;;  %v3732_v54 = vld [vmem:[#allocation3 + $0x34] sm:$0xff] }
 0x38b   : > { %15091 = vmatmul.mubr.msk.bf16.gmra.mrb[24].mxu1 %vm3029_vm4, %v3098_v58  ;;  %v3392_v58 = vpack.c.bf16 %v3383_v55, %v3382_v57  ;;  %v3556_v20 = vld [vmem:[#allocation3 + $0x43] sm:$0xff]  ;;  %v3563_v32 = vld [vmem:[#allocation3 + $0x7b] sm:$0xff] }
 0x38c   : > { %15098 = vmatprep.mubr.msk.bf16.mxu1 %vm3029_vm4, %v3063_v52  ;;  %v3385_v52 = vld [vmem:[#allocation3 + $0x7a] sm:$0xff]  ;;  %v3571_v36 = vpack.c.bf16 %v3563_v32, %v3562_v35 }
 0x38d   : > { %v3393_v61 = vpack.c.bf16 %v3385_v52, %v3384_v59  ;;  %v3729_v39 = vld [vmem:[#allocation3 + $0x1c] sm:$0xff]  ;;  %v3739_v59 = vld [vmem:[#allocation3 + $0x6c] sm:$0xff]  ;;  %v3736_v52 = vld [vmem:[#allocation3 + $0x54] sm:$0xff] }
 0x38e   : > { %v3733_v50 = vld [vmem:[#allocation3 + $0x3c] sm:$0xff] }
 0x38f   : > { %v3745_v55 = vpack.c.bf16 %v3733_v50, %v3732_v54  ;;  %v3737_v57 = vld [vmem:[#allocation3 + $0x5c] sm:$0xff]  ;;  %v4091_v54 = vld [vmem:[#allocation3 + $0x4e] sm:$0xff] }
 0x390   : > { %v3914_v32 = vld [vmem:[#allocation3 + $0x55] sm:$0xff] }
 0x391   : > { %v3918_v35 = vld [vmem:[#allocation3 + $0x75] sm:$0xff] }
 0x393   : > { %15099 = vmatmul.mubr.msk.bf16.vlgmr.msra.gmra.mrb[12].mxu1 %vm3029_vm4, %v3064_v63  ;;  %v3564_v63 = vpack.c.bf16 %v3549_v60, %v3548_v62  ;;  %v3747_v60 = vpack.c.bf16 %v3737_v57, %v3736_v52  ;;  %v3740_v62 = vld [vmem:[#allocation3 + $0x74] sm:$0xff] }
 0x394   : > { %15115 = vmatpush3.bf16.msra.mxu1 %v16389_v25  ;;  %15102 = vmatprep.mubr.msk.bf16.mxu1 %vm3029_vm4, %v3065_v2  ;;  %v3061_v25 = vld [vmem:[#allocation3 + $0x70] sm:$0xff] }
 0x395   : > { %15116 = vmatprep.subr.bf16.mxu1 %v16390_v1  ;;  %v3070_v31 = vpack.c.bf16 %v3062_v27, %v3061_v25  ;;  %v3550_v2 = vld [vmem:[#allocation3 + $0x13] sm:$0xff] }
 0x396   : > { %v3558_v25 = vld [vmem:[#allocation3 + $0x53] sm:$0xff] }
 0x397   : > { %v3569_v27 = vpack.c.bf16 %v3559_v22, %v3558_v25  ;;  %v3910_v22 = vld [vmem:[#allocation3 + $0x35] sm:$0xff] }
 0x398   : > { %15117 = vmatpush3.bf16.msra.mxu1 %v16390_v1  ;;  %v3553_v1 = vld [vmem:[#allocation3 + $0x2b] sm:$0xff] }
 0x399   : > { %15134 = vmatprep.subr.bf16.mxu1 %v16391_v7  ;;  %v3566_v12 = vpack.c.bf16 %v3553_v1, %v3552_v9  ;;  %v3905_v1 = vld [vmem:[#allocation3 + $0xd] sm:$0xff]  ;;  %v3907_v9 = vld [vmem:[#allocation3 + $0x1d] sm:$0xff] }
 0x39a   : > { %v4095_v52 = vld [vmem:[#allocation3 + $0x6e] sm:$0xff] }
 0x39b   : > { %15103 = vmatmul.mubr.msk.bf16.gmra.mrb[16].mxu1 %vm3029_vm4, %v3066_v14  ;;  %v16395_v14 = vld [vmem:[#allocation19 + $0x50] sm:$0xff]  }
 0x39c   : > { %15106 = vmatprep.mubr.msk.bf16.mxu1 %vm3029_vm4, %v3067_v16  ;;  %v3557_v16 = vld [vmem:[#allocation3 + $0x4b] sm:$0xff] }
 0x3a3   : > { %15107 = vmatmul.mubr.msk.bf16.gmra.mrb[20].mxu1 %vm3029_vm4, %v3068_v21  ;;  %v3568_v21 = vpack.c.bf16 %v3557_v16, %v3556_v20  ;;  %v16398_v16 = vld [vmem:[#allocation19 + $0x68] sm:$0xff]   ;;  %v3912_v20 = vld [vmem:[#allocation3 + $0x45] sm:$0xff] }
 0x3a4   : > { %15110 = vmatprep.mubr.msk.bf16.mxu1 %vm3029_vm4, %v3069_v24  ;;  %v3561_v24 = vld [vmem:[#allocation3 + $0x6b] sm:$0xff] }
 0x3ab   : > { %15111 = vmatmul.mubr.msk.bf16.gmra.mrb[24].mxu1 %vm3029_vm4, %v3070_v31  ;;  %v3570_v31 = vpack.c.bf16 %v3561_v24, %v3560_v29  ;;  %v3916_v29 = vld [vmem:[#allocation3 + $0x65] sm:$0xff] }
 0x3ac   : > { %15118 = vmatprep.mubr.msk.bf16.mxu1 %vm3029_vm4, %v3386_v33  ;;  %v3726_v33 = vld [vmem:[#allocation3 + $0x4] sm:$0xff] }
 0x3b3   : > { %15119 = vmatmul.mubr.msk.bf16.vlgmr.msra.gmra.mrb[12].mxu1 %vm3029_vm4, %v3387_v37  ;;  %v3742_v37 = vpack.c.bf16 %v3727_v34, %v3726_v33 }
 0x3b4   : > { %15135 = vmatpush3.bf16.msra.mxu1 %v16391_v7  ;;  %15122 = vmatprep.mubr.msk.bf16.mxu1 %vm3029_vm4, %v3388_v43  ;;  %v3565_v7 = vpack.c.bf16 %v3551_v0, %v3550_v2  ;;  %v3731_v43 = vld [vmem:[#allocation3 + $0x2c] sm:$0xff] }
 0x3b5   : > { %15136 = vmatprep.subr.bf16.mxu1 %v16392_v41  ;;  %v3904_v0 = vld [vmem:[#allocation3 + $0x5] sm:$0xff] }
 0x3b8   : > { %15137 = vmatpush3.bf16.msra.mxu1 %v16392_v41  ;;  %v3730_v41 = vld [vmem:[#allocation3 + $0x24] sm:$0xff] }
 0x3b9   : > { %15154 = vmatprep.subr.bf16.mxu1 %v16393_v45  ;;  %v3744_v48 = vpack.c.bf16 %v3731_v43, %v3730_v41 }
 0x3bb   : > { %15123 = vmatmul.mubr.msk.bf16.gmra.mrb[16].mxu1 %vm3029_vm4, %v3389_v49  ;;  %v16397_v49 = vld [vmem:[#allocation19 + $0x60] sm:$0xff]  }
 0x3bc   : > { %15126 = vmatprep.mubr.msk.bf16.mxu1 %vm3029_vm4, %v3390_v51  ;;  %v3734_v51 = vld [vmem:[#allocation3 + $0x44] sm:$0xff] }
 0x3c3   : > { %15127 = vmatmul.mubr.msk.bf16.gmra.mrb[20].mxu1 %vm3029_vm4, %v3391_v56  ;;  %v3746_v56 = vpack.c.bf16 %v3735_v53, %v3734_v51  ;;  %v4089_v51 = vld [vmem:[#allocation3 + $0x3e] sm:$0xff]  ;;  %v4090_v53 = vld [vmem:[#allocation3 + $0x46] sm:$0xff] }
 0x3c4   : > { %15130 = vmatprep.mubr.msk.bf16.mxu1 %vm3029_vm4, %v3392_v58  ;;  %v3738_v58 = vld [vmem:[#allocation3 + $0x64] sm:$0xff]  ;;  %v4102_v57 = vpack.c.bf16 %v4091_v54, %v4090_v53 }
 0x3cb   : > { %15131 = vmatmul.mubr.msk.bf16.gmra.mrb[24].mxu1 %vm3029_vm4, %v3393_v61  ;;  %v3748_v61 = vpack.c.bf16 %v3739_v59, %v3738_v58  ;;  %v4093_v58 = vld [vmem:[#allocation3 + $0x5e] sm:$0xff]  ;;  %v4094_v59 = vld [vmem:[#allocation3 + $0x66] sm:$0xff] }
 0x3cc   : > { %15138 = vmatprep.mubr.msk.bf16.mxu1 %vm3029_vm4, %v3564_v63  ;;  %v3741_v63 = vld [vmem:[#allocation3 + $0x7c] sm:$0xff] }
 0x3cd   : > { %v3749_v2 = vpack.c.bf16 %v3741_v63, %v3740_v62  ;;  %v4104_v62 = vpack.c.bf16 %v4095_v52, %v4094_v59  ;;  %v4096_v63 = vld [vmem:[#allocation3 + $0x76] sm:$0xff] }
 0x3d3   : > { %15139 = vmatmul.mubr.msk.bf16.vlgmr.msra.gmra.mrb[12].mxu1 %vm3029_vm4, %v3565_v7  ;;  %v3920_v7 = vpack.c.bf16 %v3905_v1, %v3904_v0  ;;  %v4097_v0 = vld [vmem:[#allocation3 + $0x7e] sm:$0xff] }
 0x3d4   : > { %15155 = vmatpush3.bf16.msra.mxu1 %v16393_v45  ;;  %15142 = vmatprep.mubr.msk.bf16.mxu1 %vm3029_vm4, %v3566_v12  ;;  %v3728_v45 = vld [vmem:[#allocation3 + $0x14] sm:$0xff]  ;;  %v4105_v1 = vpack.c.bf16 %v4097_v0, %v4096_v63 }
 0x3d5   : > { %15156 = vmatprep.subr.bf16.mxu1 %v16394_v11  ;;  %v3743_v46 = vpack.c.bf16 %v3729_v39, %v3728_v45  ;;  %v3909_v12 = vld [vmem:[#allocation3 + $0x2d] sm:$0xff]  ;;  %v4085_v45 = vld [vmem:[#allocation3 + $0x1e] sm:$0xff] }
 0x3d6   : > { %v4083_v39 = vld [vmem:[#allocation3 + $0xe] sm:$0xff] }
 0x3d8   : > { %15157 = vmatpush3.bf16.msra.mxu1 %v16394_v11  ;;  %v3908_v11 = vld [vmem:[#allocation3 + $0x25] sm:$0xff] }
 0x3d9   : > { %15174 = vmatprep.subr.bf16.mxu1 %v16395_v14  ;;  %v3922_v17 = vpack.c.bf16 %v3909_v12, %v3908_v11 }
 0x3db   : > { %15143 = vmatmul.mubr.msk.bf16.gmra.mrb[16].mxu1 %vm3029_vm4, %v3567_v19  ;;  %v3911_v19 = vld [vmem:[#allocation3 + $0x3d] sm:$0xff] }
 0x3dc   : > { %15146 = vmatprep.mubr.msk.bf16.mxu1 %vm3029_vm4, %v3568_v21  ;;  %v3913_v21 = vld [vmem:[#allocation3 + $0x4d] sm:$0xff]  ;;  %v3923_v24 = vpack.c.bf16 %v3911_v19, %v3910_v22 }
 0x3dd   : > { %v3924_v25 = vpack.c.bf16 %v3913_v21, %v3912_v20 }
 0x3e3   : > { %15147 = vmatmul.mubr.msk.bf16.gmra.mrb[20].mxu1 %vm3029_vm4, %v3569_v27  ;;  %v3915_v27 = vld [vmem:[#allocation3 + $0x5d] sm:$0xff] }
 0x3e4   : > { %15150 = vmatprep.mubr.msk.bf16.mxu1 %vm3029_vm4, %v3570_v31  ;;  %v3917_v31 = vld [vmem:[#allocation3 + $0x6d] sm:$0xff]  ;;  %v3925_v33 = vpack.c.bf16 %v3915_v27, %v3914_v32 }
 0x3e5   : > { %v3926_v34 = vpack.c.bf16 %v3917_v31, %v3916_v29  ;;  %v18391_v29 = vld [vmem:[#allocation21] sm:$0xff]  }
 0x3eb   : > { %15151 = vmatmul.mubr.msk.bf16.gmra.mrb[24].mxu1 %vm3029_vm4, %v3571_v36  ;;  %v3919_v36 = vld [vmem:[#allocation3 + $0x7d] sm:$0xff] }
 0x3ec   : > { %15158 = vmatprep.mubr.msk.bf16.mxu1 %vm3029_vm4, %v3742_v37  ;;  %v4082_v37 = vld [vmem:[#allocation3 + $0x6] sm:$0xff]  ;;  %v3927_v41 = vpack.c.bf16 %v3919_v36, %v3918_v35 }
 0x3ed   : > { %v4098_v43 = vpack.c.bf16 %v4083_v39, %v4082_v37 }
 0x3f3   : > { %15159 = vmatmul.mubr.msk.bf16.vlgmr.msra.gmra.mrb[12].mxu1 %vm3029_vm4, %v3743_v46  ;;  %v4086_v46 = vld [vmem:[#allocation3 + $0x26] sm:$0xff] }
 0x3f4   : > { %15175 = vmatpush3.bf16.msra.mxu1 %v16395_v14  ;;  %15162 = vmatprep.mubr.msk.bf16.mxu1 %vm3029_vm4, %v3744_v48  ;;  %v3906_v14 = vld [vmem:[#allocation3 + $0x15] sm:$0xff] }
 0x3f5   : > { %15176 = vmatprep.subr.bf16.mxu1 %v16396_v47  ;;  %v3921_v15 = vpack.c.bf16 %v3907_v9, %v3906_v14  ;;  %v4084_v48 = vld [vmem:[#allocation3 + $0x16] sm:$0xff]  ;;  %v18383_v9 = vld [vmem:[%s20241_s13] ss:$0 sm:$0xff] }
 0x3f8   : > { %15177 = vmatpush3.bf16.msra.mxu1 %v16396_v47  ;;  %v4087_v47 = vld [vmem:[#allocation3 + $0x2e] sm:$0xff] }
 0x3f9   : > { %15194 = vmatprep.subr.bf16.mxu1 %v16397_v49  ;;  %v4100_v50 = vpack.c.bf16 %v4087_v47, %v4086_v46 }
 0x3fb   : > { %15163 = vmatmul.mubr.msk.bf16.gmra.mrb[16].mxu1 %vm3029_vm4, %v3745_v55  ;;  %v4088_v55 = vld [vmem:[#allocation3 + $0x36] sm:$0xff] }
 0x3fc   : > { %15166 = vmatprep.mubr.msk.bf16.mxu1 %vm3029_vm4, %v3746_v56  ;;  %v4101_v56 = vpack.c.bf16 %v4089_v51, %v4088_v55 }
 0x403   : > { %15167 = vmatmul.mubr.msk.bf16.gmra.mrb[20].mxu1 %vm3029_vm4, %v3747_v60  ;;  %v4092_v60 = vld [vmem:[#allocation3 + $0x56] sm:$0xff] }
 0x404   : > { %15170 = vmatprep.mubr.msk.bf16.mxu1 %vm3029_vm4, %v3748_v61  ;;  %v4103_v61 = vpack.c.bf16 %v4093_v58, %v4092_v60 }
 0x40b   : > { %15171 = vmatmul.mubr.msk.bf16.gmra.mrb[24].mxu1 %vm3029_vm4, %v3749_v2  ;;  %v16399_v2 = vld [vmem:[#allocation21 + $0x10] sm:$0xff]  }
 0x40c   : > { %15178 = vmatprep.mubr.msk.bf16.mxu1 %vm3029_vm4, %v3920_v7  ;;  %v16400_v7 = vld [vmem:[#allocation21 + $0x18] sm:$0xff]  }
 0x413   : > { %15179 = vmatmul.mubr.msk.bf16.vlgmr.msra.gmra.mrb[12].mxu1 %vm3029_vm4, %v3921_v15 }
 0x414   : > { %15195 = vmatpush3.bf16.msra.mxu1 %v16397_v49  ;;  %15182 = vmatprep.mubr.msk.bf16.mxu1 %vm3029_vm4, %v3922_v17  ;;  %v4099_v49 = vpack.c.bf16 %v4085_v45, %v4084_v48 }
 0x415   : > { %15196 = vmatprep.subr.bf16.mxu1 %v16398_v16 }
 0x418   : > { %15197 = vmatpush3.bf16.msra.mxu1 %v16398_v16 }
 0x419   : > { %15214 = vmatprep.subr.bf16.mxu1 %v16399_v2 }
 0x41b   : > { %15183 = vmatmul.mubr.msk.bf16.gmra.mrb[16].mxu1 %vm3029_vm4, %v3923_v24 }
 0x41c   : > { %15186 = vmatprep.mubr.msk.bf16.mxu1 %vm3029_vm4, %v3924_v25 }
 0x423   : > { %15187 = vmatmul.mubr.msk.bf16.gmra.mrb[20].mxu1 %vm3029_vm4, %v3925_v33 }
 0x424   : > { %15190 = vmatprep.mubr.msk.bf16.mxu1 %vm3029_vm4, %v3926_v34 }
 0x42b   : > { %15191 = vmatmul.mubr.msk.bf16.gmra.mrb[24].mxu1 %vm3029_vm4, %v3927_v41 }
 0x42c   : > { %15198 = vmatprep.mubr.msk.bf16.mxu1 %vm3029_vm4, %v4098_v43 }
 0x433   : > { %15199 = vmatmul.mubr.msk.bf16.vlgmr.msra.gmra.mrb[12].mxu1 %vm3029_vm4, %v4099_v49 }
 0x434   : > { %15202 = vmatprep.mubr.msk.bf16.mxu1 %vm3029_vm4, %v4100_v50  ;;  %15215 = vmatpush3.bf16.msra.mxu1 %v16399_v2  ;;  %v20267_v2 = vmov -1.0  }
 0x435   : > { %15216 = vmatprep.subr.bf16.mxu1 %v16400_v7 }
 0x438   : > { %15217 = vmatpush3.bf16.msra.mxu1 %v16400_v7 }
 0x439   : > { %15234 = vmatprep.subr.bf16.mxu1 %v18391_v29 }
 0x43b   : > { %15203 = vmatmul.mubr.msk.bf16.gmra.mrb[16].mxu1 %vm3029_vm4, %v4101_v56 }
 0x43c   : > { %15206 = vmatprep.mubr.msk.bf16.mxu1 %vm3029_vm4, %v4102_v57 }
 0x443   : > { %15207 = vmatmul.mubr.msk.bf16.gmra.mrb[20].mxu1 %vm3029_vm4, %v4103_v61 }
 0x444   : > { %15210 = vmatprep.mubr.msk.bf16.mxu1 %vm3029_vm4, %v4104_v62 }
 0x44b   : > { %15211 = vmatmul.mubr.msk.bf16.gmra.mrb[24].mxu1 %vm3029_vm4, %v4105_v1 }
 0x506   : > { %v15200_v11 = vpop.f32.mrb[12].mxu1 }
 0x507   : > { %v4263_v12 = vadd.f32 %v15200_v11, %v18383_v9  ;;  %v4181_v14 = vpop.f32.mrb[13].mxu1 }
 0x508   : > { %v4261_v15 = vadd.f32 %v18383_v9, %v4181_v14  ;;  %v15201_v16 = vpop.f32.mrb[14].mxu1 }
 0x509   : > { %v4295_v17 = vmul.f32 0.70710677, %v4263_v12  ;;  %v4264_v19 = vadd.f32 %v15201_v16, %v18383_v9  ;;  %v4184_v20 = vpop.f32.mrb[15].mxu1  ;;  %v18398_v54 = vmul.f32 0.5, %v4263_v12 }
 0x50a   : > { %v4293_v21 = vmul.f32 0.70710677, %v4261_v15  ;;  %v4262_v25 = vadd.f32 %v18383_v9, %v4184_v20  ;;  %v18400_v55 = vmul.f32 0.5, %v4261_v15 }
 0x50b   : > { %v4343_v22 = vand.u32 2147483647, %v4295_v17  ;;  %v18388_v24 = vmul.f32 0.70710677, %v4264_v19  ;;  %vm4311_vm5 = vcmp.ge.f32.partialorder %v4295_v17, 0.0  ;;  %v18402_v57 = vmul.f32 0.5, %v4264_v19 }
 0x50c   : > { %v4341_v27 = vand.u32 2147483647, %v4293_v21  ;;  %v18395_v37 = vmul.f32 0.70710677, %v4262_v25  ;;  %vm4309_vm6 = vcmp.ge.f32.partialorder %v4293_v21, 0.0  ;;  %v18419_v7 = vsel %vm4311_vm5, 1.0, %v20267_v2 }
 0x50d   : > { %v4359_v31 = vmul.f32 0.3275911, %v4343_v22  ;;  %v4551_v32 = vsub.f32 0.0, %v4343_v22  ;;  %v4344_v35 = vand.u32 2147483647, %v18388_v24  ;;  %v18426_v15 = vmul.f32 0.5, %v4262_v25 }
 0x50e   : > { %v4357_v33 = vmul.f32 0.3275911, %v4341_v27  ;;  %v4549_v34 = vsub.f32 0.0, %v4341_v27  ;;  %v15204_v39 = vpop.f32.mrb[16].mxu1  ;;  %v4342_v47 = vand.u32 2147483647, %v18395_v37 }
 0x50f   : > { %v4375_v36 = vadd.f32 1.0, %v4359_v31  ;;  %v4360_v43 = vmul.f32 0.3275911, %v4344_v35  ;;  %v4197_v45 = vpop.f32.mrb[17].mxu1  ;;  %v4567_v46 = vmul.f32 %v4551_v32, %v4343_v22  ;;  %v4552_v51 = vsub.f32 0.0, %v4344_v35 }
 0x510   : > { %v4373_v41 = vadd.f32 1.0, %v4357_v33  ;;  %v15205_v48 = vpop.f32.mrb[18].mxu1  ;;  %v4565_v49 = vmul.f32 %v4549_v34, %v4341_v27  ;;  %v4358_v56 = vmul.f32 0.3275911, %v4342_v47  ;;  %v18405_v58 = vadd.f32 %v15204_v39, %v18383_v9 }
 0x511   : > { %17073 = vrcp.f32 %v4375_v36  ;;  %v4376_v50 = vadd.f32 1.0, %v4360_v43  ;;  %v4200_v53 = vpop.f32.mrb[19].mxu1  ;;  %v18408_v59 = vadd.f32 %v18383_v9, %v4197_v45  ;;  %v4585_v52 = vmul.f32 1.442695, %v4567_v46 }
 0x512   : > { %17075 = vrcp.f32 %v4373_v41  ;;  %v4374_v60 = vadd.f32 1.0, %v4358_v56  ;;  %v18411_v61 = vadd.f32 %v15205_v48, %v18383_v9  ;;  %v4581_v62 = vmul.f32 1.442695, %v4565_v49 }
 0x513   : > { %17077 = vrcp.f32 %v4376_v50  ;;  %v4568_v63 = vmul.f32 %v4552_v51, %v4344_v35  ;;  %v18414_v0 = vmul.f32 0.70710677, %v18405_v58  ;;  %v4550_v11 = vsub.f32 0.0, %v4342_v47 }
 0x514   : > { %17079 = vrcp.f32 %v4374_v60  ;;  %v18422_v12 = vmul.f32 0.70710677, %v18408_v59  ;;  %v18430_v17 = vmul.f32 0.70710677, %v18411_v61  ;;  %v18436_v20 = vsel %vm4309_vm6, 1.0, %v20267_v2 }
 0x515   : > { %v4347_v16 = vand.u32 2147483647, %v18414_v0  ;;  %17081 = vpow2.f32 %v4585_v52  ;;  %vm4312_vm7 = vcmp.ge.f32.partialorder %v18388_v24, 0.0  ;;  %v4587_v25 = vmul.f32 1.442695, %v4568_v63 }
 0x516   : > { %v18416_v1 = vpop.f32.mrb[20].mxu1  ;;  %v4345_v22 = vand.u32 2147483647, %v18422_v12  ;;  %17083 = vpow2.f32 %v4581_v62  ;;  %v4566_v34 = vmul.f32 %v4550_v11, %v4342_v47  ;;  %v4348_v39 = vand.u32 2147483647, %v18430_v17 }
 0x517   : > { %v18424_v14 = vpop.f32.mrb[21].mxu1  ;;  %v4363_v31 = vmul.f32 0.3275911, %v4347_v16  ;;  %v4555_v32 = vsub.f32 0.0, %v4347_v16  ;;  %v18449_v46 = vadd.f32 %v18383_v9, %v4200_v53  ;;  %vm4310_vm8 = vcmp.ge.f32.partialorder %v18395_v37, 0.0 }
 0x518   : > { %v18432_v19 = vpop.f32.mrb[22].mxu1  ;;  %v4361_v35 = vmul.f32 0.3275911, %v4345_v22  ;;  %v4553_v36 = vsub.f32 0.0, %v4345_v22  ;;  %v4364_v51 = vmul.f32 0.3275911, %v4348_v39  ;;  %v18509_v30 = vadd.f32 %v18383_v9, %v18424_v14 }
 0x519   : > { %v18440_v27 = vpop.f32.mrb[23].mxu1  ;;  %v4379_v43 = vadd.f32 1.0, %v4363_v31  ;;  %v4571_v45 = vmul.f32 %v4555_v32, %v4347_v16  ;;  %v4556_v47 = vsub.f32 0.0, %v4348_v39  ;;  %v4583_v63 = vmul.f32 1.442695, %v4566_v34 }
 0x51a   : > { %v4377_v49 = vadd.f32 1.0, %v4361_v35  ;;  %v4569_v50 = vmul.f32 %v4553_v36, %v4345_v22  ;;  %v4380_v11 = vadd.f32 1.0, %v4364_v51  ;;  %v18467_v34 = vmul.f32 0.70710677, %v18449_v46 }
 0x51b   : > { %v18442_v33 = vpop.eup %17073  ;;  %17085 = vrcp.f32 %v4379_v43  ;;  %v4593_v31 = vmul.f32 1.442695, %v4571_v45  ;;  %v4572_v32 = vmul.f32 %v4556_v47, %v4348_v39  ;;  %v18475_v47 = vsel %vm4312_vm7, 1.0, %v20267_v2 }
 0x51c   : > { %v18445_v21 = vpop.eup %17075  ;;  %v4407_v41 = vmul.f32 1.0614054, %v18442_v33  ;;  %17087 = vrcp.f32 %v4377_v49  ;;  %v4589_v43 = vmul.f32 1.442695, %v4569_v50  ;;  %v18487_v24 = vsel %vm4310_vm8, 1.0, %v20267_v2 }
 0x51d   : > { %v4405_v48 = vmul.f32 1.0614054, %v18445_v21  ;;  %v18455_v60 = vpop.eup %17077  ;;  %17089 = vpow2.f32 %v4587_v25  ;;  %v4595_v25 = vmul.f32 1.442695, %v4572_v32  ;;  %vm4315_vm9 = vcmp.ge.f32.partialorder %v18414_v0, 0.0 }
 0x51e   : > { %v4423_v56 = vadd.f32 -1.4531521, %v4407_v41  ;;  %v18453_v52 = vpop.f32.mrb[24].mxu1  ;;  %v4408_v22 = vmul.f32 1.0614054, %v18455_v60  ;;  %v18463_v36 = vpop.eup %17079  ;;  %17091 = vrcp.f32 %v4380_v11  ;;  %vm4313_vm10 = vcmp.ge.f32.partialorder %v18422_v12, 0.0 }
 0x51f   : > { %v4421_v62 = vadd.f32 -1.4531521, %v4405_v48  ;;  %v18457_v53 = vpop.f32.mrb[25].mxu1  ;;  %v17082_v45 = vpop.eup %17081  ;;  %17093 = vpow2.f32 %v4583_v63  ;;  %v4346_v63 = vand.u32 2147483647, %v18467_v34  ;;  %vm4316_vm11 = vcmp.ge.f32.partialorder %v18430_v17, 0.0 }
 0x520   : > { %v4439_v16 = vmul.f32 %v18442_v33, %v4423_v56  ;;  %v18461_v35 = vpop.f32.mrb[26].mxu1  ;;  %v4424_v51 = vadd.f32 -1.4531521, %v4408_v22  ;;  %v4406_v56 = vmul.f32 1.0614054, %v18463_v36  ;;  %v17084_v50 = vpop.eup %17083  ;;  %17095 = vpow2.f32 %v4593_v31 }
 0x521   : > { %v4437_v41 = vmul.f32 %v18445_v21, %v4421_v62  ;;  %v18469_v48 = vpop.f32.mrb[27].mxu1  ;;  %17097 = vpow2.f32 %v4589_v43  ;;  %vm4314_vm12 = vcmp.ge.f32.partialorder %v18467_v34, 0.0 }
 0x522   : > { %v4455_v49 = vadd.f32 1.4214138, %v4439_v16  ;;  %v4440_v44 = vmul.f32 %v18455_v60, %v4424_v51  ;;  %v4422_v42 = vadd.f32 -1.4531521, %v4406_v56  ;;  %v18481_v16 = vadd.f32 %v18416_v1, %v18383_v9 }
 0x523   : > { %v4453_v39 = vadd.f32 1.4214138, %v4437_v41  ;;  %v18492_v51 = vmul.f32 0.5, %v18405_v58  ;;  %17099 = vpow2.f32 %v4595_v25  ;;  %v4362_v1 = vmul.f32 0.3275911, %v4346_v63 }
 0x524   : > { %v4471_v62 = vmul.f32 %v18442_v33, %v4455_v49  ;;  %v4456_v32 = vadd.f32 1.4214138, %v4440_v44  ;;  %v4438_v41 = vmul.f32 %v18463_v36, %v4422_v42  ;;  %v18499_v2 = vmul.f32 0.70710677, %v18481_v16 }
 0x525   : > { %v4469_v11 = vmul.f32 %v18445_v21, %v4453_v39  ;;  %v18494_v56 = vpop.eup %17085  ;;  %v4378_v58 = vadd.f32 1.0, %v4362_v1 }
 0x526   : > { %v4487_v22 = vadd.f32 -0.28449672, %v4471_v62  ;;  %v4472_v39 = vmul.f32 %v18455_v60, %v4456_v32  ;;  %v4454_v31 = vadd.f32 1.4214138, %v4438_v41  ;;  %v18501_v44 = vpop.eup %17087  ;;  %v4411_v43 = vmul.f32 1.0614054, %v18494_v56 }
 0x527   : > { %v4485_v49 = vadd.f32 -0.28449672, %v4469_v11  ;;  %v4554_v62 = vsub.f32 0.0, %v4346_v63  ;;  %v17090_v38 = vpop.eup %17089  ;;  %17101 = vrcp.f32 %v4378_v58  ;;  %vm4319_vm13 = vcmp.ge.f32.partialorder %v18499_v2, 0.0 }
 0x528   : > { %v4503_v37 = vmul.f32 %v18442_v33, %v4487_v22  ;;  %v4488_v11 = vadd.f32 -0.28449672, %v4472_v39  ;;  %v4470_v40 = vmul.f32 %v18463_v36, %v4454_v31  ;;  %v4409_v22 = vmul.f32 1.0614054, %v18501_v44  ;;  %v18511_v28 = vpop.eup %17091 }
 0x529   : > { %v4501_v42 = vmul.f32 %v18445_v21, %v4485_v49  ;;  %v4427_v41 = vadd.f32 -1.4531521, %v4411_v43  ;;  %v17094_v26 = vpop.eup %17093  ;;  %v4570_v43 = vmul.f32 %v4554_v62, %v4346_v63 }
 0x52a   : > { %v4519_v25 = vadd.f32 0.2548296, %v4503_v37  ;;  %v4504_v1 = vmul.f32 %v18455_v60, %v4488_v11  ;;  %v4486_v37 = vadd.f32 -0.28449672, %v4470_v40  ;;  %v4425_v39 = vadd.f32 -1.4531521, %v4409_v22  ;;  %v17096_v10 = vpop.eup %17095 }
 0x52b   : > { %v4517_v32 = vadd.f32 0.2548296, %v4501_v42  ;;  %v4443_v23 = vmul.f32 %v18494_v56, %v4427_v41  ;;  %v4412_v42 = vmul.f32 1.0614054, %v18511_v28  ;;  %v18521_v40 = vand.u32 2147483647, %v18499_v2  ;;  %v17098_v22 = vpop.eup %17097 }
 0x52c   : > { %v4535_v49 = vmul.f32 %v18442_v33, %v4519_v25  ;;  %v4520_v18 = vadd.f32 0.2548296, %v4504_v1  ;;  %v4502_v14 = vmul.f32 %v18463_v36, %v4486_v37  ;;  %v4441_v13 = vmul.f32 %v18501_v44, %v4425_v39 }
 0x52d   : > { %v4533_v31 = vmul.f32 %v18445_v21, %v4517_v32  ;;  %v4459_v25 = vadd.f32 1.4214138, %v4443_v23  ;;  %v4428_v11 = vadd.f32 -1.4531521, %v4412_v42  ;;  %v18524_v63 = vpop.eup %17099  ;;  %v4367_v23 = vmul.f32 0.3275911, %v18521_v40 }
 0x52e   : > { %v4615_v58 = vmul.f32 %v17082_v45, %v4535_v49  ;;  %v4536_v32 = vmul.f32 %v18455_v60, %v4520_v18  ;;  %v4518_v41 = vadd.f32 0.2548296, %v4502_v14  ;;  %v4457_v8 = vadd.f32 1.4214138, %v4441_v13 }
 0x52f   : > { %v4613_v33 = vmul.f32 %v17084_v50, %v4533_v31  ;;  %v4475_v62 = vmul.f32 %v18494_v56, %v4459_v25  ;;  %v4444_v50 = vmul.f32 %v18511_v28, %v4428_v11  ;;  %v4383_v31 = vadd.f32 1.0, %v4367_v23 }
 0x530   : > { %v4631_v21 = vsub.f32 1.0, %v4615_v58  ;;  %v4616_v1 = vmul.f32 %v17090_v38, %v4536_v32  ;;  %v4534_v37 = vmul.f32 %v18463_v36, %v4518_v41  ;;  %v4473_v18 = vmul.f32 %v18501_v44, %v4457_v8 }
 0x531   : > { %v4629_v45 = vsub.f32 1.0, %v4613_v33  ;;  %v4491_v60 = vadd.f32 -0.28449672, %v4475_v62  ;;  %v4460_v39 = vadd.f32 1.4214138, %v4444_v50  ;;  %v18534_v25 = vpop.eup %17101  ;;  %17103 = vrcp.f32 %v4383_v31 }
 0x532   : > { %v4647_v49 = vmul.f32 %v4631_v21, %v18419_v7  ;;  %v4632_v58 = vsub.f32 1.0, %v4616_v1  ;;  %v4614_v14 = vmul.f32 %v17094_v26, %v4534_v37  ;;  %v4489_v33 = vadd.f32 -0.28449672, %v4473_v18 }
 0x533   : > { %v4645_v13 = vmul.f32 %v4629_v45, %v18436_v20  ;;  %v4507_v6 = vmul.f32 %v18494_v56, %v4491_v60  ;;  %v4476_v38 = vmul.f32 %v18511_v28, %v4460_v39  ;;  %v4410_v41 = vmul.f32 1.0614054, %v18534_v25 }
 0x534   : > { %v4663_v42 = vadd.f32 1.0, %v4647_v49  ;;  %v4648_v8 = vmul.f32 %v4632_v58, %v18475_v47  ;;  %v4630_v20 = vsub.f32 1.0, %v4614_v14  ;;  %v4505_v36 = vmul.f32 %v18501_v44, %v4489_v33 }
 0x535   : > { %v4661_v11 = vadd.f32 1.0, %v4645_v13  ;;  %v4523_v32 = vadd.f32 0.2548296, %v4507_v6  ;;  %v4492_v26 = vadd.f32 -0.28449672, %v4476_v38  ;;  %v4559_v37 = vsub.f32 0.0, %v18521_v40 }
 0x536   : > { %v4679_v7 = vmul.f32 %v4663_v42, %v18398_v54  ;;  %v4664_v45 = vadd.f32 1.0, %v4648_v8  ;;  %v4646_v62 = vmul.f32 %v4630_v20, %v18487_v24  ;;  %v4521_v50 = vadd.f32 0.2548296, %v4505_v36 }
 0x537   : > { %v4677_v21 = vmul.f32 %v4661_v11, %v18400_v55  ;;  %v4539_v54 = vmul.f32 %v18494_v56, %v4523_v32  ;;  %v4508_v47 = vmul.f32 %v18511_v28, %v4492_v26  ;;  %v4426_v23 = vadd.f32 -1.4531521, %v4410_v41 }
 0x538   : > { %4696 = vst.msk [vmem:[#allocation4 + $0x13] sm:$0xff] %vm3029_vm4, %v4679_v7  ;;  %v4591_v55 = vmul.f32 1.442695, %v4570_v43  ;;  %v4680_v6 = vmul.f32 %v4664_v45, %v18402_v57  ;;  %v4662_v49 = vadd.f32 1.0, %v4646_v62  ;;  %v4537_v1 = vmul.f32 %v18501_v44, %v4521_v50 }
 0x539   : > { %4694 = vst.msk [vmem:[#allocation4 + $0x3] sm:$0xff] %vm3029_vm4, %v4677_v21  ;;  %v4619_v18 = vmul.f32 %v17096_v10, %v4539_v54  ;;  %v4524_v24 = vadd.f32 0.2548296, %v4508_v47  ;;  %v4442_v13 = vmul.f32 %v18534_v25, %v4426_v23  ;;  %v18554_v60 = vmul.f32 0.70710677, %v18509_v30 }
 0x53a   : > { %4697 = vst.msk [vmem:[#allocation4 + $0x1b] sm:$0xff] %vm3029_vm4, %v4680_v6  ;;  %v4678_v56 = vmul.f32 %v4662_v49, %v18426_v15  ;;  %v20329_v39 = vmov -1.0   ;;  %v4617_v43 = vmul.f32 %v17098_v22, %v4537_v1  ;;  %v18567_v58 = vadd.f32 %v18432_v19, %v18383_v9 }
 0x53b   : > { %v4331_v57 = vsel %vm4315_vm9, 1.0, %v20329_v39  ;;  %v4329_v44 = vsel %vm4313_vm10, 1.0, %v20329_v39  ;;  %v4635_v10 = vsub.f32 1.0, %v4619_v18  ;;  %v4540_v31 = vmul.f32 %v18511_v28, %v4524_v24  ;;  %v18572_v14 = vpop.eup %17103 }
 0x53c   : > { %v4458_v42 = vadd.f32 1.4214138, %v4442_v13  ;;  %4695 = vst.msk [vmem:[#allocation4 + $0xb] sm:$0xff] %vm3029_vm4, %v4678_v56  ;;  %v4633_v15 = vsub.f32 1.0, %v4617_v43  ;;  %17105 = vpow2.f32 %v4591_v55  ;;  %v4349_v0 = vand.u32 2147483647, %v18554_v60 }
 0x53d   : > { %v4651_v12 = vmul.f32 %v4635_v10, %v4331_v57  ;;  %v4620_v22 = vmul.f32 %v18524_v63, %v4540_v31  ;;  %v4575_v33 = vmul.f32 %v4559_v37, %v18521_v40  ;;  %v4281_v19 = vmul.f32 0.5, %v18408_v59 }
 0x53e   : > { %v4474_v28 = vmul.f32 %v18534_v25, %v4458_v42  ;;  %v4649_v11 = vmul.f32 %v4633_v15, %v4329_v44  ;;  %v4415_v38 = vmul.f32 1.0614054, %v18572_v14  ;;  %v4365_v7 = vmul.f32 0.3275911, %v4349_v0 }
 0x53f   : > { %v4667_v8 = vadd.f32 1.0, %v4651_v12  ;;  %v4636_v20 = vsub.f32 1.0, %v4620_v22  ;;  %v18580_v21 = vmul.f32 0.70710677, %v18567_v58  ;;  %v4332_v63 = vsel %vm4316_vm11, 1.0, %v20329_v39 }
 0x540   : > { %v4490_v36 = vadd.f32 -0.28449672, %v4474_v28  ;;  %v4665_v32 = vadd.f32 1.0, %v4649_v11  ;;  %v4431_v26 = vadd.f32 -1.4531521, %v4415_v38  ;;  %v4381_v41 = vadd.f32 1.0, %v4365_v7 }
 0x541   : > { %v4683_v40 = vmul.f32 %v4667_v8, %v18492_v51  ;;  %v4652_v59 = vmul.f32 %v4636_v20, %v4332_v63  ;;  %v4601_v62 = vmul.f32 1.442695, %v4575_v33  ;;  %v4284_v47 = vmul.f32 0.5, %v18411_v61 }
 0x542   : > { %v4506_v45 = vmul.f32 %v18534_v25, %v4490_v36  ;;  %v4681_v50 = vmul.f32 %v4665_v32, %v4281_v19  ;;  %v4447_v54 = vmul.f32 %v18572_v14, %v4431_v26  ;;  %17107 = vrcp.f32 %v4381_v41 }
 0x543   : > { %4700 = vst.msk [vmem:[#allocation4 + $0x33] sm:$0xff] %vm3029_vm4, %v4683_v40  ;;  %v4668_v23 = vadd.f32 1.0, %v4652_v59  ;;  %v4352_v17 = vand.u32 2147483647, %v18580_v21  ;;  %v18594_v51 = vadd.f32 %v18383_v9, %v18440_v27  ;;  %v18598_v49 = vadd.f32 %v18453_v52, %v18383_v9  ;;  %v4740_v59 = vld [vmem:[#allocation4 + $0x9] sm:$0xff] }
 0x544   : > { %v4522_v55 = vadd.f32 0.2548296, %v4506_v45  ;;  %4698 = vst.msk [vmem:[#allocation4 + $0x23] sm:$0xff] %vm3029_vm4, %v4681_v50  ;;  %v4463_v6 = vadd.f32 1.4214138, %v4447_v54  ;;  %17109 = vpow2.f32 %v4601_v62  ;;  %v4557_v44 = vsub.f32 0.0, %v4349_v0 }
 0x545   : > { %v4684_v1 = vmul.f32 %v4668_v23, %v4284_v47  ;;  %v4368_v61 = vmul.f32 0.3275911, %v4352_v17  ;;  %v18603_v13 = vmul.f32 0.70710677, %v18594_v51  ;;  %v18608_v52 = vmul.f32 0.70710677, %v18598_v49 }
 0x546   : > { %v4538_v37 = vmul.f32 %v18534_v25, %v4522_v55  ;;  %v17106_v18 = vpop.eup %17105  ;;  %v4479_v24 = vmul.f32 %v18572_v14, %v4463_v6  ;;  %v4330_v10 = vsel %vm4314_vm12, 1.0, %v20329_v39  ;;  %v18615_v15 = vadd.f32 %v18383_v9, %v18457_v53  ;;  %v4739_v55 = vld [vmem:[#allocation4 + $0x1] sm:$0xff] }
 0x547   : > { %4701 = vst.msk [vmem:[#allocation4 + $0x3b] sm:$0xff] %vm3029_vm4, %v4684_v1  ;;  %v4384_v56 = vadd.f32 1.0, %v4368_v61  ;;  %v4350_v25 = vand.u32 2147483647, %v18603_v13  ;;  %v18618_v12 = vand.u32 2147483647, %v18608_v52  ;;  %v4573_v33 = vmul.f32 %v4557_v44, %v4349_v0 }
 0x548   : > { %v4618_v27 = vmul.f32 %v17106_v18, %v4538_v37  ;;  %v4495_v57 = vadd.f32 -0.28449672, %v4479_v24  ;;  %v4282_v11 = vmul.f32 0.5, %v18449_v46  ;;  %v18628_v20 = vmul.f32 0.70710677, %v18615_v15  ;;  %v4741_v24 = vld [vmem:[#allocation4 + $0x11] sm:$0xff] }
 0x549   : > { %17111 = vrcp.f32 %v4384_v56  ;;  %v4366_v42 = vmul.f32 0.3275911, %v4350_v25  ;;  %v4371_v8 = vmul.f32 0.3275911, %v18618_v12  ;;  %v4560_v0 = vsub.f32 0.0, %v4352_v17 }
 0x54a   : > { %v4634_v43 = vsub.f32 1.0, %v4618_v27  ;;  %v4511_v31 = vmul.f32 %v18572_v14, %v4495_v57  ;;  %v4597_v46 = vmul.f32 1.442695, %v4573_v33  ;;  %v18631_v40 = vand.u32 2147483647, %v18628_v20  ;;  %v4742_v27 = vld [vmem:[#allocation4 + $0x19] sm:$0xff] }
 0x54b   : > { %v4382_v19 = vadd.f32 1.0, %v4366_v42  ;;  %v4387_v26 = vadd.f32 1.0, %v4371_v8  ;;  %v4287_v45 = vmul.f32 0.5, %v18481_v16  ;;  %v4558_v62 = vsub.f32 0.0, %v4350_v25 }
 0x54c   : > { %v4650_v34 = vmul.f32 %v4634_v43, %v4330_v10  ;;  %v18620_v22 = vpop.eup %17107  ;;  %v4527_v28 = vadd.f32 0.2548296, %v4511_v31  ;;  %v4335_v50 = vsel %vm4319_vm13, 1.0, %v20329_v39  ;;  %v4369_v47 = vmul.f32 0.3275911, %v18631_v40  ;;  %v16402_v31 = vld [vmem:[#allocation21 + $0x8] sm:$0xff]  }
 0x54d   : > { %v4413_v7 = vmul.f32 1.0614054, %v18620_v22  ;;  %17113 = vrcp.f32 %v4382_v19  ;;  %v18642_v23 = vadd.f32 %v18461_v35, %v18383_v9  ;;  %vm4317_vm14 = vcmp.ge.f32.partialorder %v18554_v60, 0.0 }
 0x54e   : > { %v4666_v38 = vadd.f32 1.0, %v4650_v34  ;;  %v4543_v53 = vmul.f32 %v18572_v14, %v4527_v28  ;;  %v17110_v36 = vpop.eup %17109  ;;  %17115 = vrcp.f32 %v4387_v26  ;;  %v4576_v1 = vmul.f32 %v4560_v0, %v4352_v17 }
 0x54f   : > { %v4429_v63 = vadd.f32 -1.4531521, %v4413_v7  ;;  %v4755_v37 = vpack.c.bf16 %v4740_v59, %v4739_v55  ;;  %17117 = vpow2.f32 %v4597_v46  ;;  %v4385_v18 = vadd.f32 1.0, %v4369_v47  ;;  %v4743_v7 = vld [vmem:[#allocation4 + $0x21] sm:$0xff] }
 0x550   : > { %v4682_v32 = vmul.f32 %v4666_v38, %v4282_v11  ;;  %v4623_v41 = vmul.f32 %v17110_v36, %v4543_v53  ;;  %v4574_v57 = vmul.f32 %v4558_v62, %v4350_v25  ;;  %v4563_v35 = vsub.f32 0.0, %v18618_v12  ;;  %v18679_v62 = vld [vmem:[#allocation21 + $0x20] sm:$0xff]  }
 0x551   : > { %v4445_v14 = vmul.f32 %v18620_v22, %v4429_v63  ;;  %v18651_v44 = vmul.f32 0.70710677, %v18642_v23  ;;  %15218 = vmatprep.mubr.msk.bf16.mxu1 %vm3029_vm4, %v4755_v37  ;;  %17119 = vrcp.f32 %v4385_v18  ;;  %v18656_v10 = vadd.f32 %v18383_v9, %v18469_v48 }
 0x552   : > { %4699 = vst.msk [vmem:[#allocation4 + $0x2b] sm:$0xff] %vm3029_vm4, %v4682_v32  ;;  %v4639_v54 = vsub.f32 1.0, %v4623_v41  ;;  %v4603_v34 = vmul.f32 1.442695, %v4576_v1  ;;  %v4756_v25 = vpack.c.bf16 %v4742_v27, %v4741_v24  ;;  %v4333_v11 = vsel %vm4317_vm14, 1.0, %v20329_v39  ;;  %v4746_v41 = vld [vmem:[#allocation4 + $0x39] sm:$0xff] }
 0x553   : > { %v18644_v6 = vpop.eup %17111  ;;  %v4461_v16 = vadd.f32 1.4214138, %v4445_v14  ;;  %v18659_v28 = vand.u32 2147483647, %v18651_v44  ;;  %v4599_v53 = vmul.f32 1.442695, %v4574_v57  ;;  %v4579_v63 = vmul.f32 %v4563_v35, %v18618_v12 }
 0x554   : > { %v4655_v61 = vmul.f32 %v4639_v54, %v4335_v50  ;;  %v4416_v2 = vmul.f32 1.0614054, %v18644_v6  ;;  %15219 = vmatmul.mubr.msk.bf16.vlgmr.msra.gmra.mrb[28].mxu1 %vm3029_vm4, %v4756_v25  ;;  %v18674_v60 = vmul.f32 0.70710677, %v18656_v10  ;;  %17121 = vpow2.f32 %v4603_v34 }
 0x555   : > { %v4477_v56 = vmul.f32 %v18620_v22, %v4461_v16  ;;  %v4372_v36 = vmul.f32 0.3275911, %v18659_v28  ;;  %15235 = vmatpush3.bf16.msra.mxu1 %v18391_v29  ;;  %v4561_v54 = vsub.f32 0.0, %v18631_v40  ;;  %vm4320_vm15 = vcmp.ge.f32.partialorder %v18580_v21, 0.0 }
 0x556   : > { %v4671_v43 = vadd.f32 1.0, %v4655_v61  ;;  %v4432_v17 = vadd.f32 -1.4531521, %v4416_v2  ;;  %15236 = vmatprep.subr.bf16.mxu1 %v16402_v31  ;;  %v18685_v29 = vand.u32 2147483647, %v18674_v60  ;;  %vm4318_vm0 = vcmp.ge.f32.partialorder %v18603_v13, 0.0 }
 0x557   : > { %v4493_v42 = vadd.f32 -0.28449672, %v4477_v56  ;;  %v18661_v33 = vpop.eup %17113  ;;  %v4388_v14 = vadd.f32 1.0, %v4372_v36  ;;  %v4609_v2 = vmul.f32 1.442695, %v4579_v63  ;;  %v4577_v35 = vmul.f32 %v4561_v54, %v18631_v40 }
 0x558   : > { %v4687_v19 = vmul.f32 %v4671_v43, %v4287_v45  ;;  %v4448_v38 = vmul.f32 %v18644_v6, %v4432_v17  ;;  %v4414_v48 = vmul.f32 1.0614054, %v18661_v33  ;;  %v18677_v46 = vpop.eup %17115  ;;  %v4370_v27 = vmul.f32 0.3275911, %v18685_v29 }
 0x559   : > { %v4744_v8 = vld [vmem:[#allocation4 + $0x29] sm:$0xff]  ;;  %v4509_v9 = vmul.f32 %v18620_v22, %v4493_v42  ;;  %v4745_v26 = vld [vmem:[#allocation4 + $0x31] sm:$0xff]  ;;  %v4419_v12 = vmul.f32 1.0614054, %v18677_v46  ;;  %17123 = vrcp.f32 %v4388_v14  ;;  %v17118_v1 = vpop.eup %17117  ;;  %15237 = vmatpush3.bf16.msra.mxu1 %v16402_v31  ;;  %v4285_v36 = vmul.f32 0.5, %v18509_v30 }
 0x55a   : > { %4704 = vst.msk [vmem:[#allocation4 + $0x53] sm:$0xff] %vm3029_vm4, %v4687_v19  ;;  %v4464_v32 = vadd.f32 1.4214138, %v4448_v38  ;;  %v4757_v0 = vpack.c.bf16 %v4744_v8, %v4743_v7  ;;  %v4430_v45 = vadd.f32 -1.4531521, %v4414_v48  ;;  %v4758_v16 = vpack.c.bf16 %v4746_v41, %v4745_v26  ;;  %15254 = vmatprep.subr.bf16.mxu1 %v18679_v62 }
 0x55b   : > { %v4525_v59 = vadd.f32 0.2548296, %v4509_v9  ;;  %v4435_v61 = vadd.f32 -1.4531521, %v4419_v12  ;;  %v18693_v56 = vpop.eup %17119  ;;  %17125 = vpow2.f32 %v4599_v53  ;;  %v4386_v42 = vadd.f32 1.0, %v4370_v27 }
 0x55c   : > { %v4480_v50 = vmul.f32 %v18644_v6, %v4464_v32  ;;  %15222 = vmatprep.mubr.msk.bf16.mxu1 %vm3029_vm4, %v4757_v0  ;;  %v4446_v55 = vmul.f32 %v18661_v33, %v4430_v45  ;;  %v4417_v31 = vmul.f32 1.0614054, %v18693_v56  ;;  %17127 = vpow2.f32 %v4609_v2 }
 0x55d   : > { %v4541_v47 = vmul.f32 %v18620_v22, %v4525_v59  ;;  %v4451_v57 = vmul.f32 %v18677_v46, %v4435_v61  ;;  %15223 = vmatmul.mubr.msk.bf16.gmra.mrb[32].mxu1 %vm3029_vm4, %v4758_v16  ;;  %v4564_v19 = vsub.f32 0.0, %v18659_v28  ;;  %17129 = vrcp.f32 %v4386_v42 }
 0x55e   : > { %v4496_v37 = vadd.f32 -0.28449672, %v4480_v50  ;;  %v4462_v24 = vadd.f32 1.4214138, %v4446_v55  ;;  %v4433_v8 = vadd.f32 -1.4531521, %v4417_v31  ;;  %v17122_v53 = vpop.eup %17121 }
 0x55f   : > { %v4621_v18 = vmul.f32 %v17118_v1, %v4541_v47  ;;  %v4467_v25 = vadd.f32 1.4214138, %v4451_v57  ;;  %v4605_v48 = vmul.f32 1.442695, %v4577_v35  ;;  %v4580_v50 = vmul.f32 %v4564_v19, %v18659_v28 }
 0x560   : > { %v4512_v22 = vmul.f32 %v18644_v6, %v4496_v37  ;;  %v4478_v17 = vmul.f32 %v18661_v33, %v4462_v24  ;;  %v4449_v0 = vmul.f32 %v18693_v56, %v4433_v8  ;;  %v4562_v55 = vsub.f32 0.0, %v18685_v29 }
 0x561   : > { %v4637_v43 = vsub.f32 1.0, %v4621_v18  ;;  %v4483_v40 = vmul.f32 %v18677_v46, %v4467_v25  ;;  %17131 = vpow2.f32 %v4605_v48  ;;  %v4288_v61 = vmul.f32 0.5, %v18567_v58 }
 0x562   : > { %v4528_v34 = vadd.f32 0.2548296, %v4512_v22  ;;  %v4494_v7 = vadd.f32 -0.28449672, %v4478_v17  ;;  %v4465_v14 = vadd.f32 1.4214138, %v4449_v0  ;;  %v4578_v31 = vmul.f32 %v4562_v55, %v18685_v29 }
 0x563   : > { %v4653_v38 = vmul.f32 %v4637_v43, %v4333_v11  ;;  %v4336_v11 = vsel %vm4320_vm15, 1.0, %v20329_v39  ;;  %v4499_v41 = vadd.f32 -0.28449672, %v4483_v40  ;;  %v18710_v59 = vpop.eup %17123  ;;  %v4611_v24 = vmul.f32 1.442695, %v4580_v50 }
 0x564   : > { %v4544_v9 = vmul.f32 %v18644_v6, %v4528_v34  ;;  %v4510_v63 = vmul.f32 %v18661_v33, %v4494_v7  ;;  %v4420_v54 = vmul.f32 1.0614054, %v18710_v59  ;;  %v4481_v47 = vmul.f32 %v18693_v56, %v4465_v14 }
 0x565   : > { %v4669_v32 = vadd.f32 1.0, %v4653_v38  ;;  %v4515_v30 = vmul.f32 %v18677_v46, %v4499_v41  ;;  %v17126_v16 = vpop.eup %17125  ;;  %v4334_v57 = vsel %vm4318_vm0, 1.0, %v20329_v39  ;;  %vm4323_vm1 = vcmp.ge.f32.partialorder %v18608_v52, 0.0 }
 0x566   : > { %v4624_v26 = vmul.f32 %v17122_v53, %v4544_v9  ;;  %v4526_v45 = vadd.f32 0.2548296, %v4510_v63  ;;  %v4436_v28 = vadd.f32 -1.4531521, %v4420_v54  ;;  %v4497_v18 = vadd.f32 -0.28449672, %v4481_v47  ;;  %v17128_v27 = vpop.eup %17127 }
 0x567   : > { %v4685_v6 = vmul.f32 %v4669_v32, %v4285_v36  ;;  %v4531_v37 = vadd.f32 0.2548296, %v4515_v30  ;;  %v17130_v35 = vpop.eup %17129  ;;  %17133 = vpow2.f32 %v4611_v24  ;;  %v4339_v29 = vsel %vm4323_vm1, 1.0, %v20329_v39 }
 0x568   : > { %v4640_v12 = vsub.f32 1.0, %v4624_v26  ;;  %v4542_v21 = vmul.f32 %v18661_v33, %v4526_v45  ;;  %v4452_v33 = vmul.f32 %v18710_v59, %v4436_v28  ;;  %v4513_v17 = vmul.f32 %v18693_v56, %v4497_v18 }
 0x569   : > { %4702 = vst.msk [vmem:[#allocation4 + $0x43] sm:$0xff] %vm3029_vm4, %v4685_v6  ;;  %v4547_v13 = vmul.f32 %v18677_v46, %v4531_v37  ;;  %v4418_v25 = vmul.f32 1.0614054, %v17130_v35  ;;  %v4286_v46 = vmul.f32 0.5, %v18594_v51  ;;  %v4607_v53 = vmul.f32 1.442695, %v4578_v31 }
 0x56a   : > { %v4656_v1 = vmul.f32 %v4640_v12, %v4336_v11  ;;  %v4622_v2 = vmul.f32 %v17126_v16, %v4542_v21  ;;  %v4468_v34 = vadd.f32 1.4214138, %v4452_v33  ;;  %v4529_v38 = vadd.f32 0.2548296, %v4513_v17 }
 0x56b   : > { %v4627_v42 = vmul.f32 %v17128_v27, %v4547_v13  ;;  %v4434_v9 = vadd.f32 -1.4531521, %v4418_v25  ;;  %v17132_v36 = vpop.eup %17131  ;;  %vm4321_vm3 = vcmp.ge.f32.partialorder %v18628_v20, 0.0  ;;  %v4291_v26 = vmul.f32 0.5, %v18598_v49 }
 0x56c   : > { %v4672_v22 = vadd.f32 1.0, %v4656_v1  ;;  %v4638_v43 = vsub.f32 1.0, %v4622_v2  ;;  %v4484_v8 = vmul.f32 %v18710_v59, %v4468_v34  ;;  %v4545_v48 = vmul.f32 %v18693_v56, %v4529_v38  ;;  %v17306_v34 = vld [vmem:[#allocation12 + $0xf] sm:$0xff] }
 0x56d   : > { %v4643_v7 = vsub.f32 1.0, %v4627_v42  ;;  %v4450_v0 = vmul.f32 %v17130_v35, %v4434_v9  ;;  %17135 = vpow2.f32 %v4607_v53  ;;  %v4337_v14 = vsel %vm4321_vm3, 1.0, %v20329_v39  ;;  %v4716_v53 = vld [vmem:[#allocation4 + $0x28] sm:$0xff] }
 0x56e   : > { %v4688_v58 = vmul.f32 %v4672_v22, %v4288_v61  ;;  %v4654_v19 = vmul.f32 %v4638_v43, %v4334_v57  ;;  %v4500_v63 = vadd.f32 -0.28449672, %v4484_v8  ;;  %v4625_v51 = vmul.f32 %v17132_v36, %v4545_v48  ;;  %v4714_v48 = vld [vmem:[#allocation4 + $0x18] sm:$0xff] }
 0x56f   : > { %v4659_v32 = vmul.f32 %v4643_v7, %v4339_v29  ;;  %v4466_v45 = vadd.f32 1.4214138, %v4450_v0  ;;  %v4289_v21 = vmul.f32 0.5, %v18615_v15  ;;  %vm4324_vm5 = vcmp.ge.f32.partialorder %v18651_v44, 0.0 }
 0x570   : > { %4705 = vst.msk [vmem:[#allocation4 + $0x5b] sm:$0xff] %vm3029_vm4, %v4688_v58  ;;  %v4670_v40 = vadd.f32 1.0, %v4654_v19  ;;  %v4516_v6 = vmul.f32 %v18710_v59, %v4500_v63  ;;  %v4641_v52 = vsub.f32 1.0, %v4625_v51  ;;  %v4747_v2 = vld [vmem:[#allocation4 + $0x41] sm:$0xff]  ;;  %v4292_v44 = vmul.f32 0.5, %v18642_v23  ;;  %v4717_v51 = vld [vmem:[#allocation4 + $0x30] sm:$0xff] }
 0x571   : > { %v4675_v41 = vadd.f32 1.0, %v4659_v32  ;;  %v4482_v12 = vmul.f32 %v17130_v35, %v4466_v45  ;;  %v17134_v49 = vpop.eup %17133  ;;  %vm4322_vm6 = vcmp.ge.f32.partialorder %v18674_v60, 0.0  ;;  %v4712_v19 = vld [vmem:[#allocation4 + $0x8] sm:$0xff]  ;;  %v4715_v32 = vld [vmem:[#allocation4 + $0x20] sm:$0xff] }
 0x572   : > { %v4686_v11 = vmul.f32 %v4670_v40, %v4286_v46  ;;  %v4532_v50 = vadd.f32 0.2548296, %v4516_v6  ;;  %v4657_v30 = vmul.f32 %v4641_v52, %v4337_v14  ;;  %v4338_v58 = vsel %vm4322_vm6, 1.0, %v20329_v39  ;;  %v4711_v40 = vld [vmem:[#allocation4] sm:$0xff] }
 0x573   : > { %v4691_v56 = vmul.f32 %v4675_v41, %v4291_v26  ;;  %v4498_v54 = vadd.f32 -0.28449672, %v4482_v12  ;;  %v4727_v29 = vpack.c.bf16 %v4712_v19, %v4711_v40  ;;  %v16404_v63 = vld [vmem:[#allocation21 + $0x28] sm:$0xff]   ;;  %v4729_v0 = vpack.c.bf16 %v4716_v53, %v4715_v32  ;;  %v4718_v26 = vld [vmem:[#allocation4 + $0x38] sm:$0xff] }
 0x574   : > { %4703 = vst.msk [vmem:[#allocation4 + $0x4b] sm:$0xff] %vm3029_vm4, %v4686_v11  ;;  %v4548_v20 = vmul.f32 %v18710_v59, %v4532_v50  ;;  %v4673_v47 = vadd.f32 1.0, %v4657_v30  ;;  %v4340_v59 = vsel %vm4324_vm5, 1.0, %v20329_v39  ;;  %v16405_v11 = vld [vmem:[#allocation21 + $0x30] sm:$0xff]   ;;  %v4730_v6 = vpack.c.bf16 %v4718_v26, %v4717_v51  ;;  %v4719_v45 = vld [vmem:[#allocation4 + $0x40] sm:$0xff]  ;;  %v5218_v53 = vld [vmem:[#allocation4 + $0x33] sm:$0xff] }
 0x575   : > { %4708 = vst.msk [vmem:[#allocation4 + $0x73] sm:$0xff] %vm3029_vm4, %v4691_v56  ;;  %v4514_v16 = vmul.f32 %v17130_v35, %v4498_v54  ;;  %v5215_v19 = vld [vmem:[#allocation4 + $0x1b] sm:$0xff]  ;;  %v5220_v32 = vld [vmem:[#allocation4 + $0x43] sm:$0xff]  ;;  %v5222_v51 = vld [vmem:[#allocation4 + $0x53] sm:$0xff] }
 0x576   : > { %v4628_v55 = vmul.f32 %v17134_v49, %v4548_v20  ;;  %v4689_v37 = vmul.f32 %v4673_v47, %v4289_v21  ;;  %v5035_v49 = vld [vmem:[#allocation4 + $0xa] sm:$0xff]  ;;  %v5034_v47 = vld [vmem:[#allocation4 + $0x2] sm:$0xff] }
 0x577   : > { %v4750_v1 = vld [vmem:[#allocation4 + $0x59] sm:$0xff]  ;;  %v4530_v61 = vadd.f32 0.2548296, %v4514_v16  ;;  %v17136_v13 = vpop.eup %17135 }
 0x578   : > { %v4644_v28 = vsub.f32 1.0, %v4628_v55  ;;  %4706 = vst.msk [vmem:[#allocation4 + $0x63] sm:$0xff] %vm3029_vm4, %v4689_v37  ;;  %v4722_v14 = vld [vmem:[#allocation4 + $0x58] sm:$0xff]  ;;  %v5050_v55 = vpack.c.bf16 %v5035_v49, %v5034_v47  ;;  %v5039_v37 = vld [vmem:[#allocation4 + $0x2a] sm:$0xff] }
 0x579   : > { %v4546_v15 = vmul.f32 %v17130_v35, %v4530_v61  ;;  %v4290_v35 = vmul.f32 0.5, %v18656_v10  ;;  %v4713_v10 = vld [vmem:[#allocation4 + $0x10] sm:$0xff]  ;;  %v5038_v61 = vld [vmem:[#allocation4 + $0x22] sm:$0xff] }
 0x57a   : > { %v4660_v57 = vmul.f32 %v4644_v28, %v4340_v59  ;;  %v4728_v36 = vpack.c.bf16 %v4714_v48, %v4713_v10  ;;  %v5036_v16 = vld [vmem:[#allocation4 + $0x12] sm:$0xff]  ;;  %v5219_v10 = vld [vmem:[#allocation4 + $0x3b] sm:$0xff] }
 0x57b   : > { %v4748_v18 = vld [vmem:[#allocation4 + $0x49] sm:$0xff]  ;;  %v4749_v24 = vld [vmem:[#allocation4 + $0x51] sm:$0xff]  ;;  %v4626_v43 = vmul.f32 %v17136_v13, %v4546_v15 }
 0x57c   : > { %v4759_v27 = vpack.c.bf16 %v4748_v18, %v4747_v2  ;;  %v4760_v22 = vpack.c.bf16 %v4750_v1, %v4749_v24  ;;  %v4676_v33 = vadd.f32 1.0, %v4660_v57  ;;  %v4720_v41 = vld [vmem:[#allocation4 + $0x48] sm:$0xff]  ;;  %v4721_v56 = vld [vmem:[#allocation4 + $0x50] sm:$0xff]  ;;  %v5037_v1 = vld [vmem:[#allocation4 + $0x1a] sm:$0xff]  ;;  %v5052_v18 = vpack.c.bf16 %v5039_v37, %v5038_v61 }
 0x57d   : > { %v4642_v31 = vsub.f32 1.0, %v4626_v43  ;;  %v4731_v52 = vpack.c.bf16 %v4720_v41, %v4719_v45  ;;  %v5051_v28 = vpack.c.bf16 %v5037_v1, %v5036_v16  ;;  %v16406_v2 = vld [vmem:[#allocation21 + $0x38] sm:$0xff]   ;;  %v16407_v24 = vld [vmem:[#allocation21 + $0x40] sm:$0xff]   ;;  %v5042_v15 = vld [vmem:[#allocation4 + $0x42] sm:$0xff] }
 0x57e   : > { %15226 = vmatprep.mubr.msk.bf16.mxu1 %vm3029_vm4, %v4759_v27  ;;  %v4692_v17 = vmul.f32 %v4676_v33, %v4292_v44  ;;  %v5040_v59 = vld [vmem:[#allocation4 + $0x32] sm:$0xff]  ;;  %v5041_v27 = vld [vmem:[#allocation4 + $0x3a] sm:$0xff]  ;;  %v5398_v1 = vld [vmem:[#allocation4 + $0x44] sm:$0xff] }
 0x57f   : > { %15227 = vmatmul.mubr.msk.bf16.gmra.mrb[36].mxu1 %vm3029_vm4, %v4760_v22  ;;  %v4658_v42 = vmul.f32 %v4642_v31, %v4338_v58  ;;  %v4751_v38 = vld [vmem:[#allocation4 + $0x61] sm:$0xff]  ;;  %v5043_v22 = vld [vmem:[#allocation4 + $0x4a] sm:$0xff]  ;;  %v5053_v57 = vpack.c.bf16 %v5041_v27, %v5040_v59  ;;  %v5044_v44 = vld [vmem:[#allocation4 + $0x52] sm:$0xff] }
 0x580   : > { %4709 = vst.msk [vmem:[#allocation4 + $0x7b] sm:$0xff] %vm3029_vm4, %v4692_v17  ;;  %v4723_v12 = vld [vmem:[#allocation4 + $0x60] sm:$0xff]  ;;  %v5054_v13 = vpack.c.bf16 %v5043_v22, %v5042_v15  ;;  %v5221_v48 = vld [vmem:[#allocation4 + $0x4b] sm:$0xff]  ;;  %v5400_v27 = vld [vmem:[#allocation4 + $0x54] sm:$0xff] }
 0x581   : > { %4710 = vst.msk [vmem:[#allocation4 + $0x80] sm:$0xff] %vm3029_vm4, %v17306_v34  ;;  %v4674_v25 = vadd.f32 1.0, %v4658_v42  ;;  %v5045_v33 = vld [vmem:[#allocation4 + $0x5a] sm:$0xff]  ;;  %v5046_v31 = vld [vmem:[#allocation4 + $0x62] sm:$0xff]  ;;  %v5399_v37 = vld [vmem:[#allocation4 + $0x4c] sm:$0xff] }
 0x582   : > { %v5055_v17 = vpack.c.bf16 %v5045_v33, %v5044_v44  ;;  %v5224_v41 = vld [vmem:[#allocation4 + $0x63] sm:$0xff]  ;;  %v5569_v33 = vld [vmem:[#allocation4 + $0xd] sm:$0xff] }
 0x583   : > { %v4690_v23 = vmul.f32 %v4674_v25, %v4290_v35  ;;  %v5213_v35 = vld [vmem:[#allocation4 + $0xb] sm:$0xff]  ;;  %v5397_v16 = vld [vmem:[#allocation4 + $0x3c] sm:$0xff] }
 0x584   : > { %v5568_v44 = vld [vmem:[#allocation4 + $0x5] sm:$0xff] }
 0x585   : > { %4707 = vst.msk [vmem:[#allocation4 + $0x6b] sm:$0xff] %vm3029_vm4, %v4690_v23  ;;  %v5212_v23 = vld [vmem:[#allocation4 + $0x3] sm:$0xff] }
 0x587   : > { %v4726_v54 = vld [vmem:[#allocation4 + $0x78] sm:$0xff] }
 0x588   : > { %v4754_v60 = vld [vmem:[#allocation4 + $0x79] sm:$0xff] }
 0x589   : > { %v5049_v34 = vld [vmem:[#allocation4 + $0x7a] sm:$0xff] }
 0x58a   : > { %v5227_v45 = vld [vmem:[#allocation4 + $0x7b] sm:$0xff] }
 0x58b   : > { %v5404_v15 = vld [vmem:[#allocation4 + $0x74] sm:$0xff] }
 0x58c   : > { %v4752_v46 = vld [vmem:[#allocation4 + $0x69] sm:$0xff]  ;;  %v4753_v7 = vld [vmem:[#allocation4 + $0x71] sm:$0xff] }
 0x58d   : > { %v4761_v8 = vpack.c.bf16 %v4752_v46, %v4751_v38  ;;  %v4762_v9 = vpack.c.bf16 %v4754_v60, %v4753_v7  ;;  %v4724_v50 = vld [vmem:[#allocation4 + $0x68] sm:$0xff]  ;;  %v4725_v20 = vld [vmem:[#allocation4 + $0x70] sm:$0xff]  ;;  %v5228_v60 = vpack.c.bf16 %v5213_v35, %v5212_v23 }
 0x58e   : > { %v4733_v30 = vpack.c.bf16 %v4724_v50, %v4723_v12  ;;  %v4734_v21 = vpack.c.bf16 %v4726_v54, %v4725_v20  ;;  %v5047_v43 = vld [vmem:[#allocation4 + $0x6a] sm:$0xff]  ;;  %v5048_v42 = vld [vmem:[#allocation4 + $0x72] sm:$0xff]  ;;  %v5393_v12 = vld [vmem:[#allocation4 + $0x1c] sm:$0xff] }
 0x58f   : > { %15230 = vmatprep.mubr.msk.bf16.mxu1 %vm3029_vm4, %v4761_v8  ;;  %v5056_v58 = vpack.c.bf16 %v5047_v43, %v5046_v31  ;;  %v5057_v25 = vpack.c.bf16 %v5049_v34, %v5048_v42  ;;  %v5217_v38 = vld [vmem:[#allocation4 + $0x2b] sm:$0xff]  ;;  %v5214_v46 = vld [vmem:[#allocation4 + $0x13] sm:$0xff]  ;;  %v5216_v8 = vld [vmem:[#allocation4 + $0x23] sm:$0xff] }
 0x590   : > { %15231 = vmatmul.mubr.msk.bf16.gmra.mrb[40].mxu1 %vm3029_vm4, %v4762_v9  ;;  %v5229_v7 = vpack.c.bf16 %v5215_v19, %v5214_v46  ;;  %v16408_v9 = vld [vmem:[#allocation21 + $0x48] sm:$0xff]   ;;  %v5230_v40 = vpack.c.bf16 %v5217_v38, %v5216_v8  ;;  %v5395_v20 = vld [vmem:[#allocation4 + $0x2c] sm:$0xff]  ;;  %v5392_v54 = vld [vmem:[#allocation4 + $0x14] sm:$0xff] }
 0x591   : > { %15238 = vmatprep.mubr.msk.bf16.mxu1 %vm3029_vm4, %v4727_v29  ;;  %v16409_v29 = vld [vmem:[#allocation21 + $0x50] sm:$0xff]   ;;  %v5407_v49 = vpack.c.bf16 %v5393_v12, %v5392_v54  ;;  %v5571_v31 = vld [vmem:[#allocation4 + $0x1d] sm:$0xff]  ;;  %v5570_v34 = vld [vmem:[#allocation4 + $0x15] sm:$0xff] }
 0x592   : > { %v5403_v59 = vld [vmem:[#allocation4 + $0x6c] sm:$0xff]  ;;  %v5585_v35 = vpack.c.bf16 %v5571_v31, %v5570_v34  ;;  %v5574_v46 = vld [vmem:[#allocation4 + $0x35] sm:$0xff]  ;;  %v5757_v54 = vld [vmem:[#allocation4 + $0x5e] sm:$0xff] }
 0x593   : > { %v5573_v42 = vld [vmem:[#allocation4 + $0x2d] sm:$0xff]  ;;  %v5576_v19 = vld [vmem:[#allocation4 + $0x45] sm:$0xff]  ;;  %v5752_v12 = vld [vmem:[#allocation4 + $0x36] sm:$0xff] }
 0x594   : > { %v5577_v38 = vld [vmem:[#allocation4 + $0x4d] sm:$0xff] }
 0x595   : > { %v5588_v8 = vpack.c.bf16 %v5577_v38, %v5576_v19 }
 0x598   : > { %15239 = vmatmul.mubr.msk.bf16.vlgmr.msra.gmra.mrb[28].mxu1 %vm3029_vm4, %v4728_v36  ;;  %v5231_v36 = vpack.c.bf16 %v5219_v10, %v5218_v53  ;;  %v5578_v10 = vld [vmem:[#allocation4 + $0x55] sm:$0xff] }
 0x599   : > { %15255 = vmatpush3.bf16.msra.mxu1 %v18679_v62  ;;  %15242 = vmatprep.mubr.msk.bf16.mxu1 %vm3029_vm4, %v4729_v0  ;;  %v4732_v62 = vpack.c.bf16 %v4722_v14, %v4721_v56  ;;  %v5223_v0 = vld [vmem:[#allocation4 + $0x5b] sm:$0xff]  ;;  %v5391_v56 = vld [vmem:[#allocation4 + $0xc] sm:$0xff] }
 0x59a   : > { %15256 = vmatprep.subr.bf16.mxu1 %v16404_v63  ;;  %v5233_v26 = vpack.c.bf16 %v5223_v0, %v5222_v51  ;;  %v5226_v14 = vld [vmem:[#allocation4 + $0x73] sm:$0xff] }
 0x59b   : > { %v5235_v50 = vpack.c.bf16 %v5227_v45, %v5226_v14  ;;  %v5747_v0 = vld [vmem:[#allocation4 + $0xe] sm:$0xff]  ;;  %v5748_v45 = vld [vmem:[#allocation4 + $0x16] sm:$0xff]  ;;  %v5753_v14 = vld [vmem:[#allocation4 + $0x3e] sm:$0xff] }
 0x59d   : > { %15257 = vmatpush3.bf16.msra.mxu1 %v16404_v63  ;;  %v5232_v63 = vpack.c.bf16 %v5221_v48, %v5220_v32  ;;  %v5583_v32 = vld [vmem:[#allocation4 + $0x7d] sm:$0xff] }
 0x59e   : > { %15274 = vmatprep.subr.bf16.mxu1 %v16405_v11 }
 0x5a0   : > { %15243 = vmatmul.mubr.msk.bf16.gmra.mrb[32].mxu1 %vm3029_vm4, %v4730_v6 }
 0x5a1   : > { %15246 = vmatprep.mubr.msk.bf16.mxu1 %vm3029_vm4, %v4731_v52  ;;  %v5390_v52 = vld [vmem:[#allocation4 + $0x4] sm:$0xff] }
 0x5a8   : > { %15247 = vmatmul.mubr.msk.bf16.gmra.mrb[36].mxu1 %vm3029_vm4, %v4732_v62  ;;  %v5406_v62 = vpack.c.bf16 %v5391_v56, %v5390_v52 }
 0x5a9   : > { %15250 = vmatprep.mubr.msk.bf16.mxu1 %vm3029_vm4, %v4733_v30  ;;  %v5394_v30 = vld [vmem:[#allocation4 + $0x24] sm:$0xff] }
 0x5aa   : > { %v5408_v47 = vpack.c.bf16 %v5395_v20, %v5394_v30  ;;  %v5765_v30 = vpack.c.bf16 %v5753_v14, %v5752_v12 }
 0x5b0   : > { %15251 = vmatmul.mubr.msk.bf16.gmra.mrb[40].mxu1 %vm3029_vm4, %v4734_v21  ;;  %v16410_v21 = vld [vmem:[#allocation21 + $0x58] sm:$0xff]  }
 0x5b1   : > { %15258 = vmatprep.mubr.msk.bf16.mxu1 %vm3029_vm4, %v5050_v55  ;;  %v16411_v55 = vld [vmem:[#allocation21 + $0x60] sm:$0xff]  }
 0x5b8   : > { %15259 = vmatmul.mubr.msk.bf16.vlgmr.msra.gmra.mrb[28].mxu1 %vm3029_vm4, %v5051_v28  ;;  %v5396_v28 = vld [vmem:[#allocation4 + $0x34] sm:$0xff] }
 0x5b9   : > { %15275 = vmatpush3.bf16.msra.mxu1 %v16405_v11  ;;  %15262 = vmatprep.mubr.msk.bf16.mxu1 %vm3029_vm4, %v5052_v18  ;;  %v5225_v11 = vld [vmem:[#allocation4 + $0x6b] sm:$0xff]  ;;  %v5409_v61 = vpack.c.bf16 %v5397_v16, %v5396_v28  ;;  %v5401_v18 = vld [vmem:[#allocation4 + $0x5c] sm:$0xff] }
 0x5ba   : > { %15276 = vmatprep.subr.bf16.mxu1 %v16406_v2  ;;  %v5234_v6 = vpack.c.bf16 %v5225_v11, %v5224_v41  ;;  %v5411_v22 = vpack.c.bf16 %v5401_v18, %v5400_v27  ;;  %v5750_v41 = vld [vmem:[#allocation4 + $0x26] sm:$0xff] }
 0x5bb   : > { %v16414_v18 = vld [vmem:[#allocation22 + $0x18] sm:$0xff]  }
 0x5bd   : > { %15277 = vmatpush3.bf16.msra.mxu1 %v16406_v2  ;;  %v5410_v2 = vpack.c.bf16 %v5399_v37, %v5398_v1  ;;  %v5760_v1 = vld [vmem:[#allocation4 + $0x76] sm:$0xff]  ;;  %v5761_v37 = vld [vmem:[#allocation4 + $0x7e] sm:$0xff] }
 0x5be   : > { %15294 = vmatprep.subr.bf16.mxu1 %v16407_v24  ;;  %v5769_v28 = vpack.c.bf16 %v5761_v37, %v5760_v1 }
 0x5c0   : > { %15263 = vmatmul.mubr.msk.bf16.gmra.mrb[32].mxu1 %vm3029_vm4, %v5053_v57 }
 0x5c1   : > { %15266 = vmatprep.mubr.msk.bf16.mxu1 %vm3029_vm4, %v5054_v13  ;;  %v5405_v13 = vld [vmem:[#allocation4 + $0x7c] sm:$0xff] }
 0x5c2   : > { %v5413_v43 = vpack.c.bf16 %v5405_v13, %v5404_v15 }
 0x5c8   : > { %15267 = vmatmul.mubr.msk.bf16.gmra.mrb[36].mxu1 %vm3029_vm4, %v5055_v17  ;;  %v5584_v17 = vpack.c.bf16 %v5569_v33, %v5568_v44 }
 0x5c9   : > { %15270 = vmatprep.mubr.msk.bf16.mxu1 %vm3029_vm4, %v5056_v58  ;;  %v5572_v58 = vld [vmem:[#allocation4 + $0x25] sm:$0xff] }
 0x5ca   : > { %v5586_v23 = vpack.c.bf16 %v5573_v42, %v5572_v58 }
 0x5d0   : > { %15271 = vmatmul.mubr.msk.bf16.gmra.mrb[40].mxu1 %vm3029_vm4, %v5057_v25  ;;  %v16412_v25 = vld [vmem:[#allocation21 + $0x68] sm:$0xff]  }
 0x5d1   : > { %15278 = vmatprep.mubr.msk.bf16.mxu1 %vm3029_vm4, %v5228_v60  ;;  %v5575_v60 = vld [vmem:[#allocation4 + $0x3d] sm:$0xff] }
 0x5d8   : > { %15279 = vmatmul.mubr.msk.bf16.vlgmr.msra.gmra.mrb[28].mxu1 %vm3029_vm4, %v5229_v7  ;;  %v5587_v7 = vpack.c.bf16 %v5575_v60, %v5574_v46 }
 0x5d9   : > { %15295 = vmatpush3.bf16.msra.mxu1 %v16407_v24  ;;  %15282 = vmatprep.mubr.msk.bf16.mxu1 %vm3029_vm4, %v5230_v40  ;;  %v5402_v24 = vld [vmem:[#allocation4 + $0x64] sm:$0xff] }
 0x5da   : > { %15296 = vmatprep.subr.bf16.mxu1 %v16408_v9  ;;  %v5412_v57 = vpack.c.bf16 %v5403_v59, %v5402_v24  ;;  %v5580_v40 = vld [vmem:[#allocation4 + $0x65] sm:$0xff] }
 0x5dd   : > { %15297 = vmatpush3.bf16.msra.mxu1 %v16408_v9  ;;  %v5579_v9 = vld [vmem:[#allocation4 + $0x5d] sm:$0xff] }
 0x5de   : > { %15314 = vmatprep.subr.bf16.mxu1 %v16409_v29  ;;  %v5589_v48 = vpack.c.bf16 %v5579_v9, %v5578_v10 }
 0x5e0   : > { %15283 = vmatmul.mubr.msk.bf16.gmra.mrb[32].mxu1 %vm3029_vm4, %v5231_v36  ;;  %v5582_v36 = vld [vmem:[#allocation4 + $0x75] sm:$0xff] }
 0x5e1   : > { %15286 = vmatprep.mubr.msk.bf16.mxu1 %vm3029_vm4, %v5232_v63  ;;  %v5746_v63 = vld [vmem:[#allocation4 + $0x6] sm:$0xff]  ;;  %v5591_v11 = vpack.c.bf16 %v5583_v32, %v5582_v36 }
 0x5e2   : > { %v5762_v51 = vpack.c.bf16 %v5747_v0, %v5746_v63 }
 0x5e8   : > { %15287 = vmatmul.mubr.msk.bf16.gmra.mrb[36].mxu1 %vm3029_vm4, %v5233_v26  ;;  %v5749_v26 = vld [vmem:[#allocation4 + $0x1e] sm:$0xff] }
 0x5e9   : > { %15290 = vmatprep.mubr.msk.bf16.mxu1 %vm3029_vm4, %v5234_v6  ;;  %v5751_v6 = vld [vmem:[#allocation4 + $0x2e] sm:$0xff]  ;;  %v5763_v52 = vpack.c.bf16 %v5749_v26, %v5748_v45 }
 0x5ea   : > { %v5764_v56 = vpack.c.bf16 %v5751_v6, %v5750_v41 }
 0x5f0   : > { %15291 = vmatmul.mubr.msk.bf16.gmra.mrb[40].mxu1 %vm3029_vm4, %v5235_v50  ;;  %v5754_v50 = vld [vmem:[#allocation4 + $0x46] sm:$0xff] }
 0x5f1   : > { %15298 = vmatprep.mubr.msk.bf16.mxu1 %vm3029_vm4, %v5406_v62  ;;  %v5755_v62 = vld [vmem:[#allocation4 + $0x4e] sm:$0xff] }
 0x5f2   : > { %v5766_v20 = vpack.c.bf16 %v5755_v62, %v5754_v50 }
 0x5f8   : > { %15299 = vmatmul.mubr.msk.bf16.vlgmr.msra.gmra.mrb[28].mxu1 %vm3029_vm4, %v5407_v49  ;;  %v5758_v49 = vld [vmem:[#allocation4 + $0x66] sm:$0xff] }
 0x5f9   : > { %15315 = vmatpush3.bf16.msra.mxu1 %v16409_v29  ;;  %15302 = vmatprep.mubr.msk.bf16.mxu1 %vm3029_vm4, %v5408_v47  ;;  %v5581_v29 = vld [vmem:[#allocation4 + $0x6d] sm:$0xff]  ;;  %v5756_v47 = vld [vmem:[#allocation4 + $0x56] sm:$0xff] }
 0x5fa   : > { %15316 = vmatprep.subr.bf16.mxu1 %v16410_v21  ;;  %v5590_v53 = vpack.c.bf16 %v5581_v29, %v5580_v40  ;;  %v18816_v40 = vld [vmem:[#allocation22] sm:$0xff]  }
 0x5fb   : > { %20330 = vst [vmem:[#allocation59_spill] sm:$0xff] %v18816_v40 }
 0x5fd   : > { %15317 = vmatpush3.bf16.msra.mxu1 %v16410_v21  ;;  %v5759_v21 = vld [vmem:[#allocation4 + $0x6e] sm:$0xff] }
 0x5fe   : > { %15334 = vmatprep.subr.bf16.mxu1 %v16411_v55  ;;  %v5768_v16 = vpack.c.bf16 %v5759_v21, %v5758_v49 }
 0x600   : > { %15303 = vmatmul.mubr.msk.bf16.gmra.mrb[32].mxu1 %vm3029_vm4, %v5409_v61  ;;  %v16413_v61 = vld [vmem:[#allocation22 + $0x10] sm:$0xff]  }
 0x601   : > { %15306 = vmatprep.mubr.msk.bf16.mxu1 %vm3029_vm4, %v5410_v2  ;;  %15354 = vmatprep.subr.bf16.mxu0 %v16413_v61  ;;  %v18808_v2 = vld [vmem:[%s20241_s13 + $0x1] ss:$0 sm:$0xff] }
 0x602   : > { %15355 = vmatpush3.bf16.msra.mxu0 %v16413_v61 }
 0x603   : > { %15356 = vmatprep.subr.bf16.mxu0 %v16414_v18 }
 0x606   : > { %15357 = vmatpush3.bf16.msra.mxu0 %v16414_v18 }
 0x607   : > { %15366 = vmatprep.subr.bf16.mxu0 %v18816_v40 }
 0x608   : > { %15307 = vmatmul.mubr.msk.bf16.gmra.mrb[36].mxu1 %vm3029_vm4, %v5411_v22 }
 0x609   : > { %15310 = vmatprep.mubr.msk.bf16.mxu1 %vm3029_vm4, %v5412_v57 }
 0x610   : > { %15311 = vmatmul.mubr.msk.bf16.gmra.mrb[40].mxu1 %vm3029_vm4, %v5413_v43 }
 0x611   : > { %15318 = vmatprep.mubr.msk.bf16.mxu1 %vm3029_vm4, %v5584_v17 }
 0x618   : > { %15319 = vmatmul.mubr.msk.bf16.vlgmr.msra.gmra.mrb[28].mxu1 %vm3029_vm4, %v5585_v35 }
 0x619   : > { %15335 = vmatpush3.bf16.msra.mxu1 %v16411_v55  ;;  %15322 = vmatprep.mubr.msk.bf16.mxu1 %vm3029_vm4, %v5586_v23  ;;  %v5767_v55 = vpack.c.bf16 %v5757_v54, %v5756_v47 }
 0x61a   : > { %15336 = vmatprep.subr.bf16.mxu1 %v16412_v25 }
 0x61d   : > { %15337 = vmatpush3.bf16.msra.mxu1 %v16412_v25 }
 0x620   : > { %15323 = vmatmul.mubr.msk.bf16.gmra.mrb[32].mxu1 %vm3029_vm4, %v5587_v7 }
 0x621   : > { %15326 = vmatprep.mubr.msk.bf16.mxu1 %vm3029_vm4, %v5588_v8 }
 0x628   : > { %15327 = vmatmul.mubr.msk.bf16.gmra.mrb[36].mxu1 %vm3029_vm4, %v5589_v48 }
 0x629   : > { %15330 = vmatprep.mubr.msk.bf16.mxu1 %vm3029_vm4, %v5590_v53 }
 0x630   : > { %15331 = vmatmul.mubr.msk.bf16.gmra.mrb[40].mxu1 %vm3029_vm4, %v5591_v11 }
 0x631   : > { %15338 = vmatprep.mubr.msk.bf16.mxu1 %vm3029_vm4, %v5762_v51 }
 0x638   : > { %15339 = vmatmul.mubr.msk.bf16.vlgmr.msra.gmra.mrb[28].mxu1 %vm3029_vm4, %v5763_v52 }
 0x639   : > { %15342 = vmatprep.mubr.msk.bf16.mxu1 %vm3029_vm4, %v5764_v56 }
 0x640   : > { %15343 = vmatmul.mubr.msk.bf16.gmra.mrb[32].mxu1 %vm3029_vm4, %v5765_v30 }
 0x641   : > { %15346 = vmatprep.mubr.msk.bf16.mxu1 %vm3029_vm4, %v5766_v20 }
 0x648   : > { %15347 = vmatmul.mubr.msk.bf16.gmra.mrb[36].mxu1 %vm3029_vm4, %v5767_v55 }
 0x649   : > { %15350 = vmatprep.mubr.msk.bf16.mxu1 %vm3029_vm4, %v5768_v16 }
 0x650   : > { %15351 = vmatmul.mubr.msk.bf16.gmra.mrb[40].mxu1 %vm3029_vm4, %v5769_v28 }
 0x70b   : > { %v15340_v24 = vpop.f32.mrb[28].mxu1 }
 0x70c   : > { %v5927_v59 = vadd.f32 %v15340_v24, %v18808_v2  ;;  %v5845_v27 = vpop.f32.mrb[29].mxu1 }
 0x70d   : > { %v5925_v22 = vadd.f32 %v18808_v2, %v5845_v27  ;;  %v15341_v57 = vpop.f32.mrb[30].mxu1 }
 0x70e   : > { %v5959_v15 = vmul.f32 0.70710677, %v5927_v59  ;;  %v5928_v13 = vadd.f32 %v15341_v57, %v18808_v2  ;;  %v5848_v44 = vpop.f32.mrb[31].mxu1  ;;  %v18818_v29 = vmul.f32 0.5, %v5927_v59 }
 0x70f   : > { %v5957_v33 = vmul.f32 0.70710677, %v5925_v22  ;;  %v5926_v31 = vadd.f32 %v18808_v2, %v5848_v44  ;;  %v18821_v36 = vmul.f32 0.5, %v5925_v22 }
 0x710   : > { %v6007_v43 = vand.u32 2147483647, %v5959_v15  ;;  %v5960_v17 = vmul.f32 0.70710677, %v5928_v13  ;;  %vm5975_vm7 = vcmp.ge.f32.partialorder %v5959_v15, 0.0  ;;  %v18828_v51 = vmul.f32 0.5, %v5928_v13 }
 0x711   : > { %v6005_v58 = vand.u32 2147483647, %v5957_v33  ;;  %v18814_v19 = vmul.f32 0.70710677, %v5926_v31  ;;  %v18826_v11 = vsel %vm5975_vm7, 1.0, %v20329_v39  ;;  %vm5973_vm8 = vcmp.ge.f32.partialorder %v5957_v33, 0.0 }
 0x712   : > { %v6023_v42 = vmul.f32 0.3275911, %v6007_v43  ;;  %v6215_v34 = vsub.f32 0.0, %v6007_v43  ;;  %v6008_v23 = vand.u32 2147483647, %v5960_v17  ;;  %vm5976_vm9 = vcmp.ge.f32.partialorder %v5960_v17, 0.0 }
 0x713   : > { %v6021_v35 = vmul.f32 0.3275911, %v6005_v58  ;;  %v6213_v25 = vsub.f32 0.0, %v6005_v58  ;;  %v15344_v38 = vpop.f32.mrb[32].mxu1  ;;  %v6006_v48 = vand.u32 2147483647, %v18814_v19 }
 0x714   : > { %v6039_v60 = vadd.f32 1.0, %v6023_v42  ;;  %v6024_v7 = vmul.f32 0.3275911, %v6008_v23  ;;  %v6216_v8 = vsub.f32 0.0, %v6008_v23  ;;  %v5861_v9 = vpop.f32.mrb[33].mxu1  ;;  %v6231_v10 = vmul.f32 %v6215_v34, %v6007_v43 }
 0x715   : > { %v6037_v46 = vadd.f32 1.0, %v6021_v35  ;;  %v15345_v53 = vpop.f32.mrb[34].mxu1  ;;  %v6229_v32 = vmul.f32 %v6213_v25, %v6005_v58  ;;  %v6022_v41 = vmul.f32 0.3275911, %v6006_v48  ;;  %v18831_v6 = vadd.f32 %v15344_v38, %v18808_v2 }
 0x716   : > { %17137 = vrcp.f32 %v6039_v60  ;;  %v6040_v63 = vadd.f32 1.0, %v6024_v7  ;;  %v5864_v0 = vpop.f32.mrb[35].mxu1  ;;  %v6232_v26 = vmul.f32 %v6216_v8, %v6008_v23  ;;  %v18834_v45 = vadd.f32 %v18808_v2, %v5861_v9 }
 0x717   : > { %17139 = vrcp.f32 %v6037_v46  ;;  %v6249_v52 = vmul.f32 1.442695, %v6231_v10  ;;  %v6038_v56 = vadd.f32 1.0, %v6022_v41  ;;  %v18837_v14 = vadd.f32 %v15345_v53, %v18808_v2 }
 0x718   : > { %17141 = vrcp.f32 %v6040_v63  ;;  %v6245_v50 = vmul.f32 1.442695, %v6229_v32  ;;  %v6214_v62 = vsub.f32 0.0, %v6006_v48  ;;  %v18840_v12 = vmul.f32 0.70710677, %v18831_v6 }
 0x719   : > { %v6251_v20 = vmul.f32 1.442695, %v6232_v26  ;;  %v18844_v54 = vmul.f32 0.5, %v5926_v31  ;;  %17143 = vrcp.f32 %v6038_v56  ;;  %v18847_v49 = vmul.f32 0.70710677, %v18834_v45 }
 0x71a   : > { %v18853_v47 = vsel %vm5973_vm8, 1.0, %v20329_v39  ;;  %v6011_v55 = vand.u32 2147483647, %v18840_v12  ;;  %v18857_v16 = vmul.f32 0.70710677, %v18837_v14  ;;  %17145 = vpow2.f32 %v6249_v52 }
 0x71b   : > { %v18842_v30 = vpop.f32.mrb[36].mxu1  ;;  %v18863_v37 = vsel %vm5976_vm9, 1.0, %v20329_v39  ;;  %vm5974_vm10 = vcmp.ge.f32.partialorder %v18814_v19, 0.0  ;;  %v6009_v28 = vand.u32 2147483647, %v18847_v49  ;;  %17147 = vpow2.f32 %v6245_v50 }
 0x71c   : > { %v18849_v21 = vpop.f32.mrb[37].mxu1  ;;  %v6230_v18 = vmul.f32 %v6214_v62, %v6006_v48  ;;  %v6027_v24 = vmul.f32 0.3275911, %v6011_v55  ;;  %v6219_v59 = vsub.f32 0.0, %v6011_v55  ;;  %17149 = vpow2.f32 %v6251_v20 }
 0x71d   : > { %v18859_v1 = vpop.f32.mrb[38].mxu1  ;;  %v6025_v22 = vmul.f32 0.3275911, %v6009_v28  ;;  %v6217_v57 = vsub.f32 0.0, %v6009_v28  ;;  %v6012_v15 = vand.u32 2147483647, %v18857_v16  ;;  %v18876_v17 = vadd.f32 %v18808_v2, %v5864_v0 }
 0x71e   : > { %v18867_v61 = vpop.f32.mrb[39].mxu1  ;;  %v6043_v33 = vadd.f32 1.0, %v6027_v24  ;;  %v6235_v43 = vmul.f32 %v6219_v59, %v6011_v55  ;;  %v18882_v25 = vsel %vm5974_vm10, 1.0, %v20329_v39  ;;  %v6247_v7 = vmul.f32 1.442695, %v6230_v18 }
 0x71f   : > { %v6041_v58 = vadd.f32 1.0, %v6025_v22  ;;  %v6233_v42 = vmul.f32 %v6217_v57, %v6009_v28  ;;  %v6028_v34 = vmul.f32 0.3275911, %v6012_v15  ;;  %v6220_v23 = vsub.f32 0.0, %v6012_v15 }
 0x720   : > { %v18869_v27 = vpop.eup %17137  ;;  %17151 = vrcp.f32 %v6043_v33  ;;  %v6257_v53 = vmul.f32 1.442695, %v6235_v43  ;;  %vm5979_vm11 = vcmp.ge.f32.partialorder %v18840_v12, 0.0  ;;  %v18899_v41 = vmul.f32 0.70710677, %v18876_v17 }
 0x721   : > { %v18872_v13 = vpop.eup %17139  ;;  %v6071_v44 = vmul.f32 1.0614054, %v18869_v27  ;;  %17153 = vrcp.f32 %v6041_v58  ;;  %v6044_v8 = vadd.f32 1.0, %v6028_v34  ;;  %v6236_v19 = vmul.f32 %v6220_v23, %v6012_v15 }
 0x722   : > { %v6069_v31 = vmul.f32 1.0614054, %v18872_v13  ;;  %v18886_v38 = vpop.eup %17141  ;;  %v6253_v26 = vmul.f32 1.442695, %v6233_v42  ;;  %v18905_v28 = vmul.f32 0.5, %v18831_v6  ;;  %v18911_v15 = vadd.f32 %v18842_v30, %v18808_v2 }
 0x723   : > { %v6087_v35 = vadd.f32 -1.4531521, %v6071_v44  ;;  %v18884_v60 = vpop.f32.mrb[40].mxu1  ;;  %v6072_v48 = vmul.f32 1.0614054, %v18886_v38  ;;  %v18894_v63 = vpop.eup %17143  ;;  %17155 = vrcp.f32 %v6044_v8  ;;  %v18917_v43 = vsel %vm5979_vm11, 1.0, %v20329_v39 }
 0x724   : > { %v6085_v46 = vadd.f32 -1.4531521, %v6069_v31  ;;  %v18888_v9 = vpop.f32.mrb[41].mxu1  ;;  %v6070_v62 = vmul.f32 1.0614054, %v18894_v63  ;;  %v17146_v20 = vpop.eup %17145  ;;  %17157 = vpow2.f32 %v6247_v7  ;;  %vm5977_vm12 = vcmp.ge.f32.partialorder %v18847_v49, 0.0 }
 0x725   : > { %v6103_v10 = vmul.f32 %v18869_v27, %v6087_v35  ;;  %v18892_v32 = vpop.f32.mrb[42].mxu1  ;;  %v6088_v50 = vadd.f32 -1.4531521, %v6072_v48  ;;  %v6259_v18 = vmul.f32 1.442695, %v6236_v19  ;;  %v17148_v24 = vpop.eup %17147  ;;  %17159 = vpow2.f32 %v6257_v53  ;;  %v20331_v49 = vld [vmem:[#allocation46_spill] sm:$0xff] }
 0x726   : > { %v6101_v0 = vmul.f32 %v18872_v13, %v6085_v46  ;;  %v18901_v52 = vpop.f32.mrb[43].mxu1  ;;  %v6086_v57 = vadd.f32 -1.4531521, %v6070_v62  ;;  %v17150_v44 = vpop.eup %17149  ;;  %v6010_v6 = vand.u32 2147483647, %v18899_v41  ;;  %17161 = vpow2.f32 %v6253_v26 }
 0x727   : > { %v6119_v56 = vadd.f32 1.4214138, %v6103_v10  ;;  %v6104_v22 = vmul.f32 %v18886_v38, %v6088_v50  ;;  %17163 = vpow2.f32 %v6259_v18  ;;  %v18926_v8 = vmul.f32 0.70710677, %v18911_v15 }
 0x728   : > { %v6117_v55 = vadd.f32 1.4214138, %v6101_v0  ;;  %v6102_v42 = vmul.f32 %v18894_v63, %v6086_v57  ;;  %v6026_v30 = vmul.f32 0.3275911, %v6010_v6  ;;  %v6218_v35 = vsub.f32 0.0, %v6010_v6 }
 0x729   : > { %v6135_v59 = vmul.f32 %v18869_v27, %v6119_v56  ;;  %v6120_v58 = vadd.f32 1.4214138, %v6104_v22  ;;  %vm5980_vm13 = vcmp.ge.f32.partialorder %v18857_v16, 0.0  ;;  %vm5978_vm14 = vcmp.ge.f32.partialorder %v18899_v41, 0.0 }
 0x72a   : > { %v6133_v33 = vmul.f32 %v18872_v13, %v6117_v55  ;;  %v18921_v23 = vpop.eup %17151  ;;  %v6118_v7 = vadd.f32 1.4214138, %v6102_v42  ;;  %v6042_v19 = vadd.f32 1.0, %v6026_v30  ;;  %v6234_v0 = vmul.f32 %v6218_v35, %v6010_v6 }
 0x72b   : > { %v6151_v31 = vadd.f32 -0.28449672, %v6135_v59  ;;  %v6136_v12 = vmul.f32 %v18886_v38, %v6120_v58  ;;  %v18928_v10 = vpop.eup %17153  ;;  %v6075_v53 = vmul.f32 1.0614054, %v18921_v23  ;;  %v18936_v59 = vadd.f32 %v18808_v2, %v18849_v21 }
 0x72c   : > { %v6149_v34 = vadd.f32 -0.28449672, %v6133_v33  ;;  %v6134_v50 = vmul.f32 %v18894_v63, %v6118_v7  ;;  %v6073_v62 = vmul.f32 1.0614054, %v18928_v10  ;;  %17165 = vrcp.f32 %v6042_v19 }
 0x72d   : > { %v6167_v46 = vmul.f32 %v18869_v27, %v6151_v31  ;;  %v6152_v56 = vadd.f32 -0.28449672, %v6136_v12  ;;  %v6091_v18 = vadd.f32 -1.4531521, %v6075_v53  ;;  %v18938_v22 = vpop.eup %17155  ;;  %v18945_v35 = vmul.f32 1.442695, %v6234_v0 }
 0x72e   : > { %v6165_v48 = vmul.f32 %v18872_v13, %v6149_v34  ;;  %v6150_v6 = vadd.f32 -0.28449672, %v6134_v50  ;;  %v6089_v31 = vadd.f32 -1.4531521, %v6073_v62  ;;  %v17158_v58 = vpop.eup %17157  ;;  %v6076_v30 = vmul.f32 1.0614054, %v18938_v22 }
 0x72f   : > { %v6183_v26 = vadd.f32 0.2548296, %v6167_v46  ;;  %v6168_v33 = vmul.f32 %v18886_v38, %v6152_v56  ;;  %v6107_v34 = vmul.f32 %v18921_v23, %v6091_v18  ;;  %v5996_v16 = vsel %vm5980_vm13, 1.0, %v20329_v39 }
 0x730   : > { %v6181_v55 = vadd.f32 0.2548296, %v6165_v48  ;;  %v6166_v12 = vmul.f32 %v18894_v63, %v6150_v6  ;;  %v6105_v7 = vmul.f32 %v18928_v10, %v6089_v31  ;;  %v6092_v19 = vadd.f32 -1.4531521, %v6076_v30 }
 0x731   : > { %v6199_v57 = vmul.f32 %v18869_v27, %v6183_v26  ;;  %v6184_v21 = vadd.f32 0.2548296, %v6168_v33  ;;  %v17160_v27 = vpop.eup %17159  ;;  %v6123_v53 = vadd.f32 1.4214138, %v6107_v34  ;;  %v6015_v26 = vand.u32 2147483647, %v18926_v8 }
 0x732   : > { %v6197_v42 = vmul.f32 %v18872_v13, %v6181_v55  ;;  %v17162_v56 = vpop.eup %17161  ;;  %v6182_v62 = vadd.f32 0.2548296, %v6166_v12  ;;  %v6121_v0 = vadd.f32 1.4214138, %v6105_v7  ;;  %vm5983_vm15 = vcmp.ge.f32.partialorder %v18926_v8, 0.0 }
 0x733   : > { %v6279_v46 = vmul.f32 %v17146_v20, %v6199_v57  ;;  %v6200_v50 = vmul.f32 %v18886_v38, %v6184_v21  ;;  %v18952_v20 = vpop.eup %17163  ;;  %v6139_v18 = vmul.f32 %v18921_v23, %v6123_v53  ;;  %v6108_v57 = vmul.f32 %v18938_v22, %v6092_v19 }
 0x734   : > { %v6277_v48 = vmul.f32 %v17148_v24, %v6197_v42  ;;  %v6031_v24 = vmul.f32 0.3275911, %v6015_v26  ;;  %v6198_v31 = vmul.f32 %v18894_v63, %v6182_v62  ;;  %v6137_v42 = vmul.f32 %v18928_v10, %v6121_v0 }
 0x735   : > { %v6295_v13 = vsub.f32 1.0, %v6279_v46  ;;  %v6280_v6 = vmul.f32 %v17150_v44, %v6200_v50  ;;  %v6155_v34 = vadd.f32 -0.28449672, %v6139_v18  ;;  %v6124_v30 = vadd.f32 1.4214138, %v6108_v57 }
 0x736   : > { %v6293_v55 = vsub.f32 1.0, %v6277_v48  ;;  %v6047_v46 = vadd.f32 1.0, %v6031_v24  ;;  %v6278_v7 = vmul.f32 %v17158_v58, %v6198_v31  ;;  %v6153_v48 = vadd.f32 -0.28449672, %v6137_v42  ;;  %v18960_v53 = vpop.eup %17165 }
 0x737   : > { %v6311_v33 = vmul.f32 %v6295_v13, %v18826_v11  ;;  %v6296_v12 = vsub.f32 1.0, %v6280_v6  ;;  %v6171_v40 = vmul.f32 %v18921_v23, %v6155_v34  ;;  %v6140_v11 = vmul.f32 %v18938_v22, %v6124_v30 }
 0x738   : > { %v6309_v38 = vmul.f32 %v6293_v55, %v18853_v47  ;;  %17167 = vrcp.f32 %v6047_v46  ;;  %v6294_v47 = vsub.f32 1.0, %v6278_v7  ;;  %v6169_v13 = vmul.f32 %v18928_v10, %v6153_v48 }
 0x739   : > { %v6327_v21 = vadd.f32 1.0, %v6311_v33  ;;  %v6312_v44 = vmul.f32 %v6296_v12, %v18863_v37  ;;  %v6187_v62 = vadd.f32 0.2548296, %v6171_v40  ;;  %v6156_v58 = vadd.f32 -0.28449672, %v6140_v11 }
 0x73a   : > { %v6325_v19 = vadd.f32 1.0, %v6309_v38  ;;  %v6074_v0 = vmul.f32 1.0614054, %v18960_v53  ;;  %v6310_v57 = vmul.f32 %v6294_v47, %v18882_v25  ;;  %v6185_v24 = vadd.f32 0.2548296, %v6169_v13 }
 0x73b   : > { %v6343_v63 = vmul.f32 %v6327_v21, %v18818_v29  ;;  %v6328_v18 = vadd.f32 1.0, %v6312_v44  ;;  %v6203_v29 = vmul.f32 %v18921_v23, %v6187_v62  ;;  %v6172_v37 = vmul.f32 %v18938_v22, %v6156_v58 }
 0x73c   : > { %v6341_v50 = vmul.f32 %v6325_v19, %v18821_v36  ;;  %v6090_v6 = vadd.f32 -1.4531521, %v6074_v0  ;;  %v6326_v36 = vadd.f32 1.0, %v6310_v57  ;;  %v6201_v31 = vmul.f32 %v18928_v10, %v6185_v24  ;;  %v20332_v57 = vld [vmem:[#allocation47_spill] sm:$0xff] }
 0x73d   : > { %v6359_v55 = vadd.f32 %v18256_v3, %v6343_v63  ;;  %v6344_v40 = vmul.f32 %v6328_v18, %v18828_v51  ;;  %v6223_v42 = vsub.f32 0.0, %v6015_v26  ;;  %v6283_v3 = vmul.f32 %v17160_v27, %v6203_v29 }
 0x73e   : > { %v6357_v33 = vadd.f32 %v6341_v50, %v18260_v4  ;;  %v5993_v4 = vsel %vm5977_vm12, 1.0, %v20329_v39  ;;  %v6188_v25 = vadd.f32 0.2548296, %v6172_v37  ;;  %v6106_v23 = vmul.f32 %v18960_v53, %v6090_v6  ;;  %v20333_v6 = vld [vmem:[#allocation48_spill] sm:$0xff] }
 0x73f   : > { %6376 = vst.msk [vmem:[#allocation5 + $0x13] sm:$0xff] %vm3029_vm4, %v6359_v55  ;;  %v6360_v38 = vadd.f32 %v18264_v5, %v6344_v40  ;;  %v6342_v34 = vmul.f32 %v6326_v36, %v18844_v54  ;;  %v6281_v30 = vmul.f32 %v17162_v56, %v6201_v31  ;;  %v6239_v51 = vmul.f32 %v6223_v42, %v6015_v26 }
 0x740   : > { %6374 = vst.msk [vmem:[#allocation5 + $0x3] sm:$0xff] %vm3029_vm4, %v6357_v33  ;;  %v6299_v46 = vsub.f32 1.0, %v6283_v3  ;;  %v6204_v10 = vmul.f32 %v18938_v22, %v6188_v25  ;;  %v6122_v21 = vadd.f32 1.4214138, %v6106_v23  ;;  %v18986_v12 = vmul.f32 0.70710677, %v18936_v59 }
 0x741   : > { %6377 = vst.msk [vmem:[#allocation5 + $0x1b] sm:$0xff] %vm3029_vm4, %v6360_v38  ;;  %v6358_v27 = vadd.f32 %v6342_v34, %v20331_v49  ;;  %v6297_v7 = vsub.f32 1.0, %v6281_v30  ;;  %17169 = vpow2.f32 %v18945_v35  ;;  %v18993_v5 = vadd.f32 %v18859_v1, %v18808_v2  ;;  %v20334_v23 = vld [vmem:[#allocation49_spill] sm:$0xff] }
 0x742   : > { %v18995_v54 = vpop.eup %17167  ;;  %v6315_v26 = vmul.f32 %v6299_v46, %v18917_v43  ;;  %v6284_v22 = vmul.f32 %v18952_v20, %v6204_v10  ;;  %v6138_v56 = vmul.f32 %v18960_v53, %v6122_v21  ;;  %v5945_v48 = vmul.f32 0.5, %v18834_v45 }
 0x743   : > { %6375 = vst.msk [vmem:[#allocation5 + $0xb] sm:$0xff] %vm3029_vm4, %v6358_v27  ;;  %v6313_v19 = vmul.f32 %v6297_v7, %v5993_v4  ;;  %v6079_v35 = vmul.f32 1.0614054, %v18995_v54  ;;  %v6265_v11 = vmul.f32 1.442695, %v6239_v51  ;;  %v5948_v55 = vmul.f32 0.5, %v18837_v14 }
 0x744   : > { %v6331_v1 = vadd.f32 1.0, %v6315_v26  ;;  %v6300_v63 = vsub.f32 1.0, %v6284_v22  ;;  %v6154_v44 = vadd.f32 -0.28449672, %v6138_v56  ;;  %v6013_v47 = vand.u32 2147483647, %v18986_v12 }
 0x745   : > { %v6329_v43 = vadd.f32 1.0, %v6313_v19  ;;  %v6095_v13 = vadd.f32 -1.4531521, %v6079_v35  ;;  %v19007_v20 = vmul.f32 0.70710677, %v18993_v5  ;;  %17171 = vpow2.f32 %v6265_v11 }
 0x746   : > { %v6347_v50 = vmul.f32 %v6331_v1, %v18905_v28  ;;  %v6316_v62 = vmul.f32 %v6300_v63, %v5996_v16  ;;  %v6170_v45 = vmul.f32 %v18960_v53, %v6154_v44  ;;  %v6029_v58 = vmul.f32 0.3275911, %v6013_v47 }
 0x747   : > { %v6345_v0 = vmul.f32 %v6329_v43, %v5945_v48  ;;  %v6111_v18 = vmul.f32 %v18995_v54, %v6095_v13  ;;  %v6016_v42 = vand.u32 2147483647, %v19007_v20  ;;  %v19022_v4 = vadd.f32 %v18808_v2, %v18867_v61 }
 0x748   : > { %v6363_v24 = vadd.f32 %v20332_v57, %v6347_v50  ;;  %v6332_v33 = vadd.f32 1.0, %v6316_v62  ;;  %v6186_v29 = vadd.f32 0.2548296, %v6170_v45  ;;  %v6045_v37 = vadd.f32 1.0, %v6029_v58 }
 0x749   : > { %v6361_v40 = vadd.f32 %v20333_v6, %v6345_v0  ;;  %v6127_v36 = vadd.f32 1.4214138, %v6111_v18  ;;  %v19026_v25 = vadd.f32 %v18884_v60, %v18808_v2  ;;  %v6032_v34 = vmul.f32 0.3275911, %v6016_v42 }
 0x74a   : > { %6380 = vst.msk [vmem:[#allocation5 + $0x33] sm:$0xff] %vm3029_vm4, %v6363_v24  ;;  %v6348_v28 = vmul.f32 %v6332_v33, %v5948_v55  ;;  %v6202_v31 = vmul.f32 %v18960_v53, %v6186_v29  ;;  %17173 = vrcp.f32 %v6045_v37  ;;  %v19031_v51 = vmul.f32 0.70710677, %v19022_v4 }
 0x74b   : > { %v17170_v14 = vpop.eup %17169  ;;  %6378 = vst.msk [vmem:[#allocation5 + $0x23] sm:$0xff] %vm3029_vm4, %v6361_v40  ;;  %v6143_v3 = vmul.f32 %v18995_v54, %v6127_v36  ;;  %v6048_v10 = vadd.f32 1.0, %v6032_v34  ;;  %v5994_v61 = vsel %vm5978_vm14, 1.0, %v20329_v39  ;;  %v19038_v49 = vmul.f32 0.70710677, %v19026_v25 }
 0x74c   : > { %v6364_v38 = vadd.f32 %v20334_v23, %v6348_v28  ;;  %v6282_v53 = vmul.f32 %v17170_v14, %v6202_v31  ;;  %v6014_v60 = vand.u32 2147483647, %v19031_v51  ;;  %v6221_v27 = vsub.f32 0.0, %v6013_v47 }
 0x74d   : > { %v6159_v30 = vadd.f32 -0.28449672, %v6143_v3  ;;  %17175 = vrcp.f32 %v6048_v10  ;;  %v5946_v22 = vmul.f32 0.5, %v18876_v17  ;;  %v6224_v48 = vsub.f32 0.0, %v6016_v42  ;;  %v6415_v10 = vld [vmem:[#allocation5 + $0x1] ss:$2 sm:$0xff] }
 0x74e   : > { %6381 = vst.msk [vmem:[#allocation5 + $0x3b] sm:$0xff] %vm3029_vm4, %v6364_v38  ;;  %v6298_v46 = vsub.f32 1.0, %v6282_v53  ;;  %v6030_v26 = vmul.f32 0.3275911, %v6014_v60  ;;  %v6019_v19 = vand.u32 2147483647, %v19038_v49  ;;  %v19045_v63 = vadd.f32 %v18808_v2, %v18888_v9 }
 0x74f   : > { %v6175_v21 = vmul.f32 %v18995_v54, %v6159_v30  ;;  %v17172_v35 = vpop.eup %17171  ;;  %v6237_v16 = vmul.f32 %v6221_v27, %v6013_v47  ;;  %v19051_v17 = vadd.f32 %v18892_v32, %v18808_v2  ;;  %v6240_v58 = vmul.f32 %v6224_v48, %v6016_v42 }
 0x750   : > { %v6314_v41 = vmul.f32 %v6298_v46, %v5994_v61  ;;  %v6046_v1 = vadd.f32 1.0, %v6030_v26  ;;  %v6035_v13 = vmul.f32 0.3275911, %v6019_v19  ;;  %v19057_v18 = vmul.f32 0.70710677, %v19045_v63 }
 0x751   : > { %v6191_v7 = vadd.f32 0.2548296, %v6175_v21  ;;  %v5999_v32 = vsel %vm5983_vm15, 1.0, %v20329_v39  ;;  %v6261_v47 = vmul.f32 1.442695, %v6237_v16  ;;  %v5951_v37 = vmul.f32 0.5, %v18911_v15 }
 0x752   : > { %v6330_v56 = vadd.f32 1.0, %v6314_v41  ;;  %17177 = vrcp.f32 %v6046_v1  ;;  %v6051_v9 = vadd.f32 1.0, %v6035_v13  ;;  %v19062_v8 = vmul.f32 0.70710677, %v19051_v17  ;;  %v20336_v21 = vld [vmem:[#allocation51_spill] sm:$0xff] }
 0x753   : > { %v6207_v11 = vmul.f32 %v18995_v54, %v6191_v7  ;;  %v20335_v54 = vld [vmem:[#allocation50_spill] sm:$0xff]  ;;  %v19066_v33 = vand.u32 2147483647, %v19057_v18  ;;  %v6267_v6 = vmul.f32 1.442695, %v6240_v58  ;;  %v6222_v42 = vsub.f32 0.0, %v6014_v60 }
 0x754   : > { %v19047_v44 = vpop.eup %17173  ;;  %v6346_v43 = vmul.f32 %v6330_v56, %v5946_v22  ;;  %17179 = vrcp.f32 %v6051_v9  ;;  %v19072_v40 = vand.u32 2147483647, %v19062_v8  ;;  %v6227_v34 = vsub.f32 0.0, %v6019_v19  ;;  %v6417_v22 = vld [vmem:[#allocation5 + $0x11] ss:$2 sm:$0xff] }
 0x755   : > { %v6287_v50 = vmul.f32 %v17172_v35, %v6207_v11  ;;  %v6077_v62 = vmul.f32 1.0614054, %v19047_v44  ;;  %17181 = vpow2.f32 %v6261_v47  ;;  %v6033_v14 = vmul.f32 0.3275911, %v19066_v33 }
 0x756   : > { %v6362_v45 = vadd.f32 %v20335_v54, %v6346_v43  ;;  %v6036_v3 = vmul.f32 0.3275911, %v19072_v40  ;;  %17183 = vpow2.f32 %v6267_v6  ;;  %v19080_v46 = vadd.f32 %v18808_v2, %v18901_v52 }
 0x757   : > { %v6303_v0 = vsub.f32 1.0, %v6287_v50  ;;  %v6093_v55 = vadd.f32 -1.4531521, %v6077_v62  ;;  %v19068_v29 = vpop.eup %17175  ;;  %v6049_v15 = vadd.f32 1.0, %v6033_v14  ;;  %v6238_v26 = vmul.f32 %v6222_v42, %v6014_v60  ;;  %v16416_v50 = vld [vmem:[#allocation22 + $0x8] sm:$0xff]   ;;  %v19113_v14 = vld [vmem:[#allocation22 + $0x20] sm:$0xff]  }
 0x758   : > { %6379 = vst.msk [vmem:[#allocation5 + $0x2b] sm:$0xff] %vm3029_vm4, %v6362_v45  ;;  %v6080_v31 = vmul.f32 1.0614054, %v19068_v29  ;;  %v6052_v30 = vadd.f32 1.0, %v6036_v3  ;;  %vm5981_vm0 = vcmp.ge.f32.partialorder %v18986_v12, 0.0  ;;  %v6243_v35 = vmul.f32 %v6227_v34, %v6019_v19 }
 0x759   : > { %v6319_v57 = vmul.f32 %v6303_v0, %v5999_v32  ;;  %v6109_v24 = vmul.f32 %v19047_v44, %v6093_v55  ;;  %17185 = vrcp.f32 %v6049_v15  ;;  %v19091_v11 = vmul.f32 0.70710677, %v19080_v46 }
 0x75a   : > { %v6096_v53 = vadd.f32 -1.4531521, %v6080_v31  ;;  %17187 = vrcp.f32 %v6052_v30  ;;  %v6430_v16 = vpack.c.bf16 %v6417_v22, %v6415_v10  ;;  %v6263_v45 = vmul.f32 1.442695, %v6238_v26 }
 0x75b   : > { %v6335_v36 = vadd.f32 1.0, %v6319_v57  ;;  %v6125_v28 = vadd.f32 1.4214138, %v6109_v24  ;;  %v5949_v9 = vmul.f32 0.5, %v18936_v59  ;;  %v19100_v0 = vand.u32 2147483647, %v19091_v11 }
 0x75c   : > { %v19082_v61 = vpop.eup %17177  ;;  %v6112_v7 = vmul.f32 %v19068_v29, %v6096_v53  ;;  %15358 = vmatprep.mubr.msk.bf16.mxu0 %vm3029_vm4, %v6430_v16  ;;  %v6273_v57 = vmul.f32 1.442695, %v6243_v35  ;;  %v6225_v6 = vsub.f32 0.0, %v19066_v33  ;;  %17189 = vpow2.f32 %v6263_v45 }
 0x75d   : > { %v6351_v23 = vmul.f32 %v6335_v36, %v5951_v37  ;;  %v6141_v38 = vmul.f32 %v19047_v44, %v6125_v28  ;;  %v6078_v48 = vmul.f32 1.0614054, %v19082_v61  ;;  %v5997_v37 = vsel %vm5981_vm0, 1.0, %v20329_v39  ;;  %v20337_v28 = vld [vmem:[#allocation59_spill] sm:$0xff] }
 0x75e   : > { %v6128_v52 = vadd.f32 1.4214138, %v6112_v7  ;;  %v19093_v43 = vpop.eup %17179  ;;  %v6034_v36 = vmul.f32 0.3275911, %v19100_v0  ;;  %vm5984_vm1 = vcmp.ge.f32.partialorder %v19007_v20, 0.0  ;;  %17191 = vpow2.f32 %v6273_v57 }
 0x75f   : > { %v6367_v41 = vadd.f32 %v20336_v21, %v6351_v23  ;;  %v6157_v27 = vadd.f32 -0.28449672, %v6141_v38  ;;  %v6419_v56 = vld [vmem:[#allocation5 + $0x21] ss:$2 sm:$0xff]  ;;  %v6421_v1 = vld [vmem:[#allocation5 + $0x31] ss:$2 sm:$0xff]  ;;  %v17182_v24 = vpop.eup %17181 }
 0x760   : > { %v6094_v60 = vadd.f32 -1.4531521, %v6078_v48  ;;  %v6431_v13 = vpack.c.bf16 %v6421_v1, %v6419_v56  ;;  %v6144_v54 = vmul.f32 %v19068_v29, %v6128_v52  ;;  %v6083_v58 = vmul.f32 1.0614054, %v19093_v43  ;;  %v17184_v3 = vpop.eup %17183 }
 0x761   : > { %6384 = vst.msk [vmem:[#allocation5 + $0x53] sm:$0xff] %vm3029_vm4, %v6367_v41  ;;  %v6173_v2 = vmul.f32 %v19047_v44, %v6157_v27  ;;  %v6228_v23 = vsub.f32 0.0, %v19072_v40  ;;  %v6050_v38 = vadd.f32 1.0, %v6034_v36  ;;  %v5952_v10 = vmul.f32 0.5, %v18993_v5 }
 0x762   : > { %v6110_v19 = vmul.f32 %v19082_v61, %v6094_v60  ;;  %v6160_v32 = vadd.f32 -0.28449672, %v6144_v54  ;;  %v6099_v47 = vadd.f32 -1.4531521, %v6083_v58  ;;  %15359 = vmatmul.mubr.msk.bf16.vlgmr.msra.gmra.mrb[16].mxu0 %vm3029_vm4, %v6431_v13  ;;  %v6241_v41 = vmul.f32 %v6225_v6, %v19066_v33 }
 0x763   : > { %v6189_v62 = vadd.f32 0.2548296, %v6173_v2  ;;  %15367 = vmatpush3.bf16.msra.mxu0 %v20337_v28  ;;  %v19118_v30 = vpop.eup %17185  ;;  %17193 = vrcp.f32 %v6050_v38  ;;  %v6000_v5 = vsel %vm5984_vm1, 1.0, %v20329_v39  ;;  %vm5982_vm3 = vcmp.ge.f32.partialorder %v19031_v51, 0.0 }
 0x764   : > { %v6126_v59 = vadd.f32 1.4214138, %v6110_v19  ;;  %v6115_v42 = vmul.f32 %v19093_v43, %v6099_v47  ;;  %15368 = vmatprep.subr.bf16.mxu0 %v16416_v50  ;;  %v6081_v22 = vmul.f32 1.0614054, %v19118_v30  ;;  %v19126_v56 = vpop.eup %17187  ;;  %v6244_v48 = vmul.f32 %v6228_v23, %v19072_v40 }
 0x765   : > { %v6205_v55 = vmul.f32 %v19047_v44, %v6189_v62  ;;  %v6176_v44 = vmul.f32 %v19068_v29, %v6160_v32  ;;  %v6269_v60 = vmul.f32 1.442695, %v6241_v41  ;;  %v6084_v16 = vmul.f32 1.0614054, %v19126_v56 }
 0x766   : > { %v6142_v12 = vmul.f32 %v19082_v61, %v6126_v59  ;;  %v6131_v15 = vadd.f32 1.4214138, %v6115_v42  ;;  %v6097_v35 = vadd.f32 -1.4531521, %v6081_v22  ;;  %v6275_v58 = vmul.f32 1.442695, %v6244_v48  ;;  %v17190_v19 = vpop.eup %17189 }
 0x767   : > { %v6285_v31 = vmul.f32 %v17182_v24, %v6205_v55  ;;  %v6192_v34 = vadd.f32 0.2548296, %v6176_v44  ;;  %15369 = vmatpush3.bf16.msra.mxu0 %v16416_v50  ;;  %v6100_v45 = vadd.f32 -1.4531521, %v6084_v16  ;;  %v6226_v40 = vsub.f32 0.0, %v19100_v0  ;;  %v20338_v55 = vld [vmem:[#allocation52_spill] sm:$0xff] }
 0x768   : > { %v6158_v21 = vadd.f32 -0.28449672, %v6142_v12  ;;  %v6147_v26 = vmul.f32 %v19093_v43, %v6131_v15  ;;  %15378 = vmatprep.subr.bf16.mxu0 %v19113_v14  ;;  %v6113_v20 = vmul.f32 %v19118_v30, %v6097_v35  ;;  %17195 = vpow2.f32 %v6269_v60  ;;  %v17192_v6 = vpop.eup %17191  ;;  %v20340_v16 = vld [vmem:[#allocation54_spill] sm:$0xff] }
 0x769   : > { %v6301_v53 = vsub.f32 1.0, %v6285_v31  ;;  %v6208_v7 = vmul.f32 %v19068_v29, %v6192_v34  ;;  %v6116_v59 = vmul.f32 %v19126_v56, %v6100_v45  ;;  %vm5987_vm5 = vcmp.ge.f32.partialorder %v19038_v49, 0.0 }
 0x76a   : > { %v6174_v33 = vmul.f32 %v19082_v61, %v6158_v21  ;;  %v6163_v52 = vadd.f32 -0.28449672, %v6147_v26  ;;  %v6129_v24 = vadd.f32 1.4214138, %v6113_v20  ;;  %17197 = vpow2.f32 %v6275_v58  ;;  %v20339_v21 = vld [vmem:[#allocation53_spill] sm:$0xff] }
 0x76b   : > { %v6317_v27 = vmul.f32 %v6301_v53, %v5997_v37  ;;  %v6288_v29 = vmul.f32 %v17184_v3, %v6208_v7  ;;  %v6132_v42 = vadd.f32 1.4214138, %v6116_v59  ;;  %v6242_v51 = vmul.f32 %v6226_v40, %v19100_v0 }
 0x76c   : > { %v6190_v1 = vadd.f32 0.2548296, %v6174_v33  ;;  %v6179_v62 = vmul.f32 %v19093_v43, %v6163_v52  ;;  %v6145_v28 = vmul.f32 %v19118_v30, %v6129_v24  ;;  %v5950_v53 = vmul.f32 0.5, %v19022_v4 }
 0x76d   : > { %v6333_v2 = vadd.f32 1.0, %v6317_v27  ;;  %v6304_v50 = vsub.f32 1.0, %v6288_v29  ;;  %v17194_v31 = vpop.eup %17193  ;;  %v6148_v15 = vmul.f32 %v19126_v56, %v6132_v42  ;;  %v6003_v0 = vsel %vm5987_vm5, 1.0, %v20329_v39 }
 0x76e   : > { %v6206_v54 = vmul.f32 %v19082_v61, %v6190_v1  ;;  %v6195_v57 = vadd.f32 0.2548296, %v6179_v62  ;;  %v6161_v23 = vadd.f32 -0.28449672, %v6145_v28  ;;  %v6082_v38 = vmul.f32 1.0614054, %v17194_v31 }
 0x76f   : > { %v6349_v13 = vmul.f32 %v6333_v2, %v5949_v9  ;;  %v6320_v47 = vmul.f32 %v6304_v50, %v6000_v5  ;;  %v5998_v9 = vsel %vm5982_vm3, 1.0, %v20329_v39  ;;  %v6271_v22 = vmul.f32 1.442695, %v6242_v51  ;;  %v20342_v51 = vld [vmem:[#allocation56_spill] sm:$0xff] }
 0x770   : > { %v6286_v37 = vmul.f32 %v17190_v19, %v6206_v54  ;;  %v6211_v36 = vmul.f32 %v19093_v43, %v6195_v57  ;;  %v6177_v27 = vmul.f32 %v19118_v30, %v6161_v23  ;;  %v6098_v7 = vadd.f32 -1.4531521, %v6082_v38  ;;  %v20343_v38 = vld [vmem:[#allocation57_spill] sm:$0xff] }
 0x771   : > { %v6365_v32 = vadd.f32 %v20338_v55, %v6349_v13  ;;  %v6336_v61 = vadd.f32 1.0, %v6320_v47  ;;  %v5955_v29 = vmul.f32 0.5, %v19026_v25  ;;  %17199 = vpow2.f32 %v6271_v22  ;;  %v20341_v25 = vld [vmem:[#allocation55_spill] sm:$0xff] }
 0x772   : > { %v6302_v44 = vsub.f32 1.0, %v6286_v37  ;;  %v6291_v12 = vmul.f32 %v17192_v6, %v6211_v36  ;;  %v6193_v4 = vadd.f32 0.2548296, %v6177_v27  ;;  %v6114_v33 = vmul.f32 %v17194_v31, %v6098_v7  ;;  %v17196_v60 = vpop.eup %17195  ;;  %v6391_v27 = vld [vmem:[#allocation5] ss:$2 sm:$0xff] }
 0x773   : > { %6382 = vst.msk [vmem:[#allocation5 + $0x43] sm:$0xff] %vm3029_vm4, %v6365_v32  ;;  %v6352_v3 = vmul.f32 %v6336_v61, %v5952_v10  ;;  %v6164_v10 = vadd.f32 -0.28449672, %v6148_v15  ;;  %vm5985_vm6 = vcmp.ge.f32.partialorder %v19057_v18, 0.0  ;;  %vm5988_vm7 = vcmp.ge.f32.partialorder %v19062_v8, 0.0 }
 0x774   : > { %v6318_v34 = vmul.f32 %v6302_v44, %v5998_v9  ;;  %v6307_v43 = vsub.f32 1.0, %v6291_v12  ;;  %v6209_v35 = vmul.f32 %v19118_v30, %v6193_v4  ;;  %v6130_v1 = vadd.f32 1.4214138, %v6114_v33  ;;  %v17198_v54 = vpop.eup %17197  ;;  %v6393_v7 = vld [vmem:[#allocation5 + $0x10] ss:$2 sm:$0xff] }
 0x775   : > { %v6368_v41 = vadd.f32 %v20339_v21, %v6352_v3  ;;  %v6180_v2 = vmul.f32 %v19126_v56, %v6164_v10  ;;  %v6001_v19 = vsel %vm5985_vm6, 1.0, %v20329_v39  ;;  %v5953_v57 = vmul.f32 0.5, %v19045_v63  ;;  %v6397_v4 = vld [vmem:[#allocation5 + $0x30] ss:$2 sm:$0xff] }
 0x776   : > { %v6334_v26 = vadd.f32 1.0, %v6318_v34  ;;  %v6323_v5 = vmul.f32 %v6307_v43, %v6003_v0  ;;  %v6289_v62 = vmul.f32 %v17196_v60, %v6209_v35  ;;  %v6146_v20 = vmul.f32 %v17194_v31, %v6130_v1  ;;  %v6618_v60 = vld [vmem:[#allocation5 + $0x2] ss:$2 sm:$0xff] }
 0x777   : > { %6385 = vst.msk [vmem:[#allocation5 + $0x5b] sm:$0xff] %vm3029_vm4, %v6368_v41  ;;  %v6196_v13 = vadd.f32 0.2548296, %v6180_v2  ;;  %v6004_v9 = vsel %vm5988_vm7, 1.0, %v20329_v39  ;;  %v5956_v8 = vmul.f32 0.5, %v19051_v17  ;;  %vm5986_vm8 = vcmp.ge.f32.partialorder %v19091_v11, 0.0 }
 0x778   : > { %v6350_v48 = vmul.f32 %v6334_v26, %v5950_v53  ;;  %v6339_v52 = vadd.f32 1.0, %v6323_v5  ;;  %v6305_v40 = vsub.f32 1.0, %v6289_v62  ;;  %v6162_v30 = vadd.f32 -0.28449672, %v6146_v20  ;;  %v19178_v17 = vld [vmem:[#allocation12 + $0xf] sm:$0xff]  ;;  %v16418_v2 = vld [vmem:[#allocation22 + $0x28] sm:$0xff]  }
 0x779   : > { %v6212_v45 = vmul.f32 %v19126_v56, %v6196_v13  ;;  %v6002_v53 = vsel %vm5986_vm8, 1.0, %v20329_v39  ;;  %v5954_v11 = vmul.f32 0.5, %v19080_v46  ;;  %v20344_v41 = vld [vmem:[#allocation58_spill] sm:$0xff]  ;;  %v6406_v22 = vpack.c.bf16 %v6393_v7, %v6391_v27  ;;  %v6624_v62 = vld [vmem:[#allocation5 + $0x32] ss:$2 sm:$0xff] }
 0x77a   : > { %v6366_v49 = vadd.f32 %v20340_v16, %v6350_v48  ;;  %v6355_v50 = vmul.f32 %v6339_v52, %v5955_v29  ;;  %v6321_v32 = vmul.f32 %v6305_v40, %v6001_v19  ;;  %v6178_v18 = vmul.f32 %v17194_v31, %v6162_v30  ;;  %v6395_v5 = vld [vmem:[#allocation5 + $0x20] ss:$2 sm:$0xff]  ;;  %v16419_v52 = vld [vmem:[#allocation22 + $0x30] sm:$0xff]   ;;  %v6740_v19 = vld [vmem:[#allocation5 + $0x3] ss:$2 sm:$0xff] }
 0x77b   : > { %v6292_v55 = vmul.f32 %v17198_v54, %v6212_v45  ;;  %v17200_v28 = vpop.eup %17199  ;;  %v6407_v48 = vpack.c.bf16 %v6397_v4, %v6395_v5  ;;  %v6620_v16 = vld [vmem:[#allocation5 + $0x12] ss:$2 sm:$0xff]  ;;  %v6990_v27 = vld [vmem:[#allocation5 + $0x35] ss:$2 sm:$0xff]  ;;  %vm7446_vm9 = vcmask 523264   ;;  %vm7444_vm10 = vcmask 518144  }
 0x77c   : > { %6383 = vst.msk [vmem:[#allocation5 + $0x4b] sm:$0xff] %vm3029_vm4, %v6366_v49  ;;  %v6371_v58 = vadd.f32 %v20341_v25, %v6355_v50  ;;  %v6337_v24 = vadd.f32 1.0, %v6321_v32  ;;  %v6194_v56 = vadd.f32 0.2548296, %v6178_v18  ;;  %v6633_v13 = vpack.c.bf16 %v6620_v16, %v6618_v60  ;;  %v6622_v50 = vld [vmem:[#allocation5 + $0x22] ss:$2 sm:$0xff] }
 0x77d   : > { %v6308_v47 = vsub.f32 1.0, %v6292_v55  ;;  %v6634_v54 = vpack.c.bf16 %v6624_v62, %v6622_v50  ;;  %v16420_v45 = vld [vmem:[#allocation22 + $0x38] sm:$0xff]   ;;  %v16427_v4 = vld [vmem:[#allocation24] sm:$0xff]   ;;  %8720 = vst.msk [vmem:[#allocation8 + $0x20] sm:$0xff] %vm7446_vm9, %v19178_v17  ;;  %vm7455_vm1 = vcmask 521216   ;;  %vm8681_vm5 = vcmask 516096  }
 0x77e   : > { %6388 = vst.msk [vmem:[#allocation5 + $0x73] sm:$0xff] %vm3029_vm4, %v6371_v58  ;;  %v6353_v59 = vmul.f32 %v6337_v24, %v5953_v57  ;;  %v6210_v6 = vmul.f32 %v17194_v31, %v6194_v56  ;;  %v16421_v58 = vld [vmem:[#allocation22 + $0x40] sm:$0xff]   ;;  %v6742_v55 = vld [vmem:[#allocation5 + $0x13] ss:$2 sm:$0xff]  ;;  %vm17665_vm6 = vmmov 0  }
 0x77f   : > { %v6324_v37 = vmul.f32 %v6308_v47, %v6004_v9  ;;  %v6755_v18 = vpack.c.bf16 %v6742_v55, %v6740_v19  ;;  %v6744_v47 = vld [vmem:[#allocation5 + $0x23] ss:$2 sm:$0xff]  ;;  %v6746_v57 = vld [vmem:[#allocation5 + $0x33] ss:$2 sm:$0xff]  ;;  %v7110_v60 = vld [vmem:[#allocation5 + $0x26] ss:$2 sm:$0xff] }
 0x780   : > { %v6369_v3 = vadd.f32 %v20342_v51, %v6353_v59  ;;  %v6290_v12 = vmul.f32 %v17200_v28, %v6210_v6  ;;  %v6750_v9 = vld [vmem:[#allocation5 + $0x53] ss:$2 sm:$0xff]  ;;  %v6756_v56 = vpack.c.bf16 %v6746_v57, %v6744_v47  ;;  %v6862_v28 = vld [vmem:[#allocation5 + $0x4] ss:$2 sm:$0xff]  ;;  %7445 = vst.msk [vmem:[#allocation6] sm:$0x7] %vm7444_vm10, %v19178_v17 }
 0x781   : > { %v6340_v44 = vadd.f32 1.0, %v6324_v37  ;;  %v16422_v37 = vld [vmem:[#allocation22 + $0x48] sm:$0xff]   ;;  %v16423_v6 = vld [vmem:[#allocation22 + $0x50] sm:$0xff]   ;;  %8715 = vst.msk [vmem:[#allocation8] sm:$0x7] %vm7444_vm10, %v19178_v17 }
 0x782   : > { %6386 = vst.msk [vmem:[#allocation5 + $0x63] sm:$0xff] %vm3029_vm4, %v6369_v3  ;;  %v6306_v23 = vsub.f32 1.0, %v6290_v12  ;;  %v6866_v51 = vld [vmem:[#allocation5 + $0x24] ss:$2 sm:$0xff]  ;;  %v6868_v3 = vld [vmem:[#allocation5 + $0x34] ss:$2 sm:$0xff] }
 0x783   : > { %v6423_v61 = vld [vmem:[#allocation5 + $0x41] ss:$2 sm:$0xff]  ;;  %v6425_v36 = vld [vmem:[#allocation5 + $0x51] ss:$2 sm:$0xff]  ;;  %v6356_v63 = vmul.f32 %v6340_v44, %v5956_v8  ;;  %v6399_v33 = vld [vmem:[#allocation5 + $0x40] ss:$2 sm:$0xff] }
 0x784   : > { %v6432_v42 = vpack.c.bf16 %v6425_v36, %v6423_v61  ;;  %v6322_v34 = vmul.f32 %v6306_v23, %v6002_v53  ;;  %v6401_v46 = vld [vmem:[#allocation5 + $0x50] ss:$2 sm:$0xff]  ;;  %v6748_v24 = vld [vmem:[#allocation5 + $0x43] ss:$2 sm:$0xff]  ;;  %v6878_v23 = vpack.c.bf16 %v6868_v3, %v6866_v51  ;;  %v8572_v19 = vld [vmem:[#allocation5 + $0x53] ss:$2 sm:$0xff] }
 0x785   : > { %v6372_v31 = vadd.f32 %v20343_v38, %v6356_v63  ;;  %v6408_v29 = vpack.c.bf16 %v6401_v46, %v6399_v33  ;;  %v6626_v20 = vld [vmem:[#allocation5 + $0x42] ss:$2 sm:$0xff]  ;;  %v6757_v59 = vpack.c.bf16 %v6750_v9, %v6748_v24  ;;  %v16424_v38 = vld [vmem:[#allocation22 + $0x58] sm:$0xff]  }
 0x786   : > { %15362 = vmatprep.mubr.msk.bf16.mxu0 %vm3029_vm4, %v6432_v42  ;;  %v6338_v15 = vadd.f32 1.0, %v6322_v34  ;;  %v6864_v8 = vld [vmem:[#allocation5 + $0x14] ss:$2 sm:$0xff]  ;;  %v6870_v12 = vld [vmem:[#allocation5 + $0x44] ss:$2 sm:$0xff] }
 0x787   : > { %6389 = vst.msk [vmem:[#allocation5 + $0x7b] sm:$0xff] %vm3029_vm4, %v6372_v31  ;;  %v6877_v42 = vpack.c.bf16 %v6864_v8, %v6862_v28  ;;  %v6872_v63 = vld [vmem:[#allocation5 + $0x54] ss:$2 sm:$0xff]  ;;  %v16430_v9 = vld [vmem:[%s20233_s5 + $0x28] sm:$0xff]  }
 0x788   : > { %6390 = vst.msk [vmem:[#allocation5 + $0x80] sm:$0xff] %vm3029_vm4, %v19178_v17  ;;  %v6354_v21 = vmul.f32 %v6338_v15, %v5954_v11  ;;  %v6879_v31 = vpack.c.bf16 %v6872_v63, %v6870_v12  ;;  %v16425_v53 = vld [vmem:[#allocation22 + $0x60] sm:$0xff]  }
 0x789   : > { %v6986_v15 = vld [vmem:[#allocation5 + $0x15] ss:$2 sm:$0xff] }
 0x78a   : > { %v6370_v43 = vadd.f32 %v20344_v41, %v6354_v21  ;;  %v6984_v41 = vld [vmem:[#allocation5 + $0x5] ss:$2 sm:$0xff]  ;;  %v6994_v7 = vld [vmem:[#allocation5 + $0x55] ss:$2 sm:$0xff] }
 0x78b   : > { %v16429_v24 = vld [vmem:[%s20233_s5 + $0x20] sm:$0xff]  }
 0x78c   : > { %6387 = vst.msk [vmem:[#allocation5 + $0x6b] sm:$0xff] %vm3029_vm4, %v6370_v43  ;;  %v6999_v43 = vpack.c.bf16 %v6986_v15, %v6984_v41  ;;  %15438 = vmatprep.subr.bf16.mxu1 %v16429_v24 }
 0x78d   : > { %15439 = vmatpush3.bf16.msra.mxu1 %v16429_v24 }
 0x78e   : > { %15440 = vmatprep.subr.bf16.mxu1 %v16430_v9 }
 0x78f   : > { %v6754_v36 = vld [vmem:[#allocation5 + $0x73] ss:$2 sm:$0xff]  ;;  %v6876_v11 = vld [vmem:[#allocation5 + $0x74] ss:$2 sm:$0xff] }
 0x790   : > { %v6998_v46 = vld [vmem:[#allocation5 + $0x75] ss:$2 sm:$0xff] }
 0x791   : > { %v8574_v47 = vld [vmem:[#allocation5 + $0x73] ss:$2 sm:$0xff]  ;;  %15441 = vmatpush3.bf16.msra.mxu1 %v16430_v9 }
 0x793   : > { %v6427_v26 = vld [vmem:[#allocation5 + $0x61] ss:$2 sm:$0xff]  ;;  %v6429_v0 = vld [vmem:[#allocation5 + $0x71] ss:$2 sm:$0xff]  ;;  %v6403_v35 = vld [vmem:[#allocation5 + $0x60] ss:$2 sm:$0xff] }
 0x794   : > { %v6433_v10 = vpack.c.bf16 %v6429_v0, %v6427_v26  ;;  %v6405_v1 = vld [vmem:[#allocation5 + $0x70] ss:$2 sm:$0xff]  ;;  %v6752_v61 = vld [vmem:[#allocation5 + $0x63] ss:$2 sm:$0xff] }
 0x795   : > { %v6409_v49 = vpack.c.bf16 %v6405_v1, %v6403_v35  ;;  %v6630_v40 = vld [vmem:[#allocation5 + $0x62] ss:$2 sm:$0xff]  ;;  %v6632_v30 = vld [vmem:[#allocation5 + $0x72] ss:$2 sm:$0xff]  ;;  %v6758_v44 = vpack.c.bf16 %v6754_v36, %v6752_v61  ;;  %v6988_v26 = vld [vmem:[#allocation5 + $0x25] ss:$2 sm:$0xff] }
 0x796   : > { %15363 = vmatmul.mubr.msk.bf16.gmra.mrb[20].mxu0 %vm3029_vm4, %v6433_v10  ;;  %v6636_v32 = vpack.c.bf16 %v6632_v30, %v6630_v40  ;;  %v6874_v34 = vld [vmem:[#allocation5 + $0x64] ss:$2 sm:$0xff]  ;;  %v7000_v0 = vpack.c.bf16 %v6990_v27, %v6988_v26  ;;  %v6992_v10 = vld [vmem:[#allocation5 + $0x45] ss:$2 sm:$0xff] }
 0x797   : > { %15370 = vmatprep.mubr.msk.bf16.mxu0 %vm3029_vm4, %v6406_v22  ;;  %v6880_v21 = vpack.c.bf16 %v6876_v11, %v6874_v34  ;;  %v16426_v22 = vld [vmem:[#allocation22 + $0x68] sm:$0xff]   ;;  %v7001_v5 = vpack.c.bf16 %v6994_v7, %v6992_v10  ;;  %v7112_v35 = vld [vmem:[#allocation5 + $0x36] ss:$2 sm:$0xff]  ;;  %v8570_v40 = vld [vmem:[#allocation5 + $0x33] ss:$2 sm:$0xff] }
 0x798   : > { %v6996_v33 = vld [vmem:[#allocation5 + $0x65] ss:$2 sm:$0xff]  ;;  %v7116_v1 = vld [vmem:[#allocation5 + $0x56] ss:$2 sm:$0xff]  ;;  %v7122_v16 = vpack.c.bf16 %v7112_v35, %v7110_v60  ;;  %v7118_v62 = vld [vmem:[#allocation5 + $0x66] ss:$2 sm:$0xff] }
 0x799   : > { %v8571_v30 = vld [vmem:[#allocation5 + $0x43] ss:$2 sm:$0xff] }
 0x79e   : > { %15371 = vmatmul.mubr.msk.bf16.vlgmr.msra.gmra.mrb[16].mxu0 %vm3029_vm4, %v6407_v48  ;;  %v7108_v48 = vld [vmem:[#allocation5 + $0x16] ss:$2 sm:$0xff] }
 0x79f   : > { %15379 = vmatpush3.bf16.msra.mxu0 %v19113_v14  ;;  %15374 = vmatprep.mubr.msk.bf16.mxu0 %vm3029_vm4, %v6408_v29  ;;  %v6628_v14 = vld [vmem:[#allocation5 + $0x52] ss:$2 sm:$0xff] }
 0x7a0   : > { %15380 = vmatprep.subr.bf16.mxu0 %v16418_v2  ;;  %v6635_v25 = vpack.c.bf16 %v6628_v14, %v6626_v20  ;;  %v7106_v29 = vld [vmem:[#allocation5 + $0x6] ss:$2 sm:$0xff]  ;;  %v7120_v20 = vld [vmem:[#allocation5 + $0x76] ss:$2 sm:$0xff]  ;;  %v8567_v14 = vld [vmem:[#allocation5 + $0x3] ss:$2 sm:$0xff] }
 0x7a3   : > { %15381 = vmatpush3.bf16.msra.mxu0 %v16418_v2  ;;  %v7002_v2 = vpack.c.bf16 %v6998_v46, %v6996_v33 }
 0x7a4   : > { %15390 = vmatprep.subr.bf16.mxu0 %v16419_v52 }
 0x7a6   : > { %15375 = vmatmul.mubr.msk.bf16.gmra.mrb[20].mxu0 %vm3029_vm4, %v6409_v49  ;;  %v7114_v49 = vld [vmem:[#allocation5 + $0x46] ss:$2 sm:$0xff] }
 0x7a7   : > { %15382 = vmatprep.mubr.msk.bf16.mxu0 %vm3029_vm4, %v6633_v13  ;;  %v16428_v13 = vld [vmem:[#allocation24 + $0x8] sm:$0xff]   ;;  %v7123_v50 = vpack.c.bf16 %v7116_v1, %v7114_v49 }
 0x7ae   : > { %15383 = vmatmul.mubr.msk.bf16.vlgmr.msra.gmra.mrb[16].mxu0 %vm3029_vm4, %v6634_v54  ;;  %v8568_v54 = vld [vmem:[#allocation5 + $0x13] ss:$2 sm:$0xff] }
 0x7af   : > { %15391 = vmatpush3.bf16.msra.mxu0 %v16419_v52  ;;  %15386 = vmatprep.mubr.msk.bf16.mxu0 %vm3029_vm4, %v6635_v25  ;;  %v7121_v52 = vpack.c.bf16 %v7108_v48, %v7106_v29  ;;  %v8575_v25 = vpack.c.bf16 %v8568_v54, %v8567_v14 }
 0x7b0   : > { %15392 = vmatprep.subr.bf16.mxu0 %v16420_v45 }
 0x7b3   : > { %15393 = vmatpush3.bf16.msra.mxu0 %v16420_v45  ;;  %v7124_v45 = vpack.c.bf16 %v7120_v20, %v7118_v62 }
 0x7b4   : > { %15402 = vmatprep.subr.bf16.mxu0 %v16421_v58 }
 0x7b6   : > { %15387 = vmatmul.mubr.msk.bf16.gmra.mrb[20].mxu0 %vm3029_vm4, %v6636_v32  ;;  %v8577_v32 = vpack.c.bf16 %v8572_v19, %v8571_v30 }
 0x7b7   : > { %15394 = vmatprep.mubr.msk.bf16.mxu0 %vm3029_vm4, %v6755_v18  ;;  %v8573_v18 = vld [vmem:[#allocation5 + $0x63] ss:$2 sm:$0xff] }
 0x7b8   : > { %v8578_v57 = vpack.c.bf16 %v8574_v47, %v8573_v18 }
 0x7be   : > { %15395 = vmatmul.mubr.msk.bf16.vlgmr.msra.gmra.mrb[16].mxu0 %vm3029_vm4, %v6756_v56  ;;  %v16431_v56 = vld [vmem:[%s20233_s5 + $0x30] sm:$0xff]  }
 0x7bf   : > { %15403 = vmatpush3.bf16.msra.mxu0 %v16421_v58  ;;  %15398 = vmatprep.mubr.msk.bf16.mxu0 %vm3029_vm4, %v6757_v59  ;;  %v8569_v58 = vld [vmem:[#allocation5 + $0x23] ss:$2 sm:$0xff] }
 0x7c0   : > { %15404 = vmatprep.subr.bf16.mxu0 %v16422_v37  ;;  %v8576_v55 = vpack.c.bf16 %v8570_v40, %v8569_v58  ;;  %15442 = vmatprep.subr.bf16.mxu1 %v16431_v56  ;;  %v19235_v59 = vld [vmem:[%s20233_s5] sm:$0xff]  }
 0x7c1   : > { %15443 = vmatpush3.bf16.msra.mxu1 %v16431_v56 }
 0x7c3   : > { %15405 = vmatpush3.bf16.msra.mxu0 %v16422_v37  ;;  %v16432_v37 = vld [vmem:[%s20233_s5 + $0x38] sm:$0xff]  }
 0x7c4   : > { %15414 = vmatprep.subr.bf16.mxu0 %v16423_v6  ;;  %15444 = vmatprep.subr.bf16.mxu1 %v16432_v37 }
 0x7c5   : > { %15445 = vmatpush3.bf16.msra.mxu1 %v16432_v37 }
 0x7c6   : > { %15399 = vmatmul.mubr.msk.bf16.gmra.mrb[20].mxu0 %vm3029_vm4, %v6758_v44  ;;  %15454 = vmatprep.subr.bf16.mxu1 %v19235_v59 }
 0x7c7   : > { %15406 = vmatprep.mubr.msk.bf16.mxu0 %vm3029_vm4, %v6877_v42 }
 0x7ce   : > { %15407 = vmatmul.mubr.msk.bf16.vlgmr.msra.gmra.mrb[16].mxu0 %vm3029_vm4, %v6878_v23 }
 0x7cf   : > { %15415 = vmatpush3.bf16.msra.mxu0 %v16423_v6  ;;  %15410 = vmatprep.mubr.msk.bf16.mxu0 %vm3029_vm4, %v6879_v31  ;;  %v19241_v6 = vld [vmem:[%s20241_s13 + $0x2] ss:$0 sm:$0xff] }
 0x7d0   : > { %15416 = vmatprep.subr.bf16.mxu0 %v16424_v38 }
 0x7d3   : > { %15417 = vmatpush3.bf16.msra.mxu0 %v16424_v38 }
 0x7d4   : > { %15426 = vmatprep.subr.bf16.mxu0 %v16425_v53 }
 0x7d6   : > { %15411 = vmatmul.mubr.msk.bf16.gmra.mrb[20].mxu0 %vm3029_vm4, %v6880_v21 }
 0x7d7   : > { %15418 = vmatprep.mubr.msk.bf16.mxu0 %vm3029_vm4, %v6999_v43 }
 0x7de   : > { %15419 = vmatmul.mubr.msk.bf16.vlgmr.msra.gmra.mrb[16].mxu0 %vm3029_vm4, %v7000_v0 }
 0x7df   : > { %15427 = vmatpush3.bf16.msra.mxu0 %v16425_v53  ;;  %15422 = vmatprep.mubr.msk.bf16.mxu0 %vm3029_vm4, %v7001_v5 }
 0x7e0   : > { %15428 = vmatprep.subr.bf16.mxu0 %v16426_v22 }
 0x7e3   : > { %15429 = vmatpush3.bf16.msra.mxu0 %v16426_v22 }
 0x7e4   : > { %15550 = vmatprep.subr.bf16.mxu0 %v16427_v4 }
 0x7e6   : > { %15423 = vmatmul.mubr.msk.bf16.gmra.mrb[20].mxu0 %vm3029_vm4, %v7002_v2 }
 0x7e7   : > { %15430 = vmatprep.mubr.msk.bf16.mxu0 %vm3029_vm4, %v7121_v52 }
 0x7ee   : > { %15431 = vmatmul.mubr.msk.bf16.vlgmr.msra.gmra.mrb[16].mxu0 %vm3029_vm4, %v7122_v16 }
 0x7ef   : > { %15434 = vmatprep.mubr.msk.bf16.mxu0 %vm3029_vm4, %v7123_v50  ;;  %15551 = vmatpush3.bf16.msra.mxu0 %v16427_v4 }
 0x7f0   : > { %15552 = vmatprep.subr.bf16.mxu0 %v16428_v13 }
 0x7f3   : > { %15553 = vmatpush3.bf16.msra.mxu0 %v16428_v13 }
 0x7f4   : > { %15562 = vmatprep.subr.bf16.mxu0 %v19178_v17 }
 0x7f6   : > { %15435 = vmatmul.mubr.msk.bf16.gmra.mrb[20].mxu0 %vm3029_vm4, %v7124_v45 }
 0x7f7   : > { %15554 = vmatprep.mubr.msk.bf16.mxu0 %vm3029_vm4, %v8575_v25 }
 0x7fe   : > { %15555 = vmatmul.mubr.msk.bf16.vlgmr.msra.gmra.mrb[24].mxu0 %vm3029_vm4, %v8576_v55 }
 0x7ff   : > { %15558 = vmatprep.mubr.msk.bf16.mxu0 %vm3029_vm4, %v8577_v32 }
 0x806   : > { %15559 = vmatmul.mubr.msk.bf16.gmra.mrb[28].mxu0 %vm3029_vm4, %v8578_v57 }
 0x8c1   : > { %v15432_v61 = vpop.f32.mrb[16].mxu0 }
 0x8c2   : > { %v7230_v36 = vadd.f32 %v15432_v61, %v19241_v6  ;;  %v7188_v28 = vpop.f32.mrb[17].mxu0 }
 0x8c3   : > { %v7228_v8 = vadd.f32 %v19241_v6, %v7188_v28  ;;  %v15433_v44 = vpop.f32.mrb[18].mxu0 }
 0x8c4   : > { %v7246_v42 = vmul.f32 0.70710677, %v7230_v36  ;;  %v7231_v51 = vadd.f32 %v15433_v44, %v19241_v6  ;;  %v7191_v3 = vpop.f32.mrb[19].mxu0  ;;  %v19270_v60 = vmul.f32 0.5, %v7230_v36 }
 0x8c5   : > { %v7244_v12 = vmul.f32 0.70710677, %v7228_v8  ;;  %v19249_v38 = vadd.f32 %v19241_v6, %v7191_v3  ;;  %v19286_v54 = vmul.f32 0.5, %v7228_v8 }
 0x8c6   : > { %v7270_v63 = vand.u32 2147483647, %v7246_v42  ;;  %v19246_v23 = vmul.f32 0.70710677, %v7231_v51  ;;  %vm7254_vm4 = vcmp.ge.f32.partialorder %v7246_v42, 0.0  ;;  %v19288_v45 = vmul.f32 0.5, %v7231_v51 }
 0x8c7   : > { %v7268_v31 = vand.u32 2147483647, %v7244_v12  ;;  %v19253_v21 = vmul.f32 0.70710677, %v19249_v38  ;;  %vm7252_vm11 = vcmp.ge.f32.partialorder %v7244_v12, 0.0  ;;  %v19284_v14 = vsel %vm7254_vm4, 1.0, %v20329_v39 }
 0x8c8   : > { %v7278_v53 = vmul.f32 0.3275911, %v7270_v63  ;;  %v7271_v11 = vand.u32 2147483647, %v19246_v23  ;;  %v7374_v10 = vsub.f32 0.0, %v7270_v63  ;;  %v19294_v30 = vsel %vm7252_vm11, 1.0, %v20329_v39 }
 0x8c9   : > { %v7276_v34 = vmul.f32 0.3275911, %v7268_v31  ;;  %v15436_v41 = vpop.f32.mrb[20].mxu0  ;;  %v7269_v26 = vand.u32 2147483647, %v19253_v21  ;;  %v7372_v52 = vsub.f32 0.0, %v7268_v31 }
 0x8ca   : > { %v7286_v15 = vadd.f32 1.0, %v7278_v53  ;;  %v7279_v27 = vmul.f32 0.3275911, %v7271_v11  ;;  %v7204_v7 = vpop.f32.mrb[21].mxu0  ;;  %v19257_v33 = vadd.f32 %v15436_v41, %v19241_v6  ;;  %v7382_v29 = vmul.f32 %v7374_v10, %v7270_v63 }
 0x8cb   : > { %v7284_v43 = vadd.f32 1.0, %v7276_v34  ;;  %v15437_v0 = vpop.f32.mrb[22].mxu0  ;;  %v7277_v4 = vmul.f32 0.3275911, %v7269_v26  ;;  %v19260_v46 = vadd.f32 %v19241_v6, %v7204_v7  ;;  %v7375_v13 = vsub.f32 0.0, %v7271_v11 }
 0x8cc   : > { %17201 = vrcp.f32 %v7286_v15  ;;  %v7287_v22 = vadd.f32 1.0, %v7279_v27  ;;  %v7207_v5 = vpop.f32.mrb[23].mxu0  ;;  %v19263_v2 = vadd.f32 %v15437_v0, %v19241_v6  ;;  %v19266_v35 = vmul.f32 0.70710677, %v19257_v33 }
 0x8cd   : > { %17203 = vrcp.f32 %v7284_v43  ;;  %v7285_v48 = vadd.f32 1.0, %v7277_v4  ;;  %v19273_v16 = vmul.f32 0.70710677, %v19260_v46  ;;  %v7392_v40 = vmul.f32 1.442695, %v7382_v29 }
 0x8ce   : > { %17205 = vrcp.f32 %v7287_v22  ;;  %v7274_v50 = vand.u32 2147483647, %v19266_v35  ;;  %v19279_v62 = vmul.f32 0.70710677, %v19263_v2  ;;  %v7380_v19 = vmul.f32 %v7372_v52, %v7268_v31 }
 0x8cf   : > { %17207 = vrcp.f32 %v7285_v48  ;;  %v7272_v25 = vand.u32 2147483647, %v19273_v16  ;;  %vm7255_vm12 = vcmp.ge.f32.partialorder %v19246_v23, 0.0  ;;  %v7373_v18 = vsub.f32 0.0, %v7269_v26 }
 0x8d0   : > { %v7282_v55 = vmul.f32 0.3275911, %v7274_v50  ;;  %v19300_v57 = vand.u32 2147483647, %v19279_v62  ;;  %v7383_v56 = vmul.f32 %v7375_v13, %v7271_v11  ;;  %v19306_v61 = vadd.f32 %v19241_v6, %v7207_v5 }
 0x8d1   : > { %v19268_v1 = vpop.f32.mrb[24].mxu0  ;;  %v7280_v47 = vmul.f32 0.3275911, %v7272_v25  ;;  %v7378_v28 = vsub.f32 0.0, %v7274_v50  ;;  %v7388_v51 = vmul.f32 1.442695, %v7380_v19  ;;  %v7381_v31 = vmul.f32 %v7373_v18, %v7269_v26 }
 0x8d2   : > { %v19275_v49 = vpop.f32.mrb[25].mxu0  ;;  %v7290_v37 = vadd.f32 1.0, %v7282_v55  ;;  %v7283_v44 = vmul.f32 0.3275911, %v19300_v57  ;;  %vm7253_vm13 = vcmp.ge.f32.partialorder %v19253_v21, 0.0  ;;  %v7376_v15 = vsub.f32 0.0, %v7272_v25 }
 0x8d3   : > { %v19281_v20 = vpop.f32.mrb[26].mxu0  ;;  %v7288_v8 = vadd.f32 1.0, %v7280_v47  ;;  %v7394_v7 = vmul.f32 1.442695, %v7383_v56  ;;  %v7386_v0 = vmul.f32 %v7378_v28, %v7274_v50  ;;  %v19325_v26 = vmul.f32 0.70710677, %v19306_v61 }
 0x8d4   : > { %v19291_v58 = vpop.f32.mrb[27].mxu0  ;;  %17209 = vrcp.f32 %v7290_v37  ;;  %v7291_v6 = vadd.f32 1.0, %v7283_v44  ;;  %v19333_v29 = vsel %vm7255_vm12, 1.0, %v20329_v39  ;;  %v7390_v52 = vmul.f32 1.442695, %v7381_v31 }
 0x8d5   : > { %17211 = vrcp.f32 %v7288_v8  ;;  %v7384_v19 = vmul.f32 %v7376_v15, %v7272_v25  ;;  %v19341_v18 = vsel %vm7253_vm13, 1.0, %v20329_v39  ;;  %v7400_v47 = vmul.f32 1.442695, %v7386_v0 }
 0x8d6   : > { %v19296_v32 = vpop.eup %17201  ;;  %17213 = vpow2.f32 %v7392_v40  ;;  %v7379_v25 = vsub.f32 0.0, %v19300_v57  ;;  %vm7258_vm14 = vcmp.ge.f32.partialorder %v19266_v35, 0.0  ;;  %vm7256_vm15 = vcmp.ge.f32.partialorder %v19273_v16, 0.0 }
 0x8d7   : > { %v19302_v24 = vpop.eup %17203  ;;  %v7302_v9 = vmul.f32 1.0614054, %v19296_v32  ;;  %17215 = vrcp.f32 %v7291_v6  ;;  %v7264_v16 = vsel %vm7256_vm15, 1.0, %v20329_v39  ;;  %vm7259_vm0 = vcmp.ge.f32.partialorder %v19279_v62, 0.0 }
 0x8d8   : > { %v7300_v36 = vmul.f32 1.0614054, %v19302_v24  ;;  %v19313_v12 = vpop.eup %17205  ;;  %17217 = vpow2.f32 %v7388_v51  ;;  %v7396_v51 = vmul.f32 1.442695, %v7384_v19  ;;  %vm7257_vm3 = vcmp.ge.f32.partialorder %v19325_v26, 0.0 }
 0x8d9   : > { %v7310_v42 = vadd.f32 -1.4531521, %v7302_v9  ;;  %v19311_v3 = vpop.f32.mrb[28].mxu0  ;;  %v7303_v11 = vmul.f32 1.0614054, %v19313_v12  ;;  %v19321_v43 = vpop.eup %17207  ;;  %17219 = vpow2.f32 %v7394_v7 }
 0x8da   : > { %v7308_v63 = vadd.f32 -1.4531521, %v7300_v36  ;;  %v19315_v53 = vpop.f32.mrb[29].mxu0  ;;  %v7301_v4 = vmul.f32 1.0614054, %v19321_v43  ;;  %17221 = vpow2.f32 %v7390_v52 }
 0x8db   : > { %v7318_v34 = vmul.f32 %v19296_v32, %v7310_v42  ;;  %v19319_v41 = vpop.f32.mrb[30].mxu0  ;;  %v7311_v5 = vadd.f32 -1.4531521, %v7303_v11  ;;  %v19344_v9 = vand.u32 2147483647, %v19325_v26  ;;  %17223 = vpow2.f32 %v7400_v47 }
 0x8dc   : > { %v7316_v27 = vmul.f32 %v19302_v24, %v7308_v63  ;;  %v19327_v10 = vpop.f32.mrb[31].mxu0  ;;  %v7309_v40 = vadd.f32 -1.4531521, %v7301_v4  ;;  %v7387_v4 = vmul.f32 %v7379_v25, %v19300_v57 }
 0x8dd   : > { %v7326_v22 = vadd.f32 1.4214138, %v7318_v34  ;;  %v7319_v50 = vmul.f32 %v19313_v12, %v7311_v5  ;;  %v7281_v28 = vmul.f32 0.3275911, %v19344_v9 }
 0x8de   : > { %v7324_v48 = vadd.f32 1.4214138, %v7316_v27  ;;  %v7317_v37 = vmul.f32 %v19321_v43, %v7309_v40  ;;  %v19349_v8 = vpop.eup %17209 }
 0x8df   : > { %v7334_v13 = vmul.f32 %v19296_v32, %v7326_v22  ;;  %v7327_v56 = vadd.f32 1.4214138, %v7319_v50  ;;  %v19353_v63 = vpop.eup %17211  ;;  %v7306_v6 = vmul.f32 1.0614054, %v19349_v8  ;;  %v7289_v34 = vadd.f32 1.0, %v7281_v28 }
 0x8e0   : > { %v7332_v55 = vmul.f32 %v19302_v24, %v7324_v48  ;;  %v7325_v42 = vadd.f32 1.4214138, %v7317_v37  ;;  %v17214_v11 = vpop.eup %17213  ;;  %v7304_v0 = vmul.f32 1.0614054, %v19353_v63 }
 0x8e1   : > { %v7342_v23 = vadd.f32 -0.28449672, %v7334_v13  ;;  %v7335_v44 = vmul.f32 %v19313_v12, %v7327_v56  ;;  %v7314_v5 = vadd.f32 -1.4531521, %v7306_v6  ;;  %17225 = vrcp.f32 %v7289_v34  ;;  %v19360_v48 = vpop.eup %17215 }
 0x8e2   : > { %v7340_v36 = vadd.f32 -0.28449672, %v7332_v55  ;;  %v7333_v7 = vmul.f32 %v19321_v43, %v7325_v42  ;;  %v7312_v40 = vadd.f32 -1.4531521, %v7304_v0  ;;  %v17218_v19 = vpop.eup %17217  ;;  %17227 = vpow2.f32 %v7396_v51 }
 0x8e3   : > { %v7350_v21 = vmul.f32 %v19296_v32, %v7342_v23  ;;  %v7343_v27 = vadd.f32 -0.28449672, %v7335_v44  ;;  %v7322_v47 = vmul.f32 %v19349_v8, %v7314_v5  ;;  %v7307_v23 = vmul.f32 1.0614054, %v19360_v48  ;;  %v17220_v44 = vpop.eup %17219 }
 0x8e4   : > { %v7348_v31 = vmul.f32 %v19302_v24, %v7340_v36  ;;  %v7341_v50 = vadd.f32 -0.28449672, %v7333_v7  ;;  %v7320_v36 = vmul.f32 %v19353_v63, %v7312_v40  ;;  %v17222_v34 = vpop.eup %17221 }
 0x8e5   : > { %v7358_v15 = vadd.f32 0.2548296, %v7350_v21  ;;  %v7351_v13 = vmul.f32 %v19313_v12, %v7343_v27  ;;  %v7315_v28 = vadd.f32 -1.4531521, %v7307_v23  ;;  %v7402_v21 = vmul.f32 1.442695, %v7387_v4  ;;  %v17224_v4 = vpop.eup %17223 }
 0x8e6   : > { %v7356_v22 = vadd.f32 0.2548296, %v7348_v31  ;;  %v7349_v57 = vmul.f32 %v19321_v43, %v7341_v50  ;;  %v7328_v6 = vadd.f32 1.4214138, %v7320_v36  ;;  %v7377_v27 = vsub.f32 0.0, %v19344_v9 }
 0x8e7   : > { %v7366_v52 = vmul.f32 %v19296_v32, %v7358_v15  ;;  %v7359_v37 = vadd.f32 0.2548296, %v7351_v13  ;;  %v7330_v32 = vadd.f32 1.4214138, %v7322_v47  ;;  %17229 = vpow2.f32 %v7402_v21 }
 0x8e8   : > { %v7364_v55 = vmul.f32 %v19302_v24, %v7356_v22  ;;  %v7357_v24 = vadd.f32 0.2548296, %v7349_v57  ;;  %v7336_v5 = vmul.f32 %v19353_v63, %v7328_v6 }
 0x8e9   : > { %v7406_v56 = vmul.f32 %v17214_v11, %v7366_v52  ;;  %v7367_v31 = vmul.f32 %v19313_v12, %v7359_v37  ;;  %v7338_v15 = vmul.f32 %v19349_v8, %v7330_v32  ;;  %v7323_v11 = vmul.f32 %v19360_v48, %v7315_v28 }
 0x8ea   : > { %v7404_v25 = vmul.f32 %v17218_v19, %v7364_v55  ;;  %v7365_v22 = vmul.f32 %v19321_v43, %v7357_v24  ;;  %v7344_v55 = vadd.f32 -0.28449672, %v7336_v5  ;;  %v7385_v43 = vmul.f32 %v7377_v27, %v19344_v9 }
 0x8eb   : > { %v7414_v42 = vsub.f32 1.0, %v7406_v56  ;;  %v7407_v0 = vmul.f32 %v17220_v44, %v7367_v31  ;;  %v7346_v52 = vadd.f32 -0.28449672, %v7338_v15  ;;  %v7331_v13 = vadd.f32 1.4214138, %v7323_v11  ;;  %v19377_v47 = vpop.eup %17225 }
 0x8ec   : > { %v7412_v51 = vsub.f32 1.0, %v7404_v25  ;;  %v7405_v19 = vmul.f32 %v17222_v34, %v7365_v22  ;;  %v7352_v36 = vmul.f32 %v19353_v63, %v7344_v55  ;;  %v17228_v25 = vpop.eup %17227  ;;  %v7305_v44 = vmul.f32 1.0614054, %v19377_v47 }
 0x8ed   : > { %v7422_v7 = vmul.f32 %v7414_v42, %v19284_v14  ;;  %v7415_v40 = vsub.f32 1.0, %v7407_v0  ;;  %v7354_v14 = vmul.f32 %v19349_v8, %v7346_v52  ;;  %v7339_v56 = vmul.f32 %v19360_v48, %v7331_v13 }
 0x8ee   : > { %v7420_v12 = vmul.f32 %v7412_v51, %v19294_v30  ;;  %v7413_v57 = vsub.f32 1.0, %v7405_v19  ;;  %v7237_v31 = vmul.f32 0.5, %v19249_v38  ;;  %v7313_v24 = vadd.f32 -1.4531521, %v7305_v44 }
 0x8ef   : > { %v7430_v50 = vadd.f32 1.0, %v7422_v7  ;;  %v7423_v30 = vmul.f32 %v7415_v40, %v19333_v29  ;;  %v7362_v28 = vadd.f32 0.2548296, %v7354_v14  ;;  %v7347_v21 = vadd.f32 -0.28449672, %v7339_v56 }
 0x8f0   : > { %v7428_v23 = vadd.f32 1.0, %v7420_v12  ;;  %v7421_v9 = vmul.f32 %v7413_v57, %v19341_v18  ;;  %v7398_v15 = vmul.f32 1.442695, %v7385_v43  ;;  %v7321_v18 = vmul.f32 %v19377_v47, %v7313_v24 }
 0x8f1   : > { %v7438_v37 = vmul.f32 %v7430_v50, %v19270_v60  ;;  %v7431_v42 = vadd.f32 1.0, %v7423_v30  ;;  %v7360_v60 = vadd.f32 0.2548296, %v7352_v36  ;;  %v7370_v29 = vmul.f32 %v19349_v8, %v7362_v28  ;;  %v17230_v8 = vpop.eup %17229 }
 0x8f2   : > { %v7436_v32 = vmul.f32 %v7428_v23, %v19286_v54  ;;  %v7355_v54 = vmul.f32 %v19360_v48, %v7347_v21  ;;  %v7429_v34 = vadd.f32 1.0, %v7421_v9  ;;  %v7329_v5 = vadd.f32 1.4214138, %v7321_v18 }
 0x8f3   : > { %7449 = vst.msk [vmem:[#allocation6 + $0x13] sm:$0xff] %vm7446_vm9, %v7438_v37  ;;  %v7439_v6 = vmul.f32 %v7431_v42, %v19288_v45  ;;  %v7368_v51 = vmul.f32 %v19353_v63, %v7360_v60  ;;  %v7410_v11 = vmul.f32 %v17224_v4, %v7370_v29  ;;  %v7266_v45 = vsel %vm7258_vm14, 1.0, %v20329_v39  ;;  %v16434_v42 = vld [vmem:[%s20233_s5 + $0x8] sm:$0xff]  }
 0x8f4   : > { %7447 = vst.msk [vmem:[#allocation6 + $0x3] sm:$0xff] %vm7446_vm9, %v7436_v32  ;;  %v7363_v38 = vadd.f32 0.2548296, %v7355_v54  ;;  %v7437_v27 = vmul.f32 %v7429_v34, %v7237_v31  ;;  %17231 = vpow2.f32 %v7398_v15  ;;  %v7337_v52 = vmul.f32 %v19377_v47, %v7329_v5 }
 0x8f5   : > { %7450 = vst.msk [vmem:[#allocation6 + $0x1b] sm:$0xff] %vm7446_vm9, %v7439_v6  ;;  %v7408_v7 = vmul.f32 %v17228_v25, %v7368_v51  ;;  %v7418_v0 = vsub.f32 1.0, %v7410_v11  ;;  %v7240_v55 = vmul.f32 0.5, %v19260_v46  ;;  %v7267_v23 = vsel %vm7259_vm0, 1.0, %v20329_v39 }
 0x8f6   : > { %v7371_v22 = vmul.f32 %v19360_v48, %v7363_v38  ;;  %7448 = vst.msk [vmem:[#allocation6 + $0xb] sm:$0xff] %vm7446_vm9, %v7437_v27  ;;  %v7242_v48 = vmul.f32 0.5, %v19257_v33  ;;  %v7345_v19 = vadd.f32 -0.28449672, %v7337_v52  ;;  %v7243_v30 = vmul.f32 0.5, %v19263_v2 }
 0x8f7   : > { %v7416_v63 = vsub.f32 1.0, %v7408_v7  ;;  %v7426_v4 = vmul.f32 %v7418_v0, %v7266_v45  ;;  %v7265_v60 = vsel %vm7257_vm3, 1.0, %v20329_v39  ;;  %v7241_v54 = vmul.f32 0.5, %v19306_v61  ;;  %v16438_v45 = vld [vmem:[%s20233_s5 + $0x48] sm:$0xff]  }
 0x8f8   : > { %v7411_v12 = vmul.f32 %v17230_v8, %v7371_v22  ;;  %v7353_v43 = vmul.f32 %v19377_v47, %v7345_v19  ;;  %v16441_v19 = vld [vmem:[%s20233_s5 + $0x60] sm:$0xff]  }
 0x8f9   : > { %v7424_v13 = vmul.f32 %v7416_v63, %v7264_v16  ;;  %v7434_v50 = vadd.f32 1.0, %v7426_v4  ;;  %v16439_v63 = vld [vmem:[%s20233_s5 + $0x50] sm:$0xff]  }
 0x8fa   : > { %v7419_v40 = vsub.f32 1.0, %v7411_v12  ;;  %v7361_v33 = vadd.f32 0.2548296, %v7353_v43  ;;  %v16442_v43 = vld [vmem:[%s20233_s5 + $0x68] sm:$0xff]  }
 0x8fb   : > { %v7432_v35 = vadd.f32 1.0, %v7424_v13  ;;  %v7442_v14 = vmul.f32 %v7434_v50, %v7242_v48  ;;  %v7477_v36 = vld [vmem:[#allocation6 + $0x1] sm:$0xff]  ;;  %v16440_v50 = vld [vmem:[%s20233_s5 + $0x58] sm:$0xff]  }
 0x8fc   : > { %v7427_v56 = vmul.f32 %v7419_v40, %v7267_v23  ;;  %v7480_v37 = vld [vmem:[#allocation6 + $0x19] sm:$0xff]  ;;  %v7369_v44 = vmul.f32 %v19377_v47, %v7361_v33  ;;  %v16435_v47 = vld [vmem:[%s20233_s5 + $0x10] sm:$0xff]  }
 0x8fd   : > { %v7440_v62 = vmul.f32 %v7432_v35, %v7240_v55  ;;  %7453 = vst.msk [vmem:[#allocation6 + $0x33] sm:$0xff] %vm7446_vm9, %v7442_v14  ;;  %v7478_v25 = vld [vmem:[#allocation6 + $0x9] sm:$0xff]  ;;  %v7479_v32 = vld [vmem:[#allocation6 + $0x11] sm:$0xff]  ;;  %v7457_v18 = vld [vmem:[#allocation6] sm:$0xff] }
 0x8fe   : > { %v7435_v57 = vadd.f32 1.0, %v7427_v56  ;;  %v7485_v46 = vpack.c.bf16 %v7478_v25, %v7477_v36  ;;  %v7486_v28 = vpack.c.bf16 %v7480_v37, %v7479_v32  ;;  %v17232_v2 = vpop.eup %17231  ;;  %v7458_v34 = vld [vmem:[#allocation6 + $0x8] sm:$0xff]  ;;  %v7459_v7 = vld [vmem:[#allocation6 + $0x10] sm:$0xff]  ;;  %v7460_v8 = vld [vmem:[#allocation6 + $0x18] sm:$0xff] }
 0x8ff   : > { %7451 = vst.msk [vmem:[#allocation6 + $0x23] sm:$0xff] %vm7446_vm9, %v7440_v62  ;;  %v7409_v31 = vmul.f32 %v17232_v2, %v7369_v44  ;;  %v7465_v27 = vpack.c.bf16 %v7458_v34, %v7457_v18  ;;  %v7466_v22 = vpack.c.bf16 %v7460_v8, %v7459_v7  ;;  %v7701_v52 = vld [vmem:[#allocation6 + $0xa] sm:$0xff]  ;;  %v7700_v48 = vld [vmem:[#allocation6 + $0x2] sm:$0xff]  ;;  %v7702_v55 = vld [vmem:[#allocation6 + $0x12] sm:$0xff] }
 0x900   : > { %v7443_v21 = vmul.f32 %v7435_v57, %v7243_v30  ;;  %15446 = vmatprep.mubr.msk.bf16.mxu1 %vm7446_vm9, %v7485_v46  ;;  %v7708_v40 = vpack.c.bf16 %v7701_v52, %v7700_v48  ;;  %v7703_v35 = vld [vmem:[#allocation6 + $0x1a] sm:$0xff]  ;;  %v16443_v62 = vld [vmem:[%s20233_s5 + $0x70] sm:$0xff]   ;;  %v16444_v32 = vld [vmem:[%s20233_s5 + $0x78] sm:$0xff]  }
 0x901   : > { %15447 = vmatmul.mubr.msk.bf16.vlgmr.msra.gmra.mrb[44].mxu1 %vm7446_vm9, %v7486_v28  ;;  %v7417_v9 = vsub.f32 1.0, %v7409_v31  ;;  %v7709_v14 = vpack.c.bf16 %v7703_v35, %v7702_v55  ;;  %v7831_v33 = vld [vmem:[#allocation6 + $0xb] sm:$0xff]  ;;  %v7830_v25 = vld [vmem:[#allocation6 + $0x3] sm:$0xff]  ;;  %v16445_v28 = vld [vmem:[%s20233_s5 + $0x80] sm:$0xff]  }
 0x902   : > { %7454 = vst.msk [vmem:[#allocation6 + $0x3b] sm:$0xff] %vm7446_vm9, %v7443_v21  ;;  %15455 = vmatpush3.bf16.msra.mxu1 %v19235_v59  ;;  %v16437_v59 = vld [vmem:[%s20233_s5 + $0x40] sm:$0xff]   ;;  %v7838_v46 = vpack.c.bf16 %v7831_v33, %v7830_v25  ;;  %v16450_v18 = vld [vmem:[%s20233_s5 + $0xa8] sm:$0xff]   ;;  %v16451_v7 = vld [vmem:[%s20233_s5 + $0xb0] sm:$0xff]  }
 0x903   : > { %7456 = vst.msk [vmem:[#allocation6 + $0x42] sm:$0x3f] %vm7455_vm1, %v19178_v17  ;;  %15456 = vmatprep.subr.bf16.mxu1 %v16434_v42  ;;  %v7425_v29 = vmul.f32 %v7417_v9, %v7265_v60  ;;  %v16436_v17 = vld [vmem:[%s20233_s5 + $0x18] sm:$0xff]   ;;  %v7833_v21 = vld [vmem:[#allocation6 + $0x1b] sm:$0xff]  ;;  %v16447_v60 = vld [vmem:[%s20233_s5 + $0x90] sm:$0xff]  }
 0x904   : > { %v16446_v9 = vld [vmem:[%s20233_s5 + $0x88] sm:$0xff]   ;;  %v16449_v34 = vld [vmem:[%s20233_s5 + $0xa0] sm:$0xff]   ;;  %v16455_v55 = vld [vmem:[%s20233_s5 + $0xd0] sm:$0xff]  }
 0x905   : > { %v7433_v26 = vadd.f32 1.0, %v7425_v29  ;;  %v8092_v48 = vld [vmem:[#allocation6 + $0x15] sm:$0xff] }
 0x906   : > { %15457 = vmatpush3.bf16.msra.mxu1 %v16434_v42  ;;  %v7481_v61 = vld [vmem:[#allocation6 + $0x21] sm:$0xff]  ;;  %v7832_v42 = vld [vmem:[#allocation6 + $0x13] sm:$0xff] }
 0x907   : > { %15458 = vmatprep.subr.bf16.mxu1 %v16435_v47  ;;  %v7441_v24 = vmul.f32 %v7433_v26, %v7241_v54  ;;  %v7461_v5 = vld [vmem:[#allocation6 + $0x20] sm:$0xff]  ;;  %v7839_v2 = vpack.c.bf16 %v7833_v21, %v7832_v42  ;;  %v7961_v26 = vld [vmem:[#allocation6 + $0xc] sm:$0xff]  ;;  %v17664_v42 = vmov -inf  }
 0x908   : > { %v7704_v56 = vld [vmem:[#allocation6 + $0x22] sm:$0xff]  ;;  %8682 = vst.msk [vmem:[#allocation7] sm:$0x1] %vm8681_vm5, %v17664_v42  ;;  %10159 = vst [vmem:[#allocation11] sm:$0x1] %v17664_v42 }
 0x909   : > { %7452 = vst.msk [vmem:[#allocation6 + $0x2b] sm:$0xff] %vm7446_vm9, %v7441_v24  ;;  %v7484_v6 = vld [vmem:[#allocation6 + $0x39] sm:$0xff]  ;;  %v7834_v31 = vld [vmem:[#allocation6 + $0x23] sm:$0xff]  ;;  %10163 = vst [vmem:[#allocation11 + $0x14] sm:$0xf] %v17664_v42 }
 0x90a   : > { %15459 = vmatpush3.bf16.msra.mxu1 %v16435_v47  ;;  %v7464_v12 = vld [vmem:[#allocation6 + $0x38] sm:$0xff]  ;;  %v7960_v54 = vld [vmem:[#allocation6 + $0x4] sm:$0xff] }
 0x90b   : > { %15460 = vmatprep.subr.bf16.mxu1 %v16436_v17  ;;  %v7707_v57 = vld [vmem:[#allocation6 + $0x3a] sm:$0xff] }
 0x90c   : > { %v7837_v29 = vld [vmem:[#allocation6 + $0x3b] sm:$0xff] }
 0x90d   : > { %v7966_v8 = vld [vmem:[#allocation6 + $0x34] sm:$0xff]  ;;  %v8227_v21 = vld [vmem:[#allocation6 + $0x3e] sm:$0xff] }
 0x90e   : > { %15461 = vmatpush3.bf16.msra.mxu1 %v16436_v17  ;;  %v7836_v17 = vld [vmem:[#allocation6 + $0x33] sm:$0xff] }
 0x90f   : > { %15470 = vmatprep.subr.bf16.mxu1 %v16437_v59  ;;  %v7841_v24 = vpack.c.bf16 %v7837_v29, %v7836_v17  ;;  %v8096_v35 = vld [vmem:[#allocation6 + $0x35] sm:$0xff]  ;;  %v16462_v29 = vld [vmem:[#allocation25 + $0x50] sm:$0xff]  }
 0x910   : > { %v7482_v51 = vld [vmem:[#allocation6 + $0x29] sm:$0xff]  ;;  %v7483_v15 = vld [vmem:[#allocation6 + $0x31] sm:$0xff]  ;;  %v19540_v17 = vld [vmem:[%s20241_s13 + $0x3] ss:$0 sm:$0xff] }
 0x911   : > { %v7487_v11 = vpack.c.bf16 %v7482_v51, %v7481_v61  ;;  %v7488_v38 = vpack.c.bf16 %v7484_v6, %v7483_v15  ;;  %v7462_v0 = vld [vmem:[#allocation6 + $0x28] sm:$0xff]  ;;  %v7463_v4 = vld [vmem:[#allocation6 + $0x30] sm:$0xff]  ;;  %v7968_v6 = vpack.c.bf16 %v7961_v26, %v7960_v54  ;;  %v7963_v61 = vld [vmem:[#allocation6 + $0x1c] sm:$0xff] }
 0x912   : > { %v7467_v16 = vpack.c.bf16 %v7462_v0, %v7461_v5  ;;  %v7468_v13 = vpack.c.bf16 %v7464_v12, %v7463_v4  ;;  %v7705_v23 = vld [vmem:[#allocation6 + $0x2a] sm:$0xff]  ;;  %v7706_v30 = vld [vmem:[#allocation6 + $0x32] sm:$0xff]  ;;  %v7967_v0 = vld [vmem:[#allocation6 + $0x3c] sm:$0xff] }
 0x913   : > { %15450 = vmatprep.mubr.msk.bf16.mxu1 %vm7446_vm9, %v7487_v11  ;;  %v7710_v37 = vpack.c.bf16 %v7705_v23, %v7704_v56  ;;  %v7711_v36 = vpack.c.bf16 %v7707_v57, %v7706_v30  ;;  %v7835_v44 = vld [vmem:[#allocation6 + $0x2b] sm:$0xff]  ;;  %v7962_v11 = vld [vmem:[#allocation6 + $0x14] sm:$0xff]  ;;  %v8093_v12 = vld [vmem:[#allocation6 + $0x1d] sm:$0xff] }
 0x914   : > { %15451 = vmatmul.mubr.msk.bf16.gmra.mrb[48].mxu1 %vm7446_vm9, %v7488_v38  ;;  %v7840_v47 = vpack.c.bf16 %v7835_v44, %v7834_v31  ;;  %v7964_v51 = vld [vmem:[#allocation6 + $0x24] sm:$0xff]  ;;  %v7965_v15 = vld [vmem:[#allocation6 + $0x2c] sm:$0xff]  ;;  %v7969_v38 = vpack.c.bf16 %v7963_v61, %v7962_v11  ;;  %v16453_v4 = vld [vmem:[%s20233_s5 + $0xc0] sm:$0xff]  }
 0x915   : > { %15462 = vmatprep.mubr.msk.bf16.mxu1 %vm7446_vm9, %v7465_v27  ;;  %v7970_v27 = vpack.c.bf16 %v7965_v15, %v7964_v51  ;;  %v8091_v5 = vld [vmem:[#allocation6 + $0xd] sm:$0xff]  ;;  %v8094_v52 = vld [vmem:[#allocation6 + $0x25] sm:$0xff]  ;;  %v8097_v23 = vld [vmem:[#allocation6 + $0x3d] sm:$0xff] }
 0x916   : > { %v8221_v56 = vld [vmem:[#allocation6 + $0xe] sm:$0xff]  ;;  %v8223_v30 = vld [vmem:[#allocation6 + $0x1e] sm:$0xff]  ;;  %v8224_v57 = vld [vmem:[#allocation6 + $0x26] sm:$0xff] }
 0x917   : > { %v8225_v33 = vld [vmem:[#allocation6 + $0x2e] sm:$0xff]  ;;  %v16458_v31 = vld [vmem:[#allocation25 + $0x40] sm:$0xff]  }
 0x918   : > { %v16463_v54 = vld [vmem:[#allocation25 + $0x38] sm:$0xff]  }
 0x919   : > { %v16464_v26 = vld [vmem:[#allocation25 + $0x58] sm:$0xff]  }
 0x91c   : > { %15463 = vmatmul.mubr.msk.bf16.vlgmr.msra.gmra.mrb[44].mxu1 %vm7446_vm9, %v7466_v22  ;;  %v8090_v22 = vld [vmem:[#allocation6 + $0x5] sm:$0xff] }
 0x91d   : > { %15471 = vmatpush3.bf16.msra.mxu1 %v16437_v59  ;;  %15466 = vmatprep.mubr.msk.bf16.mxu1 %vm7446_vm9, %v7467_v16  ;;  %v16448_v59 = vld [vmem:[%s20233_s5 + $0x98] sm:$0xff]  }
 0x91e   : > { %15472 = vmatprep.subr.bf16.mxu1 %v16438_v45  ;;  %v16452_v16 = vld [vmem:[%s20233_s5 + $0xb8] sm:$0xff]  }
 0x921   : > { %15473 = vmatpush3.bf16.msra.mxu1 %v16438_v45  ;;  %v7971_v45 = vpack.c.bf16 %v7967_v0, %v7966_v8 }
 0x922   : > { %15474 = vmatprep.subr.bf16.mxu1 %v16439_v63 }
 0x924   : > { %15467 = vmatmul.mubr.msk.bf16.gmra.mrb[48].mxu1 %vm7446_vm9, %v7468_v13  ;;  %v8095_v13 = vld [vmem:[#allocation6 + $0x2d] sm:$0xff] }
 0x925   : > { %15475 = vmatpush3.bf16.msra.mxu1 %v16439_v63  ;;  %15478 = vmatprep.mubr.msk.bf16.mxu1 %vm7446_vm9, %v7708_v40  ;;  %v8098_v63 = vpack.c.bf16 %v8091_v5, %v8090_v22  ;;  %v16454_v40 = vld [vmem:[%s20233_s5 + $0xc8] sm:$0xff]  }
 0x926   : > { %15476 = vmatprep.subr.bf16.mxu1 %v16440_v50 }
 0x929   : > { %15477 = vmatpush3.bf16.msra.mxu1 %v16440_v50  ;;  %v8099_v50 = vpack.c.bf16 %v8093_v12, %v8092_v48 }
 0x92a   : > { %15486 = vmatprep.subr.bf16.mxu1 %v16441_v19 }
 0x92c   : > { %15479 = vmatmul.mubr.msk.bf16.vlgmr.msra.gmra.mrb[44].mxu1 %vm7446_vm9, %v7709_v14  ;;  %v8220_v14 = vld [vmem:[#allocation6 + $0x6] sm:$0xff] }
 0x92d   : > { %15487 = vmatpush3.bf16.msra.mxu1 %v16441_v19  ;;  %15482 = vmatprep.mubr.msk.bf16.mxu1 %vm7446_vm9, %v7710_v37  ;;  %v8100_v19 = vpack.c.bf16 %v8095_v13, %v8094_v52  ;;  %v16456_v37 = vld [vmem:[%s20233_s5 + $0xd8] sm:$0xff]   ;;  %v19554_v13 = vld [vmem:[%s20241_s13 + $0x4] ss:$0 sm:$0xff] }
 0x92e   : > { %15488 = vmatprep.subr.bf16.mxu1 %v16442_v43 }
 0x931   : > { %15489 = vmatpush3.bf16.msra.mxu1 %v16442_v43  ;;  %v8101_v43 = vpack.c.bf16 %v8097_v23, %v8096_v35  ;;  %v19559_v23 = vadd.f32 %v19268_v1, %v19554_v13 }
 0x932   : > { %15490 = vmatprep.subr.bf16.mxu1 %v16443_v62 }
 0x934   : > { %15483 = vmatmul.mubr.msk.bf16.gmra.mrb[48].mxu1 %vm7446_vm9, %v7711_v36  ;;  %v8222_v36 = vld [vmem:[#allocation6 + $0x16] sm:$0xff] }
 0x935   : > { %15491 = vmatpush3.bf16.msra.mxu1 %v16443_v62  ;;  %15494 = vmatprep.mubr.msk.bf16.mxu1 %vm7446_vm9, %v7838_v46  ;;  %v8228_v62 = vpack.c.bf16 %v8221_v56, %v8220_v14  ;;  %v8229_v25 = vpack.c.bf16 %v8223_v30, %v8222_v36  ;;  %v8230_v46 = vpack.c.bf16 %v8225_v33, %v8224_v57 }
 0x936   : > { %15492 = vmatprep.subr.bf16.mxu1 %v16444_v32  ;;  %v19563_v14 = vadd.f32 %v19275_v49, %v19554_v13 }
 0x939   : > { %15493 = vmatpush3.bf16.msra.mxu1 %v16444_v32  ;;  %v19516_v32 = vld [vmem:[#allocation12 + $0xf] sm:$0xff] }
 0x93a   : > { %15502 = vmatprep.subr.bf16.mxu1 %v16445_v28  ;;  %15570 = vmatprep.mubr.msk.bf16.mxu0 %vm17665_vm6, %v19516_v32 }
 0x93c   : > { %15495 = vmatmul.mubr.msk.bf16.vlgmr.msra.gmra.mrb[44].mxu1 %vm7446_vm9, %v7839_v2  ;;  %v16457_v2 = vld [vmem:[#allocation25 + $0x20] sm:$0xff]  }
 0x93d   : > { %15503 = vmatpush3.bf16.msra.mxu1 %v16445_v28  ;;  %15498 = vmatprep.mubr.msk.bf16.mxu1 %vm7446_vm9, %v7840_v47  ;;  %v8226_v28 = vld [vmem:[#allocation6 + $0x36] sm:$0xff]  ;;  %v16460_v47 = vld [vmem:[#allocation25 + $0x48] sm:$0xff]  }
 0x93e   : > { %15504 = vmatprep.subr.bf16.mxu1 %v16446_v9  ;;  %v8231_v44 = vpack.c.bf16 %v8227_v21, %v8226_v28  ;;  %15563 = vmatpush3.bf16.msra.mxu0 %v16457_v2 }
 0x93f   : > { %15564 = vmatprep.subr.bf16.mxu0 %v19516_v32 }
 0x941   : > { %15505 = vmatpush3.bf16.msra.mxu1 %v16446_v9  ;;  %v16459_v9 = vld [vmem:[#allocation25 + $0x28] sm:$0xff]  }
 0x942   : > { %15506 = vmatprep.subr.bf16.mxu1 %v16447_v60  ;;  %15565 = vmatpush3.bf16.msra.mxu0 %v16459_v9 }
 0x943   : > { %15566 = vmatprep.subr.bf16.mxu0 %v19516_v32 }
 0x944   : > { %15499 = vmatmul.mubr.msk.bf16.gmra.mrb[48].mxu1 %vm7446_vm9, %v7841_v24 }
 0x945   : > { %15507 = vmatpush3.bf16.msra.mxu1 %v16447_v60  ;;  %15510 = vmatprep.mubr.msk.bf16.mxu1 %vm7446_vm9, %v7968_v6  ;;  %v16461_v60 = vld [vmem:[#allocation25 + $0x30] sm:$0xff]  }
 0x946   : > { %15508 = vmatprep.subr.bf16.mxu1 %v16448_v59  ;;  %15567 = vmatpush3.bf16.msra.mxu0 %v16461_v60 }
 0x947   : > { %15568 = vmatprep.subr.bf16.mxu0 %v19516_v32 }
 0x949   : > { %15509 = vmatpush3.bf16.msra.mxu1 %v16448_v59 }
 0x94a   : > { %15518 = vmatprep.subr.bf16.mxu1 %v16449_v34  ;;  %15569 = vmatpush3.bf16.msra.mxu0 %v16463_v54 }
 0x94b   : > { %15574 = vmatprep.subr.bf16.mxu0 %v19516_v32 }
 0x94c   : > { %15511 = vmatmul.mubr.msk.bf16.vlgmr.msra.gmra.mrb[44].mxu1 %vm7446_vm9, %v7969_v38 }
 0x94d   : > { %15519 = vmatpush3.bf16.msra.mxu1 %v16449_v34  ;;  %15514 = vmatprep.mubr.msk.bf16.mxu1 %vm7446_vm9, %v7970_v27 }
 0x94e   : > { %15520 = vmatprep.subr.bf16.mxu1 %v16450_v18 }
 0x951   : > { %15521 = vmatpush3.bf16.msra.mxu1 %v16450_v18 }
 0x952   : > { %15522 = vmatprep.subr.bf16.mxu1 %v16451_v7 }
 0x954   : > { %15515 = vmatmul.mubr.msk.bf16.gmra.mrb[48].mxu1 %vm7446_vm9, %v7971_v45 }
 0x955   : > { %15523 = vmatpush3.bf16.msra.mxu1 %v16451_v7  ;;  %15526 = vmatprep.mubr.msk.bf16.mxu1 %vm7446_vm9, %v8098_v63 }
 0x956   : > { %15524 = vmatprep.subr.bf16.mxu1 %v16452_v16 }
 0x959   : > { %15525 = vmatpush3.bf16.msra.mxu1 %v16452_v16 }
 0x95a   : > { %15534 = vmatprep.subr.bf16.mxu1 %v16453_v4 }
 0x95c   : > { %15527 = vmatmul.mubr.msk.bf16.vlgmr.msra.gmra.mrb[44].mxu1 %vm7446_vm9, %v8099_v50 }
 0x95d   : > { %15535 = vmatpush3.bf16.msra.mxu1 %v16453_v4  ;;  %15530 = vmatprep.mubr.msk.bf16.mxu1 %vm7446_vm9, %v8100_v19 }
 0x95e   : > { %15536 = vmatprep.subr.bf16.mxu1 %v16454_v40 }
 0x961   : > { %15537 = vmatpush3.bf16.msra.mxu1 %v16454_v40 }
 0x962   : > { %15538 = vmatprep.subr.bf16.mxu1 %v16455_v55 }
 0x964   : > { %15531 = vmatmul.mubr.msk.bf16.gmra.mrb[48].mxu1 %vm7446_vm9, %v8101_v43 }
 0x965   : > { %15539 = vmatpush3.bf16.msra.mxu1 %v16455_v55  ;;  %15542 = vmatprep.mubr.msk.bf16.mxu1 %vm7446_vm9, %v8228_v62 }
 0x966   : > { %15540 = vmatprep.subr.bf16.mxu1 %v16456_v37 }
 0x969   : > { %15541 = vmatpush3.bf16.msra.mxu1 %v16456_v37  ;;  %v19573_v37 = vadd.f32 %v19281_v20, %v19554_v13 }
 0x96a   : > { %15586 = vmatprep.subr.bf16.mxu1 %v19516_v32 }
 0x96c   : > { %15543 = vmatmul.mubr.msk.bf16.vlgmr.msra.gmra.mrb[44].mxu1 %vm7446_vm9, %v8229_v25 }
 0x96d   : > { %15546 = vmatprep.mubr.msk.bf16.mxu1 %vm7446_vm9, %v8230_v46  ;;  %15587 = vmatpush3.bf16.msra.mxu1 %v16458_v31 }
 0x96e   : > { %15588 = vmatprep.subr.bf16.mxu1 %v19516_v32 }
 0x971   : > { %15589 = vmatpush3.bf16.msra.mxu1 %v16460_v47 }
 0x972   : > { %15590 = vmatprep.subr.bf16.mxu1 %v19516_v32 }
 0x974   : > { %15547 = vmatmul.mubr.msk.bf16.gmra.mrb[48].mxu1 %vm7446_vm9, %v8231_v44 }
 0x975   : > { %15594 = vmatprep.mubr.msk.bf16.mxu1 %vm17665_vm6, %v19516_v32  ;;  %15591 = vmatpush3.bf16.msra.mxu1 %v16462_v29 }
 0x976   : > { %15592 = vmatprep.subr.bf16.mxu1 %v19516_v32 }
 0x979   : > { %15593 = vmatpush3.bf16.msra.mxu1 %v16464_v26 }
 0x97a   : > { %15610 = vmatprep.subr.bf16.mxu1 %v19516_v32 }
 0xa3f   : > { %v15544_v24 = vpop.f32.mrb[44].mxu1 }
 0xa40   : > { %v8353_v59 = vadd.f32 %v15544_v24, %v19540_v17  ;;  %v8311_v6 = vpop.f32.mrb[45].mxu1 }
 0xa41   : > { %v8351_v34 = vadd.f32 %v19540_v17, %v8311_v6  ;;  %v15545_v61 = vpop.f32.mrb[46].mxu1 }
 0xa42   : > { %v8369_v51 = vmul.f32 0.70710677, %v8353_v59  ;;  %v8354_v15 = vadd.f32 %v15545_v61, %v19540_v17  ;;  %v8314_v11 = vpop.f32.mrb[47].mxu1  ;;  %v19581_v33 = vmul.f32 0.5, %v8353_v59 }
 0xa43   : > { %v8367_v38 = vmul.f32 0.70710677, %v8351_v34  ;;  %v8352_v7 = vadd.f32 %v19540_v17, %v8314_v11  ;;  %v19586_v20 = vmul.f32 0.5, %v8351_v34 }
 0xa44   : > { %v8393_v18 = vand.u32 2147483647, %v8369_v51  ;;  %v19545_v27 = vmul.f32 0.70710677, %v8354_v15  ;;  %vm8377_vm7 = vcmp.ge.f32.partialorder %v8369_v51, 0.0  ;;  %v19595_v44 = vmul.f32 0.5, %v8354_v15 }
 0xa45   : > { %v8391_v8 = vand.u32 2147483647, %v8367_v38  ;;  %v19549_v16 = vmul.f32 0.70710677, %v8352_v7  ;;  %vm8375_vm8 = vcmp.ge.f32.partialorder %v8367_v38, 0.0  ;;  %v19593_v21 = vsel %vm8377_vm7, 1.0, %v20329_v39 }
 0xa46   : > { %v8401_v0 = vmul.f32 0.3275911, %v8393_v18  ;;  %v8394_v5 = vand.u32 2147483647, %v19545_v27  ;;  %v8497_v40 = vsub.f32 0.0, %v8393_v18  ;;  %v19597_v2 = vmul.f32 0.5, %v8352_v7 }
 0xa47   : > { %v8399_v22 = vmul.f32 0.3275911, %v8391_v8  ;;  %v15548_v63 = vpop.f32.mrb[48].mxu1  ;;  %v8392_v48 = vand.u32 2147483647, %v19549_v16  ;;  %v8495_v57 = vsub.f32 0.0, %v8391_v8 }
 0xa48   : > { %v8409_v45 = vadd.f32 1.0, %v8401_v0  ;;  %v8402_v12 = vmul.f32 0.3275911, %v8394_v5  ;;  %v8327_v52 = vpop.f32.mrb[49].mxu1  ;;  %v19566_v56 = vadd.f32 %v15548_v63, %v19540_v17  ;;  %v8505_v1 = vmul.f32 %v8497_v40, %v8393_v18 }
 0xa49   : > { %v8407_v4 = vadd.f32 1.0, %v8399_v22  ;;  %v15549_v50 = vpop.f32.mrb[50].mxu1  ;;  %v8400_v35 = vmul.f32 0.3275911, %v8392_v48  ;;  %v19569_v43 = vadd.f32 %v19540_v17, %v8327_v52  ;;  %v8498_v25 = vsub.f32 0.0, %v8394_v5 }
 0xa4a   : > { %17233 = vrcp.f32 %v8409_v45  ;;  %v8410_v19 = vadd.f32 1.0, %v8402_v12  ;;  %v8330_v55 = vpop.f32.mrb[51].mxu1  ;;  %v19576_v30 = vadd.f32 %v15549_v50, %v19540_v17  ;;  %v19579_v49 = vmul.f32 0.70710677, %v19566_v56 }
 0xa4b   : > { %17235 = vrcp.f32 %v8407_v4  ;;  %v8408_v62 = vadd.f32 1.0, %v8400_v35  ;;  %v19584_v36 = vmul.f32 0.70710677, %v19569_v43  ;;  %v8515_v9 = vmul.f32 1.442695, %v8505_v1 }
 0xa4c   : > { %17237 = vrcp.f32 %v8410_v19  ;;  %v8397_v46 = vand.u32 2147483647, %v19579_v49  ;;  %v19590_v28 = vmul.f32 0.70710677, %v19576_v30  ;;  %v19601_v47 = vsel %vm8375_vm8, 1.0, %v20329_v39 }
 0xa4d   : > { %17239 = vrcp.f32 %v8408_v62  ;;  %v8395_v31 = vand.u32 2147483647, %v19584_v36  ;;  %v8503_v60 = vmul.f32 %v8495_v57, %v8391_v8  ;;  %vm8378_vm10 = vcmp.ge.f32.partialorder %v19545_v27, 0.0 }
 0xa4e   : > { %v8405_v29 = vmul.f32 0.3275911, %v8397_v46  ;;  %v8496_v26 = vsub.f32 0.0, %v8392_v48  ;;  %v19607_v59 = vand.u32 2147483647, %v19590_v28  ;;  %v8506_v61 = vmul.f32 %v8498_v25, %v8394_v5 }
 0xa4f   : > { %v8403_v24 = vmul.f32 0.3275911, %v8395_v31  ;;  %v19613_v15 = vadd.f32 %v19540_v17, %v8330_v55  ;;  %v8501_v38 = vsub.f32 0.0, %v8397_v46  ;;  %v8511_v0 = vmul.f32 1.442695, %v8503_v60 }
 0xa50   : > { %v8413_v51 = vadd.f32 1.0, %v8405_v29  ;;  %v8406_v7 = vmul.f32 0.3275911, %v19607_v59  ;;  %vm8376_vm4 = vcmp.ge.f32.partialorder %v19549_v16, 0.0  ;;  %v8504_v63 = vmul.f32 %v8496_v26, %v8392_v48 }
 0xa51   : > { %v8411_v18 = vadd.f32 1.0, %v8403_v24  ;;  %v8499_v12 = vsub.f32 0.0, %v8395_v31  ;;  %v8517_v40 = vmul.f32 1.442695, %v8506_v61  ;;  %v8509_v19 = vmul.f32 %v8501_v38, %v8397_v46 }
 0xa52   : > { %17241 = vrcp.f32 %v8413_v51  ;;  %v8414_v5 = vadd.f32 1.0, %v8406_v7  ;;  %v19626_v55 = vmul.f32 0.70710677, %v19613_v15  ;;  %v19632_v57 = vsel %vm8378_vm10, 1.0, %v20329_v39 }
 0xa53   : > { %17243 = vrcp.f32 %v8411_v18  ;;  %v8513_v25 = vmul.f32 1.442695, %v8504_v63  ;;  %v8507_v29 = vmul.f32 %v8499_v12, %v8395_v31  ;;  %v19640_v24 = vsel %vm8376_vm4, 1.0, %v20329_v39 }
 0xa54   : > { %v19603_v54 = vpop.eup %17233  ;;  %17245 = vpow2.f32 %v8515_v9  ;;  %v19643_v61 = vand.u32 2147483647, %v19626_v55  ;;  %v8502_v31 = vsub.f32 0.0, %v19607_v59  ;;  %vm8381_vm11 = vcmp.ge.f32.partialorder %v19579_v49, 0.0 }
 0xa55   : > { %v19609_v6 = vpop.eup %17235  ;;  %v8425_v34 = vmul.f32 1.0614054, %v19603_v54  ;;  %17247 = vrcp.f32 %v8414_v5  ;;  %vm8379_vm12 = vcmp.ge.f32.partialorder %v19584_v36, 0.0  ;;  %vm8382_vm13 = vcmp.ge.f32.partialorder %v19590_v28, 0.0 }
 0xa56   : > { %v8423_v11 = vmul.f32 1.0614054, %v19609_v6  ;;  %v19618_v22 = vpop.eup %17237  ;;  %17249 = vpow2.f32 %v8511_v0  ;;  %v8404_v18 = vmul.f32 0.3275911, %v19643_v61  ;;  %vm8380_vm14 = vcmp.ge.f32.partialorder %v19626_v55, 0.0 }
 0xa57   : > { %v8433_v8 = vadd.f32 -1.4531521, %v8425_v34  ;;  %v8426_v4 = vmul.f32 1.0614054, %v19618_v22  ;;  %v19622_v52 = vpop.eup %17239  ;;  %v8523_v34 = vmul.f32 1.442695, %v8509_v19  ;;  %17251 = vpow2.f32 %v8517_v40 }
 0xa58   : > { %v8431_v45 = vadd.f32 -1.4531521, %v8423_v11  ;;  %v8424_v48 = vmul.f32 1.0614054, %v19622_v52  ;;  %17253 = vpow2.f32 %v8513_v25  ;;  %vm11158_vm7 = vcmask 1045504  }
 0xa59   : > { %v8441_v17 = vmul.f32 %v19603_v54, %v8433_v8  ;;  %v8434_v62 = vadd.f32 -1.4531521, %v8426_v4  ;;  %17255 = vpow2.f32 %v8523_v34  ;;  %v8412_v4 = vadd.f32 1.0, %v8404_v18 }
 0xa5a   : > { %v8439_v50 = vmul.f32 %v19609_v6, %v8431_v45  ;;  %v8432_v60 = vadd.f32 -1.4531521, %v8424_v48  ;;  %v8519_v45 = vmul.f32 1.442695, %v8507_v29  ;;  %vm11177_vm8 = vcmask 1044480  }
 0xa5b   : > { %v8449_v35 = vadd.f32 1.4214138, %v8441_v17  ;;  %v8442_v46 = vmul.f32 %v19618_v22, %v8434_v62  ;;  %17257 = vrcp.f32 %v8412_v4  ;;  %vm11196_vm10 = vcmask 1043456  }
 0xa5c   : > { %v8447_v1 = vadd.f32 1.4214138, %v8439_v50  ;;  %v8440_v11 = vmul.f32 %v19622_v52, %v8432_v60  ;;  %v19648_v7 = vpop.eup %17241  ;;  %17259 = vpow2.f32 %v8519_v45  ;;  %vm11215_vm4 = vcmask 1042432  }
 0xa5d   : > { %v8457_v9 = vmul.f32 %v19603_v54, %v8449_v35  ;;  %v8450_v51 = vadd.f32 1.4214138, %v8442_v46  ;;  %v19652_v63 = vpop.eup %17243  ;;  %v8429_v17 = vmul.f32 1.0614054, %v19648_v7 }
 0xa5e   : > { %v8455_v26 = vmul.f32 %v19609_v6, %v8447_v1  ;;  %v8448_v0 = vadd.f32 1.4214138, %v8440_v11  ;;  %v17246_v12 = vpop.eup %17245  ;;  %v8427_v35 = vmul.f32 1.0614054, %v19652_v63  ;;  %v8510_v1 = vmul.f32 %v8502_v31, %v19607_v59 }
 0xa5f   : > { %v8465_v27 = vadd.f32 -0.28449672, %v8457_v9  ;;  %v8458_v8 = vmul.f32 %v19618_v22, %v8450_v51  ;;  %v8437_v48 = vadd.f32 -1.4531521, %v8429_v17  ;;  %v19659_v25 = vpop.eup %17247 }
 0xa60   : > { %v8463_v38 = vadd.f32 -0.28449672, %v8455_v26  ;;  %v8456_v19 = vmul.f32 %v19622_v52, %v8448_v0  ;;  %v8435_v29 = vadd.f32 -1.4531521, %v8427_v35  ;;  %v17250_v26 = vpop.eup %17249  ;;  %v8430_v51 = vmul.f32 1.0614054, %v19659_v25 }
 0xa61   : > { %v8473_v16 = vmul.f32 %v19603_v54, %v8465_v27  ;;  %v8466_v40 = vadd.f32 -0.28449672, %v8458_v8  ;;  %v8445_v27 = vmul.f32 %v19648_v7, %v8437_v48  ;;  %v8525_v8 = vmul.f32 1.442695, %v8510_v1  ;;  %v17252_v0 = vpop.eup %17251 }
 0xa62   : > { %v8471_v5 = vmul.f32 %v19609_v6, %v8463_v38  ;;  %v8464_v60 = vadd.f32 -0.28449672, %v8456_v19  ;;  %v8443_v31 = vmul.f32 %v19652_v63, %v8435_v29  ;;  %v8500_v19 = vsub.f32 0.0, %v19643_v61 }
 0xa63   : > { %v8481_v50 = vadd.f32 0.2548296, %v8473_v16  ;;  %v8474_v46 = vmul.f32 %v19618_v22, %v8466_v40  ;;  %v8438_v16 = vadd.f32 -1.4531521, %v8430_v51  ;;  %17261 = vpow2.f32 %v8525_v8 }
 0xa64   : > { %v8479_v62 = vadd.f32 0.2548296, %v8471_v5  ;;  %v8472_v59 = vmul.f32 %v19622_v52, %v8464_v60  ;;  %v8451_v4 = vadd.f32 1.4214138, %v8443_v31 }
 0xa65   : > { %v8489_v9 = vmul.f32 %v19603_v54, %v8481_v50  ;;  %v8482_v38 = vadd.f32 0.2548296, %v8474_v46  ;;  %v8453_v54 = vadd.f32 1.4214138, %v8445_v27  ;;  %v17254_v50 = vpop.eup %17253 }
 0xa66   : > { %v8487_v34 = vmul.f32 %v19609_v6, %v8479_v62  ;;  %v8480_v6 = vadd.f32 0.2548296, %v8472_v59  ;;  %v8459_v1 = vmul.f32 %v19652_v63, %v8451_v4 }
 0xa67   : > { %v8529_v11 = vmul.f32 %v17246_v12, %v8489_v9  ;;  %v8490_v17 = vmul.f32 %v19618_v22, %v8482_v38  ;;  %v8461_v40 = vmul.f32 %v19648_v7, %v8453_v54  ;;  %v8446_v12 = vmul.f32 %v19659_v25, %v8438_v16  ;;  %v17256_v22 = vpop.eup %17255 }
 0xa68   : > { %v8527_v18 = vmul.f32 %v17250_v26, %v8487_v34  ;;  %v8488_v48 = vmul.f32 %v19622_v52, %v8480_v6  ;;  %v8467_v27 = vadd.f32 -0.28449672, %v8459_v1  ;;  %v19677_v51 = vpop.eup %17257  ;;  %v8508_v38 = vmul.f32 %v8500_v19, %v19643_v61 }
 0xa69   : > { %v8537_v5 = vsub.f32 1.0, %v8529_v11  ;;  %v8530_v62 = vmul.f32 %v17252_v0, %v8490_v17  ;;  %v8469_v46 = vadd.f32 -0.28449672, %v8461_v40  ;;  %v8454_v60 = vadd.f32 1.4214138, %v8446_v12  ;;  %v17260_v54 = vpop.eup %17259 }
 0xa6a   : > { %v8535_v45 = vsub.f32 1.0, %v8527_v18  ;;  %v8528_v34 = vmul.f32 %v17254_v50, %v8488_v48  ;;  %v8475_v18 = vmul.f32 %v19652_v63, %v8467_v27  ;;  %v8521_v19 = vmul.f32 1.442695, %v8508_v38 }
 0xa6b   : > { %v8545_v35 = vmul.f32 %v8537_v5, %v19593_v21  ;;  %v8538_v26 = vsub.f32 1.0, %v8530_v62  ;;  %v8477_v11 = vmul.f32 %v19648_v7, %v8469_v46  ;;  %v8462_v52 = vmul.f32 %v19659_v25, %v8454_v60 }
 0xa6c   : > { %v8543_v9 = vmul.f32 %v8535_v45, %v19601_v47  ;;  %v8536_v31 = vsub.f32 1.0, %v8528_v34  ;;  %v8428_v5 = vmul.f32 1.0614054, %v19677_v51  ;;  %v8483_v61 = vadd.f32 0.2548296, %v8475_v18 }
 0xa6d   : > { %v8553_v29 = vadd.f32 1.0, %v8545_v35  ;;  %v8546_v47 = vmul.f32 %v8538_v26, %v19632_v57  ;;  %v8485_v8 = vadd.f32 0.2548296, %v8477_v11  ;;  %v8470_v0 = vadd.f32 -0.28449672, %v8462_v52  ;;  %v17262_v48 = vpop.eup %17261 }
 0xa6e   : > { %v8551_v21 = vadd.f32 1.0, %v8543_v9  ;;  %v8544_v4 = vmul.f32 %v8536_v31, %v19640_v24  ;;  %v8436_v45 = vadd.f32 -1.4531521, %v8428_v5  ;;  %v8491_v12 = vmul.f32 %v19652_v63, %v8483_v61 }
 0xa6f   : > { %v8561_v59 = vmul.f32 %v8553_v29, %v19581_v33  ;;  %v8554_v6 = vadd.f32 1.0, %v8546_v47  ;;  %v8493_v57 = vmul.f32 %v19648_v7, %v8485_v8  ;;  %v8478_v50 = vmul.f32 %v19659_v25, %v8470_v0 }
 0xa70   : > { %v8559_v16 = vmul.f32 %v8551_v21, %v19586_v20  ;;  %v8552_v40 = vadd.f32 1.0, %v8544_v4  ;;  %v8646_v7 = vadd.f32 %v19291_v58, %v19554_v13  ;;  %v8389_v63 = vsel %vm8381_vm11, 1.0, %v20329_v39 }
 0xa71   : > { %v8675_v17 = vadd.f32 %v19559_v23, %v8561_v59  ;;  %v8562_v20 = vmul.f32 %v8554_v6, %v19595_v44  ;;  %v8533_v23 = vmul.f32 %v17256_v22, %v8493_v57  ;;  %v8486_v24 = vadd.f32 0.2548296, %v8478_v50 }
 0xa72   : > { %v8673_v33 = vadd.f32 %v19563_v14, %v8559_v16  ;;  %v8444_v14 = vmul.f32 %v19677_v51, %v8436_v45  ;;  %v8560_v62 = vmul.f32 %v8552_v40, %v19597_v2  ;;  %v8531_v44 = vmul.f32 %v17260_v54, %v8491_v12 }
 0xa73   : > { %8685 = vst.msk [vmem:[#allocation7 + $0x11] sm:$0xff] %vm7446_vm9, %v8675_v17  ;;  %v8676_v35 = vadd.f32 %v19573_v37, %v8562_v20  ;;  %v8541_v1 = vsub.f32 1.0, %v8533_v23  ;;  %v8494_v22 = vmul.f32 %v19659_v25, %v8486_v24  ;;  %v8387_v46 = vsel %vm8379_vm12, 1.0, %v20329_v39 }
 0xa74   : > { %8683 = vst.msk [vmem:[#allocation7 + $0x1] sm:$0xff] %vm7446_vm9, %v8673_v33  ;;  %v8452_v36 = vadd.f32 1.4214138, %v8444_v14  ;;  %v8674_v9 = vadd.f32 %v8646_v7, %v8560_v62  ;;  %v8539_v58 = vsub.f32 1.0, %v8531_v44  ;;  %17263 = vpow2.f32 %v8521_v19 }
 0xa75   : > { %8686 = vst.msk [vmem:[#allocation7 + $0x19] sm:$0xff] %vm7446_vm9, %v8676_v35  ;;  %v8549_v37 = vmul.f32 %v8541_v1, %v8389_v63  ;;  %v8534_v2 = vmul.f32 %v17262_v48, %v8494_v22  ;;  %v8365_v29 = vmul.f32 0.5, %v19566_v56  ;;  %v8363_v27 = vmul.f32 0.5, %v19569_v43  ;;  %v16466_v22 = vld [vmem:[#allocation25 + $0x80] sm:$0xff]  }
 0xa76   : > { %v8460_v60 = vmul.f32 %v19677_v51, %v8452_v36  ;;  %8684 = vst.msk [vmem:[#allocation7 + $0x9] sm:$0xff] %vm7446_vm9, %v8674_v9  ;;  %v8547_v49 = vmul.f32 %v8539_v58, %v8387_v46  ;;  %v8390_v11 = vsel %vm8382_vm13, 1.0, %v20329_v39  ;;  %v8667_v52 = vadd.f32 %v19311_v3, %v19554_v13  ;;  %v16467_v46 = vld [vmem:[#allocation25 + $0x8] sm:$0xff]  }
 0xa77   : > { %v8557_v25 = vadd.f32 1.0, %v8549_v37  ;;  %v8542_v26 = vsub.f32 1.0, %v8534_v2  ;;  %v8659_v47 = vadd.f32 %v19315_v53, %v19554_v13  ;;  %v8366_v18 = vmul.f32 0.5, %v19576_v30  ;;  %v16468_v58 = vld [vmem:[#allocation25 + $0x88] sm:$0xff]   ;;  %v16469_v37 = vld [vmem:[#allocation25 + $0x10] sm:$0xff]  }
 0xa78   : > { %v8468_v34 = vadd.f32 -0.28449672, %v8460_v60  ;;  %v8555_v21 = vadd.f32 1.0, %v8547_v49  ;;  %v8670_v8 = vadd.f32 %v19319_v41, %v19554_v13  ;;  %v8388_v57 = vsel %vm8380_vm14, 1.0, %v20329_v39  ;;  %v16470_v2 = vld [vmem:[#allocation25 + $0x90] sm:$0xff]   ;;  %v16471_v60 = vld [vmem:[#allocation25 + $0x18] sm:$0xff]  }
 0xa79   : > { %v8565_v28 = vmul.f32 %v8557_v25, %v8365_v29  ;;  %v8550_v38 = vmul.f32 %v8542_v26, %v8390_v11  ;;  %v8364_v50 = vmul.f32 0.5, %v19613_v15  ;;  %v8662_v20 = vadd.f32 %v19327_v10, %v19554_v13  ;;  %v16465_v13 = vld [vmem:[#allocation25] sm:$0xff]   ;;  %v16472_v49 = vld [vmem:[#allocation25 + $0x98] sm:$0xff]  }
 0xa7a   : > { %v8476_v59 = vmul.f32 %v19677_v51, %v8468_v34  ;;  %v8563_v31 = vmul.f32 %v8555_v21, %v8363_v27  ;;  %v16473_v27 = vld [vmem:[#allocation25 + $0x60] sm:$0xff]  }
 0xa7b   : > { %v8679_v56 = vadd.f32 %v8667_v52, %v8565_v28  ;;  %v8558_v54 = vadd.f32 1.0, %v8550_v38  ;;  %v16474_v21 = vld [vmem:[#allocation25 + $0xc0] sm:$0xff]   ;;  %v16475_v28 = vld [vmem:[#allocation25 + $0x68] sm:$0xff]  }
 0xa7c   : > { %v8484_v16 = vadd.f32 0.2548296, %v8476_v59  ;;  %v8677_v43 = vadd.f32 %v8659_v47, %v8563_v31  ;;  %v16476_v38 = vld [vmem:[#allocation25 + $0xc8] sm:$0xff]   ;;  %v16477_v59 = vld [vmem:[#allocation25 + $0x70] sm:$0xff]   ;;  %v16479_v31 = vld [vmem:[#allocation25 + $0x78] sm:$0xff]  }
 0xa7d   : > { %v8698_v0 = vld [vmem:[#allocation7 + $0x1] ss:$3 sm:$0xff]  ;;  %8689 = vst.msk [vmem:[#allocation7 + $0x31] sm:$0xff] %vm7446_vm9, %v8679_v56  ;;  %v8566_v3 = vmul.f32 %v8558_v54, %v8366_v18  ;;  %v8692_v17 = vld [vmem:[#allocation7] ss:$3 sm:$0xff] }
 0xa7e   : > { %v8492_v5 = vmul.f32 %v19677_v51, %v8484_v16  ;;  %v17264_v6 = vpop.eup %17263  ;;  %8687 = vst.msk [vmem:[#allocation7 + $0x21] sm:$0xff] %vm7446_vm9, %v8677_v43  ;;  %v8703_v53 = vmax.f32 %v8692_v17, %v8698_v0  ;;  %v8707_v4 = vld [vmem:[#allocation7 + $0x2] ss:$3 sm:$0xff] }
 0xa7f   : > { %v8680_v61 = vadd.f32 %v8670_v8, %v8566_v3  ;;  %v16478_v47 = vld [vmem:[#allocation25 + $0xd0] sm:$0xff]   ;;  %v16480_v56 = vld [vmem:[#allocation25 + $0xd8] sm:$0xff]   ;;  %v16481_v8 = vld [vmem:[#allocation25 + $0xa0] sm:$0xff]  }
 0xa80   : > { %v8532_v30 = vmul.f32 %v17264_v6, %v8492_v5  ;;  %v8712_v33 = vmax.f32 %v8703_v53, %v8707_v4  ;;  %v16482_v5 = vld [vmem:[#allocation25 + $0xa8] sm:$0xff]   ;;  %v16483_v17 = vld [vmem:[#allocation25 + $0xb0] sm:$0xff]   ;;  %v16484_v6 = vld [vmem:[#allocation25 + $0xb8] sm:$0xff]  }
 0xa81   : > { %8690 = vst.msk [vmem:[#allocation7 + $0x39] sm:$0xff] %vm7446_vm9, %v8680_v61 }
 0xa82   : > { %v8540_v41 = vsub.f32 1.0, %v8532_v30  ;;  %8691 = vst.msk [vmem:[#allocation7 + $0x40] sm:$0xff] %vm7446_vm9, %v17664_v42  ;;  %8716 = vst.msk [vmem:[#allocation8 + $0x3] sm:$0xff] %vm7446_vm9, %v8712_v33  ;;  %v16485_v30 = vld [vmem:[%s20236_s8 + $0x40] sm:$0xff]  }
 0xa83   : > { %v16486_v33 = vld [vmem:[%s20236_s8 + $0xc0] sm:$0xff]  }
 0xa84   : > { %v8548_v51 = vmul.f32 %v8540_v41, %v8388_v57  ;;  %v16487_v41 = vld [vmem:[%s20236_s8] sm:$0xff]  }
 0xa85   : > { %v16488_v57 = vld [vmem:[%s20236_s8 + $0x80] sm:$0xff]  }
 0xa86   : > { %v8556_v45 = vadd.f32 1.0, %v8548_v51  ;;  %v16489_v51 = vld [vmem:[%s20236_s8 + $0x48] sm:$0xff]  }
 0xa88   : > { %v8564_v55 = vmul.f32 %v8556_v45, %v8364_v50  ;;  %v16490_v50 = vld [vmem:[%s20236_s8 + $0xc8] sm:$0xff]  }
 0xa89   : > { %v8702_v12 = vld [vmem:[#allocation7 + $0x31] ss:$3 sm:$0xff]  ;;  %v8711_v35 = vld [vmem:[#allocation7 + $0x32] ss:$3 sm:$0xff] }
 0xa8a   : > { %v8678_v40 = vadd.f32 %v8662_v20, %v8564_v55  ;;  %v16491_v45 = vld [vmem:[%s20236_s8 + $0x8] sm:$0xff]   ;;  %v16493_v55 = vld [vmem:[%s20236_s8 + $0x50] sm:$0xff]  }
 0xa8b   : > { %v16492_v20 = vld [vmem:[%s20236_s8 + $0x88] sm:$0xff]  }
 0xa8c   : > { %8688 = vst.msk [vmem:[#allocation7 + $0x29] sm:$0xff] %vm7446_vm9, %v8678_v40  ;;  %v16494_v40 = vld [vmem:[%s20236_s8 + $0xd0] sm:$0xff]  }
 0xa93   : > { %v8694_v19 = vld [vmem:[#allocation7 + $0x18] ss:$3 sm:$0xff]  ;;  %v8696_v23 = vld [vmem:[#allocation7 + $0x30] ss:$3 sm:$0xff]  ;;  %v8709_v62 = vld [vmem:[#allocation7 + $0x1a] ss:$3 sm:$0xff] }
 0xa94   : > { %v8700_v24 = vld [vmem:[#allocation7 + $0x19] ss:$3 sm:$0xff]  ;;  %v8705_v7 = vmax.f32 %v8696_v23, %v8702_v12 }
 0xa95   : > { %v8704_v14 = vmax.f32 %v8694_v19, %v8700_v24  ;;  %v16495_v12 = vld [vmem:[%s20236_s8 + $0x10] sm:$0xff]   ;;  %v16497_v23 = vld [vmem:[%s20236_s8 + $0x58] sm:$0xff]  }
 0xa96   : > { %v8714_v48 = vmax.f32 %v8705_v7, %v8711_v35  ;;  %v16496_v19 = vld [vmem:[%s20236_s8 + $0x90] sm:$0xff]   ;;  %v16498_v24 = vld [vmem:[%s20236_s8 + $0xd8] sm:$0xff]   ;;  %v16501_v35 = vld [vmem:[%s20236_s8 + $0x60] sm:$0xff]  }
 0xa97   : > { %v8713_v44 = vmax.f32 %v8704_v14, %v8709_v62  ;;  %v16499_v14 = vld [vmem:[%s20236_s8 + $0x18] sm:$0xff]   ;;  %v16502_v62 = vld [vmem:[%s20236_s8 + $0xe0] sm:$0xff]  }
 0xa98   : > { %8718 = vst.msk [vmem:[#allocation8 + $0x13] sm:$0xff] %vm7446_vm9, %v8714_v48  ;;  %v16500_v7 = vld [vmem:[%s20236_s8 + $0x98] sm:$0xff]   ;;  %v16504_v48 = vld [vmem:[%s20236_s8 + $0xa0] sm:$0xff]  }
 0xa99   : > { %8717 = vst.msk [vmem:[#allocation8 + $0xb] sm:$0xff] %vm7446_vm9, %v8713_v44  ;;  %8719 = vst.msk [vmem:[#allocation8 + $0x18] sm:$0xff] %vm7446_vm9, %v19516_v32  ;;  %v16503_v44 = vld [vmem:[%s20236_s8 + $0x20] sm:$0xff]  }
 0xaa0   : > { %v8734_v10 = vld [vmem:[#allocation8 + $0x1] ss:$2 sm:$0xff]  ;;  %v8884_v15 = vld [vmem:[#allocation8 + $0x2] ss:$2 sm:$0xff]  ;;  %v8736_v63 = vld [vmem:[#allocation8 + $0x11] ss:$2 sm:$0xff] }
 0xaa1   : > { %v8886_v1 = vld [vmem:[#allocation8 + $0x12] ss:$2 sm:$0xff]  ;;  %v8737_v36 = vpack.c.bf16 %v8736_v63, %v8734_v10  ;;  %v8968_v18 = vld [vmem:[#allocation8 + $0x3] ss:$2 sm:$0xff]  ;;  %v8970_v54 = vld [vmem:[#allocation8 + $0x13] ss:$2 sm:$0xff] }
 0xaa2   : > { %v8887_v9 = vpack.c.bf16 %v8886_v1, %v8884_v15  ;;  %v8721_v29 = vld [vmem:[#allocation8] ss:$2 sm:$0xff]  ;;  %v8723_v25 = vld [vmem:[#allocation8 + $0x10] ss:$2 sm:$0xff]  ;;  %v8971_v0 = vpack.c.bf16 %v8970_v54, %v8968_v18  ;;  %v9136_v53 = vld [vmem:[#allocation8 + $0x5] ss:$2 sm:$0xff] }
 0xaa3   : > { %15571 = vmatmul.mubr.msk.bf16.vlgmr.msra.gmra.mrb[32].mxu0 %vm7446_vm9, %v8737_v36  ;;  %v9052_v26 = vld [vmem:[#allocation8 + $0x4] ss:$2 sm:$0xff]  ;;  %v9054_v34 = vld [vmem:[#allocation8 + $0x14] ss:$2 sm:$0xff]  ;;  %v8724_v11 = vpack.c.bf16 %v8723_v25, %v8721_v29  ;;  %v9138_v4 = vld [vmem:[#allocation8 + $0x15] ss:$2 sm:$0xff] }
 0xaa4   : > { %15595 = vmatmul.mubr.msk.bf16.vlgmr.msra.gmra.mrb[52].mxu1 %vm7446_vm9, %v8887_v9  ;;  %15575 = vmatpush3.bf16.msra.mxu0 %v16465_v13  ;;  %v9055_v52 = vpack.c.bf16 %v9054_v34, %v9052_v26  ;;  %v9220_v16 = vld [vmem:[#allocation8 + $0x6] ss:$2 sm:$0xff]  ;;  %v9222_v43 = vld [vmem:[#allocation8 + $0x16] ss:$2 sm:$0xff]  ;;  %v9139_v61 = vpack.c.bf16 %v9138_v4, %v9136_v53 }
 0xaa5   : > { %15611 = vmatpush3.bf16.msra.mxu1 %v16466_v22  ;;  %15576 = vmatprep.subr.bf16.mxu0 %v19516_v32  ;;  %v9223_v3 = vpack.c.bf16 %v9222_v43, %v9220_v16  ;;  %v16505_v10 = vld [vmem:[%s20236_s8 + $0x68] sm:$0xff]   ;;  %v16509_v1 = vld [vmem:[%s20236_s8 + $0x70] sm:$0xff]  }
 0xaa6   : > { %15612 = vmatprep.subr.bf16.mxu1 %v19516_v32  ;;  %15582 = vmatprep.mubr.msk.bf16.mxu0 %vm17665_vm6, %v19516_v32  ;;  %v16506_v13 = vld [vmem:[%s20236_s8 + $0xe8] sm:$0xff]   ;;  %v16510_v22 = vld [vmem:[%s20236_s8 + $0xf0] sm:$0xff]  }
 0xaa7   : > { %15618 = vmatprep.mubr.msk.bf16.mxu1 %vm17665_vm6, %v19516_v32  ;;  %v16507_v15 = vld [vmem:[%s20236_s8 + $0x28] sm:$0xff]   ;;  %v16511_v36 = vld [vmem:[%s20236_s8 + $0x30] sm:$0xff]  }
 0xaa8   : > { %15577 = vmatpush3.bf16.msra.mxu0 %v16467_v46  ;;  %v16508_v63 = vld [vmem:[%s20236_s8 + $0xa8] sm:$0xff]   ;;  %v16512_v9 = vld [vmem:[%s20236_s8 + $0xb0] sm:$0xff]   ;;  %v16513_v46 = vld [vmem:[%s20236_s8 + $0x78] sm:$0xff]  }
 0xaa9   : > { %15613 = vmatpush3.bf16.msra.mxu1 %v16468_v58  ;;  %15578 = vmatprep.subr.bf16.mxu0 %v19516_v32  ;;  %v16514_v58 = vld [vmem:[%s20236_s8 + $0xf8] sm:$0xff]  }
 0xaaa   : > { %15614 = vmatprep.subr.bf16.mxu1 %v19516_v32 }
 0xaac   : > { %15579 = vmatpush3.bf16.msra.mxu0 %v16469_v37  ;;  %v16515_v37 = vld [vmem:[%s20236_s8 + $0x38] sm:$0xff]  }
 0xaad   : > { %15615 = vmatpush3.bf16.msra.mxu1 %v16470_v2  ;;  %15580 = vmatprep.subr.bf16.mxu0 %v19516_v32  ;;  %v16516_v2 = vld [vmem:[%s20236_s8 + $0xb8] sm:$0xff]  }
 0xaae   : > { %15616 = vmatprep.subr.bf16.mxu1 %v19516_v32 }
 0xab0   : > { %15581 = vmatpush3.bf16.msra.mxu0 %v16471_v60  ;;  %v16517_v60 = vld [vmem:[%s20236_s8 + $0x140] sm:$0xff]  }
 0xab1   : > { %15617 = vmatpush3.bf16.msra.mxu1 %v16472_v49  ;;  %15598 = vmatprep.subr.bf16.mxu0 %v19516_v32 }
 0xab2   : > { %15634 = vmatprep.subr.bf16.mxu1 %v19516_v32 }
 0xab3   : > { %15583 = vmatmul.mubr.msk.bf16.vlgmr.msra.gmra.mrb[36].mxu0 %vm7446_vm9, %v8724_v11 }
 0xab4   : > { %15619 = vmatmul.mubr.msk.bf16.vlgmr.msra.gmra.mrb[56].mxu1 %vm7446_vm9, %v9055_v52  ;;  %15599 = vmatpush3.bf16.msra.mxu0 %v16473_v27 }
 0xab5   : > { %15635 = vmatpush3.bf16.msra.mxu1 %v16474_v21  ;;  %15600 = vmatprep.subr.bf16.mxu0 %v19516_v32 }
 0xab6   : > { %15636 = vmatprep.subr.bf16.mxu1 %v19516_v32  ;;  %15606 = vmatprep.mubr.msk.bf16.mxu0 %vm17665_vm6, %v19516_v32 }
 0xab7   : > { %15642 = vmatprep.mubr.msk.bf16.mxu1 %vm17665_vm6, %v19516_v32 }
 0xab8   : > { %15601 = vmatpush3.bf16.msra.mxu0 %v16475_v28 }
 0xab9   : > { %15637 = vmatpush3.bf16.msra.mxu1 %v16476_v38  ;;  %15602 = vmatprep.subr.bf16.mxu0 %v19516_v32 }
 0xaba   : > { %15638 = vmatprep.subr.bf16.mxu1 %v19516_v32 }
 0xabc   : > { %15603 = vmatpush3.bf16.msra.mxu0 %v16477_v59 }
 0xabd   : > { %15639 = vmatpush3.bf16.msra.mxu1 %v16478_v47  ;;  %15604 = vmatprep.subr.bf16.mxu0 %v19516_v32 }
 0xabe   : > { %15640 = vmatprep.subr.bf16.mxu1 %v19516_v32 }
 0xac0   : > { %15605 = vmatpush3.bf16.msra.mxu0 %v16479_v31 }
 0xac1   : > { %15641 = vmatpush3.bf16.msra.mxu1 %v16480_v56  ;;  %15622 = vmatprep.subr.bf16.mxu0 %v19516_v32 }
 0xac2   : > { %14747 = vmatprep.subr.bf16.mxu1 %v16486_v33 }
 0xac3   : > { %15607 = vmatmul.mubr.msk.bf16.vlgmr.msra.gmra.mrb[40].mxu0 %vm7446_vm9, %v8971_v0 }
 0xac4   : > { %15643 = vmatmul.mubr.msk.bf16.vlgmr.msra.gmra.mrb[60].mxu1 %vm7446_vm9, %v9223_v3  ;;  %15623 = vmatpush3.bf16.msra.mxu0 %v16481_v8 }
 0xac5   : > { %15630 = vmatprep.mubr.msk.bf16.mxu0 %vm17665_vm6, %v19516_v32  ;;  %15624 = vmatprep.subr.bf16.mxu0 %v19516_v32 }
 0xac6   : > { %14748 = vmatpush3.bf16.msra.mxu1 %v16488_v57 }
 0xac7   : > { %14749 = vmatprep.subr.bf16.mxu1 %v16490_v50 }
 0xac8   : > { %15625 = vmatpush3.bf16.msra.mxu0 %v16482_v5 }
 0xac9   : > { %15626 = vmatprep.subr.bf16.mxu0 %v19516_v32 }
 0xaca   : > { %14750 = vmatpush3.bf16.msra.mxu1 %v16492_v20 }
 0xacb   : > { %14751 = vmatprep.subr.bf16.mxu1 %v16494_v40 }
 0xacc   : > { %15627 = vmatpush3.bf16.msra.mxu0 %v16483_v17 }
 0xacd   : > { %15628 = vmatprep.subr.bf16.mxu0 %v19516_v32 }
 0xace   : > { %14752 = vmatpush3.bf16.msra.mxu1 %v16496_v19 }
 0xacf   : > { %14753 = vmatprep.subr.bf16.mxu1 %v16498_v24 }
 0xad0   : > { %15629 = vmatpush3.bf16.msra.mxu0 %v16484_v6 }
 0xad1   : > { %14725 = vmatprep.subr.bf16.mxu0 %v16485_v30 }
 0xad2   : > { %14754 = vmatpush3.bf16.msra.mxu1 %v16500_v7 }
 0xad3   : > { %15631 = vmatmul.mubr.msk.bf16.vlgmr.msra.gmra.mrb[44].mxu0 %vm7446_vm9, %v9139_v61  ;;  %14755 = vmatprep.subr.bf16.mxu1 %v16502_v62 }
 0xad4   : > { %14726 = vmatpush3.bf16.msra.mxu0 %v16487_v41 }
 0xad5   : > { %14727 = vmatprep.subr.bf16.mxu0 %v16489_v51 }
 0xad6   : > { %14756 = vmatpush3.bf16.msra.mxu1 %v16504_v48 }
 0xad7   : > { %14757 = vmatprep.subr.bf16.mxu1 %v16506_v13 }
 0xad8   : > { %14728 = vmatpush3.bf16.msra.mxu0 %v16491_v45  ;;  %v9303_v45 = vld [vmem:[%s20241_s13 + $0x5] ss:$0 sm:$0xff] }
 0xad9   : > { %14729 = vmatprep.subr.bf16.mxu0 %v16493_v55 }
 0xada   : > { %14758 = vmatpush3.bf16.msra.mxu1 %v16508_v63 }
 0xadb   : > { %14759 = vmatprep.subr.bf16.mxu1 %v16510_v22 }
 0xadc   : > { %14730 = vmatpush3.bf16.msra.mxu0 %v16495_v12 }
 0xadd   : > { %14731 = vmatprep.subr.bf16.mxu0 %v16497_v23 }
 0xade   : > { %14760 = vmatpush3.bf16.msra.mxu1 %v16512_v9 }
 0xadf   : > { %14761 = vmatprep.subr.bf16.mxu1 %v16514_v58 }
 0xae0   : > { %14732 = vmatpush3.bf16.msra.mxu0 %v16499_v14 }
 0xae1   : > { %14733 = vmatprep.subr.bf16.mxu0 %v16501_v35 }
 0xae2   : > { %14762 = vmatpush3.bf16.msra.mxu1 %v16516_v2 }
 0xae3   : > { %15646 = vmatprep.subr.bf16.mxu1 %v19516_v32 }
 0xae4   : > { %14734 = vmatpush3.bf16.msra.mxu0 %v16503_v44 }
 0xae5   : > { %14735 = vmatprep.subr.bf16.mxu0 %v16505_v10 }
 0xae8   : > { %14736 = vmatpush3.bf16.msra.mxu0 %v16507_v15 }
 0xae9   : > { %14737 = vmatprep.subr.bf16.mxu0 %v16509_v1 }
 0xaec   : > { %14738 = vmatpush3.bf16.msra.mxu0 %v16511_v36 }
 0xaed   : > { %14739 = vmatprep.subr.bf16.mxu0 %v16513_v46 }
 0xaf0   : > { %14740 = vmatpush3.bf16.msra.mxu0 %v16515_v37 }
 0xaf1   : > { %14769 = vmatprep.subr.bf16.mxu0 %v16517_v60 }
 0xb76   : > { %v8808_v49 = vpop.f32.mrb[32].mxu0 }
 0xb77   : > { %v8958_v29 = vpop.f32.mrb[52].mxu1  ;;  %v15572_v25 = vpop.f32.mrb[33].mxu0 }
 0xb78   : > { %v15596_v26 = vpop.f32.mrb[53].mxu1  ;;  %v8811_v34 = vpop.f32.mrb[34].mxu0 }
 0xb79   : > { %v8961_v27 = vpop.f32.mrb[54].mxu1  ;;  %v15573_v21 = vpop.f32.mrb[35].mxu0 }
 0xb7a   : > { %v15597_v11 = vpop.f32.mrb[55].mxu1 }
 0xb86   : > { %v8876_v52 = vpop.f32.mrb[36].mxu0 }
 0xb87   : > { %v9126_v28 = vpop.f32.mrb[56].mxu1  ;;  %v8877_v38 = vadd.f32 %v8876_v52, %v8808_v49  ;;  %v15584_v59 = vpop.f32.mrb[37].mxu0 }
 0xb88   : > { %v15620_v47 = vpop.f32.mrb[57].mxu1  ;;  %v8879_v31 = vpop.f32.mrb[38].mxu0 }
 0xb89   : > { %v9129_v56 = vpop.f32.mrb[58].mxu1  ;;  %v8880_v18 = vadd.f32 %v8879_v31, %v8811_v34  ;;  %v15585_v54 = vpop.f32.mrb[39].mxu0  ;;  %v8965_v32 = vadd.f32 %v8958_v29, %v8877_v38 }
 0xb8a   : > { %v15621_v16 = vpop.f32.mrb[59].mxu1 }
 0xb8b   : > { %v8966_v43 = vadd.f32 %v8961_v27, %v8880_v18 }
 0xb96   : > { %v9042_v8 = vpop.f32.mrb[40].mxu0 }
 0xb97   : > { %v9294_v0 = vpop.f32.mrb[60].mxu1  ;;  %v9049_v3 = vadd.f32 %v9042_v8, %v8965_v32  ;;  %v15608_v5 = vpop.f32.mrb[41].mxu0 }
 0xb98   : > { %v15644_v17 = vpop.f32.mrb[61].mxu1  ;;  %v9045_v6 = vpop.f32.mrb[42].mxu0 }
 0xb99   : > { %v9297_v53 = vpop.f32.mrb[62].mxu1  ;;  %v9050_v4 = vadd.f32 %v9045_v6, %v8966_v43  ;;  %v15609_v61 = vpop.f32.mrb[43].mxu0  ;;  %v9133_v33 = vadd.f32 %v9126_v28, %v9049_v3 }
 0xb9a   : > { %v15645_v30 = vpop.f32.mrb[63].mxu1 }
 0xb9b   : > { %v9134_v41 = vadd.f32 %v9129_v56, %v9050_v4 }
 0xba6   : > { %v9210_v57 = vpop.f32.mrb[44].mxu0 }
 0xba7   : > { %v9217_v51 = vadd.f32 %v9210_v57, %v9133_v33  ;;  %v15632_v50 = vpop.f32.mrb[45].mxu0 }
 0xba8   : > { %v9213_v20 = vpop.f32.mrb[46].mxu0 }
 0xba9   : > { %v9301_v55 = vadd.f32 %v9294_v0, %v9217_v51  ;;  %v9218_v40 = vadd.f32 %v9213_v20, %v9134_v41  ;;  %v15633_v12 = vpop.f32.mrb[47].mxu0  ;;  %v19879_v41 = vld [vmem:[#allocation12 + $0xf] sm:$0xff] }
 0xbaa   : > { %v16519_v20 = vld [vmem:[%s20236_s8 + $0x180] sm:$0xff]  }
 0xbab   : > { %v9304_v19 = vadd.f32 %v9303_v45, %v9301_v55  ;;  %v9302_v23 = vadd.f32 %v9297_v53, %v9218_v40 }
 0xbad   : > { %v9308_v24 = vmul.f32 0.70710677, %v9304_v19  ;;  %v9305_v14 = vadd.f32 %v9303_v45, %v9302_v23  ;;  %v9306_v5 = vmul.f32 0.5, %v9304_v19  ;;  %v16518_v45 = vld [vmem:[%s20236_s8 + $0x100] sm:$0xff]  }
 0xbaf   : > { %v9314_v7 = vand.u32 2147483647, %v9308_v24  ;;  %v9309_v35 = vmul.f32 0.70710677, %v9305_v14  ;;  %vm9310_vm15 = vcmp.ge.f32.partialorder %v9308_v24, 0.0  ;;  %v9307_v61 = vmul.f32 0.5, %v9305_v14 }
 0xbb0   : > { %v9312_v43 = vsel %vm9310_vm15, 1.0, %v20329_v39  ;;  %vm13296_vm15 = vcmask 16384  }
 0xbb1   : > { %v9316_v62 = vmul.f32 0.3275911, %v9314_v7  ;;  %v9315_v44 = vand.u32 2147483647, %v9309_v35  ;;  %v9340_v15 = vsub.f32 0.0, %v9314_v7  ;;  %vm9311_vm0 = vcmp.ge.f32.partialorder %v9309_v35, 0.0 }
 0xbb2   : > { %v9313_v6 = vsel %vm9311_vm0, 1.0, %v20329_v39 }
 0xbb3   : > { %v9318_v48 = vadd.f32 1.0, %v9316_v62  ;;  %v9317_v10 = vmul.f32 0.3275911, %v9315_v44  ;;  %v9341_v63 = vsub.f32 0.0, %v9315_v44  ;;  %v9342_v22 = vmul.f32 %v9340_v15, %v9314_v7  ;;  %v16523_v15 = vld [vmem:[%s20236_s8 + $0x150] sm:$0xff]  }
 0xbb5   : > { %17265 = vrcp.f32 %v9318_v48  ;;  %v9319_v13 = vadd.f32 1.0, %v9317_v10  ;;  %v9343_v58 = vmul.f32 %v9341_v63, %v9315_v44  ;;  %v9344_v37 = vmul.f32 1.442695, %v9342_v22  ;;  %v16520_v44 = vld [vmem:[%s20236_s8 + $0x148] sm:$0xff]   ;;  %v16524_v63 = vld [vmem:[%s20236_s8 + $0x110] sm:$0xff]   ;;  %v16526_v22 = vld [vmem:[%s20236_s8 + $0x158] sm:$0xff]  }
 0xbb6   : > { %v16521_v10 = vld [vmem:[%s20236_s8 + $0x108] sm:$0xff]  }
 0xbb7   : > { %17267 = vrcp.f32 %v9319_v13  ;;  %v9346_v25 = vmul.f32 1.442695, %v9343_v58  ;;  %v16522_v13 = vld [vmem:[%s20236_s8 + $0x188] sm:$0xff]   ;;  %v16530_v58 = vld [vmem:[%s20236_s8 + $0x120] sm:$0xff]  }
 0xbb8   : > { %17269 = vpow2.f32 %v9344_v37  ;;  %v16531_v37 = vld [vmem:[%s20236_s8 + $0x1a0] sm:$0xff]  }
 0xbb9   : > { %17271 = vpow2.f32 %v9346_v25  ;;  %v16536_v25 = vld [vmem:[%s20236_s8 + $0x130] sm:$0xff]  }
 0xbbf   : > { %v17266_v1 = vpop.eup %17265 }
 0xbc0   : > { %v9322_v36 = vmul.f32 1.0614054, %v17266_v1 }
 0xbc1   : > { %v17268_v9 = vpop.eup %17267 }
 0xbc2   : > { %v9324_v46 = vadd.f32 -1.4531521, %v9322_v36  ;;  %v9323_v2 = vmul.f32 1.0614054, %v17268_v9  ;;  %v17270_v31 = vpop.eup %17269  ;;  %v16527_v36 = vld [vmem:[%s20236_s8 + $0x118] sm:$0xff]  }
 0xbc3   : > { %v17272_v16 = vpop.eup %17271 }
 0xbc4   : > { %v9326_v60 = vmul.f32 %v17266_v1, %v9324_v46  ;;  %v9325_v49 = vadd.f32 -1.4531521, %v9323_v2  ;;  %v16529_v46 = vld [vmem:[%s20236_s8 + $0x160] sm:$0xff]   ;;  %v16532_v2 = vld [vmem:[%s20236_s8 + $0x168] sm:$0xff]  }
 0xbc6   : > { %v9328_v29 = vadd.f32 1.4214138, %v9326_v60  ;;  %v9327_v26 = vmul.f32 %v17268_v9, %v9325_v49  ;;  %v16533_v60 = vld [vmem:[%s20236_s8 + $0x128] sm:$0xff]  }
 0xbc7   : > { %v16534_v49 = vld [vmem:[%s20236_s8 + $0x1a8] sm:$0xff]  }
 0xbc8   : > { %v9330_v34 = vmul.f32 %v17266_v1, %v9328_v29  ;;  %v9329_v27 = vadd.f32 1.4214138, %v9327_v26  ;;  %v16535_v29 = vld [vmem:[%s20236_s8 + $0x170] sm:$0xff]  }
 0xbc9   : > { %v16537_v26 = vld [vmem:[%s20236_s8 + $0x1b0] sm:$0xff]  }
 0xbca   : > { %v9332_v21 = vadd.f32 -0.28449672, %v9330_v34  ;;  %v9331_v11 = vmul.f32 %v17268_v9, %v9329_v27  ;;  %v16538_v34 = vld [vmem:[%s20236_s8 + $0x178] sm:$0xff]  }
 0xbcb   : > { %v16539_v27 = vld [vmem:[%s20236_s8 + $0x138] sm:$0xff]  }
 0xbcc   : > { %v9334_v52 = vmul.f32 %v17266_v1, %v9332_v21  ;;  %v9333_v28 = vadd.f32 -0.28449672, %v9331_v11  ;;  %v16540_v21 = vld [vmem:[%s20236_s8 + $0x1b8] sm:$0xff]  }
 0xbce   : > { %v9336_v38 = vadd.f32 0.2548296, %v9334_v52  ;;  %v9335_v59 = vmul.f32 %v17268_v9, %v9333_v28 }
 0xbd0   : > { %v9338_v47 = vmul.f32 %v17266_v1, %v9336_v38  ;;  %v9337_v56 = vadd.f32 0.2548296, %v9335_v59  ;;  %v16525_v1 = vld [vmem:[%s20236_s8 + $0x190] sm:$0xff]   ;;  %v16541_v38 = vld [vmem:[#allocation27] sm:$0xff]  }
 0xbd2   : > { %v9348_v18 = vmul.f32 %v17270_v31, %v9338_v47  ;;  %v9339_v54 = vmul.f32 %v17268_v9, %v9337_v56  ;;  %v16528_v9 = vld [vmem:[%s20236_s8 + $0x198] sm:$0xff]   ;;  %v16542_v31 = vld [vmem:[#allocation27 + $0x8] sm:$0xff]  }
 0xbd3   : > { %v16543_v56 = vld [vmem:[#allocation27 + $0x10] sm:$0xff]  }
 0xbd4   : > { %v9350_v32 = vsub.f32 1.0, %v9348_v18  ;;  %v9349_v8 = vmul.f32 %v17272_v16, %v9339_v54  ;;  %v16544_v18 = vld [vmem:[#allocation27 + $0x18] sm:$0xff]   ;;  %v10078_v16 = vld [vmem:[#allocation8 + $0x13] ss:$2 sm:$0xff] }
 0xbd5   : > { %v10077_v54 = vld [vmem:[#allocation8 + $0x3] ss:$2 sm:$0xff] }
 0xbd6   : > { %v9352_v0 = vmul.f32 %v9350_v32, %v9312_v43  ;;  %v9351_v3 = vsub.f32 1.0, %v9349_v8  ;;  %v10079_v32 = vpack.c.bf16 %v10078_v16, %v10077_v54  ;;  %v16547_v43 = vld [vmem:[#allocation28 + $0x4] ss:$8 sps:$4 sm:$0xff]   ;;  %v16545_v8 = vld [vmem:[#allocation28] ss:$8 sps:$4 sm:$0xff]  }
 0xbd8   : > { %v9354_v17 = vadd.f32 1.0, %v9352_v0  ;;  %v9353_v53 = vmul.f32 %v9351_v3, %v9313_v6  ;;  %v16550_v0 = vld [vmem:[#allocation28 + $0x14] ss:$8 sps:$4 sm:$0xff]   ;;  %v16548_v3 = vld [vmem:[#allocation28 + $0x10] ss:$8 sps:$4 sm:$0xff]  }
 0xbd9   : > { %v16556_v6 = vld [vmem:[#allocation28 + $0x34] ss:$8 sps:$4 sm:$0xff]  }
 0xbda   : > { %v9356_v4 = vmul.f32 %v9354_v17, %v9306_v5  ;;  %v9355_v30 = vadd.f32 1.0, %v9353_v53  ;;  %v16553_v5 = vld [vmem:[#allocation28 + $0x24] ss:$8 sps:$4 sm:$0xff]   ;;  %v16551_v17 = vld [vmem:[#allocation28 + $0x20] ss:$8 sps:$4 sm:$0xff]  }
 0xbdb   : > { %v16554_v53 = vld [vmem:[#allocation28 + $0x30] ss:$8 sps:$4 sm:$0xff]  }
 0xbdc   : > { %9359 = vst [vmem:[#allocation9 + $0x3] sm:$0xff] %v9356_v4  ;;  %v9357_v33 = vmul.f32 %v9355_v30, %v9307_v61  ;;  %v16557_v61 = vld [vmem:[#allocation28 + $0x40] ss:$8 sps:$4 sm:$0xff]   ;;  %v16562_v30 = vld [vmem:[#allocation28 + $0x54] ss:$8 sps:$4 sm:$0xff]  }
 0xbde   : > { %9360 = vst [vmem:[#allocation9 + $0xb] sm:$0xff] %v9357_v33  ;;  %v16560_v33 = vld [vmem:[#allocation28 + $0x50] ss:$8 sps:$4 sm:$0xff]  }
 0xbdf   : > { %9361 = vst [vmem:[#allocation9 + $0xe] sm:$0xff] %v19879_v41 }
 0xbe3   : > { %v9367_v57 = vld [vmem:[#allocation9 + $0x1] sm:$0xff] }
 0xbe4   : > { %v9363_v51 = vld [vmem:[#allocation9] sm:$0xff] }
 0xbe5   : > { %v9371_v50 = vld [vmem:[#allocation9 + $0x2] sm:$0xff] }
 0xbe6   : > { %v9368_v55 = vld [vmem:[#allocation9 + $0x9] sm:$0xff] }
 0xbe7   : > { %v9376_v40 = vld [vmem:[#allocation9 + $0xb] sm:$0xff]  ;;  %v9406_v19 = vpack.c.bf16 %v9368_v55, %v9367_v57 }
 0xbe8   : > { %v9364_v12 = vld [vmem:[#allocation9 + $0x8] sm:$0xff]  ;;  %v9408_v23 = vpack.c.bf16 %v9376_v40, %v9356_v4  ;;  %v16574_v40 = vld [vmem:[#allocation28 + $0x94] ss:$8 sps:$4 sm:$0xff]  }
 0xbe9   : > { %v9405_v24 = vpack.c.bf16 %v9364_v12, %v9363_v51  ;;  %v9372_v14 = vld [vmem:[#allocation9 + $0xa] sm:$0xff]  ;;  %9893 = vmatprep.mubr.bf16.mxu0 %v9406_v19  ;;  %v16572_v12 = vld [vmem:[#allocation28 + $0x90] ss:$8 sps:$4 sm:$0xff]  }
 0xbea   : > { %v9383_v7 = vld [vmem:[#allocation9 + $0x5] sm:$0xff]  ;;  %v9384_v35 = vld [vmem:[#allocation9 + $0xd] sm:$0xff]  ;;  %v9407_v62 = vpack.c.bf16 %v9372_v14, %v9371_v50  ;;  %9934 = vmatprep.mubr.bf16.mxu1 %v9408_v23  ;;  %v16568_v50 = vld [vmem:[#allocation28 + $0x74] ss:$8 sps:$4 sm:$0xff]  }
 0xbeb   : > { %9894 = vmatmul.mubr.bf16.vlgmr.msra.gmra.mrb[48].mxu0 %v9405_v24  ;;  %v9410_v48 = vpack.c.bf16 %v9384_v35, %v9383_v7  ;;  %v9379_v11 = vld [vmem:[#allocation9 + $0x4] sm:$0xff]  ;;  %v9380_v52 = vld [vmem:[#allocation9 + $0xc] sm:$0xff]  ;;  %v16580_v24 = vld [vmem:[#allocation28 + $0xb4] ss:$8 sps:$4 sm:$0xff]  }
 0xbec   : > { %9935 = vmatmul.mubr.bf16.vlgmr.msra.gmra.mrb[64].mxu1 %v9407_v62  ;;  %14770 = vmatpush3.bf16.msra.mxu0 %v16518_v45  ;;  %v9387_v28 = vld [vmem:[#allocation9 + $0x6] sm:$0xff]  ;;  %v9409_v59 = vpack.c.bf16 %v9380_v52, %v9379_v11  ;;  %v16566_v45 = vld [vmem:[#allocation28 + $0x70] ss:$8 sps:$4 sm:$0xff]   ;;  %v16586_v62 = vld [vmem:[#allocation28 + $0xd4] ss:$8 sps:$4 sm:$0xff]  }
 0xbed   : > { %15647 = vmatpush3.bf16.msra.mxu1 %v16519_v20  ;;  %9975 = vmatprep.mubr.bf16.mxu0 %v9410_v48  ;;  %v9411_v47 = vpack.c.bf16 %v19879_v41, %v9387_v28  ;;  %v16559_v4 = vld [vmem:[#allocation28 + $0x44] ss:$8 sps:$4 sm:$0xff]   ;;  %v16563_v51 = vld [vmem:[#allocation28 + $0x60] ss:$8 sps:$4 sm:$0xff]   ;;  %v16578_v14 = vld [vmem:[#allocation28 + $0xb0] ss:$8 sps:$4 sm:$0xff]  }
 0xbee   : > { %14771 = vmatprep.subr.bf16.mxu0 %v16520_v44  ;;  %15648 = vmatprep.subr.bf16.mxu1 %v19879_v41  ;;  %v16565_v57 = vld [vmem:[#allocation28 + $0x64] ss:$8 sps:$4 sm:$0xff]   ;;  %v16569_v55 = vld [vmem:[#allocation28 + $0x80] ss:$8 sps:$4 sm:$0xff]   ;;  %v16584_v44 = vld [vmem:[#allocation28 + $0xd0] ss:$8 sps:$4 sm:$0xff]  }
 0xbef   : > { %15662 = vmatprep.mubr.msk.bf16.mxu1 %vm17665_vm6, %v19879_v41  ;;  %v16571_v20 = vld [vmem:[#allocation28 + $0x84] ss:$8 sps:$4 sm:$0xff]   ;;  %v16575_v23 = vld [vmem:[#allocation28 + $0xa0] ss:$8 sps:$4 sm:$0xff]  }
 0xbf0   : > { %14772 = vmatpush3.bf16.msra.mxu0 %v16521_v10  ;;  %v16577_v19 = vld [vmem:[#allocation28 + $0xa4] ss:$8 sps:$4 sm:$0xff]   ;;  %v16581_v35 = vld [vmem:[#allocation28 + $0xc0] ss:$8 sps:$4 sm:$0xff]  }
 0xbf1   : > { %15649 = vmatpush3.bf16.msra.mxu1 %v16522_v13  ;;  %14773 = vmatprep.subr.bf16.mxu0 %v16523_v15  ;;  %v16583_v7 = vld [vmem:[#allocation28 + $0xc4] ss:$8 sps:$4 sm:$0xff]   ;;  %v16587_v48 = vld [vmem:[#allocation28 + $0xe0] ss:$8 sps:$4 sm:$0xff]   ;;  %v16592_v13 = vld [vmem:[#allocation28 + $0xf4] ss:$8 sps:$4 sm:$0xff]  }
 0xbf2   : > { %15650 = vmatprep.subr.bf16.mxu1 %v19879_v41  ;;  %v16589_v10 = vld [vmem:[#allocation28 + $0xe4] ss:$8 sps:$4 sm:$0xff]   ;;  %v16590_v15 = vld [vmem:[#allocation28 + $0xf0] ss:$8 sps:$4 sm:$0xff]  }
 0xbf4   : > { %14774 = vmatpush3.bf16.msra.mxu0 %v16524_v63  ;;  %v16595_v63 = vld [vmem:[#allocation28 + $0x104] ss:$8 sps:$4 sm:$0xff]  }
 0xbf5   : > { %15651 = vmatpush3.bf16.msra.mxu1 %v16525_v1  ;;  %14775 = vmatprep.subr.bf16.mxu0 %v16526_v22 }
 0xbf6   : > { %15652 = vmatprep.subr.bf16.mxu1 %v19879_v41 }
 0xbf8   : > { %14776 = vmatpush3.bf16.msra.mxu0 %v16527_v36  ;;  %v9524_v36 = vld [vmem:[%s20241_s13 + $0x6] ss:$0 sm:$0xff] }
 0xbf9   : > { %15653 = vmatpush3.bf16.msra.mxu1 %v16528_v9  ;;  %14777 = vmatprep.subr.bf16.mxu0 %v16529_v46 }
 0xbfa   : > { %15654 = vmatprep.subr.bf16.mxu1 %v19879_v41 }
 0xbfc   : > { %14778 = vmatpush3.bf16.msra.mxu0 %v16530_v58 }
 0xbfd   : > { %15655 = vmatpush3.bf16.msra.mxu1 %v16531_v37  ;;  %14779 = vmatprep.subr.bf16.mxu0 %v16532_v2 }
 0xbfe   : > { %15656 = vmatprep.subr.bf16.mxu1 %v19879_v41 }
 0xc00   : > { %14780 = vmatpush3.bf16.msra.mxu0 %v16533_v60 }
 0xc01   : > { %15657 = vmatpush3.bf16.msra.mxu1 %v16534_v49  ;;  %14781 = vmatprep.subr.bf16.mxu0 %v16535_v29 }
 0xc02   : > { %15658 = vmatprep.subr.bf16.mxu1 %v19879_v41 }
 0xc04   : > { %14782 = vmatpush3.bf16.msra.mxu0 %v16536_v25 }
 0xc05   : > { %15659 = vmatpush3.bf16.msra.mxu1 %v16537_v26  ;;  %14783 = vmatprep.subr.bf16.mxu0 %v16538_v34 }
 0xc06   : > { %15660 = vmatprep.subr.bf16.mxu1 %v19879_v41 }
 0xc08   : > { %14784 = vmatpush3.bf16.msra.mxu0 %v16539_v27 }
 0xc09   : > { %15661 = vmatpush3.bf16.msra.mxu1 %v16540_v21  ;;  %15666 = vmatprep.subr.bf16.mxu0 %v19879_v41 }
 0xc0a   : > { %10895 = vmatprep.subr.bf16.mxu1 %v16547_v43 }
 0xc0b   : > { %9976 = vmatmul.mubr.bf16.vlgmr.msra.gmra.mrb[52].mxu0 %v9409_v59 }
 0xc0c   : > { %15663 = vmatmul.mubr.bf16.vlgmr.msra.gmra.mrb[68].mxu1 %v9411_v47  ;;  %15667 = vmatpush3.bf16.msra.mxu0 %v16541_v38 }
 0xc0d   : > { %15674 = vmatprep.mubr.msk.bf16.mxu0 %vm17665_vm6, %v19879_v41  ;;  %15668 = vmatprep.subr.bf16.mxu0 %v19879_v41  ;;  %vm11139_vm6 = vcmask 1046528  }
 0xc0e   : > { %10896 = vmatpush1.bf16.msra.mxu1 %v16545_v8 }
 0xc0f   : > { %10897 = vmatprep.subr.bf16.mxu1 %v16550_v0 }
 0xc10   : > { %15669 = vmatpush3.bf16.msra.mxu0 %v16542_v31 }
 0xc11   : > { %15670 = vmatprep.subr.bf16.mxu0 %v19879_v41 }
 0xc12   : > { %10898 = vmatpush1.bf16.msra.mxu1 %v16548_v3 }
 0xc13   : > { %10899 = vmatprep.subr.bf16.mxu1 %v16553_v5 }
 0xc14   : > { %15671 = vmatpush3.bf16.msra.mxu0 %v16543_v56 }
 0xc15   : > { %15672 = vmatprep.subr.bf16.mxu0 %v19879_v41 }
 0xc16   : > { %10900 = vmatpush1.bf16.msra.mxu1 %v16551_v17 }
 0xc17   : > { %10901 = vmatprep.subr.bf16.mxu1 %v16556_v6 }
 0xc18   : > { %15673 = vmatpush3.bf16.msra.mxu0 %v16544_v18 }
 0xc1a   : > { %10902 = vmatpush1.bf16.msra.mxu1 %v16554_v53 }
 0xc1b   : > { %15675 = vmatmul.mubr.msk.bf16.vlgmr.msra.gmra.mrb[56].mxu0 %vm7446_vm9, %v10079_v32  ;;  %10903 = vmatprep.subr.bf16.mxu1 %v16559_v4 }
 0xc1e   : > { %10904 = vmatpush1.bf16.msra.mxu1 %v16557_v61 }
 0xc1f   : > { %10905 = vmatprep.subr.bf16.mxu1 %v16562_v30 }
 0xc22   : > { %10906 = vmatpush1.bf16.msra.mxu1 %v16560_v33 }
 0xc23   : > { %10907 = vmatprep.subr.bf16.mxu1 %v16565_v57 }
 0xc26   : > { %10908 = vmatpush1.bf16.msra.mxu1 %v16563_v51 }
 0xc27   : > { %10909 = vmatprep.subr.bf16.mxu1 %v16568_v50 }
 0xc2a   : > { %10910 = vmatpush1.bf16.msra.mxu1 %v16566_v45 }
 0xc2b   : > { %10911 = vmatprep.subr.bf16.mxu1 %v16571_v20 }
 0xc2e   : > { %10912 = vmatpush1.bf16.msra.mxu1 %v16569_v55 }
 0xc2f   : > { %10913 = vmatprep.subr.bf16.mxu1 %v16574_v40 }
 0xc32   : > { %10914 = vmatpush1.bf16.msra.mxu1 %v16572_v12 }
 0xc33   : > { %10915 = vmatprep.subr.bf16.mxu1 %v16577_v19 }
 0xc36   : > { %10916 = vmatpush1.bf16.msra.mxu1 %v16575_v23 }
 0xc37   : > { %10917 = vmatprep.subr.bf16.mxu1 %v16580_v24 }
 0xc3a   : > { %10918 = vmatpush1.bf16.msra.mxu1 %v16578_v14 }
 0xc3b   : > { %10919 = vmatprep.subr.bf16.mxu1 %v16583_v7 }
 0xc3e   : > { %10920 = vmatpush1.bf16.msra.mxu1 %v16581_v35 }
 0xc3f   : > { %10921 = vmatprep.subr.bf16.mxu1 %v16586_v62 }
 0xc42   : > { %10922 = vmatpush1.bf16.msra.mxu1 %v16584_v44 }
 0xc43   : > { %10923 = vmatprep.subr.bf16.mxu1 %v16589_v10 }
 0xc46   : > { %10924 = vmatpush1.bf16.msra.mxu1 %v16587_v48 }
 0xc47   : > { %10925 = vmatprep.subr.bf16.mxu1 %v16592_v13 }
 0xc4a   : > { %10926 = vmatpush1.bf16.msra.mxu1 %v16590_v15 }
 0xc4b   : > { %10936 = vmatprep.subr.bf16.mxu1 %v16595_v63 }
 0xcbe   : > { %v14741_v1 = vpop.f32.mrb[48].mxu0 }
 0xcbf   : > { %v14763_v22 = vpop.f32.mrb[64].mxu1  ;;  %v14742_v9 = vpop.f32.mrb[49].mxu0 }
 0xcc0   : > { %v14764_v46 = vpop.f32.mrb[65].mxu1  ;;  %v14743_v58 = vadd.f32 %v14742_v9, %v14741_v1  ;;  %v14744_v2 = vpop.f32.mrb[50].mxu0 }
 0xcc1   : > { %v14765_v37 = vadd.f32 %v14764_v46, %v14763_v22  ;;  %v14766_v60 = vpop.f32.mrb[66].mxu1  ;;  %v14745_v49 = vpop.f32.mrb[51].mxu0 }
 0xcc2   : > { %v14767_v29 = vpop.f32.mrb[67].mxu1  ;;  %v9896_v25 = vadd.f32 %v14743_v58, %v9524_v36  ;;  %v14746_v26 = vadd.f32 %v14745_v49, %v14744_v2 }
 0xcc3   : > { %v14768_v34 = vadd.f32 %v14767_v29, %v14766_v60 }
 0xcc4   : > { %v9937_v27 = vadd.f32 %v14765_v37, %v9896_v25  ;;  %v9899_v21 = vadd.f32 %v14746_v26, %v9524_v36 }
 0xcc6   : > { %v9940_v11 = vadd.f32 %v14768_v34, %v9899_v21  ;;  %v10088_v21 = vld [vmem:[%s20241_s13 + $0x7] ss:$0 sm:$0xff] }
 0xcde   : > { %v14785_v52 = vpop.f32.mrb[52].mxu0 }
 0xcdf   : > { %v10018_v28 = vpop.f32.mrb[68].mxu1  ;;  %v14786_v38 = vpop.f32.mrb[53].mxu0 }
 0xce0   : > { %v15664_v59 = vpop.f32.mrb[69].mxu1  ;;  %v14787_v47 = vadd.f32 %v14786_v38, %v14785_v52  ;;  %v14788_v31 = vpop.f32.mrb[54].mxu0 }
 0xce1   : > { %v10021_v56 = vpop.f32.mrb[70].mxu1  ;;  %v14789_v18 = vpop.f32.mrb[55].mxu0 }
 0xce2   : > { %v15665_v54 = vpop.f32.mrb[71].mxu1  ;;  %v9978_v16 = vadd.f32 %v14787_v47, %v9937_v27  ;;  %v14790_v32 = vadd.f32 %v14789_v18, %v14788_v31 }
 0xce4   : > { %v10019_v43 = vadd.f32 %v10018_v28, %v9978_v16  ;;  %v9981_v8 = vadd.f32 %v14790_v32, %v9940_v11 }
 0xce6   : > { %v10027_v0 = vmul.f32 0.70710677, %v10019_v43  ;;  %v10022_v3 = vadd.f32 %v10021_v56, %v9981_v8  ;;  %v10025_v52 = vmul.f32 0.5, %v10019_v43 }
 0xce8   : > { %v10033_v5 = vand.u32 2147483647, %v10027_v0  ;;  %v10028_v17 = vmul.f32 0.70710677, %v10022_v3  ;;  %vm10029_vm9 = vcmp.ge.f32.partialorder %v10027_v0, 0.0  ;;  %v10026_v56 = vmul.f32 0.5, %v10022_v3 }
 0xce9   : > { %v10031_v26 = vsel %vm10029_vm9, 1.0, %v20329_v39 }
 0xcea   : > { %v10035_v6 = vmul.f32 0.3275911, %v10033_v5  ;;  %v10034_v53 = vand.u32 2147483647, %v10028_v17  ;;  %v10059_v45 = vsub.f32 0.0, %v10033_v5  ;;  %vm10030_vm1 = vcmp.ge.f32.partialorder %v10028_v17, 0.0 }
 0xceb   : > { %v10032_v38 = vsel %vm10030_vm1, 1.0, %v20329_v39 }
 0xcec   : > { %v10037_v4 = vadd.f32 1.0, %v10035_v6  ;;  %v10036_v61 = vmul.f32 0.3275911, %v10034_v53  ;;  %v10060_v20 = vsub.f32 0.0, %v10034_v53  ;;  %v10061_v40 = vmul.f32 %v10059_v45, %v10033_v5  ;;  %v16599_v45 = vld [vmem:[#allocation28 + $0x120] ss:$8 sps:$4 sm:$0xff]  }
 0xcee   : > { %17273 = vrcp.f32 %v10037_v4  ;;  %v10038_v30 = vadd.f32 1.0, %v10036_v61  ;;  %v10150_v33 = vpop.f32.mrb[56].mxu0  ;;  %v10062_v23 = vmul.f32 %v10060_v20, %v10034_v53  ;;  %v10063_v14 = vmul.f32 1.442695, %v10061_v40  ;;  %v16604_v20 = vld [vmem:[#allocation28 + $0x134] ss:$8 sps:$4 sm:$0xff]  }
 0xcef   : > { %v15676_v57 = vpop.f32.mrb[57].mxu0  ;;  %v10151_v31 = vadd.f32 %v10150_v33, %v10088_v21  ;;  %v16605_v40 = vld [vmem:[#allocation28 + $0x140] ss:$8 sps:$4 sm:$0xff]  }
 0xcf0   : > { %v10153_v51 = vpop.f32.mrb[58].mxu0  ;;  %17275 = vrcp.f32 %v10038_v30  ;;  %v10065_v44 = vmul.f32 1.442695, %v10062_v23  ;;  %v16593_v30 = vld [vmem:[#allocation28 + $0x100] ss:$8 sps:$4 sm:$0xff]  }
 0xcf1   : > { %v15677_v50 = vpop.f32.mrb[59].mxu0  ;;  %17277 = vpow2.f32 %v10063_v14  ;;  %v10154_v32 = vadd.f32 %v10153_v51, %v10088_v21  ;;  %v16598_v57 = vld [vmem:[#allocation28 + $0x114] ss:$8 sps:$4 sm:$0xff]   ;;  %v16613_v23 = vld [vmem:[#allocation28 + $0x164] ss:$8 sps:$4 sm:$0xff]  }
 0xcf2   : > { %17279 = vpow2.f32 %v10065_v44  ;;  %v16601_v50 = vld [vmem:[#allocation28 + $0x124] ss:$8 sps:$4 sm:$0xff]   ;;  %v16616_v14 = vld [vmem:[#allocation28 + $0x174] ss:$8 sps:$4 sm:$0xff]   ;;  %v16644_v21 = vld [vmem:[#allocation28 + $0x210] ss:$8 sps:$4 sm:$0xff]  }
 0xcf3   : > { %v16622_v44 = vld [vmem:[#allocation28 + $0x194] ss:$8 sps:$4 sm:$0xff]  }
 0xcf8   : > { %v17274_v55 = vpop.eup %17273 }
 0xcf9   : > { %v10041_v12 = vmul.f32 1.0614054, %v17274_v55 }
 0xcfa   : > { %v17276_v19 = vpop.eup %17275 }
 0xcfb   : > { %v10043_v24 = vadd.f32 -1.4531521, %v10041_v12  ;;  %v10042_v7 = vmul.f32 1.0614054, %v17276_v19  ;;  %v17278_v37 = vpop.eup %17277  ;;  %v16610_v12 = vld [vmem:[#allocation28 + $0x154] ss:$8 sps:$4 sm:$0xff]  }
 0xcfc   : > { %v17280_v29 = vpop.eup %17279 }
 0xcfd   : > { %v10045_v35 = vmul.f32 %v17274_v55, %v10043_v24  ;;  %v10044_v62 = vadd.f32 -1.4531521, %v10042_v7  ;;  %v16611_v24 = vld [vmem:[#allocation28 + $0x160] ss:$8 sps:$4 sm:$0xff]   ;;  %v16614_v7 = vld [vmem:[#allocation28 + $0x170] ss:$8 sps:$4 sm:$0xff]  }
 0xcff   : > { %v10047_v48 = vadd.f32 1.4214138, %v10045_v35  ;;  %v10046_v10 = vmul.f32 %v17276_v19, %v10044_v62  ;;  %v16619_v35 = vld [vmem:[#allocation28 + $0x184] ss:$8 sps:$4 sm:$0xff]   ;;  %v16617_v62 = vld [vmem:[#allocation28 + $0x180] ss:$8 sps:$4 sm:$0xff]  }
 0xd01   : > { %v10049_v13 = vmul.f32 %v17274_v55, %v10047_v48  ;;  %v10048_v15 = vadd.f32 1.4214138, %v10046_v10  ;;  %v16620_v48 = vld [vmem:[#allocation28 + $0x190] ss:$8 sps:$4 sm:$0xff]   ;;  %v16625_v10 = vld [vmem:[#allocation28 + $0x1a4] ss:$8 sps:$4 sm:$0xff]  }
 0xd03   : > { %v10051_v63 = vadd.f32 -0.28449672, %v10049_v13  ;;  %v10050_v1 = vmul.f32 %v17276_v19, %v10048_v15  ;;  %v16623_v13 = vld [vmem:[#allocation28 + $0x1a0] ss:$8 sps:$4 sm:$0xff]   ;;  %v16628_v15 = vld [vmem:[#allocation28 + $0x1b4] ss:$8 sps:$4 sm:$0xff]  }
 0xd05   : > { %v10053_v22 = vmul.f32 %v17274_v55, %v10051_v63  ;;  %v10052_v36 = vadd.f32 -0.28449672, %v10050_v1  ;;  %v16626_v63 = vld [vmem:[#allocation28 + $0x1b0] ss:$8 sps:$4 sm:$0xff]   ;;  %v16631_v1 = vld [vmem:[#allocation28 + $0x1c4] ss:$8 sps:$4 sm:$0xff]  }
 0xd07   : > { %v10055_v9 = vadd.f32 0.2548296, %v10053_v22  ;;  %v10054_v46 = vmul.f32 %v17276_v19, %v10052_v36  ;;  %v16629_v22 = vld [vmem:[#allocation28 + $0x1c0] ss:$8 sps:$4 sm:$0xff]   ;;  %v16634_v36 = vld [vmem:[#allocation28 + $0x1d4] ss:$8 sps:$4 sm:$0xff]  }
 0xd09   : > { %v10057_v58 = vmul.f32 %v17274_v55, %v10055_v9  ;;  %v10056_v2 = vadd.f32 0.2548296, %v10054_v46  ;;  %v16607_v55 = vld [vmem:[#allocation28 + $0x144] ss:$8 sps:$4 sm:$0xff]   ;;  %v16632_v9 = vld [vmem:[#allocation28 + $0x1d0] ss:$8 sps:$4 sm:$0xff]  }
 0xd0a   : > { %v16637_v46 = vld [vmem:[#allocation28 + $0x1e4] ss:$8 sps:$4 sm:$0xff]  }
 0xd0b   : > { %v10067_v60 = vmul.f32 %v17278_v37, %v10057_v58  ;;  %v10058_v49 = vmul.f32 %v17276_v19, %v10056_v2  ;;  %v16608_v19 = vld [vmem:[#allocation28 + $0x150] ss:$8 sps:$4 sm:$0xff]   ;;  %v16635_v58 = vld [vmem:[#allocation28 + $0x1e0] ss:$8 sps:$4 sm:$0xff]   ;;  %v16640_v37 = vld [vmem:[#allocation28 + $0x1f4] ss:$8 sps:$4 sm:$0xff]  }
 0xd0c   : > { %v16638_v2 = vld [vmem:[#allocation28 + $0x1f0] ss:$8 sps:$4 sm:$0xff]  }
 0xd0d   : > { %v10069_v25 = vsub.f32 1.0, %v10067_v60  ;;  %v10068_v34 = vmul.f32 %v17280_v29, %v10058_v49  ;;  %v16643_v60 = vld [vmem:[#allocation28 + $0x204] ss:$8 sps:$4 sm:$0xff]  }
 0xd0f   : > { %v10071_v27 = vmul.f32 %v10069_v25, %v10031_v26  ;;  %v10070_v11 = vsub.f32 1.0, %v10068_v34  ;;  %v16641_v25 = vld [vmem:[#allocation28 + $0x200] ss:$8 sps:$4 sm:$0xff]   ;;  %v16646_v34 = vld [vmem:[#allocation28 + $0x214] ss:$8 sps:$4 sm:$0xff]  }
 0xd11   : > { %v10073_v28 = vadd.f32 1.0, %v10071_v27  ;;  %v10072_v59 = vmul.f32 %v10070_v11, %v10032_v38  ;;  %v16649_v11 = vld [vmem:[#allocation28 + $0x224] ss:$8 sps:$4 sm:$0xff]   ;;  %v16650_v38 = vld [vmem:[#allocation28 + $0x230] ss:$8 sps:$4 sm:$0xff]  }
 0xd13   : > { %v10075_v47 = vmul.f32 %v10073_v28, %v10025_v52  ;;  %v10074_v18 = vadd.f32 1.0, %v10072_v59  ;;  %v16647_v52 = vld [vmem:[#allocation28 + $0x220] ss:$8 sps:$4 sm:$0xff]   ;;  %v16652_v28 = vld [vmem:[#allocation28 + $0x234] ss:$8 sps:$4 sm:$0xff]  }
 0xd14   : > { %v16655_v59 = vld [vmem:[#allocation28 + $0x244] ss:$8 sps:$4 sm:$0xff]  }
 0xd15   : > { %v10157_v54 = vadd.f32 %v10151_v31, %v10075_v47  ;;  %v10076_v16 = vmul.f32 %v10074_v18, %v10026_v56  ;;  %v16653_v47 = vld [vmem:[#allocation28 + $0x240] ss:$8 sps:$4 sm:$0xff]   ;;  %v16658_v31 = vld [vmem:[#allocation28 + $0x254] ss:$8 sps:$4 sm:$0xff]   ;;  %v16656_v56 = vld [vmem:[#allocation28 + $0x250] ss:$8 sps:$4 sm:$0xff]  }
 0xd16   : > { %v16661_v18 = vld [vmem:[#allocation28 + $0x264] ss:$8 sps:$4 sm:$0xff]  }
 0xd17   : > { %10160 = vst [vmem:[#allocation11 + $0x1] sm:$0xff] %v10157_v54  ;;  %v10158_v8 = vadd.f32 %v10154_v32, %v10076_v16  ;;  %v16659_v54 = vld [vmem:[#allocation28 + $0x260] ss:$8 sps:$4 sm:$0xff]   ;;  %v16664_v16 = vld [vmem:[#allocation28 + $0x274] ss:$8 sps:$4 sm:$0xff]  }
 0xd18   : > { %v16662_v32 = vld [vmem:[#allocation28 + $0x270] ss:$8 sps:$4 sm:$0xff]  }
 0xd19   : > { %10161 = vst [vmem:[#allocation11 + $0x9] sm:$0xff] %v10158_v8  ;;  %v16667_v8 = vld [vmem:[#allocation28 + $0x284] ss:$8 sps:$4 sm:$0xff]  }
 0xd1a   : > { %10162 = vst [vmem:[#allocation11 + $0xc] sm:$0xff] %v17664_v42  ;;  %v16596_v42 = vld [vmem:[#allocation28 + $0x110] ss:$8 sps:$4 sm:$0xff]  }
 0xd21   : > { %v10164_v0 = vld [vmem:[#allocation11] ss:$3 sm:$0xff]  ;;  %v10166_v5 = vld [vmem:[#allocation11 + $0x1] ss:$3 sm:$0xff]  ;;  %v10169_v43 = vld [vmem:[#allocation11 + $0x2] ss:$3 sm:$0xff] }
 0xd22   : > { %v10167_v17 = vmax.f32 %v10164_v0, %v10166_v5  ;;  %v16665_v0 = vld [vmem:[#allocation28 + $0x280] ss:$8 sps:$4 sm:$0xff]   ;;  %v16670_v5 = vld [vmem:[#allocation28 + $0x294] ss:$8 sps:$4 sm:$0xff]  }
 0xd24   : > { %v10170_v6 = vmax.f32 %v10167_v17, %v10169_v43  ;;  %v16668_v17 = vld [vmem:[#allocation28 + $0x290] ss:$8 sps:$4 sm:$0xff]   ;;  %v16673_v43 = vld [vmem:[#allocation28 + $0x2a4] ss:$8 sps:$4 sm:$0xff]  }
 0xd26   : > { %10172 = vst [vmem:[#allocation12 + $0x3] sm:$0xff] %v10170_v6  ;;  %v16671_v6 = vld [vmem:[#allocation28 + $0x2a0] ss:$8 sps:$4 sm:$0xff]  }
 0xd27   : > { %10173 = vst [vmem:[#allocation12 + $0x7] sm:$0xff] %v19879_v41  ;;  %v16602_v41 = vld [vmem:[#allocation28 + $0x130] ss:$8 sps:$4 sm:$0xff]  }
 0xd2e   : > { %v10179_v53 = vld [vmem:[#allocation12 + $0x1] ss:$2 sm:$0xff]  ;;  %v10176_v4 = vld [vmem:[#allocation12] ss:$2 sm:$0xff] }
 0xd2f   : > { %v10185_v3 = vld [vmem:[#allocation12 + $0x3] ss:$2 sm:$0xff]  ;;  %v10204_v61 = vpack.c.bf16 %v10179_v53, %v10179_v53  ;;  %v10203_v33 = vpack.c.bf16 %v10176_v4, %v10176_v4  ;;  %v10182_v49 = vld [vmem:[#allocation12 + $0x2] ss:$2 sm:$0xff] }
 0xd30   : > { %v10206_v51 = vpack.c.bf16 %v10185_v3, %v10185_v3  ;;  %v10191_v29 = vld [vmem:[#allocation12 + $0x5] ss:$2 sm:$0xff]  ;;  %v10205_v26 = vpack.c.bf16 %v10182_v49, %v10182_v49  ;;  %v16679_v3 = vld [vmem:[#allocation28 + $0x2c4] ss:$8 sps:$4 sm:$0xff]  }
 0xd31   : > { %10927 = vmatprep.mubr.bf16.mxu1 %v10204_v61  ;;  %v10208_v27 = vpack.c.bf16 %v10191_v29, %v10191_v29  ;;  %v16676_v53 = vld [vmem:[#allocation28 + $0x2b4] ss:$8 sps:$4 sm:$0xff]   ;;  %v16674_v4 = vld [vmem:[#allocation28 + $0x2b0] ss:$8 sps:$4 sm:$0xff]   ;;  %v16677_v61 = vld [vmem:[#allocation28 + $0x2c0] ss:$8 sps:$4 sm:$0xff]  }
 0xd32   : > { %10928 = vmatmul.mubr.bf16.vlgmr.msra.gmra.mrb[72].mxu1 %v10203_v33  ;;  %v16680_v33 = vld [vmem:[#allocation28 + $0x2d0] ss:$8 sps:$4 sm:$0xff]   ;;  %v16727_v29 = vld [vmem:[#allocation30 + $0x24] ss:$8 sps:$4 sm:$0xff]  }
 0xd33   : > { %10937 = vmatpush1.bf16.msra.mxu1 %v16593_v30  ;;  %10968 = vmatprep.mubr.bf16.mxu1 %v10206_v51  ;;  %v16682_v30 = vld [vmem:[#allocation28 + $0x2d4] ss:$8 sps:$4 sm:$0xff]   ;;  %v16683_v51 = vld [vmem:[#allocation28 + $0x2e0] ss:$8 sps:$4 sm:$0xff]   ;;  %v16722_v49 = vld [vmem:[#allocation30 + $0x110] ss:$8 sps:$4 sm:$0xff]  }
 0xd34   : > { %10938 = vmatprep.subr.bf16.mxu1 %v16598_v57  ;;  %v16685_v57 = vld [vmem:[#allocation28 + $0x2e4] ss:$8 sps:$4 sm:$0xff]  }
 0xd37   : > { %10939 = vmatpush1.bf16.msra.mxu1 %v16596_v42  ;;  %v16688_v42 = vld [vmem:[#allocation28 + $0x2f4] ss:$8 sps:$4 sm:$0xff]  }
 0xd38   : > { %10940 = vmatprep.subr.bf16.mxu1 %v16601_v50  ;;  %v16686_v50 = vld [vmem:[#allocation28 + $0x2f0] ss:$8 sps:$4 sm:$0xff]  }
 0xd3b   : > { %10941 = vmatpush1.bf16.msra.mxu1 %v16599_v45  ;;  %v16691_v45 = vld [vmem:[#allocation28 + $0x304] ss:$8 sps:$4 sm:$0xff]  }
 0xd3c   : > { %10942 = vmatprep.subr.bf16.mxu1 %v16604_v20  ;;  %v10188_v20 = vld [vmem:[#allocation12 + $0x4] ss:$2 sm:$0xff] }
 0xd3f   : > { %10943 = vmatpush1.bf16.msra.mxu1 %v16602_v41  ;;  %v16689_v41 = vld [vmem:[#allocation28 + $0x300] ss:$8 sps:$4 sm:$0xff]  }
 0xd40   : > { %10944 = vmatprep.subr.bf16.mxu1 %v16607_v55  ;;  %v10207_v55 = vpack.c.bf16 %v10188_v20, %v10188_v20  ;;  %v16776_v20 = vld [vmem:[#allocation30 + $0x1a0] ss:$8 sps:$4 sm:$0xff]  }
 0xd43   : > { %10945 = vmatpush1.bf16.msra.mxu1 %v16605_v40  ;;  %v16694_v40 = vld [vmem:[#allocation28 + $0x314] ss:$8 sps:$4 sm:$0xff]  }
 0xd44   : > { %10946 = vmatprep.subr.bf16.mxu1 %v16610_v12  ;;  %v16692_v12 = vld [vmem:[#allocation28 + $0x310] ss:$8 sps:$4 sm:$0xff]  }
 0xd47   : > { %10947 = vmatpush1.bf16.msra.mxu1 %v16608_v19  ;;  %v17666_v19 = vmov 0  }
 0xd48   : > { %10948 = vmatprep.subr.bf16.mxu1 %v16613_v23  ;;  %v16697_v23 = vld [vmem:[#allocation28 + $0x324] ss:$8 sps:$4 sm:$0xff]  }
 0xd4b   : > { %10949 = vmatpush1.bf16.msra.mxu1 %v16611_v24  ;;  %v16695_v24 = vld [vmem:[#allocation28 + $0x320] ss:$8 sps:$4 sm:$0xff]  }
 0xd4c   : > { %10950 = vmatprep.subr.bf16.mxu1 %v16616_v14  ;;  %v16700_v14 = vld [vmem:[#allocation28 + $0x334] ss:$8 sps:$4 sm:$0xff]  }
 0xd4f   : > { %10951 = vmatpush1.bf16.msra.mxu1 %v16614_v7  ;;  %v16698_v7 = vld [vmem:[#allocation28 + $0x330] ss:$8 sps:$4 sm:$0xff]  }
 0xd50   : > { %10952 = vmatprep.subr.bf16.mxu1 %v16619_v35  ;;  %v16703_v35 = vld [vmem:[#allocation28 + $0x344] ss:$8 sps:$4 sm:$0xff]  }
 0xd53   : > { %10953 = vmatpush1.bf16.msra.mxu1 %v16617_v62  ;;  %v16701_v62 = vld [vmem:[#allocation28 + $0x340] ss:$8 sps:$4 sm:$0xff]  }
 0xd54   : > { %10954 = vmatprep.subr.bf16.mxu1 %v16622_v44  ;;  %v16706_v44 = vld [vmem:[#allocation28 + $0x354] ss:$8 sps:$4 sm:$0xff]  }
 0xd57   : > { %10955 = vmatpush1.bf16.msra.mxu1 %v16620_v48  ;;  %v16704_v48 = vld [vmem:[#allocation28 + $0x350] ss:$8 sps:$4 sm:$0xff]  }
 0xd58   : > { %10956 = vmatprep.subr.bf16.mxu1 %v16625_v10  ;;  %v16709_v10 = vld [vmem:[#allocation28 + $0x364] ss:$8 sps:$4 sm:$0xff]  }
 0xd5b   : > { %10957 = vmatpush1.bf16.msra.mxu1 %v16623_v13  ;;  %v16707_v13 = vld [vmem:[#allocation28 + $0x360] ss:$8 sps:$4 sm:$0xff]  }
 0xd5c   : > { %10958 = vmatprep.subr.bf16.mxu1 %v16628_v15  ;;  %v16712_v15 = vld [vmem:[#allocation28 + $0x374] ss:$8 sps:$4 sm:$0xff]  }
 0xd5f   : > { %10959 = vmatpush1.bf16.msra.mxu1 %v16626_v63  ;;  %v16710_v63 = vld [vmem:[#allocation28 + $0x370] ss:$8 sps:$4 sm:$0xff]  }
 0xd60   : > { %10960 = vmatprep.subr.bf16.mxu1 %v16631_v1  ;;  %v10194_v1 = vld [vmem:[#allocation12 + $0x6] ss:$2 sm:$0xff] }
 0xd63   : > { %10961 = vmatpush1.bf16.msra.mxu1 %v16629_v22  ;;  %v10209_v22 = vpack.c.bf16 %v10194_v1, %v10194_v1  ;;  %v16800_v1 = vld [vmem:[#allocation30 + $0x1e0] ss:$8 sps:$4 sm:$0xff]  }
 0xd64   : > { %10962 = vmatprep.subr.bf16.mxu1 %v16634_v36  ;;  %v16715_v36 = vld [vmem:[#allocation30 + $0x4] ss:$8 sps:$4 sm:$0xff]  }
 0xd67   : > { %10963 = vmatpush1.bf16.msra.mxu1 %v16632_v9  ;;  %v16713_v9 = vld [vmem:[#allocation30] ss:$8 sps:$4 sm:$0xff]  }
 0xd68   : > { %10964 = vmatprep.subr.bf16.mxu1 %v16637_v46  ;;  %v16718_v46 = vld [vmem:[#allocation30 + $0x104] ss:$8 sps:$4 sm:$0xff]  }
 0xd69   : > { %12670 = vmatprep.subr.bf16.mxu0 %v16718_v46  ;;  %v16811_v46 = vld [vmem:[%s20345_s30 + $0x4] ss:$8 sps:$4 sm:$0xff]  }
 0xd6b   : > { %10965 = vmatpush1.bf16.msra.mxu1 %v16635_v58  ;;  %v16716_v58 = vld [vmem:[#allocation30 + $0x100] ss:$8 sps:$4 sm:$0xff]  }
 0xd6c   : > { %10966 = vmatprep.subr.bf16.mxu1 %v16640_v37  ;;  %v16721_v37 = vld [vmem:[#allocation30 + $0x14] ss:$8 sps:$4 sm:$0xff]   ;;  %12671 = vmatpush1.bf16.msra.mxu0 %v16716_v58  ;;  %v16814_v58 = vld [vmem:[#allocation30 + $0x204] ss:$8 sps:$4 sm:$0xff]  }
 0xd6f   : > { %10967 = vmatpush1.bf16.msra.mxu1 %v16638_v2  ;;  %v16719_v2 = vld [vmem:[#allocation30 + $0x10] ss:$8 sps:$4 sm:$0xff]  }
 0xd70   : > { %10977 = vmatprep.subr.bf16.mxu1 %v16643_v60  ;;  %v16724_v60 = vld [vmem:[#allocation30 + $0x114] ss:$8 sps:$4 sm:$0xff]  }
 0xd71   : > { %12672 = vmatprep.subr.bf16.mxu0 %v16724_v60 }
 0xd72   : > { %10969 = vmatmul.mubr.bf16.vlgmr.msra.gmra.mrb[72].mxu1 %v10205_v26  ;;  %12673 = vmatpush1.bf16.msra.mxu0 %v16722_v49  ;;  %v16730_v26 = vld [vmem:[#allocation30 + $0x124] ss:$8 sps:$4 sm:$0xff]  }
 0xd73   : > { %10978 = vmatpush1.bf16.msra.mxu1 %v16641_v25  ;;  %11009 = vmatprep.mubr.bf16.mxu1 %v10208_v27  ;;  %v16725_v25 = vld [vmem:[#allocation30 + $0x20] ss:$8 sps:$4 sm:$0xff]   ;;  %v16733_v27 = vld [vmem:[#allocation30 + $0x34] ss:$8 sps:$4 sm:$0xff]  }
 0xd74   : > { %10979 = vmatprep.subr.bf16.mxu1 %v16646_v34  ;;  %v16728_v34 = vld [vmem:[#allocation30 + $0x120] ss:$8 sps:$4 sm:$0xff]   ;;  %12674 = vmatprep.subr.bf16.mxu0 %v16730_v26  ;;  %v13970_v49 = vld [vmem:[%s20241_s13 + $0x10] ss:$8 sm:$0x3] }
 0xd76   : > { %12675 = vmatpush1.bf16.msra.mxu0 %v16728_v34 }
 0xd77   : > { %10980 = vmatpush1.bf16.msra.mxu1 %v16644_v21  ;;  %v16731_v21 = vld [vmem:[#allocation30 + $0x30] ss:$8 sps:$4 sm:$0xff]  }
 0xd78   : > { %10981 = vmatprep.subr.bf16.mxu1 %v16649_v11  ;;  %v16736_v11 = vld [vmem:[#allocation30 + $0x134] ss:$8 sps:$4 sm:$0xff]  }
 0xd79   : > { %12676 = vmatprep.subr.bf16.mxu0 %v16736_v11 }
 0xd7b   : > { %10982 = vmatpush1.bf16.msra.mxu1 %v16647_v52  ;;  %v16734_v52 = vld [vmem:[#allocation30 + $0x130] ss:$8 sps:$4 sm:$0xff]  }
 0xd7c   : > { %10983 = vmatprep.subr.bf16.mxu1 %v16652_v28  ;;  %v16739_v28 = vld [vmem:[#allocation30 + $0x44] ss:$8 sps:$4 sm:$0xff]   ;;  %12677 = vmatpush1.bf16.msra.mxu0 %v16734_v52 }
 0xd7f   : > { %10984 = vmatpush1.bf16.msra.mxu1 %v16650_v38  ;;  %v16737_v38 = vld [vmem:[#allocation30 + $0x40] ss:$8 sps:$4 sm:$0xff]  }
 0xd80   : > { %10985 = vmatprep.subr.bf16.mxu1 %v16655_v59  ;;  %v16742_v59 = vld [vmem:[#allocation30 + $0x144] ss:$8 sps:$4 sm:$0xff]  }
 0xd81   : > { %12678 = vmatprep.subr.bf16.mxu0 %v16742_v59 }
 0xd83   : > { %10986 = vmatpush1.bf16.msra.mxu1 %v16653_v47  ;;  %v16740_v47 = vld [vmem:[#allocation30 + $0x140] ss:$8 sps:$4 sm:$0xff]  }
 0xd84   : > { %10987 = vmatprep.subr.bf16.mxu1 %v16658_v31  ;;  %v16745_v31 = vld [vmem:[#allocation30 + $0x54] ss:$8 sps:$4 sm:$0xff]   ;;  %12679 = vmatpush1.bf16.msra.mxu0 %v16740_v47 }
 0xd87   : > { %10988 = vmatpush1.bf16.msra.mxu1 %v16656_v56  ;;  %v16743_v56 = vld [vmem:[#allocation30 + $0x50] ss:$8 sps:$4 sm:$0xff]  }
 0xd88   : > { %10989 = vmatprep.subr.bf16.mxu1 %v16661_v18  ;;  %v16748_v18 = vld [vmem:[#allocation30 + $0x154] ss:$8 sps:$4 sm:$0xff]  }
 0xd89   : > { %12680 = vmatprep.subr.bf16.mxu0 %v16748_v18 }
 0xd8b   : > { %10990 = vmatpush1.bf16.msra.mxu1 %v16659_v54  ;;  %v16746_v54 = vld [vmem:[#allocation30 + $0x150] ss:$8 sps:$4 sm:$0xff]  }
 0xd8c   : > { %10991 = vmatprep.subr.bf16.mxu1 %v16664_v16  ;;  %v16751_v16 = vld [vmem:[#allocation30 + $0x64] ss:$8 sps:$4 sm:$0xff]   ;;  %12681 = vmatpush1.bf16.msra.mxu0 %v16746_v54 }
 0xd8f   : > { %10992 = vmatpush1.bf16.msra.mxu1 %v16662_v32  ;;  %v16749_v32 = vld [vmem:[#allocation30 + $0x60] ss:$8 sps:$4 sm:$0xff]  }
 0xd90   : > { %10993 = vmatprep.subr.bf16.mxu1 %v16667_v8  ;;  %v16754_v8 = vld [vmem:[#allocation30 + $0x164] ss:$8 sps:$4 sm:$0xff]  }
 0xd91   : > { %12682 = vmatprep.subr.bf16.mxu0 %v16754_v8 }
 0xd93   : > { %10994 = vmatpush1.bf16.msra.mxu1 %v16665_v0  ;;  %v16752_v0 = vld [vmem:[#allocation30 + $0x160] ss:$8 sps:$4 sm:$0xff]  }
 0xd94   : > { %10995 = vmatprep.subr.bf16.mxu1 %v16670_v5  ;;  %v16757_v5 = vld [vmem:[#allocation30 + $0x74] ss:$8 sps:$4 sm:$0xff]   ;;  %12683 = vmatpush1.bf16.msra.mxu0 %v16752_v0 }
 0xd97   : > { %10996 = vmatpush1.bf16.msra.mxu1 %v16668_v17  ;;  %v16755_v17 = vld [vmem:[#allocation30 + $0x70] ss:$8 sps:$4 sm:$0xff]  }
 0xd98   : > { %10997 = vmatprep.subr.bf16.mxu1 %v16673_v43  ;;  %v16760_v43 = vld [vmem:[#allocation30 + $0x174] ss:$8 sps:$4 sm:$0xff]  }
 0xd99   : > { %12684 = vmatprep.subr.bf16.mxu0 %v16760_v43 }
 0xd9b   : > { %10998 = vmatpush1.bf16.msra.mxu1 %v16671_v6  ;;  %v16758_v6 = vld [vmem:[#allocation30 + $0x170] ss:$8 sps:$4 sm:$0xff]  }
 0xd9c   : > { %10999 = vmatprep.subr.bf16.mxu1 %v16676_v53  ;;  %v16763_v53 = vld [vmem:[#allocation30 + $0x84] ss:$8 sps:$4 sm:$0xff]   ;;  %12685 = vmatpush1.bf16.msra.mxu0 %v16758_v6 }
 0xd9f   : > { %11000 = vmatpush1.bf16.msra.mxu1 %v16674_v4  ;;  %v16761_v4 = vld [vmem:[#allocation30 + $0x80] ss:$8 sps:$4 sm:$0xff]  }
 0xda0   : > { %11001 = vmatprep.subr.bf16.mxu1 %v16679_v3  ;;  %v16766_v3 = vld [vmem:[#allocation30 + $0x184] ss:$8 sps:$4 sm:$0xff]  }
 0xda1   : > { %12686 = vmatprep.subr.bf16.mxu0 %v16766_v3 }
 0xda3   : > { %11002 = vmatpush1.bf16.msra.mxu1 %v16677_v61  ;;  %v16764_v61 = vld [vmem:[#allocation30 + $0x180] ss:$8 sps:$4 sm:$0xff]  }
 0xda4   : > { %11003 = vmatprep.subr.bf16.mxu1 %v16682_v30  ;;  %v16769_v30 = vld [vmem:[#allocation30 + $0x94] ss:$8 sps:$4 sm:$0xff]   ;;  %12687 = vmatpush1.bf16.msra.mxu0 %v16764_v61 }
 0xda7   : > { %11004 = vmatpush1.bf16.msra.mxu1 %v16680_v33  ;;  %v16767_v33 = vld [vmem:[#allocation30 + $0x90] ss:$8 sps:$4 sm:$0xff]  }
 0xda8   : > { %11005 = vmatprep.subr.bf16.mxu1 %v16685_v57  ;;  %v16772_v57 = vld [vmem:[#allocation30 + $0x194] ss:$8 sps:$4 sm:$0xff]  }
 0xda9   : > { %12688 = vmatprep.subr.bf16.mxu0 %v16772_v57 }
 0xdab   : > { %11006 = vmatpush1.bf16.msra.mxu1 %v16683_v51  ;;  %v16770_v51 = vld [vmem:[#allocation30 + $0x190] ss:$8 sps:$4 sm:$0xff]  }
 0xdac   : > { %11007 = vmatprep.subr.bf16.mxu1 %v16688_v42  ;;  %v16775_v42 = vld [vmem:[#allocation30 + $0xa4] ss:$8 sps:$4 sm:$0xff]   ;;  %12689 = vmatpush1.bf16.msra.mxu0 %v16770_v51 }
 0xdaf   : > { %11008 = vmatpush1.bf16.msra.mxu1 %v16686_v50  ;;  %v16773_v50 = vld [vmem:[#allocation30 + $0xa0] ss:$8 sps:$4 sm:$0xff]  }
 0xdb0   : > { %11018 = vmatprep.subr.bf16.mxu1 %v16691_v45  ;;  %v16778_v45 = vld [vmem:[#allocation30 + $0x1a4] ss:$8 sps:$4 sm:$0xff]  }
 0xdb1   : > { %12690 = vmatprep.subr.bf16.mxu0 %v16778_v45 }
 0xdb2   : > { %11010 = vmatmul.mubr.bf16.vlgmr.msra.gmra.mrb[72].mxu1 %v10207_v55  ;;  %v16779_v55 = vld [vmem:[#allocation30 + $0xb0] ss:$8 sps:$4 sm:$0xff]   ;;  %12691 = vmatpush1.bf16.msra.mxu0 %v16776_v20 }
 0xdb3   : > { %11019 = vmatpush1.bf16.msra.mxu1 %v16689_v41  ;;  %11050 = vmatprep.mubr.bf16.mxu1 %v17666_v19  ;;  %v16781_v41 = vld [vmem:[#allocation30 + $0xb4] ss:$8 sps:$4 sm:$0xff]  }
 0xdb4   : > { %11020 = vmatprep.subr.bf16.mxu1 %v16694_v40  ;;  %v16784_v40 = vld [vmem:[#allocation30 + $0x1b4] ss:$8 sps:$4 sm:$0xff]  }
 0xdb5   : > { %12692 = vmatprep.subr.bf16.mxu0 %v16784_v40 }
 0xdb7   : > { %11021 = vmatpush1.bf16.msra.mxu1 %v16692_v12  ;;  %v16782_v12 = vld [vmem:[#allocation30 + $0x1b0] ss:$8 sps:$4 sm:$0xff]  }
 0xdb8   : > { %11022 = vmatprep.subr.bf16.mxu1 %v16697_v23  ;;  %v16787_v23 = vld [vmem:[#allocation30 + $0xc4] ss:$8 sps:$4 sm:$0xff]   ;;  %12693 = vmatpush1.bf16.msra.mxu0 %v16782_v12 }
 0xdbb   : > { %11023 = vmatpush1.bf16.msra.mxu1 %v16695_v24  ;;  %v16785_v24 = vld [vmem:[#allocation30 + $0xc0] ss:$8 sps:$4 sm:$0xff]  }
 0xdbc   : > { %11024 = vmatprep.subr.bf16.mxu1 %v16700_v14  ;;  %v16790_v14 = vld [vmem:[#allocation30 + $0x1c4] ss:$8 sps:$4 sm:$0xff]  }
 0xdbd   : > { %12694 = vmatprep.subr.bf16.mxu0 %v16790_v14 }
 0xdbf   : > { %11025 = vmatpush1.bf16.msra.mxu1 %v16698_v7  ;;  %v16788_v7 = vld [vmem:[#allocation30 + $0x1c0] ss:$8 sps:$4 sm:$0xff]  }
 0xdc0   : > { %11026 = vmatprep.subr.bf16.mxu1 %v16703_v35  ;;  %v16793_v35 = vld [vmem:[#allocation30 + $0xd4] ss:$8 sps:$4 sm:$0xff]   ;;  %12695 = vmatpush1.bf16.msra.mxu0 %v16788_v7 }
 0xdc3   : > { %11027 = vmatpush1.bf16.msra.mxu1 %v16701_v62  ;;  %v16791_v62 = vld [vmem:[#allocation30 + $0xd0] ss:$8 sps:$4 sm:$0xff]  }
 0xdc4   : > { %11028 = vmatprep.subr.bf16.mxu1 %v16706_v44  ;;  %v16794_v44 = vld [vmem:[#allocation30 + $0x1d0] ss:$8 sps:$4 sm:$0xff]  }
 0xdc7   : > { %11029 = vmatpush1.bf16.msra.mxu1 %v16704_v48  ;;  %v16796_v48 = vld [vmem:[#allocation30 + $0x1d4] ss:$8 sps:$4 sm:$0xff]  }
 0xdc8   : > { %11030 = vmatprep.subr.bf16.mxu1 %v16709_v10  ;;  %v16797_v10 = vld [vmem:[#allocation30 + $0xe0] ss:$8 sps:$4 sm:$0xff]   ;;  %12696 = vmatprep.subr.bf16.mxu0 %v16796_v48 }
 0xdc9   : > { %12697 = vmatpush1.bf16.msra.mxu0 %v16794_v44 }
 0xdcb   : > { %11031 = vmatpush1.bf16.msra.mxu1 %v16707_v13  ;;  %v16799_v13 = vld [vmem:[#allocation30 + $0xe4] ss:$8 sps:$4 sm:$0xff]  }
 0xdcc   : > { %11032 = vmatprep.subr.bf16.mxu1 %v16712_v15  ;;  %v16802_v15 = vld [vmem:[#allocation30 + $0x1e4] ss:$8 sps:$4 sm:$0xff]  }
 0xdcd   : > { %12698 = vmatprep.subr.bf16.mxu0 %v16802_v15 }
 0xdce   : > { %12699 = vmatpush1.bf16.msra.mxu0 %v16800_v1 }
 0xdcf   : > { %11033 = vmatpush1.bf16.msra.mxu1 %v16710_v63  ;;  %v16805_v63 = vld [vmem:[#allocation30 + $0xf4] ss:$8 sps:$4 sm:$0xff]  }
 0xdd0   : > { %12629 = vmatprep.subr.bf16.mxu1 %v16715_v36  ;;  %v16808_v36 = vld [vmem:[#allocation30 + $0x1f4] ss:$8 sps:$4 sm:$0xff]  }
 0xdd1   : > { %12700 = vmatprep.subr.bf16.mxu0 %v16808_v36 }
 0xdd2   : > { %11051 = vmatmul.mubr.bf16.vlgmr.msra.gmra.mrb[72].mxu1 %v10209_v22  ;;  %v16803_v22 = vld [vmem:[#allocation30 + $0xf0] ss:$8 sps:$4 sm:$0xff]  }
 0xdd3   : > { %12630 = vmatpush1.bf16.msra.mxu1 %v16713_v9  ;;  %v16806_v9 = vld [vmem:[#allocation30 + $0x1f0] ss:$8 sps:$4 sm:$0xff]  }
 0xdd4   : > { %12631 = vmatprep.subr.bf16.mxu1 %v16721_v37  ;;  %12701 = vmatpush1.bf16.msra.mxu0 %v16806_v9  ;;  %v10325_v37 = vlaneseq }
 0xdd5   : > { %12711 = vmatprep.subr.bf16.mxu0 %v16814_v58 }
 0xdd7   : > { %12632 = vmatpush1.bf16.msra.mxu1 %v16719_v2  ;;  %v19982_v2 = vshrl.u32 %v10325_v37, 7 }
 0xdd8   : > { %12633 = vmatprep.subr.bf16.mxu1 %v16727_v29 }
 0xdd9   : > { %v19985_v60 = vsub.s32 0, %v19982_v2  ;;  %v19991_v29 = vsub.s32 1, %v19982_v2  ;;  %vm13176_vm14 = vcmp.lt.s32.totalorder %v19982_v2, 2 }
 0xddb   : > { %12634 = vmatpush1.bf16.msra.mxu1 %v16725_v25  ;;  %v10328_v25 = vrot.slane %v13970_v49, %v19985_v60  ;;  %v10332_v26 = vrot.slane %v13970_v49, %v19991_v29 }
 0xddc   : > { %12635 = vmatprep.subr.bf16.mxu1 %v16733_v27 }
 0xddf   : > { %12636 = vmatpush1.bf16.msra.mxu1 %v16731_v21 }
 0xde0   : > { %12637 = vmatprep.subr.bf16.mxu1 %v16739_v28 }
 0xde3   : > { %12638 = vmatpush1.bf16.msra.mxu1 %v16737_v38 }
 0xde4   : > { %12639 = vmatprep.subr.bf16.mxu1 %v16745_v31 }
 0xde7   : > { %12640 = vmatpush1.bf16.msra.mxu1 %v16743_v56 }
 0xde8   : > { %12641 = vmatprep.subr.bf16.mxu1 %v16751_v16 }
 0xdeb   : > { %12642 = vmatpush1.bf16.msra.mxu1 %v16749_v32 }
 0xdec   : > { %12643 = vmatprep.subr.bf16.mxu1 %v16757_v5 }
 0xdef   : > { %12644 = vmatpush1.bf16.msra.mxu1 %v16755_v17 }
 0xdf0   : > { %12645 = vmatprep.subr.bf16.mxu1 %v16763_v53 }
 0xdf3   : > { %12646 = vmatpush1.bf16.msra.mxu1 %v16761_v4 }
 0xdf4   : > { %12647 = vmatprep.subr.bf16.mxu1 %v16769_v30 }
 0xdf7   : > { %12648 = vmatpush1.bf16.msra.mxu1 %v16767_v33 }
 0xdf8   : > { %12649 = vmatprep.subr.bf16.mxu1 %v16775_v42 }
 0xdfb   : > { %12650 = vmatpush1.bf16.msra.mxu1 %v16773_v50 }
 0xdfc   : > { %12651 = vmatprep.subr.bf16.mxu1 %v16781_v41 }
 0xdff   : > { %12652 = vmatpush1.bf16.msra.mxu1 %v16779_v55 }
 0xe00   : > { %12653 = vmatprep.subr.bf16.mxu1 %v16787_v23 }
 0xe03   : > { %12654 = vmatpush1.bf16.msra.mxu1 %v16785_v24 }
 0xe04   : > { %12655 = vmatprep.subr.bf16.mxu1 %v16793_v35 }
 0xe07   : > { %12656 = vmatpush1.bf16.msra.mxu1 %v16791_v62 }
 0xe08   : > { %12657 = vmatprep.subr.bf16.mxu1 %v16799_v13 }
 0xe0b   : > { %12658 = vmatpush1.bf16.msra.mxu1 %v16797_v10 }
 0xe0c   : > { %12659 = vmatprep.subr.bf16.mxu1 %v16805_v63 }
 0xe0f   : > { %12660 = vmatpush1.bf16.msra.mxu1 %v16803_v22 }
 0xe10   : > { %13079 = vmatprep.subr.bf16.mxu1 %v16811_v46 }
 0xea5   : > { %v11052_v34 = vpop.f32.mrb[72].mxu1 }
 0xea6   : > { %v15724_v27 = vadd.f32 %v11052_v34, %v10328_v25  ;;  %v11054_v21 = vpop.f32.mrb[73].mxu1  ;;  %v16809_v34 = vld [vmem:[%s20345_s30] ss:$8 sps:$4 sm:$0xff]  }
 0xea7   : > { %v15725_v11 = vadd.f32 %v11054_v21, %v10332_v26  ;;  %v11056_v52 = vpop.f32.mrb[74].mxu1  ;;  %v17310_v26 = vld [vmem:[#allocation12 + $0xf] sm:$0xff] }
 0xea8   : > { %v11061_v28 = vmul.f32 0.70710677, %v15724_v27  ;;  %v11057_v38 = vpop.f32.mrb[75].mxu1  ;;  %v11059_v22 = vmul.f32 0.5, %v15724_v27 }
 0xea9   : > { %v11062_v59 = vmul.f32 0.70710677, %v15725_v11  ;;  %v11060_v9 = vmul.f32 0.5, %v15725_v11 }
 0xeaa   : > { %v11067_v47 = vand.u32 2147483647, %v11061_v28  ;;  %vm11063_vm3 = vcmp.ge.f32.partialorder %v11061_v28, 0.0 }
 0xeab   : > { %v11068_v31 = vand.u32 2147483647, %v11062_v59  ;;  %vm11064_vm5 = vcmp.ge.f32.partialorder %v11062_v59, 0.0  ;;  %v11065_v10 = vsel %vm11063_vm3, 1.0, %v20329_v39 }
 0xeac   : > { %v11069_v56 = vmul.f32 0.3275911, %v11067_v47  ;;  %v11093_v32 = vsub.f32 0.0, %v11067_v47  ;;  %v11066_v63 = vsel %vm11064_vm5, 1.0, %v20329_v39 }
 0xead   : > { %v11070_v18 = vmul.f32 0.3275911, %v11068_v31  ;;  %v11094_v8 = vsub.f32 0.0, %v11068_v31 }
 0xeae   : > { %v11071_v54 = vadd.f32 1.0, %v11069_v56  ;;  %v11095_v5 = vmul.f32 %v11093_v32, %v11067_v47  ;;  %v16817_v32 = vld [vmem:[%s20345_s30 + $0x14] ss:$8 sps:$4 sm:$0xff]  }
 0xeaf   : > { %v11072_v16 = vadd.f32 1.0, %v11070_v18  ;;  %v11096_v6 = vmul.f32 %v11094_v8, %v11068_v31 }
 0xeb0   : > { %17281 = vrcp.f32 %v11071_v54  ;;  %v11097_v3 = vmul.f32 1.442695, %v11095_v5 }
 0xeb1   : > { %17283 = vrcp.f32 %v11072_v16  ;;  %v11099_v33 = vmul.f32 1.442695, %v11096_v6 }
 0xeb2   : > { %17285 = vpow2.f32 %v11097_v3  ;;  %v16815_v3 = vld [vmem:[%s20345_s30 + $0x10] ss:$8 sps:$4 sm:$0xff]  }
 0xeb3   : > { %17287 = vpow2.f32 %v11099_v33 }
 0xeba   : > { %v17282_v0 = vpop.eup %17281 }
 0xebb   : > { %v17284_v17 = vpop.eup %17283  ;;  %v11075_v43 = vmul.f32 1.0614054, %v17282_v0 }
 0xebc   : > { %v11076_v53 = vmul.f32 1.0614054, %v17284_v17  ;;  %v17286_v14 = vpop.eup %17285 }
 0xebd   : > { %v11077_v4 = vadd.f32 -1.4531521, %v11075_v43  ;;  %v17288_v35 = vpop.eup %17287 }
 0xebe   : > { %v11078_v61 = vadd.f32 -1.4531521, %v11076_v53  ;;  %v16812_v53 = vld [vmem:[#allocation30 + $0x200] ss:$8 sps:$4 sm:$0xff]  }
 0xebf   : > { %v11079_v30 = vmul.f32 %v17282_v0, %v11077_v4 }
 0xec0   : > { %v11080_v57 = vmul.f32 %v17284_v17, %v11078_v61 }
 0xec1   : > { %v11081_v51 = vadd.f32 1.4214138, %v11079_v30  ;;  %v16820_v30 = vld [vmem:[#allocation30 + $0x214] ss:$8 sps:$4 sm:$0xff]  }
 0xec2   : > { %v11082_v42 = vadd.f32 1.4214138, %v11080_v57  ;;  %v16823_v57 = vld [vmem:[%s20345_s30 + $0x24] ss:$8 sps:$4 sm:$0xff]  }
 0xec3   : > { %v11083_v50 = vmul.f32 %v17282_v0, %v11081_v51  ;;  %v16818_v51 = vld [vmem:[#allocation30 + $0x210] ss:$8 sps:$4 sm:$0xff]  }
 0xec4   : > { %v11084_v45 = vmul.f32 %v17284_v17, %v11082_v42  ;;  %v16821_v42 = vld [vmem:[%s20345_s30 + $0x20] ss:$8 sps:$4 sm:$0xff]  }
 0xec5   : > { %v11085_v20 = vadd.f32 -0.28449672, %v11083_v50  ;;  %v16826_v50 = vld [vmem:[#allocation30 + $0x224] ss:$8 sps:$4 sm:$0xff]  }
 0xec6   : > { %v11086_v41 = vadd.f32 -0.28449672, %v11084_v45  ;;  %v16824_v45 = vld [vmem:[#allocation30 + $0x220] ss:$8 sps:$4 sm:$0xff]  }
 0xec7   : > { %v11087_v55 = vmul.f32 %v17282_v0, %v11085_v20  ;;  %v16827_v20 = vld [vmem:[%s20345_s30 + $0x30] ss:$8 sps:$4 sm:$0xff]  }
 0xec8   : > { %v11088_v40 = vmul.f32 %v17284_v17, %v11086_v41  ;;  %v16832_v41 = vld [vmem:[#allocation30 + $0x234] ss:$8 sps:$4 sm:$0xff]  }
 0xec9   : > { %v11089_v12 = vadd.f32 0.2548296, %v11087_v55  ;;  %v16835_v55 = vld [vmem:[%s20345_s30 + $0x44] ss:$8 sps:$4 sm:$0xff]  }
 0xeca   : > { %v11090_v23 = vadd.f32 0.2548296, %v11088_v40  ;;  %v16830_v40 = vld [vmem:[#allocation30 + $0x230] ss:$8 sps:$4 sm:$0xff]  }
 0xecb   : > { %v11091_v24 = vmul.f32 %v17282_v0, %v11089_v12  ;;  %v16833_v12 = vld [vmem:[%s20345_s30 + $0x40] ss:$8 sps:$4 sm:$0xff]  }
 0xecc   : > { %v11092_v7 = vmul.f32 %v17284_v17, %v11090_v23  ;;  %v16838_v23 = vld [vmem:[#allocation30 + $0x244] ss:$8 sps:$4 sm:$0xff]  }
 0xecd   : > { %v11101_v62 = vmul.f32 %v17286_v14, %v11091_v24  ;;  %v16841_v24 = vld [vmem:[%s20345_s30 + $0x54] ss:$8 sps:$4 sm:$0xff]   ;;  %v16836_v14 = vld [vmem:[#allocation30 + $0x240] ss:$8 sps:$4 sm:$0xff]  }
 0xece   : > { %v11102_v44 = vmul.f32 %v17288_v35, %v11092_v7  ;;  %v16839_v7 = vld [vmem:[%s20345_s30 + $0x50] ss:$8 sps:$4 sm:$0xff]  }
 0xecf   : > { %v11103_v48 = vsub.f32 1.0, %v11101_v62  ;;  %v16844_v35 = vld [vmem:[#allocation30 + $0x254] ss:$8 sps:$4 sm:$0xff]   ;;  %v16847_v62 = vld [vmem:[%s20345_s30 + $0x64] ss:$8 sps:$4 sm:$0xff]  }
 0xed0   : > { %v11104_v13 = vsub.f32 1.0, %v11102_v44  ;;  %v16842_v44 = vld [vmem:[#allocation30 + $0x250] ss:$8 sps:$4 sm:$0xff]  }
 0xed1   : > { %v11105_v15 = vmul.f32 %v11103_v48, %v11065_v10  ;;  %v16845_v48 = vld [vmem:[%s20345_s30 + $0x60] ss:$8 sps:$4 sm:$0xff]  }
 0xed2   : > { %v11106_v1 = vmul.f32 %v11104_v13, %v11066_v63  ;;  %v16850_v10 = vld [vmem:[#allocation30 + $0x264] ss:$8 sps:$4 sm:$0xff]   ;;  %v16853_v13 = vld [vmem:[%s20345_s30 + $0x74] ss:$8 sps:$4 sm:$0xff]  }
 0xed3   : > { %v11107_v36 = vadd.f32 1.0, %v11105_v15  ;;  %v16848_v15 = vld [vmem:[#allocation30 + $0x260] ss:$8 sps:$4 sm:$0xff]   ;;  %v16851_v63 = vld [vmem:[%s20345_s30 + $0x70] ss:$8 sps:$4 sm:$0xff]  }
 0xed4   : > { %v11108_v46 = vadd.f32 1.0, %v11106_v1  ;;  %v16856_v1 = vld [vmem:[#allocation30 + $0x274] ss:$8 sps:$4 sm:$0xff]  }
 0xed5   : > { %v11109_v58 = vmul.f32 %v11107_v36, %v11059_v22  ;;  %v12968_v22 = vld [vmem:[#allocation12 + $0x3] ss:$2 sm:$0xff] }
 0xed6   : > { %v11110_v37 = vmul.f32 %v11108_v46, %v11060_v9  ;;  %v16854_v36 = vld [vmem:[#allocation30 + $0x270] ss:$8 sps:$4 sm:$0xff]   ;;  %v16859_v9 = vld [vmem:[#allocation30 + $0x284] ss:$8 sps:$4 sm:$0xff]   ;;  %v12969_v46 = vpack.c.bf16 %v12968_v22, %v12968_v22 }
 0xed7   : > { %v11115_v49 = vrot.slane %v11109_v58, 5  ;;  %v16857_v58 = vld [vmem:[#allocation30 + $0x280] ss:$8 sps:$4 sm:$0xff]  }
 0xed8   : > { %v11116_v25 = vrot.slane %v11110_v37, 5  ;;  %v16862_v37 = vld [vmem:[#allocation30 + $0x294] ss:$8 sps:$4 sm:$0xff]  }
 0xed9   : > { %11119 = vst [vmem:[#allocation14] sm:$0xf8] %v11115_v49  ;;  %11121 = vst [vmem:[#allocation14 + $0x10] sm:$0x7] %v11115_v49  ;;  %v16860_v49 = vld [vmem:[#allocation30 + $0x290] ss:$8 sps:$4 sm:$0xff]  }
 0xeda   : > { %11123 = vst [vmem:[#allocation14] sm:$0xe0] %v17310_v26  ;;  %11125 = vst [vmem:[#allocation14 + $0x10] sm:$0xff] %v17310_v26 }
 0xedb   : > { %11120 = vst [vmem:[#allocation14 + $0x8] sm:$0xf8] %v11116_v25  ;;  %11122 = vst [vmem:[#allocation14 + $0x18] sm:$0x7] %v11116_v25  ;;  %v16865_v25 = vld [vmem:[#allocation30 + $0x2a4] ss:$8 sps:$4 sm:$0xff]  }
 0xedc   : > { %11124 = vst [vmem:[#allocation14 + $0x8] sm:$0xe0] %v17310_v26  ;;  %11126 = vst [vmem:[#allocation14 + $0x18] sm:$0xff] %v17310_v26  ;;  %v16863_v26 = vld [vmem:[#allocation30 + $0x2a0] ss:$8 sps:$4 sm:$0xff]  }
 0xee1   : > { %v11127_v27 = vld [vmem:[#allocation14] sm:$0xff]  ;;  %v11133_v11 = vld [vmem:[#allocation14 + $0x10] sm:$0x1] }
 0xee2   : > { %v11131_v21 = vld [vmem:[#allocation14] sm:$0xfe]  ;;  %v11141_v18 = vrot.slane %v11133_v11, 1  ;;  %v11258_v16 = vpack.c.bf16 %v11127_v27, %v11127_v27  ;;  %v16866_v27 = vld [vmem:[#allocation30 + $0x2b0] ss:$8 sps:$4 sm:$0xff]  }
 0xee3   : > { %v11128_v52 = vld [vmem:[#allocation14 + $0x8] sm:$0xff]  ;;  %v11134_v38 = vld [vmem:[#allocation14 + $0x18] sm:$0x1]  ;;  %v11140_v59 = vrot.slane %v11131_v21, 1  ;;  %v16869_v11 = vld [vmem:[#allocation30 + $0x2c0] ss:$8 sps:$4 sm:$0xff]  }
 0xee4   : > { %v11132_v28 = vld [vmem:[#allocation14 + $0x8] sm:$0xfe]  ;;  %v11259_v47 = vpack.c.bf16 %v11128_v52, %v11128_v52  ;;  %v11144_v56 = vrot.slane %v11134_v38, 1  ;;  %v11153_v8 = vld [vmem:[#allocation14 + $0x18] sm:$0x3] }
 0xee5   : > { %v11143_v31 = vrot.slane %v11132_v28, 1  ;;  %v11151_v54 = vld [vmem:[#allocation14 + $0x8] sm:$0xfc]  ;;  %v11142_v17 = vsel %vm11139_vm6, %v11140_v59, %v11141_v18  ;;  %v11163_v43 = vrot.slane %v11153_v8, 2  ;;  %v16871_v21 = vld [vmem:[#allocation30 + $0x2c4] ss:$8 sps:$4 sm:$0xff]  }
 0xee6   : > { %v11162_v0 = vrot.slane %v11151_v54, 2  ;;  %12661 = vmatprep.mubr.bf16.mxu1 %v11259_v47  ;;  %v11260_v4 = vpack.c.bf16 %v11142_v17, %v11142_v17  ;;  %v16874_v52 = vld [vmem:[#allocation30 + $0x2d4] ss:$8 sps:$4 sm:$0xff]   ;;  %v16872_v28 = vld [vmem:[#allocation30 + $0x2d0] ss:$8 sps:$4 sm:$0xff]  }
 0xee7   : > { %v11145_v5 = vsel %vm11139_vm6, %v11143_v31, %v11144_v56  ;;  %12662 = vmatmul.mubr.bf16.vlgmr.msra.gmra.mrb[76].mxu1 %v11258_v16  ;;  %v16877_v38 = vld [vmem:[#allocation30 + $0x2e4] ss:$8 sps:$4 sm:$0xff]   ;;  %v11152_v47 = vld [vmem:[#allocation14 + $0x10] sm:$0x3]  ;;  %v16875_v31 = vld [vmem:[#allocation30 + $0x2e0] ss:$8 sps:$4 sm:$0xff]  }
 0xee8   : > { %v11261_v6 = vpack.c.bf16 %v11145_v5, %v11145_v5  ;;  %13080 = vmatpush1.bf16.msra.mxu1 %v16809_v34  ;;  %v11164_v61 = vsel %vm11158_vm7, %v11162_v0, %v11163_v43  ;;  %13111 = vmatprep.mubr.bf16.mxu1 %v17666_v19  ;;  %v16829_v19 = vld [vmem:[%s20345_s30 + $0x34] ss:$8 sps:$4 sm:$0xff]   ;;  %v11150_v59 = vld [vmem:[#allocation14] sm:$0xfc]  ;;  %v11172_v18 = vld [vmem:[#allocation14 + $0x18] sm:$0x7] }
 0xee9   : > { %13081 = vmatprep.subr.bf16.mxu1 %v16817_v32  ;;  %v11263_v33 = vpack.c.bf16 %v11164_v61, %v11164_v61  ;;  %v16868_v34 = vld [vmem:[#allocation30 + $0x2b4] ss:$8 sps:$4 sm:$0xff]   ;;  %v11159_v16 = vrot.slane %v11150_v59, 2  ;;  %v11160_v32 = vrot.slane %v11152_v47, 2  ;;  %v11182_v0 = vrot.slane %v11172_v18, 3 }
 0xeea   : > { %12702 = vmatprep.mubr.bf16.mxu0 %v11261_v6  ;;  %v11170_v56 = vld [vmem:[#allocation14 + $0x8] sm:$0xf8]  ;;  %v16883_v17 = vld [vmem:[#allocation30 + $0x304] ss:$8 sps:$4 sm:$0xff]   ;;  %v16935_v18 = vld [vmem:[#allocation30 + $0x420] ss:$8 sps:$4 sm:$0xff]  }
 0xeeb   : > { %12703 = vmatmul.mubr.bf16.vlgmr.msra.gmra.mrb[60].mxu0 %v11260_v4  ;;  %v16880_v54 = vld [vmem:[#allocation30 + $0x2f4] ss:$8 sps:$4 sm:$0xff]   ;;  %v11181_v8 = vrot.slane %v11170_v56, 3  ;;  %v16878_v5 = vld [vmem:[#allocation30 + $0x2f0] ss:$8 sps:$4 sm:$0xff]   ;;  %v11161_v43 = vsel %vm11158_vm7, %v11159_v16, %v11160_v32 }
 0xeec   : > { %12712 = vmatpush1.bf16.msra.mxu0 %v16812_v53  ;;  %12743 = vmatprep.mubr.bf16.mxu0 %v11263_v33  ;;  %v16881_v53 = vld [vmem:[#allocation30 + $0x300] ss:$8 sps:$4 sm:$0xff]   ;;  %v11262_v4 = vpack.c.bf16 %v11161_v43, %v11161_v43  ;;  %v16889_v33 = vld [vmem:[#allocation30 + $0x324] ss:$8 sps:$4 sm:$0xff]   ;;  %v16934_v59 = vld [vmem:[#allocation30 + $0x414] ss:$8 sps:$4 sm:$0xff]  }
 0xeed   : > { %13082 = vmatpush1.bf16.msra.mxu1 %v16815_v3  ;;  %12713 = vmatprep.subr.bf16.mxu0 %v16820_v30  ;;  %v11183_v6 = vsel %vm11177_vm8, %v11181_v8, %v11182_v0  ;;  %v16886_v3 = vld [vmem:[#allocation30 + $0x314] ss:$8 sps:$4 sm:$0xff]   ;;  %v16884_v30 = vld [vmem:[#allocation30 + $0x310] ss:$8 sps:$4 sm:$0xff]   ;;  %v11169_v22 = vld [vmem:[#allocation14] sm:$0xf8] }
 0xeee   : > { %13083 = vmatprep.subr.bf16.mxu1 %v16823_v57  ;;  %v11265_v61 = vpack.c.bf16 %v11183_v6, %v11183_v6  ;;  %v16887_v57 = vld [vmem:[#allocation30 + $0x320] ss:$8 sps:$4 sm:$0xff]   ;;  %v16937_v56 = vld [vmem:[#allocation30 + $0x424] ss:$8 sps:$4 sm:$0xff]   ;;  %v16938_v16 = vld [vmem:[#allocation30 + $0x430] ss:$8 sps:$4 sm:$0xff]  }
 0xeef   : > { %v16943_v32 = vld [vmem:[#allocation30 + $0x444] ss:$8 sps:$4 sm:$0xff]   ;;  %v16941_v8 = vld [vmem:[#allocation30 + $0x440] ss:$8 sps:$4 sm:$0xff]   ;;  %v16946_v0 = vld [vmem:[#allocation30 + $0x454] ss:$8 sps:$4 sm:$0xff]  }
 0xef0   : > { %12714 = vmatpush1.bf16.msra.mxu0 %v16818_v51  ;;  %v16892_v51 = vld [vmem:[#allocation30 + $0x334] ss:$8 sps:$4 sm:$0xff]   ;;  %v16947_v43 = vld [vmem:[#allocation30 + $0x460] ss:$8 sps:$4 sm:$0xff]  }
 0xef1   : > { %13084 = vmatpush1.bf16.msra.mxu1 %v16821_v42  ;;  %12715 = vmatprep.subr.bf16.mxu0 %v16826_v50  ;;  %v16890_v42 = vld [vmem:[#allocation30 + $0x330] ss:$8 sps:$4 sm:$0xff]   ;;  %v16895_v50 = vld [vmem:[#allocation30 + $0x344] ss:$8 sps:$4 sm:$0xff]   ;;  %v16952_v6 = vld [vmem:[#allocation30 + $0x474] ss:$8 sps:$4 sm:$0xff]  }
 0xef2   : > { %13085 = vmatprep.subr.bf16.mxu1 %v16829_v19  ;;  %v16893_v19 = vld [vmem:[#allocation30 + $0x340] ss:$8 sps:$4 sm:$0xff]  }
 0xef4   : > { %12716 = vmatpush1.bf16.msra.mxu0 %v16824_v45  ;;  %v16898_v45 = vld [vmem:[#allocation30 + $0x354] ss:$8 sps:$4 sm:$0xff]  }
 0xef5   : > { %13086 = vmatpush1.bf16.msra.mxu1 %v16827_v20  ;;  %12717 = vmatprep.subr.bf16.mxu0 %v16832_v41  ;;  %v16896_v20 = vld [vmem:[#allocation30 + $0x350] ss:$8 sps:$4 sm:$0xff]   ;;  %v16901_v41 = vld [vmem:[#allocation30 + $0x364] ss:$8 sps:$4 sm:$0xff]  }
 0xef6   : > { %13087 = vmatprep.subr.bf16.mxu1 %v16835_v55  ;;  %v16899_v55 = vld [vmem:[#allocation30 + $0x360] ss:$8 sps:$4 sm:$0xff]  }
 0xef8   : > { %12718 = vmatpush1.bf16.msra.mxu0 %v16830_v40  ;;  %v16904_v40 = vld [vmem:[#allocation30 + $0x374] ss:$8 sps:$4 sm:$0xff]  }
 0xef9   : > { %13088 = vmatpush1.bf16.msra.mxu1 %v16833_v12  ;;  %12719 = vmatprep.subr.bf16.mxu0 %v16838_v23  ;;  %v16902_v12 = vld [vmem:[#allocation30 + $0x370] ss:$8 sps:$4 sm:$0xff]   ;;  %v16907_v23 = vld [vmem:[#allocation30 + $0x384] ss:$8 sps:$4 sm:$0xff]  }
 0xefa   : > { %13089 = vmatprep.subr.bf16.mxu1 %v16841_v24  ;;  %v16905_v24 = vld [vmem:[#allocation30 + $0x380] ss:$8 sps:$4 sm:$0xff]  }
 0xefc   : > { %12720 = vmatpush1.bf16.msra.mxu0 %v16836_v14  ;;  %v16910_v14 = vld [vmem:[#allocation30 + $0x394] ss:$8 sps:$4 sm:$0xff]  }
 0xefd   : > { %13090 = vmatpush1.bf16.msra.mxu1 %v16839_v7  ;;  %12721 = vmatprep.subr.bf16.mxu0 %v16844_v35  ;;  %v16908_v7 = vld [vmem:[#allocation30 + $0x390] ss:$8 sps:$4 sm:$0xff]   ;;  %v16913_v35 = vld [vmem:[#allocation30 + $0x3a4] ss:$8 sps:$4 sm:$0xff]  }
 0xefe   : > { %13091 = vmatprep.subr.bf16.mxu1 %v16847_v62  ;;  %v16911_v62 = vld [vmem:[#allocation30 + $0x3a0] ss:$8 sps:$4 sm:$0xff]  }
 0xf00   : > { %12722 = vmatpush1.bf16.msra.mxu0 %v16842_v44  ;;  %v16916_v44 = vld [vmem:[#allocation30 + $0x3b4] ss:$8 sps:$4 sm:$0xff]  }
 0xf01   : > { %13092 = vmatpush1.bf16.msra.mxu1 %v16845_v48  ;;  %12723 = vmatprep.subr.bf16.mxu0 %v16850_v10  ;;  %v16914_v48 = vld [vmem:[#allocation30 + $0x3b0] ss:$8 sps:$4 sm:$0xff]   ;;  %v16919_v10 = vld [vmem:[#allocation30 + $0x3c4] ss:$8 sps:$4 sm:$0xff]  }
 0xf02   : > { %13093 = vmatprep.subr.bf16.mxu1 %v16853_v13  ;;  %v16917_v13 = vld [vmem:[#allocation30 + $0x3c0] ss:$8 sps:$4 sm:$0xff]  }
 0xf04   : > { %12724 = vmatpush1.bf16.msra.mxu0 %v16848_v15  ;;  %v16922_v15 = vld [vmem:[#allocation30 + $0x3d4] ss:$8 sps:$4 sm:$0xff]  }
 0xf05   : > { %13094 = vmatpush1.bf16.msra.mxu1 %v16851_v63  ;;  %12725 = vmatprep.subr.bf16.mxu0 %v16856_v1  ;;  %v16920_v63 = vld [vmem:[#allocation30 + $0x3d0] ss:$8 sps:$4 sm:$0xff]   ;;  %v16925_v1 = vld [vmem:[#allocation30 + $0x3e4] ss:$8 sps:$4 sm:$0xff]  }
 0xf08   : > { %12726 = vmatpush1.bf16.msra.mxu0 %v16854_v36  ;;  %13112 = vmatmul.mubr.bf16.vlgmr.msra.gmra.mrb[80].mxu1 %v12969_v46  ;;  %v11171_v36 = vld [vmem:[#allocation14 + $0x10] sm:$0x7]  ;;  %v11189_v46 = vld [vmem:[#allocation14 + $0x8] sm:$0xf0] }
 0xf09   : > { %12727 = vmatprep.subr.bf16.mxu0 %v16859_v9  ;;  %v16923_v9 = vld [vmem:[#allocation30 + $0x3e0] ss:$8 sps:$4 sm:$0xff]  }
 0xf0c   : > { %12728 = vmatpush1.bf16.msra.mxu0 %v16857_v58  ;;  %v11191_v58 = vld [vmem:[#allocation14 + $0x18] sm:$0xf] }
 0xf0d   : > { %12729 = vmatprep.subr.bf16.mxu0 %v16862_v37  ;;  %v16928_v37 = vld [vmem:[#allocation30 + $0x3f4] ss:$8 sps:$4 sm:$0xff]  }
 0xf10   : > { %12730 = vmatpush1.bf16.msra.mxu0 %v16860_v49  ;;  %v11178_v49 = vrot.slane %v11169_v22, 3 }
 0xf11   : > { %12731 = vmatprep.subr.bf16.mxu0 %v16865_v25  ;;  %v11179_v25 = vrot.slane %v11171_v36, 3  ;;  %v16982_v36 = vld [vmem:[#allocation30 + $0x514] ss:$8 sps:$4 sm:$0xff]  }
 0xf14   : > { %12732 = vmatpush1.bf16.msra.mxu0 %v16863_v26  ;;  %v11200_v26 = vrot.slane %v11189_v46, 4  ;;  %v16985_v46 = vld [vmem:[#allocation30 + $0x524] ss:$8 sps:$4 sm:$0xff]  }
 0xf15   : > { %12733 = vmatprep.subr.bf16.mxu0 %v16868_v34  ;;  %v11201_v34 = vrot.slane %v11191_v58, 4  ;;  %v16983_v58 = vld [vmem:[#allocation30 + $0x520] ss:$8 sps:$4 sm:$0xff]  }
 0xf18   : > { %12734 = vmatpush1.bf16.msra.mxu0 %v16866_v27  ;;  %v16926_v27 = vld [vmem:[#allocation30 + $0x3f0] ss:$8 sps:$4 sm:$0xff]  }
 0xf19   : > { %12735 = vmatprep.subr.bf16.mxu0 %v16871_v21  ;;  %v16931_v21 = vld [vmem:[#allocation30 + $0x404] ss:$8 sps:$4 sm:$0xff]  }
 0xf1c   : > { %12736 = vmatpush1.bf16.msra.mxu0 %v16869_v11  ;;  %v11180_v11 = vsel %vm11177_vm8, %v11178_v49, %v11179_v25  ;;  %v16986_v49 = vld [vmem:[#allocation30 + $0x530] ss:$8 sps:$4 sm:$0xff]   ;;  %v16991_v25 = vld [vmem:[#allocation30 + $0x544] ss:$8 sps:$4 sm:$0xff]  }
 0xf1d   : > { %12737 = vmatprep.subr.bf16.mxu0 %v16874_v52  ;;  %v11202_v52 = vsel %vm11196_vm10, %v11200_v26, %v11201_v34  ;;  %v16989_v26 = vld [vmem:[#allocation30 + $0x540] ss:$8 sps:$4 sm:$0xff]   ;;  %v16994_v34 = vld [vmem:[#allocation30 + $0x554] ss:$8 sps:$4 sm:$0xff]  }
 0xf1e   : > { %v11267_v47 = vpack.c.bf16 %v11202_v52, %v11202_v52 }
 0xf20   : > { %12738 = vmatpush1.bf16.msra.mxu0 %v16872_v28  ;;  %v16929_v28 = vld [vmem:[#allocation30 + $0x400] ss:$8 sps:$4 sm:$0xff]  }
 0xf21   : > { %12739 = vmatprep.subr.bf16.mxu0 %v16877_v38  ;;  %v11264_v38 = vpack.c.bf16 %v11180_v11, %v11180_v11  ;;  %v16992_v11 = vld [vmem:[#allocation30 + $0x550] ss:$8 sps:$4 sm:$0xff]  }
 0xf24   : > { %12740 = vmatpush1.bf16.msra.mxu0 %v16875_v31  ;;  %v16932_v31 = vld [vmem:[#allocation30 + $0x410] ss:$8 sps:$4 sm:$0xff]  }
 0xf25   : > { %12741 = vmatprep.subr.bf16.mxu0 %v16880_v54  ;;  %v16940_v54 = vld [vmem:[#allocation30 + $0x434] ss:$8 sps:$4 sm:$0xff]  }
 0xf28   : > { %12742 = vmatpush1.bf16.msra.mxu0 %v16878_v5  ;;  %v16944_v5 = vld [vmem:[#allocation30 + $0x450] ss:$8 sps:$4 sm:$0xff]  }
 0xf29   : > { %12752 = vmatprep.subr.bf16.mxu0 %v16883_v17  ;;  %v16949_v17 = vld [vmem:[#allocation30 + $0x464] ss:$8 sps:$4 sm:$0xff]  }
 0xf2b   : > { %12744 = vmatmul.mubr.bf16.vlgmr.msra.gmra.mrb[60].mxu0 %v11262_v4  ;;  %v16955_v4 = vld [vmem:[#allocation30 + $0x484] ss:$8 sps:$4 sm:$0xff]  }
 0xf2c   : > { %12753 = vmatpush1.bf16.msra.mxu0 %v16881_v53  ;;  %12784 = vmatprep.mubr.bf16.mxu0 %v11265_v61  ;;  %v16950_v53 = vld [vmem:[#allocation30 + $0x470] ss:$8 sps:$4 sm:$0xff]   ;;  %v16958_v61 = vld [vmem:[#allocation30 + $0x494] ss:$8 sps:$4 sm:$0xff]  }
 0xf2d   : > { %12754 = vmatprep.subr.bf16.mxu0 %v16886_v3  ;;  %v16953_v3 = vld [vmem:[#allocation30 + $0x480] ss:$8 sps:$4 sm:$0xff]  }
 0xf30   : > { %12755 = vmatpush1.bf16.msra.mxu0 %v16884_v30  ;;  %v16956_v30 = vld [vmem:[#allocation30 + $0x490] ss:$8 sps:$4 sm:$0xff]  }
 0xf31   : > { %12756 = vmatprep.subr.bf16.mxu0 %v16889_v33  ;;  %v16961_v33 = vld [vmem:[#allocation30 + $0x4a4] ss:$8 sps:$4 sm:$0xff]  }
 0xf34   : > { %12757 = vmatpush1.bf16.msra.mxu0 %v16887_v57  ;;  %v16959_v57 = vld [vmem:[#allocation30 + $0x4a0] ss:$8 sps:$4 sm:$0xff]  }
 0xf35   : > { %12758 = vmatprep.subr.bf16.mxu0 %v16892_v51  ;;  %v16964_v51 = vld [vmem:[#allocation30 + $0x4b4] ss:$8 sps:$4 sm:$0xff]  }
 0xf38   : > { %12759 = vmatpush1.bf16.msra.mxu0 %v16890_v42  ;;  %v16962_v42 = vld [vmem:[#allocation30 + $0x4b0] ss:$8 sps:$4 sm:$0xff]  }
 0xf39   : > { %12760 = vmatprep.subr.bf16.mxu0 %v16895_v50  ;;  %v16967_v50 = vld [vmem:[#allocation30 + $0x4c4] ss:$8 sps:$4 sm:$0xff]  }
 0xf3c   : > { %12761 = vmatpush1.bf16.msra.mxu0 %v16893_v19  ;;  %v16965_v19 = vld [vmem:[#allocation30 + $0x4c0] ss:$8 sps:$4 sm:$0xff]  }
 0xf3d   : > { %12762 = vmatprep.subr.bf16.mxu0 %v16898_v45  ;;  %v16970_v45 = vld [vmem:[#allocation30 + $0x4d4] ss:$8 sps:$4 sm:$0xff]  }
 0xf40   : > { %12763 = vmatpush1.bf16.msra.mxu0 %v16896_v20  ;;  %v16968_v20 = vld [vmem:[#allocation30 + $0x4d0] ss:$8 sps:$4 sm:$0xff]  }
 0xf41   : > { %12764 = vmatprep.subr.bf16.mxu0 %v16901_v41  ;;  %v16973_v41 = vld [vmem:[#allocation30 + $0x4e4] ss:$8 sps:$4 sm:$0xff]  }
 0xf44   : > { %12765 = vmatpush1.bf16.msra.mxu0 %v16899_v55  ;;  %v11208_v55 = vld [vmem:[#allocation14 + $0x8] sm:$0xe0] }
 0xf45   : > { %12766 = vmatprep.subr.bf16.mxu0 %v16904_v40  ;;  %v11210_v40 = vld [vmem:[#allocation14 + $0x18] sm:$0x1f] }
 0xf48   : > { %12767 = vmatpush1.bf16.msra.mxu0 %v16902_v12  ;;  %v11188_v12 = vld [vmem:[#allocation14] sm:$0xf0] }
 0xf49   : > { %12768 = vmatprep.subr.bf16.mxu0 %v16907_v23  ;;  %v11190_v23 = vld [vmem:[#allocation14 + $0x10] sm:$0xf] }
 0xf4c   : > { %12769 = vmatpush1.bf16.msra.mxu0 %v16905_v24  ;;  %v16971_v24 = vld [vmem:[#allocation30 + $0x4e0] ss:$8 sps:$4 sm:$0xff]  }
 0xf4d   : > { %12770 = vmatprep.subr.bf16.mxu0 %v16910_v14  ;;  %v16976_v14 = vld [vmem:[#allocation30 + $0x4f4] ss:$8 sps:$4 sm:$0xff]  }
 0xf50   : > { %12771 = vmatpush1.bf16.msra.mxu0 %v16908_v7  ;;  %v11219_v7 = vrot.slane %v11208_v55, 5 }
 0xf51   : > { %12772 = vmatprep.subr.bf16.mxu0 %v16913_v35  ;;  %v11220_v35 = vrot.slane %v11210_v40, 5 }
 0xf54   : > { %12773 = vmatpush1.bf16.msra.mxu0 %v16911_v62  ;;  %v11197_v62 = vrot.slane %v11188_v12, 4  ;;  %v17022_v12 = vld [vmem:[#allocation30 + $0x5f0] ss:$8 sps:$4 sm:$0xff]  }
 0xf55   : > { %12774 = vmatprep.subr.bf16.mxu0 %v16916_v44  ;;  %v11198_v44 = vrot.slane %v11190_v23, 4 }
 0xf58   : > { %12775 = vmatpush1.bf16.msra.mxu0 %v16914_v48  ;;  %v16974_v48 = vld [vmem:[#allocation30 + $0x4f0] ss:$8 sps:$4 sm:$0xff]  }
 0xf59   : > { %12776 = vmatprep.subr.bf16.mxu0 %v16919_v10  ;;  %v16979_v10 = vld [vmem:[#allocation30 + $0x504] ss:$8 sps:$4 sm:$0xff]  }
 0xf5c   : > { %12777 = vmatpush1.bf16.msra.mxu0 %v16917_v13  ;;  %v11221_v13 = vsel %vm11215_vm4, %v11219_v7, %v11220_v35  ;;  %v17025_v35 = vld [vmem:[#allocation30 + $0x600] ss:$8 sps:$4 sm:$0xff]  }
 0xf5d   : > { %12778 = vmatprep.subr.bf16.mxu0 %v16922_v15  ;;  %v11199_v15 = vsel %vm11196_vm10, %v11197_v62, %v11198_v44  ;;  %v17030_v44 = vld [vmem:[#allocation30 + $0x614] ss:$8 sps:$4 sm:$0xff]  }
 0xf5e   : > { %v11266_v22 = vpack.c.bf16 %v11199_v15, %v11199_v15  ;;  %v17036_v15 = vld [vmem:[#allocation30 + $0x634] ss:$8 sps:$4 sm:$0xff]  }
 0xf60   : > { %12779 = vmatpush1.bf16.msra.mxu0 %v16920_v63  ;;  %v16977_v63 = vld [vmem:[#allocation30 + $0x500] ss:$8 sps:$4 sm:$0xff]  }
 0xf61   : > { %12780 = vmatprep.subr.bf16.mxu0 %v16925_v1  ;;  %v11269_v1 = vpack.c.bf16 %v11221_v13, %v11221_v13  ;;  %v17031_v13 = vld [vmem:[#allocation30 + $0x620] ss:$8 sps:$4 sm:$0xff]  }
 0xf64   : > { %12781 = vmatpush1.bf16.msra.mxu0 %v16923_v9  ;;  %v16980_v9 = vld [vmem:[#allocation30 + $0x510] ss:$8 sps:$4 sm:$0xff]  }
 0xf65   : > { %12782 = vmatprep.subr.bf16.mxu0 %v16928_v37  ;;  %v16988_v37 = vld [vmem:[#allocation30 + $0x534] ss:$8 sps:$4 sm:$0xff]  }
 0xf68   : > { %12783 = vmatpush1.bf16.msra.mxu0 %v16926_v27 }
 0xf69   : > { %12793 = vmatprep.subr.bf16.mxu0 %v16931_v21 }
 0xf6b   : > { %12785 = vmatmul.mubr.bf16.vlgmr.msra.gmra.mrb[60].mxu0 %v11264_v38 }
 0xf6c   : > { %12794 = vmatpush1.bf16.msra.mxu0 %v16929_v28  ;;  %12825 = vmatprep.mubr.bf16.mxu0 %v11267_v47  ;;  %v16997_v28 = vld [vmem:[#allocation30 + $0x564] ss:$8 sps:$4 sm:$0xff]   ;;  %v17000_v47 = vld [vmem:[#allocation30 + $0x574] ss:$8 sps:$4 sm:$0xff]  }
 0xf6d   : > { %12795 = vmatprep.subr.bf16.mxu0 %v16934_v59  ;;  %v16995_v59 = vld [vmem:[#allocation30 + $0x560] ss:$8 sps:$4 sm:$0xff]  }
 0xf70   : > { %12796 = vmatpush1.bf16.msra.mxu0 %v16932_v31  ;;  %v16998_v31 = vld [vmem:[#allocation30 + $0x570] ss:$8 sps:$4 sm:$0xff]  }
 0xf71   : > { %12797 = vmatprep.subr.bf16.mxu0 %v16937_v56  ;;  %v17003_v56 = vld [vmem:[#allocation30 + $0x584] ss:$8 sps:$4 sm:$0xff]  }
 0xf74   : > { %12798 = vmatpush1.bf16.msra.mxu0 %v16935_v18  ;;  %v17001_v18 = vld [vmem:[#allocation30 + $0x580] ss:$8 sps:$4 sm:$0xff]  }
 0xf75   : > { %12799 = vmatprep.subr.bf16.mxu0 %v16940_v54  ;;  %v17006_v54 = vld [vmem:[#allocation30 + $0x594] ss:$8 sps:$4 sm:$0xff]  }
 0xf78   : > { %12800 = vmatpush1.bf16.msra.mxu0 %v16938_v16  ;;  %v17004_v16 = vld [vmem:[#allocation30 + $0x590] ss:$8 sps:$4 sm:$0xff]  }
 0xf79   : > { %12801 = vmatprep.subr.bf16.mxu0 %v16943_v32  ;;  %v17009_v32 = vld [vmem:[#allocation30 + $0x5a4] ss:$8 sps:$4 sm:$0xff]  }
 0xf7c   : > { %12802 = vmatpush1.bf16.msra.mxu0 %v16941_v8  ;;  %v17007_v8 = vld [vmem:[#allocation30 + $0x5a0] ss:$8 sps:$4 sm:$0xff]  }
 0xf7d   : > { %12803 = vmatprep.subr.bf16.mxu0 %v16946_v0  ;;  %v17012_v0 = vld [vmem:[#allocation30 + $0x5b4] ss:$8 sps:$4 sm:$0xff]  }
 0xf80   : > { %12804 = vmatpush1.bf16.msra.mxu0 %v16944_v5  ;;  %v17010_v5 = vld [vmem:[#allocation30 + $0x5b0] ss:$8 sps:$4 sm:$0xff]  }
 0xf81   : > { %12805 = vmatprep.subr.bf16.mxu0 %v16949_v17  ;;  %v17015_v17 = vld [vmem:[#allocation30 + $0x5c4] ss:$8 sps:$4 sm:$0xff]  }
 0xf84   : > { %12806 = vmatpush1.bf16.msra.mxu0 %v16947_v43  ;;  %v17013_v43 = vld [vmem:[#allocation30 + $0x5c0] ss:$8 sps:$4 sm:$0xff]  }
 0xf85   : > { %12807 = vmatprep.subr.bf16.mxu0 %v16952_v6  ;;  %v17018_v6 = vld [vmem:[#allocation30 + $0x5d4] ss:$8 sps:$4 sm:$0xff]  }
 0xf88   : > { %12808 = vmatpush1.bf16.msra.mxu0 %v16950_v53 }
 0xf89   : > { %12809 = vmatprep.subr.bf16.mxu0 %v16955_v4 }
 0xf8c   : > { %12810 = vmatpush1.bf16.msra.mxu0 %v16953_v3  ;;  %v17016_v3 = vld [vmem:[#allocation30 + $0x5d0] ss:$8 sps:$4 sm:$0xff]  }
 0xf8d   : > { %12811 = vmatprep.subr.bf16.mxu0 %v16958_v61  ;;  %v17021_v61 = vld [vmem:[#allocation30 + $0x5e4] ss:$8 sps:$4 sm:$0xff]  }
 0xf90   : > { %12812 = vmatpush1.bf16.msra.mxu0 %v16956_v30 }
 0xf91   : > { %12813 = vmatprep.subr.bf16.mxu0 %v16961_v33  ;;  %v11207_v33 = vld [vmem:[#allocation14] sm:$0xe0] }
 0xf94   : > { %12814 = vmatpush1.bf16.msra.mxu0 %v16959_v57  ;;  %v11209_v57 = vld [vmem:[#allocation14 + $0x10] sm:$0x1f] }
 0xf95   : > { %12815 = vmatprep.subr.bf16.mxu0 %v16964_v51 }
 0xf98   : > { %12816 = vmatpush1.bf16.msra.mxu0 %v16962_v42  ;;  %v11227_v42 = vld [vmem:[#allocation14 + $0x8] sm:$0xc0] }
 0xf99   : > { %12817 = vmatprep.subr.bf16.mxu0 %v16967_v50  ;;  %v11229_v50 = vld [vmem:[#allocation14 + $0x18] sm:$0x3f]  ;;  %v11237_v55 = vrot.slane %v11227_v42, 6 }
 0xf9a   : > { %v11238_v40 = vrot.slane %v11229_v50, 6  ;;  %v13211_v50 = vld [vmem:[%s20347_s15 + $0x90] sm:$0xff] }
 0xf9c   : > { %12818 = vmatpush1.bf16.msra.mxu0 %v16965_v19  ;;  %v17019_v19 = vld [vmem:[#allocation30 + $0x5e0] ss:$8 sps:$4 sm:$0xff]  }
 0xf9d   : > { %12819 = vmatprep.subr.bf16.mxu0 %v16970_v45  ;;  %v11216_v45 = vrot.slane %v11207_v33, 5 }
 0xfa0   : > { %12820 = vmatpush1.bf16.msra.mxu0 %v16968_v20  ;;  %v11217_v20 = vrot.slane %v11209_v57, 5  ;;  %v13193_v57 = vld [vmem:[%s20347_s15] sm:$0xff] }
 0xfa1   : > { %12821 = vmatprep.subr.bf16.mxu0 %v16973_v41  ;;  %v17024_v41 = vld [vmem:[#allocation30 + $0x5f4] ss:$8 sps:$4 sm:$0xff]  }
 0xfa2   : > { %v11218_v23 = vsel %vm11215_vm4, %v11216_v45, %v11217_v20  ;;  %v13195_v20 = vld [vmem:[%s20347_s15 + $0x10] sm:$0xff] }
 0xfa3   : > { %v11268_v7 = vpack.c.bf16 %v11218_v23, %v11218_v23  ;;  %v13197_v23 = vld [vmem:[%s20347_s15 + $0x20] sm:$0xff] }
 0xfa4   : > { %12822 = vmatpush1.bf16.msra.mxu0 %v16971_v24  ;;  %v17027_v24 = vld [vmem:[#allocation30 + $0x604] ss:$8 sps:$4 sm:$0xff]  }
 0xfa5   : > { %12823 = vmatprep.subr.bf16.mxu0 %v16976_v14  ;;  %v11239_v14 = vsel %vm800_vm2, %v11237_v55, %v11238_v40  ;;  %v13213_v40 = vld [vmem:[%s20347_s15 + $0xa0] sm:$0xff] }
 0xfa6   : > { %v11271_v62 = vpack.c.bf16 %v11239_v14, %v11239_v14  ;;  %v13198_v14 = vld [vmem:[%s20347_s15 + $0x28] sm:$0xff] }
 0xfa8   : > { %12824 = vmatpush1.bf16.msra.mxu0 %v16974_v48  ;;  %v17028_v48 = vld [vmem:[#allocation30 + $0x610] ss:$8 sps:$4 sm:$0xff]  }
 0xfa9   : > { %12834 = vmatprep.subr.bf16.mxu0 %v16979_v10  ;;  %v17033_v10 = vld [vmem:[#allocation30 + $0x624] ss:$8 sps:$4 sm:$0xff]  }
 0xfab   : > { %12826 = vmatmul.mubr.bf16.vlgmr.msra.gmra.mrb[60].mxu0 %v11266_v22  ;;  %v17037_v22 = vld [vmem:[#allocation30 + $0x640] ss:$8 sps:$4 sm:$0xff]  }
 0xfac   : > { %12835 = vmatpush1.bf16.msra.mxu0 %v16977_v63  ;;  %12866 = vmatprep.mubr.bf16.mxu0 %v11269_v1  ;;  %v17034_v63 = vld [vmem:[#allocation30 + $0x630] ss:$8 sps:$4 sm:$0xff]   ;;  %v17039_v1 = vld [vmem:[#allocation30 + $0x644] ss:$8 sps:$4 sm:$0xff]  }
 0xfad   : > { %12836 = vmatprep.subr.bf16.mxu0 %v16982_v36  ;;  %v17042_v36 = vld [vmem:[#allocation30 + $0x654] ss:$8 sps:$4 sm:$0xff]  }
 0xfb0   : > { %12837 = vmatpush1.bf16.msra.mxu0 %v16980_v9  ;;  %v17040_v9 = vld [vmem:[#allocation30 + $0x650] ss:$8 sps:$4 sm:$0xff]  }
 0xfb1   : > { %12838 = vmatprep.subr.bf16.mxu0 %v16985_v46  ;;  %v17045_v46 = vld [vmem:[#allocation30 + $0x664] ss:$8 sps:$4 sm:$0xff]  }
 0xfb4   : > { %12839 = vmatpush1.bf16.msra.mxu0 %v16983_v58  ;;  %v17043_v58 = vld [vmem:[#allocation30 + $0x660] ss:$8 sps:$4 sm:$0xff]  }
 0xfb5   : > { %12840 = vmatprep.subr.bf16.mxu0 %v16988_v37  ;;  %v17048_v37 = vld [vmem:[#allocation30 + $0x674] ss:$8 sps:$4 sm:$0xff]  }
 0xfb8   : > { %12841 = vmatpush1.bf16.msra.mxu0 %v16986_v49  ;;  %v17046_v49 = vld [vmem:[#allocation30 + $0x670] ss:$8 sps:$4 sm:$0xff]  }
 0xfb9   : > { %12842 = vmatprep.subr.bf16.mxu0 %v16991_v25  ;;  %v17051_v25 = vld [vmem:[#allocation30 + $0x684] ss:$8 sps:$4 sm:$0xff]  }
 0xfba   : > { %v20052_v27 = vpop.f32.mrb[76].mxu1 }
 0xfbb   : > { %v20054_v21 = vpop.f32.mrb[77].mxu1 }
 0xfbc   : > { %12843 = vmatpush1.bf16.msra.mxu0 %v16989_v26  ;;  %v12667_v52 = vpop.f32.mrb[78].mxu1  ;;  %v17049_v26 = vld [vmem:[#allocation30 + $0x680] ss:$8 sps:$4 sm:$0xff]  }
 0xfbd   : > { %12844 = vmatprep.subr.bf16.mxu0 %v16994_v34  ;;  %v12668_v38 = vpop.f32.mrb[79].mxu1  ;;  %v17054_v34 = vld [vmem:[#allocation30 + $0x694] ss:$8 sps:$4 sm:$0xff]   ;;  %v17057_v52 = vld [vmem:[#allocation30 + $0x6a4] ss:$8 sps:$4 sm:$0xff]  }
 0xfbe   : > { %v17060_v38 = vld [vmem:[#allocation30 + $0x6b4] ss:$8 sps:$4 sm:$0xff]  }
 0xfc0   : > { %12845 = vmatpush1.bf16.msra.mxu0 %v16992_v11  ;;  %v17052_v11 = vld [vmem:[#allocation30 + $0x690] ss:$8 sps:$4 sm:$0xff]  }
 0xfc1   : > { %12846 = vmatprep.subr.bf16.mxu0 %v16997_v28  ;;  %v17055_v28 = vld [vmem:[#allocation30 + $0x6a0] ss:$8 sps:$4 sm:$0xff]  }
 0xfc4   : > { %12847 = vmatpush1.bf16.msra.mxu0 %v16995_v59  ;;  %v17058_v59 = vld [vmem:[#allocation30 + $0x6b0] ss:$8 sps:$4 sm:$0xff]  }
 0xfc5   : > { %12848 = vmatprep.subr.bf16.mxu0 %v17000_v47  ;;  %v17063_v47 = vld [vmem:[#allocation30 + $0x6c4] ss:$8 sps:$4 sm:$0xff]  }
 0xfc8   : > { %12849 = vmatpush1.bf16.msra.mxu0 %v16998_v31  ;;  %v17061_v31 = vld [vmem:[#allocation30 + $0x6c0] ss:$8 sps:$4 sm:$0xff]  }
 0xfc9   : > { %12850 = vmatprep.subr.bf16.mxu0 %v17003_v56  ;;  %v17066_v56 = vld [vmem:[#allocation30 + $0x6d4] ss:$8 sps:$4 sm:$0xff]  }
 0xfcc   : > { %12851 = vmatpush1.bf16.msra.mxu0 %v17001_v18  ;;  %v17064_v18 = vld [vmem:[#allocation30 + $0x6d0] ss:$8 sps:$4 sm:$0xff]  }
 0xfcd   : > { %12852 = vmatprep.subr.bf16.mxu0 %v17006_v54  ;;  %v17069_v54 = vld [vmem:[#allocation30 + $0x6e4] ss:$8 sps:$4 sm:$0xff]  }
 0xfd0   : > { %12853 = vmatpush1.bf16.msra.mxu0 %v17004_v16  ;;  %v11226_v16 = vld [vmem:[#allocation14] sm:$0xc0] }
 0xfd1   : > { %12854 = vmatprep.subr.bf16.mxu0 %v17009_v32  ;;  %v11228_v32 = vld [vmem:[#allocation14 + $0x10] sm:$0x3f] }
 0xfd4   : > { %12855 = vmatpush1.bf16.msra.mxu0 %v17007_v8  ;;  %v17067_v8 = vld [vmem:[#allocation30 + $0x6e0] ss:$8 sps:$4 sm:$0xff]  }
 0xfd5   : > { %12856 = vmatprep.subr.bf16.mxu0 %v17012_v0  ;;  %v11234_v0 = vrot.slane %v11226_v16, 6 }
 0xfd8   : > { %12857 = vmatpush1.bf16.msra.mxu0 %v17010_v5  ;;  %v11235_v5 = vrot.slane %v11228_v32, 6  ;;  %v14083_v32 = vld [vmem:[%s20241_s13 + $0x11] ss:$8 sm:$0x3] }
 0xfd9   : > { %12858 = vmatprep.subr.bf16.mxu0 %v17015_v17  ;;  %v17072_v17 = vld [vmem:[#allocation30 + $0x6f4] ss:$8 sps:$4 sm:$0xff]  }
 0xfdb   : > { %v20056_v53 = vpop.f32.mrb[80].mxu1 }
 0xfdc   : > { %12859 = vmatpush1.bf16.msra.mxu0 %v17013_v43  ;;  %v20058_v4 = vpop.f32.mrb[81].mxu1  ;;  %v17070_v43 = vld [vmem:[#allocation30 + $0x6f0] ss:$8 sps:$4 sm:$0xff]  }
 0xfdd   : > { %v13117_v30 = vpop.f32.mrb[82].mxu1  ;;  %12860 = vmatprep.subr.bf16.mxu0 %v17018_v6  ;;  %v11236_v6 = vsel %vm800_vm2, %v11234_v0, %v11235_v5  ;;  %v11506_v0 = vrot.slane %v14083_v32, %v19991_v29 }
 0xfde   : > { %v13118_v51 = vpop.f32.mrb[83].mxu1  ;;  %v13210_v30 = vld [vmem:[%s20347_s15 + $0x88] sm:$0xff] }
 0xfdf   : > { %v13194_v51 = vld [vmem:[%s20347_s15 + $0x8] sm:$0xff] }
 0xfe0   : > { %12861 = vmatpush1.bf16.msra.mxu0 %v17016_v3  ;;  %v11270_v3 = vpack.c.bf16 %v11236_v6, %v11236_v6  ;;  %v15680_v42 = vpack.c.bf16 %v13194_v51, %v13193_v57 }
 0xfe1   : > { %12862 = vmatprep.subr.bf16.mxu0 %v17021_v61  ;;  %v13209_v61 = vld [vmem:[%s20346_s20 + $0x80] sm:$0xff]  ;;  %s616_s20 = sand.u32 1, %s20348_s2  }
 0xfe2   : > { %v15678_v33 = vpack.c.bf16 %v13210_v30, %v13209_v61  ;;  %s617_s19 = scalar_lea.vmem [#allocation31], %s616_s20  ;;  %s13299_s27 = scalar_lea.sflag [#allocation18], %s616_s20 }
 0xfe3   : > { %s13311_s16 = sshll.u32 %s617_s19, 4  ;;  %s20188_s16 = int_to_ptr.vmem [resolvable:$true] %s13311_s16 }
 0xfe4   : > { %12863 = vmatpush1.bf16.msra.mxu0 %v17019_v19  ;;  %15679 = vmatprep.subr.bf16.mxu1 %v15678_v33  ;;  %v13212_v19 = vld [vmem:[%s20347_s15 + $0x98] sm:$0xff]  ;;  %s17563_s17 = scalar_lea.vmem %s20188_s16, 16  ;;  %p17570_p10 = scmp.lt.s32.totalorder %s20188_s16, %s17568_s26 }
 0xfe5   : > { %12864 = vmatprep.subr.bf16.mxu0 %v17024_v41  ;;  %15681 = vmatpush3.bf16.msra.mxu1 %v15680_v42  ;;  %v15682_v45 = vpack.c.bf16 %v13212_v19, %v13211_v50  ;;  %v13196_v41 = vld [vmem:[%s20347_s15 + $0x18] sm:$0xff]  ;;  %p17564_p6 = scmp.ne.s32.totalorder %s20188_s16, %s17563_s17  ;;  %p17571_p2 = scmp.lt.s32.totalorder %s17569_s12, %s17563_s17 }
 0xfe6   : > { %v15684_v55 = vpack.c.bf16 %v13196_v41, %v13195_v20 }
 0xfe7   : > { %15683 = vmatprep.subr.bf16.mxu1 %v15682_v45  ;;  %p17565_p5 = pnand %p17564_p6, %p20352_p9  ;;  %p17572_p3 = por %p17571_p2, %p17570_p10 }
 0xfe8   : > { %12865 = vmatpush1.bf16.msra.mxu0 %v17022_v12  ;;  %v13214_v12 = vld [vmem:[%s20347_s15 + $0xa8] sm:$0xff] }
 0xfe9   : > { %12875 = vmatprep.subr.bf16.mxu0 %v17027_v24  ;;  %15685 = vmatpush3.bf16.msra.mxu1 %v15684_v55  ;;  %v15686_v24 = vpack.c.bf16 %v13214_v12, %v13213_v40  ;;  %p17566_p0 = pneg %p17565_p5 }
 0xfeb   : > { %12867 = vmatmul.mubr.bf16.vlgmr.msra.gmra.mrb[60].mxu0 %v11268_v7  ;;  %v13215_v7 = vld [vmem:[%s20347_s15 + $0xb0] sm:$0xff]  ;;  %15687 = vmatprep.subr.bf16.mxu1 %v15686_v24  ;;  %p17573_p4 = pnand %p17572_p3, %p17566_p0 }
 0xfec   : > { %12876 = vmatpush1.bf16.msra.mxu0 %v17025_v35  ;;  %12907 = vmatprep.mubr.bf16.mxu0 %v11271_v62  ;;  %v13216_v35 = vld [vmem:[%s20347_s15 + $0xb8] sm:$0xff]  ;;  %v15688_v62 = vpack.c.bf16 %v13198_v14, %v13197_v23 }
 0xfed   : > { %12877 = vmatprep.subr.bf16.mxu0 %v17030_v44  ;;  %v15690_v44 = vpack.c.bf16 %v13216_v35, %v13215_v7 }
 0xfee   : > { %15689 = vmatpush3.bf16.msra.mxu1 %v15688_v62 }
 0xfef   : > { %15691 = vmatprep.subr.bf16.mxu1 %v15690_v44 }
 0xff0   : > { %12878 = vmatpush1.bf16.msra.mxu0 %v17028_v48  ;;  %v13199_v48 = vld [vmem:[%s20347_s15 + $0x30] sm:$0xff] }
 0xff1   : > { %12879 = vmatprep.subr.bf16.mxu0 %v17033_v10  ;;  %v13200_v10 = vld [vmem:[%s20347_s15 + $0x38] sm:$0xff] }
 0xff4   : > { %12880 = vmatpush1.bf16.msra.mxu0 %v17031_v13  ;;  %v13217_v13 = vld [vmem:[%s20347_s15 + $0xc0] sm:$0xff] }
 0xff5   : > { %12881 = vmatprep.subr.bf16.mxu0 %v17036_v15  ;;  %v13218_v15 = vld [vmem:[%s20347_s15 + $0xc8] sm:$0xff] }
 0xff8   : > { %12882 = vmatpush1.bf16.msra.mxu0 %v17034_v63  ;;  %v15692_v63 = vpack.c.bf16 %v13200_v10, %v13199_v48 }
 0xff9   : > { %12883 = vmatprep.subr.bf16.mxu0 %v17039_v1  ;;  %v15694_v1 = vpack.c.bf16 %v13218_v15, %v13217_v13 }
 0xffa   : > { %15693 = vmatpush3.bf16.msra.mxu1 %v15692_v63 }
 0xffb   : > { %15695 = vmatprep.subr.bf16.mxu1 %v15694_v1 }
 0xffc   : > { %12884 = vmatpush1.bf16.msra.mxu0 %v17037_v22  ;;  %v13201_v22 = vld [vmem:[%s20347_s15 + $0x40] sm:$0xff] }
 0xffd   : > { %12885 = vmatprep.subr.bf16.mxu0 %v17042_v36  ;;  %v13202_v36 = vld [vmem:[%s20347_s15 + $0x48] sm:$0xff] }
0x1000   : > { %12886 = vmatpush1.bf16.msra.mxu0 %v17040_v9  ;;  %v13219_v9 = vld [vmem:[%s20347_s15 + $0xd0] sm:$0xff] }
0x1001   : > { %12887 = vmatprep.subr.bf16.mxu0 %v17045_v46  ;;  %v13220_v46 = vld [vmem:[%s20347_s15 + $0xd8] sm:$0xff] }
0x1004   : > { %12888 = vmatpush1.bf16.msra.mxu0 %v17043_v58  ;;  %v15696_v58 = vpack.c.bf16 %v13202_v36, %v13201_v22 }
0x1005   : > { %12889 = vmatprep.subr.bf16.mxu0 %v17048_v37  ;;  %v15698_v37 = vpack.c.bf16 %v13220_v46, %v13219_v9 }
0x1006   : > { %15697 = vmatpush3.bf16.msra.mxu1 %v15696_v58 }
0x1007   : > { %15699 = vmatprep.subr.bf16.mxu1 %v15698_v37 }
0x1008   : > { %12890 = vmatpush1.bf16.msra.mxu0 %v17046_v49  ;;  %v13203_v49 = vld [vmem:[%s20347_s15 + $0x50] sm:$0xff] }
0x1009   : > { %12891 = vmatprep.subr.bf16.mxu0 %v17051_v25  ;;  %v13204_v25 = vld [vmem:[%s20347_s15 + $0x58] sm:$0xff] }
0x100c   : > { %12892 = vmatpush1.bf16.msra.mxu0 %v17049_v26  ;;  %v13221_v26 = vld [vmem:[%s20347_s15 + $0xe0] sm:$0xff] }
0x100d   : > { %12893 = vmatprep.subr.bf16.mxu0 %v17054_v34  ;;  %v13222_v34 = vld [vmem:[%s20347_s15 + $0xe8] sm:$0xff] }
0x1010   : > { %12894 = vmatpush1.bf16.msra.mxu0 %v17052_v11  ;;  %v15700_v11 = vpack.c.bf16 %v13204_v25, %v13203_v49 }
0x1011   : > { %12895 = vmatprep.subr.bf16.mxu0 %v17057_v52  ;;  %v15702_v52 = vpack.c.bf16 %v13222_v34, %v13221_v26 }
0x1012   : > { %15701 = vmatpush3.bf16.msra.mxu1 %v15700_v11 }
0x1013   : > { %15703 = vmatprep.subr.bf16.mxu1 %v15702_v52  ;;  %v14308_v52 = vld [vmem:[%s20241_s13 + $0x12] ss:$8 sm:$0x3] }
0x1014   : > { %12896 = vmatpush1.bf16.msra.mxu0 %v17055_v28  ;;  %v13205_v28 = vld [vmem:[%s20347_s15 + $0x60] sm:$0xff] }
0x1015   : > { %12897 = vmatprep.subr.bf16.mxu0 %v17060_v38  ;;  %v13206_v38 = vld [vmem:[%s20347_s15 + $0x68] sm:$0xff] }
0x1018   : > { %12898 = vmatpush1.bf16.msra.mxu0 %v17058_v59  ;;  %v13223_v59 = vld [vmem:[%s20347_s15 + $0xf0] sm:$0xff] }
0x1019   : > { %12899 = vmatprep.subr.bf16.mxu0 %v17063_v47  ;;  %v13224_v47 = vld [vmem:[%s20347_s15 + $0xf8] sm:$0xff] }
0x101c   : > { %12900 = vmatpush1.bf16.msra.mxu0 %v17061_v31  ;;  %v15704_v31 = vpack.c.bf16 %v13206_v38, %v13205_v28 }
0x101d   : > { %12901 = vmatprep.subr.bf16.mxu0 %v17066_v56  ;;  %v15706_v56 = vpack.c.bf16 %v13224_v47, %v13223_v59 }
0x101e   : > { %15705 = vmatpush3.bf16.msra.mxu1 %v15704_v31  ;;  %v12992_v31 = vrot.slane %v14308_v52, %v19985_v60 }
0x101f   : > { %15707 = vmatprep.subr.bf16.mxu1 %v15706_v56 }
0x1020   : > { %12902 = vmatpush1.bf16.msra.mxu0 %v17064_v18  ;;  %v13207_v18 = vld [vmem:[%s20347_s15 + $0x70] sm:$0xff] }
0x1021   : > { %12903 = vmatprep.subr.bf16.mxu0 %v17069_v54  ;;  %v13208_v54 = vld [vmem:[%s20347_s15 + $0x78] sm:$0xff] }
0x1022   : > { %v15708_v16 = vpack.c.bf16 %v13208_v54, %v13207_v18  ;;  %v12996_v54 = vrot.slane %v14308_v52, %v19991_v29 }
0x1024   : > { %12904 = vmatpush1.bf16.msra.mxu0 %v17067_v8  ;;  %15709 = vmatpush3.bf16.msra.mxu1 %v15708_v16  ;;  %v11502_v8 = vrot.slane %v14083_v32, %v19985_v60 }
0x1025   : > { %12905 = vmatprep.subr.bf16.mxu0 %v17072_v17  ;;  %v12666_v17 = vadd.f32 %v20054_v21, %v11506_v0 }
0x1026   : > { %v12664_v5 = vadd.f32 %v20052_v27, %v11502_v8 }
0x1028   : > { %12906 = vmatpush1.bf16.msra.mxu0 %v17070_v43 }
0x102b   : > { %12908 = vmatmul.mubr.bf16.vlgmr.msra.gmra.mrb[60].mxu0 %v11270_v3 }
0x10fe   : > { %v12909_v43 = vpop.f32.mrb[60].mxu0 }
0x10ff   : > { %v15727_v6 = vadd.f32 %v12909_v43, %v12664_v5  ;;  %v12911_v3 = vpop.f32.mrb[61].mxu0 }
0x1100   : > { %v15729_v61 = vadd.f32 %v12911_v3, %v12666_v17  ;;  %v12913_v30 = vpop.f32.mrb[62].mxu0  ;;  %v13114_v17 = vadd.f32 %v20056_v53, %v12992_v31  ;;  %v13116_v3 = vadd.f32 %v20058_v4, %v12996_v54 }
0x1101   : > { %v12918_v33 = vmul.f32 0.70710677, %v15727_v6  ;;  %v12914_v57 = vpop.f32.mrb[63].mxu0  ;;  %v12916_v32 = vmul.f32 0.5, %v15727_v6 }
0x1102   : > { %v12919_v51 = vmul.f32 0.70710677, %v15729_v61  ;;  %v12917_v0 = vmul.f32 0.5, %v15729_v61 }
0x1103   : > { %v12924_v42 = vand.u32 2147483647, %v12918_v33  ;;  %vm12920_vm2 = vcmp.ge.f32.partialorder %v12918_v33, 0.0 }
0x1104   : > { %v12925_v50 = vand.u32 2147483647, %v12919_v51  ;;  %vm12921_vm11 = vcmp.ge.f32.partialorder %v12919_v51, 0.0  ;;  %v12922_v59 = vsel %vm12920_vm2, 1.0, %v20329_v39 }
0x1105   : > { %v12926_v19 = vmul.f32 0.3275911, %v12924_v42  ;;  %v12950_v55 = vsub.f32 0.0, %v12924_v42  ;;  %v12923_v18 = vsel %vm12921_vm11, 1.0, %v20329_v39 }
0x1106   : > { %v12927_v45 = vmul.f32 0.3275911, %v12925_v50  ;;  %v12951_v27 = vsub.f32 0.0, %v12925_v50 }
0x1107   : > { %v12928_v20 = vadd.f32 1.0, %v12926_v19  ;;  %v12952_v21 = vmul.f32 %v12950_v55, %v12924_v42 }
0x1108   : > { %v12929_v41 = vadd.f32 1.0, %v12927_v45  ;;  %v12953_v24 = vmul.f32 %v12951_v27, %v12925_v50 }
0x1109   : > { %17289 = vrcp.f32 %v12928_v20  ;;  %v12954_v35 = vmul.f32 1.442695, %v12952_v21 }
0x110a   : > { %17291 = vrcp.f32 %v12929_v41  ;;  %v12956_v48 = vmul.f32 1.442695, %v12953_v24 }
0x110b   : > { %17293 = vpow2.f32 %v12954_v35 }
0x110c   : > { %17295 = vpow2.f32 %v12956_v48 }
0x1113   : > { %v17290_v40 = vpop.eup %17289 }
0x1114   : > { %v17292_v12 = vpop.eup %17291  ;;  %v12932_v23 = vmul.f32 1.0614054, %v17290_v40 }
0x1115   : > { %v12933_v14 = vmul.f32 1.0614054, %v17292_v12  ;;  %v17294_v25 = vpop.eup %17293 }
0x1116   : > { %v12934_v7 = vadd.f32 -1.4531521, %v12932_v23  ;;  %v17296_v34 = vpop.eup %17295 }
0x1117   : > { %v12935_v62 = vadd.f32 -1.4531521, %v12933_v14 }
0x1118   : > { %v12936_v44 = vmul.f32 %v17290_v40, %v12934_v7 }
0x1119   : > { %v12937_v10 = vmul.f32 %v17292_v12, %v12935_v62 }
0x111a   : > { %v12938_v13 = vadd.f32 1.4214138, %v12936_v44 }
0x111b   : > { %v12939_v15 = vadd.f32 1.4214138, %v12937_v10 }
0x111c   : > { %v12940_v63 = vmul.f32 %v17290_v40, %v12938_v13 }
0x111d   : > { %v12941_v1 = vmul.f32 %v17292_v12, %v12939_v15 }
0x111e   : > { %v12942_v22 = vadd.f32 -0.28449672, %v12940_v63 }
0x111f   : > { %v12943_v36 = vadd.f32 -0.28449672, %v12941_v1 }
0x1120   : > { %v12944_v9 = vmul.f32 %v17290_v40, %v12942_v22 }
0x1121   : > { %v12945_v46 = vmul.f32 %v17292_v12, %v12943_v36 }
0x1122   : > { %v12946_v58 = vadd.f32 0.2548296, %v12944_v9 }
0x1123   : > { %v12947_v37 = vadd.f32 0.2548296, %v12945_v46 }
0x1124   : > { %v12948_v49 = vmul.f32 %v17290_v40, %v12946_v58 }
0x1125   : > { %v12949_v26 = vmul.f32 %v17292_v12, %v12947_v37 }
0x1126   : > { %v12958_v11 = vmul.f32 %v17294_v25, %v12948_v49 }
0x1127   : > { %v12959_v28 = vmul.f32 %v17296_v34, %v12949_v26 }
0x1128   : > { %v12960_v38 = vsub.f32 1.0, %v12958_v11 }
0x1129   : > { %v12961_v47 = vsub.f32 1.0, %v12959_v28 }
0x112a   : > { %v12962_v56 = vmul.f32 %v12960_v38, %v12922_v59 }
0x112b   : > { %v12963_v16 = vmul.f32 %v12961_v47, %v12923_v18 }
0x112c   : > { %v12964_v8 = vadd.f32 1.0, %v12962_v56 }
0x112d   : > { %v12965_v5 = vadd.f32 1.0, %v12963_v16 }
0x112e   : > { %v12966_v43 = vmul.f32 %v12964_v8, %v12916_v32 }
0x112f   : > { %v12967_v30 = vmul.f32 %v12965_v5, %v12917_v0 }
0x1130   : > { %v13120_v33 = vadd.f32 %v13114_v17, %v12966_v43 }
0x1131   : > { %v13121_v57 = vadd.f32 %v13116_v3, %v12967_v30 }
0x1132   : > { %v13124_v51 = vmul.f32 0.70710677, %v13120_v33  ;;  %v13122_v38 = vmul.f32 0.5, %v13120_v33 }
0x1133   : > { %v13125_v60 = vmul.f32 0.70710677, %v13121_v57  ;;  %v13123_v47 = vmul.f32 0.5, %v13121_v57 }
0x1134   : > { %v13130_v42 = vand.u32 2147483647, %v13124_v51  ;;  %vm13126_vm12 = vcmp.ge.f32.partialorder %v13124_v51, 0.0 }
0x1135   : > { %v13131_v50 = vand.u32 2147483647, %v13125_v60  ;;  %vm13127_vm13 = vcmp.ge.f32.partialorder %v13125_v60, 0.0  ;;  %v13128_v26 = vsel %vm13126_vm12, 1.0, %v20329_v39 }
0x1136   : > { %v13132_v19 = vmul.f32 0.3275911, %v13130_v42  ;;  %v13156_v6 = vsub.f32 0.0, %v13130_v42  ;;  %v13129_v52 = vsel %vm13127_vm13, 1.0, %v20329_v39 }
0x1137   : > { %v13133_v45 = vmul.f32 0.3275911, %v13131_v50  ;;  %v13157_v61 = vsub.f32 0.0, %v13131_v50 }
0x1138   : > { %v13134_v29 = vadd.f32 1.0, %v13132_v19  ;;  %v13158_v53 = vmul.f32 %v13156_v6, %v13130_v42 }
0x1139   : > { %v13135_v20 = vadd.f32 1.0, %v13133_v45  ;;  %v13159_v4 = vmul.f32 %v13157_v61, %v13131_v50  ;;  %v13225_v50 = vld [vmem:[%s20241_s13 + $0x13] ss:$0 sm:$0xff] }
0x113a   : > { %17297 = vrcp.f32 %v13134_v29  ;;  %v13160_v12 = vmul.f32 1.442695, %v13158_v53 }
0x113b   : > { %17299 = vrcp.f32 %v13135_v20  ;;  %v13162_v14 = vmul.f32 1.442695, %v13159_v4 }
0x113c   : > { %17301 = vpow2.f32 %v13160_v12 }
0x113d   : > { %17303 = vpow2.f32 %v13162_v14 }
0x1144   : > { %v17298_v41 = vpop.eup %17297 }
0x1145   : > { %v17300_v55 = vpop.eup %17299  ;;  %v13138_v27 = vmul.f32 1.0614054, %v17298_v41 }
0x1146   : > { %v13139_v40 = vmul.f32 1.0614054, %v17300_v55  ;;  %v17302_v9 = vpop.eup %17301 }
0x1147   : > { %v13140_v21 = vadd.f32 -1.4531521, %v13138_v27  ;;  %v17304_v58 = vpop.eup %17303 }
0x1148   : > { %v13141_v23 = vadd.f32 -1.4531521, %v13139_v40 }
0x1149   : > { %v13142_v24 = vmul.f32 %v17298_v41, %v13140_v21 }
0x114a   : > { %v13143_v7 = vmul.f32 %v17300_v55, %v13141_v23 }
0x114b   : > { %v13144_v35 = vadd.f32 1.4214138, %v13142_v24 }
0x114c   : > { %v13145_v62 = vadd.f32 1.4214138, %v13143_v7 }
0x114d   : > { %v13146_v44 = vmul.f32 %v17298_v41, %v13144_v35 }
0x114e   : > { %v13147_v48 = vmul.f32 %v17300_v55, %v13145_v62 }
0x114f   : > { %v13148_v10 = vadd.f32 -0.28449672, %v13146_v44 }
0x1150   : > { %v13149_v13 = vadd.f32 -0.28449672, %v13147_v48 }
0x1151   : > { %v13150_v15 = vmul.f32 %v17298_v41, %v13148_v10 }
0x1152   : > { %v13151_v63 = vmul.f32 %v17300_v55, %v13149_v13 }
0x1153   : > { %v13152_v1 = vadd.f32 0.2548296, %v13150_v15 }
0x1154   : > { %v13153_v22 = vadd.f32 0.2548296, %v13151_v63 }
0x1155   : > { %v13154_v36 = vmul.f32 %v17298_v41, %v13152_v1 }
0x1156   : > { %v13155_v46 = vmul.f32 %v17300_v55, %v13153_v22 }
0x1157   : > { %v13164_v37 = vmul.f32 %v17302_v9, %v13154_v36 }
0x1158   : > { %v13165_v49 = vmul.f32 %v17304_v58, %v13155_v46 }
0x1159   : > { %v13166_v25 = vsub.f32 1.0, %v13164_v37 }
0x115a   : > { %v13167_v34 = vsub.f32 1.0, %v13165_v49 }
0x115b   : > { %v13168_v11 = vmul.f32 %v13166_v25, %v13128_v26 }
0x115c   : > { %v13169_v28 = vmul.f32 %v13167_v34, %v13129_v52 }
0x115d   : > { %v13170_v59 = vadd.f32 1.0, %v13168_v11 }
0x115e   : > { %v13171_v31 = vadd.f32 1.0, %v13169_v28 }
0x115f   : > { %v13172_v56 = vmul.f32 %v13170_v59, %v13122_v38 }
0x1160   : > { %v13173_v18 = vmul.f32 %v13171_v31, %v13123_v47 }
0x1161   : > { %v13177_v54 = vsel %vm13176_vm14, %v13172_v56, 0.0 }
0x1162   : > { %v13178_v16 = vsel %vm13176_vm14, %v13173_v18, 0.0  ;;  %v13179_v32 = vrot.slane %v13177_v54, 4 }
0x1163   : > { %v13185_v8 = vrot.slane %v13178_v16, 4 }
0x1164   : > { %v13180_v0 = vadd.f32 %v13179_v32, %v13177_v54 }
0x1165   : > { %v13186_v5 = vadd.f32 %v13185_v8, %v13178_v16 }
0x1166   : > { %v13181_v17 = vrot.slane %v13180_v0, 2 }
0x1167   : > { %v13187_v43 = vrot.slane %v13186_v5, 2 }
0x1168   : > { %v13182_v39 = vadd.f32 %v13181_v17, %v13180_v0 }
0x1169   : > { %v13188_v3 = vadd.f32 %v13187_v43, %v13186_v5 }
0x116a   : > { %v13183_v30 = vrot.slane %v13182_v39, 1 }
0x116b   : > { %v13189_v33 = vrot.slane %v13188_v3, 1 }
0x116c   : > { %v13184_v57 = vadd.f32 %v13183_v30, %v13182_v39 }
0x116d   : > { %v13190_v51 = vadd.f32 %v13189_v33, %v13188_v3 }
0x116e   : > { %v13191_v2 = vmul.f32 0.5, %v13184_v57 }
0x116f   : > { %v13192_v60 = vmul.f32 0.5, %v13190_v51 }
0x1171   : > { %13290 = vmatprep.mubr.f32.mxu1 %v13192_v60 }
0x1172   : > { %13291 = vmatmul.mubr.f32.vlgmr.msra.gmra.mrb[84].mxu1 %v13191_v2 }
0x1245   : > { %v14837_v42 = vpop.f32.mrb[84].mxu1 }
0x1246   : > { %v14838_v19 = vpop.f32.mrb[85].mxu1 }
0x1247   : > { %v14839_v45 = vadd.f32 %v14838_v19, %v14837_v42 }
0x1249   : > { %v13293_v29 = vadd.f32 %v14839_v45, %v13225_v50 }
0x124b   : > { %13297 = vst.msk [vmem:[%s617_s19] sm:$0x1] %vm13296_vm15, %v13293_v29 }
0x124c   : > { %17576 = shalt.err (!%p17573_p4)
}
0x124d   : > { %s17577_s2 = scalar_lea.hbm %s20186_s29, 16  ;;  %s17581_s18 = scalar_lea.hbm %s20351_s24, 32 }
0x124e   : > { %p17578_p12 = scmp.ne.s32.totalorder %s20186_s29, %s17577_s2  ;;  %p17582_p11 = scmp.lt.u32.totalorder %s20186_s29, %s20351_s24 }
0x124f   : > { %p17583_p13 = scmp.lt.u32.totalorder %s17581_s18, %s17577_s2  ;;  %p17585_p6 = scmp.lt.u32.totalorder %s17577_s2, %s20186_s29 }
0x1250   : > { %p17579_p7 = pnand %p17578_p12, %p20352_p9 }
0x1251   : > { %p17584_p1 = por %p17583_p13, %p17582_p11 }
0x1252   : > { %p17580_p8 = pneg %p17579_p7 }
0x1253   : > { %p17586_p5 = por %p17585_p6, %p17584_p1 }
0x1255   : > { %p17587_p0 = pnand %p17586_p5, %p17580_p8 }
0x1257   : > { %17590 = shalt.err (!%p17587_p0)
}
0x1258   : > { %16280 = dma.vmem_to_hbm [thread:$0]  (%p20352_p9), %s20188_s16, 16, %s20186_s29, %s13299_s27  }
0x1259 PF: > { %s20353_s4 = sld [smem:[#allocation41_spill]]  ;;  %s20354_s28 = sld [smem:[#allocation38_spill]] }
0x125a   : > { %s20355_s21 = sld [smem:[#allocation45_spill]] }
0x125f   : > { %p16332_p10 = scmp.ge.s32.totalorder %s20353_s4, 2  ;;  %s13323_s17 = sand.u32 1, %s20354_s28  }
0x1260   : > { %p20356_p2 = scmp.ne.s32.totalorder %s20355_s21, 0  ;;  %s13324_s22 = scalar_lea.sflag [#allocation18], %s13323_s17 }
0x1262   : > { %p16311_p3 = pnand %p16332_p10, %p20356_p2 }
0x1264   : > { %17628 = dma.done.wait (!%p16311_p3), %s13324_s22, 16  }
0x1265   : > { %17630 = vsyncadd (!%p16311_p3), %s13324_s22, 4294967280  ;;  %s20357_s21 = sld [smem:[#allocation42_spill]]  ;;  %s20358_s18 = sld [smem:[#allocation39_spill]] }
0x1266   : > { %s20359_s19 = sld [smem:[#allocation40_spill]]  ;;  %s20360_s20 = sld [smem:[#allocation43_spill]] }
0x126b   : > { %p30_p4 = scmp.ge.s32.totalorder %s20357_s21, 4  }
0x126d   :  { %32 = sbr.rel (!%p30_p4) target bundleno = 14 (0xe), region = 488 }
0x1274   :  { %13328 = vsyncpa [#allocation17], 1 }
0x1275   :  { %13330 = vsyncpa [#allocation17 + $0x1], 1 }
0x1276   :  { %13331 = vsyncpa [#allocation20], 1 }
0x1277   :  { %13332 = vsyncpa [#allocation23], 1 }
0x1278   :  { %13333 = vsyncpa [#allocation26], 1 }
0x1279   :  { %13334 = vsyncpa [#allocation29], 1 }
0x127a   :  { %13335 = vsyncpa [#allocation18], 1 }
0x127b   :  { %13337 = vsyncpa [#allocation18 + $0x1], 1 }

</bundles_post_ra>
